<compile_context>
chip_gen: v7x
topology: tpu7x:2x2x1
jax: 0.10.0
libtpu: 0.0.40
codegen_flags: <defaults>
</compile_context>

<pallas_src>
import functools

import jax
import jax.numpy as jnp
from jax.experimental import pallas as pl
from jax.experimental.pallas import tpu as pltpu

EPS = 1e-5


def _default_vmem_limit():
    """Pipeline VMEM budget: physical capacity minus headroom, 48 MiB fallback."""
    try:
        cap = int(pltpu.get_tpu_info().vmem_capacity_bytes)
        return max(32 * 1024 * 1024, cap - 16 * 1024 * 1024)
    except Exception:   # conservative fallback (safe on v5e/v6e/v7x)
        return 48 * 1024 * 1024


VMEM_LIMIT = _default_vmem_limit()


def _valid_mask(tp, wp8, h_img, w_img):
    """(TP, 1) f32 mask of non-padding pixels, built in-kernel (no HBM buffer).

    Uses f32 divide/floor instead of integer div/mod (plain VPU ops).  Exact
    for the pixel counts involved (<< 2^24)."""
    pix = jax.lax.broadcasted_iota(jnp.int32, (tp, 1), 0).astype(jnp.float32)
    row = jnp.floor(pix / float(wp8))
    col = pix - row * float(wp8)
    valid = ((row >= 1.0) & (row <= float(h_img)) &
             (col >= 1.0) & (col <= float(w_img)))
    return valid.astype(jnp.float32)


# --------------------------------------------------------------------------
# Pass 1: ReLU -> 3x3 conv (4 rolls, 9 bf16 dots) + BN1 sum / sum-of-squares.
# --------------------------------------------------------------------------
def _conv3_stats_kernel(xp_ref, w3_ref, h1_ref, s1_ref, q1_ref, *,
                        wp8, h_img, w_img, n_real, n_inner):
    tp = xp_ref.shape[0]
    xr = jnp.maximum(xp_ref[...], 0.0)                       # ReLU (pre-conv)

    # Shifted views along the flat pixel axis (only 2 XLU rolls here):
    #   x_m1[p] = xr[p - 1]  (tap kw=0),  x_p1[p] = xr[p + 1]  (tap kw=2).
    x_m1 = pltpu.roll(xr, shift=1, axis=0)
    x_p1 = pltpu.roll(xr, shift=tp - 1, axis=0)
    xc_b = xr.astype(jnp.bfloat16)
    xm_b = x_m1.astype(jnp.bfloat16)
    xp_b = x_p1.astype(jnp.bfloat16)

    def row_partial(kh):                                     # sum over kw at fixed kh
        return (jnp.dot(xm_b, w3_ref[3 * kh + 0], preferred_element_type=jnp.float32)
                + jnp.dot(xc_b, w3_ref[3 * kh + 1], preferred_element_type=jnp.float32)
                + jnp.dot(xp_b, w3_ref[3 * kh + 2], preferred_element_type=jnp.float32))

    p0 = row_partial(0)
    p1 = row_partial(1)
    p2 = row_partial(2)
    # Combine rows with 2 sublane-aligned (+-wp8) rolls of the partial sums:
    #   out[p] = p0[p - wp8] + p1[p] + p2[p + wp8]
    # (wrap-around only ever lands on padding pixels; see wrapper assert).
    acc = (p1
           + pltpu.roll(p0, shift=wp8, axis=0)
           + pltpu.roll(p2, shift=tp - wp8, axis=0))

    h1_bf = acc.astype(jnp.bfloat16)
    h1_ref[...] = h1_bf

    # ---- BN1 statistics over valid (non-padding) pixels; f32 accumulation.
    @pl.when(pl.program_id(1) == 0)
    def _():
        s1_ref[...] = jnp.zeros_like(s1_ref)
        q1_ref[...] = jnp.zeros_like(q1_ref)

    img = pl.program_id(0) * n_inner + pl.program_id(1)

    @pl.when(img < n_real)                # skip the batch-padding image, if any
    def _():
        maskf = _valid_mask(tp, wp8, h_img, w_img)
        h = h1_bf.astype(jnp.float32)     # stats of the value actually stored
        hm = h * maskf
        s1_ref[0:1, :] += jnp.sum(hm, axis=0, keepdims=True)
        q1_ref[0:1, :] += jnp.sum(hm * h, axis=0, keepdims=True)


# --------------------------------------------------------------------------
# Pass 2: BN2 sum / sum-of-squares of h2 = relu(bn1(h1)) @ W1.
# --------------------------------------------------------------------------
def _bn2_stats_kernel(h1_ref, sc1_ref, sh1_ref, w1_ref, s2_ref, q2_ref, *,
                      wp8, h_img, w_img, n_real, n_inner):
    tp = h1_ref.shape[0]
    a = jnp.maximum(h1_ref[...].astype(jnp.float32) * sc1_ref[...] + sh1_ref[...],
                    0.0)
    h2 = jnp.dot(a.astype(jnp.bfloat16), w1_ref[...],
                 preferred_element_type=jnp.float32)

    @pl.when(pl.program_id(1) == 0)
    def _():
        s2_ref[...] = jnp.zeros_like(s2_ref)
        q2_ref[...] = jnp.zeros_like(q2_ref)

    img = pl.program_id(0) * n_inner + pl.program_id(1)

    @pl.when(img < n_real)
    def _():
        maskf = _valid_mask(tp, wp8, h_img, w_img)
        hm = h2 * maskf
        s2_ref[0:1, :] += jnp.sum(hm, axis=0, keepdims=True)
        q2_ref[0:1, :] += jnp.sum(hm * h2, axis=0, keepdims=True)


# --------------------------------------------------------------------------
# Pass 3: apply BN1 -> ReLU -> (1x1 conv, BN2 scale folded) -> BN2 shift
#         -> residual add.
# --------------------------------------------------------------------------
def _apply_kernel(xp_ref, h1_ref, sc1_ref, sh1_ref, w1s_ref, sh2_ref, o_ref):
    a = jnp.maximum(h1_ref[...].astype(jnp.float32) * sc1_ref[...] + sh1_ref[...],
                    0.0)
    h2s = jnp.dot(a.astype(jnp.bfloat16), w1s_ref[...],
                  preferred_element_type=jnp.float32)
    o_ref[...] = xp_ref[...] + h2s + sh2_ref[...]


# --------------------------------------------------------------------------
# Wrapper
# --------------------------------------------------------------------------
def residual_forward(x_nchw, w3, w1, g1, b1, g2, b2):
    """x_nchw: (N, C, H, W) f32.  w3: (C, C, 3, 3) OIHW.  w1: (C, C, 1, 1)."""
    N, C, H, W = x_nchw.shape
    Hp = H + 2                                # >= 1 halo/pad row top + bottom
    Wp8 = ((W + 2 + 7) // 8) * 8              # padded width, multiple of 8
    if (Hp * Wp8) % 16:                       # bf16 h1 blocks need 16-row tiles
        Hp += 1
    TP = Hp * Wp8                             # flat pixels per padded image
    M = N * H * W                             # number of valid pixels
    # Roll wrap-around / flat-layout column jumps must only land on padding:
    assert Hp >= H + 2 and Wp8 >= W + 2 and TP % 16 == 0

    NS = 2 if N >= 2 else 1                   # stat shards (megacore on v7x)
    NI = -(-N // NS)                          # images per shard
    Npad = NS * NI

    # --- layout glue (pure JAX): NCHW -> zero-padded flat NHWC ---
    # TODO(synk): accept/emit NHWC (or the padded flat layout) at the op
    # boundary when the surrounding model allows, to drop these HBM round
    # trips (biggest remaining relative cost on v5e).
    x_nhwc = jnp.transpose(x_nchw, (0, 2, 3, 1)).astype(jnp.float32)
    xpad = jnp.pad(x_nhwc, ((0, Npad - N), (1, Hp - H - 1),
                            (1, Wp8 - W - 1), (0, 0)))
    xflat = xpad.reshape(Npad * TP, C)

    # weights: OIHW -> (kh*3+kw, Cin, Cout) and (Cin, Cout); bf16 for the MXU.
    w3f = jnp.transpose(w3, (2, 3, 1, 0)).reshape(9, C, C).astype(jnp.bfloat16)
    w1_f32 = jnp.transpose(w1[:, :, 0, 0], (1, 0)).astype(jnp.float32)
    w1f = w1_f32.astype(jnp.bfloat16)

    # ---------------- pass 1: ReLU -> conv3x3 + BN1 stats ----------------
    kernel1 = functools.partial(_conv3_stats_kernel, wp8=Wp8, h_img=H,
                                w_img=W, n_real=N, n_inner=NI)
    h1, s1, q1 = pl.pallas_call(
        kernel1,
        grid=(NS, NI),
        in_specs=[
            pl.BlockSpec((TP, C), lambda s, i: (s * NI + i, 0)),   # padded x
            pl.BlockSpec((9, C, C), lambda s, i: (0, 0, 0)),       # conv3 w
        ],
        out_specs=[
            pl.BlockSpec((TP, C), lambda s, i: (s * NI + i, 0)),   # h1 (bf16)
            pl.BlockSpec((8, C), lambda s, i: (s, 0)),             # per-shard sum
            pl.BlockSpec((8, C), lambda s, i: (s, 0)),             # per-shard sumsq
        ],
        out_shape=[
            jax.ShapeDtypeStruct((Npad * TP, C), jnp.bfloat16),
            jax.ShapeDtypeStruct((NS * 8, C), jnp.float32),
            jax.ShapeDtypeStruct((NS * 8, C), jnp.float32),
        ],
        compiler_params=pltpu.CompilerParams(
            dimension_semantics=("parallel", "arbitrary"),
            vmem_limit_bytes=VMEM_LIMIT),
    )(xflat, w3f)

    # BN1 affine fold (tiny (C,)-sized math on the host; sums stay f32).
    inv_m = 1.0 / float(M)
    mu1 = jnp.sum(s1, axis=0) * inv_m
    var1 = jnp.maximum(jnp.sum(q1, axis=0) * inv_m - mu1 * mu1, 0.0)
    scale1_v = g1.astype(jnp.float32) * jax.lax.rsqrt(var1 + EPS)
    shift1_v = b1.astype(jnp.float32) - mu1 * scale1_v
    scale1 = scale1_v.reshape(1, C)
    shift1 = shift1_v.reshape(1, C)

    # ---------------- pass 2: BN2 stats ----------------
    kernel2 = functools.partial(_bn2_stats_kernel, wp8=Wp8, h_img=H,
                                w_img=W, n_real=N, n_inner=NI)
    s2, q2 = pl.pallas_call(
        kernel2,
        grid=(NS, NI),
        in_specs=[
            pl.BlockSpec((TP, C), lambda s, i: (s * NI + i, 0)),   # h1 (bf16)
            pl.BlockSpec((1, C), lambda s, i: (0, 0)),             # BN1 scale
            pl.BlockSpec((1, C), lambda s, i: (0, 0)),             # BN1 shift
            pl.BlockSpec((C, C), lambda s, i: (0, 0)),             # W1 (bf16)
        ],
        out_specs=[
            pl.BlockSpec((8, C), lambda s, i: (s, 0)),
            pl.BlockSpec((8, C), lambda s, i: (s, 0)),
        ],
        out_shape=[
            jax.ShapeDtypeStruct((NS * 8, C), jnp.float32),
            jax.ShapeDtypeStruct((NS * 8, C), jnp.float32),
        ],
        compiler_params=pltpu.CompilerParams(
            dimension_semantics=("parallel", "arbitrary"),
            vmem_limit_bytes=VMEM_LIMIT),
    )(h1, scale1, shift1, w1f)

    mu2 = jnp.sum(s2, axis=0) * inv_m
    var2 = jnp.maximum(jnp.sum(q2, axis=0) * inv_m - mu2 * mu2, 0.0)
    scale2_v = g2.astype(jnp.float32) * jax.lax.rsqrt(var2 + EPS)
    shift2_v = b2.astype(jnp.float32) - mu2 * scale2_v
    w1s = (w1_f32 * scale2_v[None, :]).astype(jnp.bfloat16)   # fold BN2 scale
    shift2 = shift2_v.reshape(1, C)

    # ---------------- pass 3: apply + residual ----------------
    out_flat = pl.pallas_call(
        _apply_kernel,
        grid=(N,),
        in_specs=[
            pl.BlockSpec((TP, C), lambda n: (n, 0)),        # padded x (residual)
            pl.BlockSpec((TP, C), lambda n: (n, 0)),        # h1 (bf16)
            pl.BlockSpec((1, C), lambda n: (0, 0)),         # BN1 scale
            pl.BlockSpec((1, C), lambda n: (0, 0)),         # BN1 shift
            pl.BlockSpec((C, C), lambda n: (0, 0)),         # W1 * BN2 scale
            pl.BlockSpec((1, C), lambda n: (0, 0)),         # BN2 shift
        ],
        out_specs=pl.BlockSpec((TP, C), lambda n: (n, 0)),
        out_shape=jax.ShapeDtypeStruct((N * TP, C), jnp.float32),
        compiler_params=pltpu.CompilerParams(
            dimension_semantics=("parallel",),
            vmem_limit_bytes=VMEM_LIMIT),
    )(xflat, h1, scale1, shift1, w1s, shift2)

    # --- layout glue: flat padded -> NCHW (slice away padding) ---
    out = out_flat.reshape(N, Hp, Wp8, C)[:, 1:H + 1, 1:W + 1, :]
    return jnp.transpose(out, (0, 3, 1, 2))


# --------------------------------------------------------------------------
# Pure-JAX reference (training-mode BatchNorm), NCHW.
# --------------------------------------------------------------------------
def residual_ref(x, w3, w1, g1, b1, g2, b2):
    C = x.shape[1]
    h = jax.nn.relu(x)
    h = jax.lax.conv_general_dilated(
        h, w3, (1, 1), ((1, 1), (1, 1)),
        dimension_numbers=('NCHW', 'OIHW', 'NCHW'))
    mu = jnp.mean(h, axis=(0, 2, 3), keepdims=True)
    var = jnp.var(h, axis=(0, 2, 3), keepdims=True)
    h = (h - mu) / jnp.sqrt(var + EPS) * g1.reshape(1, C, 1, 1) + b1.reshape(1, C, 1, 1)
    h = jax.nn.relu(h)
    h = jax.lax.conv_general_dilated(
        h, w1, (1, 1), ((0, 0), (0, 0)),
        dimension_numbers=('NCHW', 'OIHW', 'NCHW'))
    mu = jnp.mean(h, axis=(0, 2, 3), keepdims=True)
    var = jnp.var(h, axis=(0, 2, 3), keepdims=True)
    h = (h - mu) / jnp.sqrt(var + EPS) * g2.reshape(1, C, 1, 1) + b2.reshape(1, C, 1, 1)
    return x + h


if __name__ == "__main__":
    key = jax.random.PRNGKey(0)
    kx, kw3, kw1, kg1, kb1, kg2, kb2 = jax.random.split(key, 7)

    N, C, H, W = 2, 4, 16, 16
    x = jax.random.normal(kx, (N, C, H, W), jnp.float32)

    # deterministic synthetic parameters (shapes from the module __init__)
    w3 = jax.random.normal(kw3, (C, C, 3, 3), jnp.float32) * 0.1   # Conv2d(C,C,3), OIHW
    w1 = jax.random.normal(kw1, (C, C, 1, 1), jnp.float32) * 0.1   # Conv2d(C,C,1)
    g1 = 1.0 + 0.1 * jax.random.normal(kg1, (C,), jnp.float32)     # BN1 gamma
    b1 = 0.1 * jax.random.normal(kb1, (C,), jnp.float32)           # BN1 beta
    g2 = 1.0 + 0.1 * jax.random.normal(kg2, (C,), jnp.float32)     # BN2 gamma
    b2 = 0.1 * jax.random.normal(kb2, (C,), jnp.float32)           # BN2 beta

    out = residual_forward(x, w3, w1, g1, b1, g2, b2)
    out = jax.block_until_ready(out)

    ref = residual_ref(x, w3, w1, g1, b1, g2, b2)
    assert out.shape == (N, C, H, W)

    # bf16 MXU operands + bf16 h1 storage, re-normalized through two
    # batch-norms -> ~1e-2-scale relative error vs the all-f32 reference.
    err = jnp.abs(out - ref)
    err_mean = float(jnp.mean(err))
    err_max = float(jnp.max(err))
    assert err_mean < 3e-2 and err_max < 1e-1, \
        f"mean abs err {err_mean}, max abs err {err_max}"

    print("KERNEL_OK")
</pallas_src>

<mosaic_0001>
module attributes {stable_mosaic.version = 11 : i64} {
  func.func @_conv3_stats_kernel(%arg0: i32, %arg1: i32, %arg2: memref<432x4xf32, #tpu.memory_space<vmem>>, %arg3: memref<9x4x4xbf16, #tpu.memory_space<vmem>>, %arg4: memref<432x4xbf16, #tpu.memory_space<vmem>>, %arg5: memref<8x4xf32, #tpu.memory_space<vmem>>, %arg6: memref<8x4xf32, #tpu.memory_space<vmem>>) attributes {dimension_semantics = [#tpu.dimension_semantics<parallel>, #tpu.dimension_semantics<arbitrary>], iteration_bounds = array<i64: 2, 1>, scalar_prefetch = 0 : i64, scratch_operands = 0 : i64, tpu.core_type = #tpu.core_type<tc>, window_params = [{transform_indices = @transform_0, window_bounds = array<i64: 432, 4>}, {pipeline_mode = #tpu.pipeline_mode<synchronous>, transform_indices = @transform_1, window_bounds = array<i64: 9, 4, 4>}, {transform_indices = @transform_2, window_bounds = array<i64: 432, 4>}, {transform_indices = @transform_3, window_bounds = array<i64: 8, 4>}, {transform_indices = @transform_4, window_bounds = array<i64: 8, 4>}]} {
    %c0 = arith.constant 0 : index
    %c0_0 = arith.constant 0 : index
    %0 = vector.load %arg2[%c0, %c0_0] : memref<432x4xf32, #tpu.memory_space<vmem>>, vector<432x4xf32>
    %cst = arith.constant 0.000000e+00 : f32
    %1 = vector.broadcast %cst : f32 to vector<432x4xf32>
    %2 = arith.maximumf %0, %1 : vector<432x4xf32>
    %c1_i32 = arith.constant 1 : i32
    %3 = tpu.dynamic_rotate %2 by %c1_i32 dim 0 : vector<432x4xf32>, i32 -> vector<432x4xf32>
    %c431_i32 = arith.constant 431 : i32
    %4 = tpu.dynamic_rotate %2 by %c431_i32 dim 0 : vector<432x4xf32>, i32 -> vector<432x4xf32>
    %5 = arith.truncf %2 : vector<432x4xf32> to vector<432x4xbf16>
    %6 = arith.truncf %3 : vector<432x4xf32> to vector<432x4xbf16>
    %7 = arith.truncf %4 : vector<432x4xf32> to vector<432x4xbf16>
    %c0_1 = arith.constant 0 : index
    %c0_2 = arith.constant 0 : index
    %c0_3 = arith.constant 0 : index
    %8 = vector.load %arg3[%c0_1, %c0_2, %c0_3] : memref<9x4x4xbf16, #tpu.memory_space<vmem>>, vector<1x4x4xbf16>
    %9 = vector.shape_cast %8 : vector<1x4x4xbf16> to vector<4x4xbf16>
    %cst_4 = arith.constant dense<0.000000e+00> : vector<432x4xf32>
    %10 = tpu.matmul %6, %9, %cst_4 {dimension_numbers = #tpu.dot_dimension_numbers<[1], [0], [0], [1], [0, 0, 1, 1], [], []>} : vector<432x4xbf16>, vector<4x4xbf16>, vector<432x4xf32> -> vector<432x4xf32>
    %c1 = arith.constant 1 : index
    %c0_5 = arith.constant 0 : index
    %c0_6 = arith.constant 0 : index
    %11 = vector.load %arg3[%c1, %c0_5, %c0_6] : memref<9x4x4xbf16, #tpu.memory_space<vmem>>, vector<1x4x4xbf16>
    %12 = vector.shape_cast %11 : vector<1x4x4xbf16> to vector<4x4xbf16>
    %cst_7 = arith.constant dense<0.000000e+00> : vector<432x4xf32>
    %13 = tpu.matmul %5, %12, %cst_7 {dimension_numbers = #tpu.dot_dimension_numbers<[1], [0], [0], [1], [0, 0, 1, 1], [], []>} : vector<432x4xbf16>, vector<4x4xbf16>, vector<432x4xf32> -> vector<432x4xf32>
    %14 = arith.addf %10, %13 : vector<432x4xf32>
    %c2 = arith.constant 2 : index
    %c0_8 = arith.constant 0 : index
    %c0_9 = arith.constant 0 : index
    %15 = vector.load %arg3[%c2, %c0_8, %c0_9] : memref<9x4x4xbf16, #tpu.memory_space<vmem>>, vector<1x4x4xbf16>
    %16 = vector.shape_cast %15 : vector<1x4x4xbf16> to vector<4x4xbf16>
    %cst_10 = arith.constant dense<0.000000e+00> : vector<432x4xf32>
    %17 = tpu.matmul %7, %16, %cst_10 {dimension_numbers = #tpu.dot_dimension_numbers<[1], [0], [0], [1], [0, 0, 1, 1], [], []>} : vector<432x4xbf16>, vector<4x4xbf16>, vector<432x4xf32> -> vector<432x4xf32>
    %18 = arith.addf %14, %17 : vector<432x4xf32>
    %c3 = arith.constant 3 : index
    %c0_11 = arith.constant 0 : index
    %c0_12 = arith.constant 0 : index
    %19 = vector.load %arg3[%c3, %c0_11, %c0_12] : memref<9x4x4xbf16, #tpu.memory_space<vmem>>, vector<1x4x4xbf16>
    %20 = vector.shape_cast %19 : vector<1x4x4xbf16> to vector<4x4xbf16>
    %cst_13 = arith.constant dense<0.000000e+00> : vector<432x4xf32>
    %21 = tpu.matmul %6, %20, %cst_13 {dimension_numbers = #tpu.dot_dimension_numbers<[1], [0], [0], [1], [0, 0, 1, 1], [], []>} : vector<432x4xbf16>, vector<4x4xbf16>, vector<432x4xf32> -> vector<432x4xf32>
    %c4 = arith.constant 4 : index
    %c0_14 = arith.constant 0 : index
    %c0_15 = arith.constant 0 : index
    %22 = vector.load %arg3[%c4, %c0_14, %c0_15] : memref<9x4x4xbf16, #tpu.memory_space<vmem>>, vector<1x4x4xbf16>
    %23 = vector.shape_cast %22 : vector<1x4x4xbf16> to vector<4x4xbf16>
    %cst_16 = arith.constant dense<0.000000e+00> : vector<432x4xf32>
    %24 = tpu.matmul %5, %23, %cst_16 {dimension_numbers = #tpu.dot_dimension_numbers<[1], [0], [0], [1], [0, 0, 1, 1], [], []>} : vector<432x4xbf16>, vector<4x4xbf16>, vector<432x4xf32> -> vector<432x4xf32>
    %25 = arith.addf %21, %24 : vector<432x4xf32>
    %c5 = arith.constant 5 : index
    %c0_17 = arith.constant 0 : index
    %c0_18 = arith.constant 0 : index
    %26 = vector.load %arg3[%c5, %c0_17, %c0_18] : memref<9x4x4xbf16, #tpu.memory_space<vmem>>, vector<1x4x4xbf16>
    %27 = vector.shape_cast %26 : vector<1x4x4xbf16> to vector<4x4xbf16>
    %cst_19 = arith.constant dense<0.000000e+00> : vector<432x4xf32>
    %28 = tpu.matmul %7, %27, %cst_19 {dimension_numbers = #tpu.dot_dimension_numbers<[1], [0], [0], [1], [0, 0, 1, 1], [], []>} : vector<432x4xbf16>, vector<4x4xbf16>, vector<432x4xf32> -> vector<432x4xf32>
    %29 = arith.addf %25, %28 : vector<432x4xf32>
    %c6 = arith.constant 6 : index
    %c0_20 = arith.constant 0 : index
    %c0_21 = arith.constant 0 : index
    %30 = vector.load %arg3[%c6, %c0_20, %c0_21] : memref<9x4x4xbf16, #tpu.memory_space<vmem>>, vector<1x4x4xbf16>
    %31 = vector.shape_cast %30 : vector<1x4x4xbf16> to vector<4x4xbf16>
    %cst_22 = arith.constant dense<0.000000e+00> : vector<432x4xf32>
    %32 = tpu.matmul %6, %31, %cst_22 {dimension_numbers = #tpu.dot_dimension_numbers<[1], [0], [0], [1], [0, 0, 1, 1], [], []>} : vector<432x4xbf16>, vector<4x4xbf16>, vector<432x4xf32> -> vector<432x4xf32>
    %c7 = arith.constant 7 : index
    %c0_23 = arith.constant 0 : index
    %c0_24 = arith.constant 0 : index
    %33 = vector.load %arg3[%c7, %c0_23, %c0_24] : memref<9x4x4xbf16, #tpu.memory_space<vmem>>, vector<1x4x4xbf16>
    %34 = vector.shape_cast %33 : vector<1x4x4xbf16> to vector<4x4xbf16>
    %cst_25 = arith.constant dense<0.000000e+00> : vector<432x4xf32>
    %35 = tpu.matmul %5, %34, %cst_25 {dimension_numbers = #tpu.dot_dimension_numbers<[1], [0], [0], [1], [0, 0, 1, 1], [], []>} : vector<432x4xbf16>, vector<4x4xbf16>, vector<432x4xf32> -> vector<432x4xf32>
    %36 = arith.addf %32, %35 : vector<432x4xf32>
    %c8 = arith.constant 8 : index
    %c0_26 = arith.constant 0 : index
    %c0_27 = arith.constant 0 : index
    %37 = vector.load %arg3[%c8, %c0_26, %c0_27] : memref<9x4x4xbf16, #tpu.memory_space<vmem>>, vector<1x4x4xbf16>
    %38 = vector.shape_cast %37 : vector<1x4x4xbf16> to vector<4x4xbf16>
    %cst_28 = arith.constant dense<0.000000e+00> : vector<432x4xf32>
    %39 = tpu.matmul %7, %38, %cst_28 {dimension_numbers = #tpu.dot_dimension_numbers<[1], [0], [0], [1], [0, 0, 1, 1], [], []>} : vector<432x4xbf16>, vector<4x4xbf16>, vector<432x4xf32> -> vector<432x4xf32>
    %40 = arith.addf %36, %39 : vector<432x4xf32>
    %c24_i32 = arith.constant 24 : i32
    %41 = tpu.dynamic_rotate %18 by %c24_i32 dim 0 : vector<432x4xf32>, i32 -> vector<432x4xf32>
    %42 = arith.addf %29, %41 : vector<432x4xf32>
    %c408_i32 = arith.constant 408 : i32
    %43 = tpu.dynamic_rotate %40 by %c408_i32 dim 0 : vector<432x4xf32>, i32 -> vector<432x4xf32>
    %44 = arith.addf %42, %43 : vector<432x4xf32>
    %45 = arith.truncf %44 : vector<432x4xf32> to vector<432x4xbf16>
    %c0_29 = arith.constant 0 : index
    %c0_30 = arith.constant 0 : index
    %46 = vector.load %arg4[%c0_29, %c0_30] : memref<432x4xbf16, #tpu.memory_space<vmem>>, vector<432x4xbf16>
    tpu.vector_store %arg4[%c0_29, %c0_30], %45 {strides = array<i32>} : memref<432x4xbf16, #tpu.memory_space<vmem>>, vector<432x4xbf16>,
    %c0_i32 = arith.constant 0 : i32
    %47 = arith.cmpi eq, %arg1, %c0_i32 : i32
    %48 = arith.extui %47 : i1 to i32
    %c0_i32_31 = arith.constant 0 : i32
    %49 = arith.cmpi ne, %48, %c0_i32_31 : i32
    scf.if %49 {
      %cst_34 = arith.constant 0.000000e+00 : f32
      %55 = vector.broadcast %cst_34 : f32 to vector<8x4xf32>
      %c0_35 = arith.constant 0 : index
      %c0_36 = arith.constant 0 : index
      %56 = vector.load %arg5[%c0_35, %c0_36] : memref<8x4xf32, #tpu.memory_space<vmem>>, vector<8x4xf32>
      tpu.vector_store %arg5[%c0_35, %c0_36], %55 {strides = array<i32>} : memref<8x4xf32, #tpu.memory_space<vmem>>, vector<8x4xf32>,
      %cst_37 = arith.constant 0.000000e+00 : f32
      %57 = vector.broadcast %cst_37 : f32 to vector<8x4xf32>
      %c0_38 = arith.constant 0 : index
      %c0_39 = arith.constant 0 : index
      %58 = vector.load %arg6[%c0_38, %c0_39] : memref<8x4xf32, #tpu.memory_space<vmem>>, vector<8x4xf32>
      tpu.vector_store %arg6[%c0_38, %c0_39], %57 {strides = array<i32>} : memref<8x4xf32, #tpu.memory_space<vmem>>, vector<8x4xf32>,
    } else {
    }
    %c1_i32_32 = arith.constant 1 : i32
    %50 = arith.muli %arg0, %c1_i32_32 : i32
    %51 = arith.addi %50, %arg1 : i32
    %c2_i32 = arith.constant 2 : i32
    %52 = arith.cmpi slt, %51, %c2_i32 : i32
    %53 = arith.extui %52 : i1 to i32
    %c0_i32_33 = arith.constant 0 : i32
    %54 = arith.cmpi ne, %53, %c0_i32_33 : i32
    scf.if %54 {
      %55 = tpu.iota {dimensions = array<i32: 0>} : vector<432x1xi32>
      %56 = arith.sitofp %55 : vector<432x1xi32> to vector<432x1xf32>
      %cst_34 = arith.constant 2.400000e+01 : f32
      %57 = vector.broadcast %cst_34 : f32 to vector<432x1xf32>
      %58 = arith.divf %56, %57 : vector<432x1xf32>
      %59 = math.floor %58 : vector<432x1xf32>
      %cst_35 = arith.constant 2.400000e+01 : f32
      %60 = vector.broadcast %cst_35 : f32 to vector<432x1xf32>
      %61 = arith.mulf %59, %60 : vector<432x1xf32>
      %62 = arith.subf %56, %61 : vector<432x1xf32>
      %cst_36 = arith.constant 1.000000e+00 : f32
      %63 = vector.broadcast %cst_36 : f32 to vector<432x1xf32>
      %64 = arith.cmpf oge, %59, %63 : vector<432x1xf32>
      %cst_37 = arith.constant 1.600000e+01 : f32
      %65 = vector.broadcast %cst_37 : f32 to vector<432x1xf32>
      %66 = arith.cmpf ole, %59, %65 : vector<432x1xf32>
      %67 = arith.andi %64, %66 : vector<432x1xi1>
      %cst_38 = arith.constant 1.000000e+00 : f32
      %68 = vector.broadcast %cst_38 : f32 to vector<432x1xf32>
      %69 = arith.cmpf oge, %62, %68 : vector<432x1xf32>
      %70 = arith.andi %67, %69 : vector<432x1xi1>
      %cst_39 = arith.constant 1.600000e+01 : f32
      %71 = vector.broadcast %cst_39 : f32 to vector<432x1xf32>
      %72 = arith.cmpf ole, %62, %71 : vector<432x1xf32>
      %73 = arith.andi %70, %72 : vector<432x1xi1>
      %74 = arith.extui %73 : vector<432x1xi1> to vector<432x1xi32>
      %75 = arith.sitofp %74 : vector<432x1xi32> to vector<432x1xf32>
      %76 = arith.extf %45 : vector<432x4xbf16> to vector<432x4xf32>
      %77 = vector.broadcast %75 : vector<432x1xf32> to vector<432x4xf32>
      %78 = arith.mulf %76, %77 : vector<432x4xf32>
      %c0_40 = arith.constant 0 : index
      %c0_41 = arith.constant 0 : index
      %79 = vector.load %arg5[%c0_40, %c0_41] : memref<8x4xf32, #tpu.memory_space<vmem>>, vector<1x4xf32>
      %cst_42 = arith.constant dense<0.000000e+00> : vector<4xf32>
      %80 = vector.multi_reduction <add>, %78, %cst_42 [0] : vector<432x4xf32> to vector<4xf32>
      %81 = vector.shape_cast %80 : vector<4xf32> to vector<1x4xf32>
      %82 = arith.addf %79, %81 : vector<1x4xf32>
      %c0_43 = arith.constant 0 : index
      %c0_44 = arith.constant 0 : index
      %83 = vector.load %arg5[%c0_43, %c0_44] : memref<8x4xf32, #tpu.memory_space<vmem>>, vector<1x4xf32>
      tpu.vector_store %arg5[%c0_43, %c0_44], %82 {strides = array<i32>} : memref<8x4xf32, #tpu.memory_space<vmem>>, vector<1x4xf32>,
      %c0_45 = arith.constant 0 : index
      %c0_46 = arith.constant 0 : index
      %84 = vector.load %arg6[%c0_45, %c0_46] : memref<8x4xf32, #tpu.memory_space<vmem>>, vector<1x4xf32>
      %85 = arith.mulf %78, %76 : vector<432x4xf32>
      %cst_47 = arith.constant dense<0.000000e+00> : vector<4xf32>
      %86 = vector.multi_reduction <add>, %85, %cst_47 [0] : vector<432x4xf32> to vector<4xf32>
      %87 = vector.shape_cast %86 : vector<4xf32> to vector<1x4xf32>
      %88 = arith.addf %84, %87 : vector<1x4xf32>
      %c0_48 = arith.constant 0 : index
      %c0_49 = arith.constant 0 : index
      %89 = vector.load %arg6[%c0_48, %c0_49] : memref<8x4xf32, #tpu.memory_space<vmem>>, vector<1x4xf32>
      tpu.vector_store %arg6[%c0_48, %c0_49], %88 {strides = array<i32>} : memref<8x4xf32, #tpu.memory_space<vmem>>, vector<1x4xf32>,
    } else {
    }
    return
  }
  func.func @transform_0(%arg0: i32, %arg1: i32) -> (i32, i32) {
    %c1_i32 = arith.constant 1 : i32
    %0 = arith.muli %arg0, %c1_i32 : i32
    %1 = arith.addi %0, %arg1 : i32
    %c0_i32 = arith.constant 0 : i32
    %c0_i32_0 = arith.constant 0 : i32
    return %1, %c0_i32 : i32, i32
  }
  func.func @transform_1(%arg0: i32, %arg1: i32) -> (i32, i32, i32) {
    %c0_i32 = arith.constant 0 : i32
    %c0_i32_0 = arith.constant 0 : i32
    %c0_i32_1 = arith.constant 0 : i32
    %c0_i32_2 = arith.constant 0 : i32
    return %c0_i32, %c0_i32_0, %c0_i32_1 : i32, i32, i32
  }
  func.func @transform_2(%arg0: i32, %arg1: i32) -> (i32, i32) {
    %c1_i32 = arith.constant 1 : i32
    %0 = arith.muli %arg0, %c1_i32 : i32
    %1 = arith.addi %0, %arg1 : i32
    %c0_i32 = arith.constant 0 : i32
    %c0_i32_0 = arith.constant 0 : i32
    return %1, %c0_i32 : i32, i32
  }
  func.func @transform_3(%arg0: i32, %arg1: i32) -> (i32, i32) {
    %c0_i32 = arith.constant 0 : i32
    %c0_i32_0 = arith.constant 0 : i32
    return %arg0, %c0_i32 : i32, i32
  }
  func.func @transform_4(%arg0: i32, %arg1: i32) -> (i32, i32) {
    %c0_i32 = arith.constant 0 : i32
    %c0_i32_0 = arith.constant 0 : i32
    return %arg0, %c0_i32 : i32, i32
  }
}

</mosaic_0001>

<bundles_post_ra>
// kernel: tpu_custom_call.1
= control target key start
LH: loop header
LB: loop body
LE: loop exit
PB: predicated region body
PF: predicated region fallthrough
CT: control target
= control target key end

     0   :  { %s7227_s15 = smov 0   ;;  %s7229_s16 = smov 0   ;;  %s12743_s0 = inlined_call_operand.vmem [shape: f32[864,4], index: 0, kind: input, shape index: {}]   ;;  %s12744_s1 = inlined_call_operand.vmem [shape: bf16[9,4,4], index: 1, kind: input, shape index: {}]   ;;  %s12745_s2 = inlined_call_operand.vmem [shape: bf16[864,4], index: 2, kind: output, shape index: {0}]   ;;  %s12746_s3 = inlined_call_operand.vmem [shape: f32[16,4], index: 3, kind: output, shape index: {1}]   ;;  %s12747_s4 = inlined_call_operand.vmem [shape: f32[16,4], index: 4, kind: output, shape index: {2}]  }
   0x1   :  { %s7231_s17 = smov 0  }
   0x2 LB: > { %s27_s18 = sadd.s32 1, %s7193_s16  ;;  %p5077_p0 = scmp.ge.s32.totalorder %s7197_s17, 1  ;;  %s7197_s17 = sphi %s7231_s17, %s15_s17   ;;  %s7193_s16 = sphi %s7229_s16, %s14684_s16   ;;  %s7189_s15 = sphi %s7227_s15, %s14683_s15  }
   0x3   : > { %p29_p1 = scmp.ge.s32.totalorder %s27_s18, 2  ;;  %p186_p2 = scmp.lt.s32.totalorder %s7197_s17, 3 }
   0x5   : > { %s14686_s18 = smov (%p29_p1, %s27_s18), 0  ;;  %p187_p3 = pnand %p5077_p0, %p186_p2 }
   0x7   : > { %190 = sbr.rel (%p187_p3) target bundleno = 1600 (0x640), region = 28 }
   0xe   : > { %p238_p4 = scmp.lt.s32.totalorder %s7189_s15, 1  ;;  %v5082_v0 = vld [vmem:[%s12744_s1 + $0x2] sm:$0x3]  ;;  %vm741_vm0 = vcmask 1041408   ;;  %v12750_v1 = vmov 0.0   ;;  %s223_s21 = smul.u32 54, %s7189_s15  ;;  %v409_v31 = vlaneseq }
   0xf   : > { %5750 = vmatprep.subr.bf16.mxu0 %v12750_v1  ;;  %6740 = vmatprep.subr.bf16.mxu1 %v12750_v1  ;;  %v743_v2 = vsel %vm741_vm0, %v5082_v0, 0  ;;  %vm7200_vm1 = vmmov 0   ;;  %vm13066_vm2 = vcmask 31744   ;;  %v656_v3 = vld [vmem:[%s12744_s1] sm:$0x3]  ;;  %vm3672_vm5 = vcmask 27648  }
  0x10   : > { %s239_s22 = scalar_select %p238_p4, %s7189_s15, 1  ;;  %5751 = vmatpush3.bf16.msra.mxu0 %v743_v2  ;;  %6741 = vmatpush3.bf16.msra.mxu1 %v743_v2  ;;  %v5166_v11 = vld [vmem:[%s12744_s1 + $0x8] sm:$0x3]  ;;  %v1076_v19 = vsel %vm741_vm0, %v656_v3, 0  ;;  %v7364_v36 = vshrl.u32 %v409_v31, 7 }
  0x11   : > { %5752 = vmatprep.mubr.msk.bf16.mxu0 %vm7200_vm1, %v12750_v1  ;;  %5808 = vmatprep.mubr.msk.bf16.mxu1 %vm7200_vm1, %v12750_v1  ;;  %p224_p5 = scmp.lt.s32.totalorder %s223_s21, 107  ;;  %v1721_v20 = vsel %vm741_vm0, %v5166_v11, 0  ;;  %p5387_p6 = scmp.ge.s32.totalorder %s7189_s15, 2 }
  0x12   : > { %s5080_s23 = sshll.u32 %s239_s22, 3  ;;  %5860 = vmatprep.subr.bf16.mxu0 %v12750_v1  ;;  %6080 = vmatprep.subr.bf16.mxu1 %v12750_v1  ;;  %13119 = vst [vmem:[#allocation8_spill] sm:$0xff] %v7364_v36  ;;  %vm411_vm3 = vcmp.lt.s32.totalorder %v7364_v36, 1  ;;  %vm520_vm4 = vcmp.lt.s32.totalorder %v7364_v36, 7 }
  0x13   : > { %s7265_s26 = scalar_lea.vmem %s12746_s3, %s5080_s23  ;;  %s7270_s29 = scalar_lea.vmem %s12747_s4, %s5080_s23 }
  0x14   : > { %s14688_s21 = smov (!%p224_p5, %s223_s21), 107  ;;  %3731 = vst.msk [vmem:[%s7265_s26] sm:$0xff] %vm13066_vm2, %v12750_v1  ;;  %3732 = vst.msk [vmem:[%s7270_s29] sm:$0xff] %vm13066_vm2, %v12750_v1 }
  0x15   : > { %s5078_s30 = sshll.u32 %s14688_s21, 3  ;;  %s5079_s5 = sshll.u32 %s14688_s21, 2 }
  0x16   : > { %s7284_s7 = scalar_lea.vmem %s12743_s0, %s5078_s30  ;;  %s9465_s8 = scalar_lea.vmem %s12745_s2, %s5079_s5 }
  0x17   : > { %v247_v4 = vld [vmem:[%s7284_s7] sm:$0xff]  ;;  %v248_v5 = vld [vmem:[%s7284_s7 + $0x8] sm:$0xff]  ;;  %v249_v13 = vld [vmem:[%s7284_s7 + $0x10] sm:$0xff] }
  0x18   : > { %v275_v6 = vld [vmem:[%s7284_s7 + $0xe0] sm:$0xff]  ;;  %v7292_v7 = vmax.f32 %v247_v4, 0.0  ;;  %v7294_v8 = vmax.f32 %v248_v5, 0.0  ;;  %v276_v9 = vld [vmem:[%s7284_s7 + $0xe8] sm:$0xff]  ;;  %v250_v14 = vld [vmem:[%s7284_s7 + $0x18] sm:$0xff]  ;;  %v7322_v21 = vmax.f32 %v249_v13, 0.0 }
  0x19   : > { %v7297_v10 = vmax.f32 %v275_v6, 0.0  ;;  %v7302_v12 = vmax.f32 %v276_v9, 0.0  ;;  %v277_v15 = vld [vmem:[%s7284_s7 + $0xf0] sm:$0xff]  ;;  %v278_v16 = vld [vmem:[%s7284_s7 + $0xf8] sm:$0xff]  ;;  %v7324_v22 = vmax.f32 %v250_v14, 0.0  ;;  %v251_v27 = vld [vmem:[%s7284_s7 + $0x20] sm:$0xff] }
  0x1a   : > { %13113 = vst [vmem:[#allocation2_spill] sm:$0xff] %v7292_v7  ;;  %v7310_v17 = vpack.c.bf16 %v7294_v8, %v7292_v7  ;;  %v7326_v23 = vmax.f32 %v277_v15, 0.0  ;;  %v7328_v24 = vmax.f32 %v278_v16, 0.0  ;;  %v252_v28 = vld [vmem:[%s7284_s7 + $0x28] sm:$0xff]  ;;  %v279_v29 = vld [vmem:[%s7284_s7 + $0x100] sm:$0xff]  ;;  %v7352_v32 = vmax.f32 %v251_v27, 0.0 }
  0x1b   : > { %v7314_v18 = vpack.c.bf16 %v7302_v12, %v7297_v10  ;;  %v7338_v25 = vpack.c.bf16 %v7324_v22, %v7322_v21  ;;  %v280_v30 = vld [vmem:[%s7284_s7 + $0x108] sm:$0xff]  ;;  %v7354_v33 = vmax.f32 %v252_v28, 0.0  ;;  %v7356_v34 = vmax.f32 %v279_v29, 0.0  ;;  %v253_v41 = vld [vmem:[%s7284_s7 + $0x30] sm:$0xff]  ;;  %v254_v42 = vld [vmem:[%s7284_s7 + $0x38] sm:$0xff] }
  0x1c   : > { %13114 = vst [vmem:[#allocation3_spill] sm:$0xff] %v7310_v17  ;;  %5753 = vmatmul.mubr.msk.bf16.vlgmr.msra.gmra.mrb[0].mxu0 %vm13066_vm2, %v7310_v17  ;;  %v7342_v26 = vpack.c.bf16 %v7328_v24, %v7326_v23  ;;  %v7358_v35 = vmax.f32 %v280_v30, 0.0  ;;  %v355_v37 = vrot.slane %v7292_v7, 7  ;;  %v356_v38 = vrot.slane %v7294_v8, 7  ;;  %v300_v43 = vld [vmem:[%s7284_s7 + $0x1a8] sm:$0xff]  ;;  %v281_v44 = vld [vmem:[%s7284_s7 + $0x110] sm:$0xff] }
  0x1d   : > { %13115 = vst [vmem:[#allocation4_spill] sm:$0xff] %v7314_v18  ;;  %5809 = vmatmul.mubr.msk.bf16.vlgmr.msra.gmra.mrb[0].mxu1 %vm13066_vm2, %v7314_v18  ;;  %5861 = vmatpush3.bf16.msra.mxu0 %v1076_v19  ;;  %13116 = vst [vmem:[#allocation5_spill] sm:$0xff] %v7338_v25  ;;  %v7370_v39 = vpack.c.bf16 %v7354_v33, %v7352_v32  ;;  %v282_v45 = vld [vmem:[%s7284_s7 + $0x118] sm:$0xff]  ;;  %v7382_v46 = vmax.f32 %v253_v41, 0.0  ;;  %v7384_v47 = vmax.f32 %v254_v42, 0.0  ;;  %v7386_v48 = vmax.f32 %v300_v43, 0.0 }
  0x1e   : > { %6081 = vmatpush3.bf16.msra.mxu1 %v1721_v20  ;;  %5756 = vmatprep.mubr.msk.bf16.mxu0 %vm7200_vm1, %v12750_v1  ;;  %13117 = vst [vmem:[#allocation6_spill] sm:$0xff] %v7342_v26  ;;  %13118 = vst [vmem:[#allocation7_spill] sm:$0xff] %v7354_v33  ;;  %v7374_v40 = vpack.c.bf16 %v7358_v35, %v7356_v34  ;;  %v7392_v49 = vmax.f32 %v281_v44, 0.0  ;;  %v7394_v50 = vmax.f32 %v282_v45, 0.0  ;;  %v357_v52 = vrot.slane %v7322_v21, 7  ;;  %v255_v60 = vld [vmem:[%s7284_s7 + $0x40] sm:$0xff] }
  0x1f   : > { %5812 = vmatprep.mubr.msk.bf16.mxu1 %vm7200_vm1, %v12750_v1  ;;  %6190 = vmatprep.subr.bf16.mxu1 %v12750_v1  ;;  %13120 = vst [vmem:[#allocation9_spill] sm:$0xff] %v7370_v39  ;;  %13122 = vst [vmem:[#allocation11_spill] sm:$0xff] %v7384_v47  ;;  %v464_v51 = vsel %vm411_vm3, %v355_v37, %v356_v38  ;;  %v12748_v53 = vrot.slane %v7386_v48, 7  ;;  %v12749_v54 = vrot.slane %v7324_v22, 7  ;;  %v256_v63 = vld [vmem:[%s7284_s7 + $0x48] sm:$0xff]  ;;  %v283_v0 = vld [vmem:[%s7284_s7 + $0x120] sm:$0xff] }
  0x20   : > { %5970 = vmatprep.subr.bf16.mxu0 %v12750_v1  ;;  %13121 = vst [vmem:[#allocation10_spill] sm:$0xff] %v7374_v40  ;;  %13123 = vst [vmem:[#allocation12_spill] sm:$0xff] %v7386_v48  ;;  %v463_v55 = vsel %vm411_vm3, %v356_v38, %v357_v52  ;;  %v7417_v58 = vpack.c.bf16 %v7384_v47, %v7382_v46  ;;  %v7421_v59 = vpack.c.bf16 %v7394_v50, %v7392_v49  ;;  %v284_v2 = vld [vmem:[%s7284_s7 + $0x128] sm:$0xff]  ;;  %v257_v13 = vld [vmem:[%s7284_s7 + $0x50] sm:$0xff] }
  0x21   : > { %v465_v56 = vsel %vm411_vm3, %v12748_v53, %v355_v37  ;;  %v462_v57 = vsel %vm411_vm3, %v357_v52, %v12749_v54  ;;  %v7435_v3 = vmax.f32 %v255_v60, 0.0  ;;  %v7437_v4 = vmax.f32 %v256_v63, 0.0  ;;  %v258_v14 = vld [vmem:[%s7284_s7 + $0x58] sm:$0xff]  ;;  %v285_v15 = vld [vmem:[%s7284_s7 + $0x130] sm:$0xff]  ;;  %v259_v31 = vld [vmem:[%s7284_s7 + $0x60] sm:$0xff] }
  0x22   : > { %13124 = vst [vmem:[#allocation13_spill] sm:$0xff] %v7417_v58  ;;  %13125 = vst [vmem:[#allocation14_spill] sm:$0xff] %v7421_v59  ;;  %v7424_v61 = vpack.c.bf16 %v464_v51, %v465_v56  ;;  %v7426_v62 = vpack.c.bf16 %v462_v57, %v463_v55  ;;  %v7439_v5 = vmax.f32 %v283_v0, 0.0  ;;  %v7441_v6 = vmax.f32 %v284_v2, 0.0  ;;  %v286_v16 = vld [vmem:[%s7284_s7 + $0x138] sm:$0xff]  ;;  %v260_v37 = vld [vmem:[%s7284_s7 + $0x68] sm:$0xff] }
  0x23   : > { %v7449_v9 = vpack.c.bf16 %v7437_v4, %v7435_v3  ;;  %v7463_v19 = vmax.f32 %v257_v13, 0.0  ;;  %v7465_v20 = vmax.f32 %v258_v14, 0.0  ;;  %v7467_v27 = vmax.f32 %v285_v15, 0.0  ;;  %v287_v38 = vld [vmem:[%s7284_s7 + $0x140] sm:$0xff]  ;;  %v288_v41 = vld [vmem:[%s7284_s7 + $0x148] sm:$0xff]  ;;  %v261_v55 = vld [vmem:[%s7284_s7 + $0x70] sm:$0xff] }
  0x24   : > { %5757 = vmatmul.mubr.msk.bf16.gmra.mrb[4].mxu0 %vm13066_vm2, %v7338_v25  ;;  %13126 = vst [vmem:[#allocation15_spill] sm:$0xff] %v7439_v5  ;;  %13127 = vst [vmem:[#allocation16_spill] sm:$0xff] %v7441_v6  ;;  %v7453_v11 = vpack.c.bf16 %v7441_v6, %v7439_v5  ;;  %v7469_v28 = vmax.f32 %v286_v16, 0.0  ;;  %v7491_v42 = vmax.f32 %v259_v31, 0.0  ;;  %v7493_v43 = vmax.f32 %v260_v37, 0.0  ;;  %v262_v56 = vld [vmem:[%s7284_s7 + $0x78] sm:$0xff] }
  0x25   : > { %5813 = vmatmul.mubr.msk.bf16.gmra.mrb[4].mxu1 %vm13066_vm2, %v7342_v26  ;;  %5760 = vmatprep.mubr.msk.bf16.mxu0 %vm7200_vm1, %v12750_v1  ;;  %13128 = vst [vmem:[#allocation17_spill] sm:$0xff] %v7449_v9  ;;  %13130 = vst [vmem:[#allocation19_spill] sm:$0xff] %v7467_v27  ;;  %v7477_v29 = vpack.c.bf16 %v7465_v20, %v7463_v19  ;;  %v7495_v44 = vmax.f32 %v287_v38, 0.0  ;;  %v7497_v45 = vmax.f32 %v288_v41, 0.0  ;;  %v289_v57 = vld [vmem:[%s7284_s7 + $0x150] sm:$0xff]  ;;  %v290_v60 = vld [vmem:[%s7284_s7 + $0x158] sm:$0xff] }
  0x26   : > { %5816 = vmatprep.mubr.msk.bf16.mxu1 %vm7200_vm1, %v12750_v1  ;;  %13129 = vst [vmem:[#allocation18_spill] sm:$0xff] %v7453_v11  ;;  %13131 = vst [vmem:[#allocation20_spill] sm:$0xff] %v7469_v28  ;;  %v7481_v30 = vpack.c.bf16 %v7469_v28, %v7467_v27  ;;  %v7505_v51 = vpack.c.bf16 %v7493_v43, %v7491_v42  ;;  %v7519_v63 = vmax.f32 %v261_v55, 0.0  ;;  %v7521_v0 = vmax.f32 %v262_v56, 0.0  ;;  %v263_v16 = vld [vmem:[%s7284_s7 + $0x80] sm:$0xff]  ;;  %v264_v31 = vld [vmem:[%s7284_s7 + $0x88] sm:$0xff] }
  0x27   : > { %13132 = vst [vmem:[#allocation21_spill] sm:$0xff] %v7477_v29  ;;  %13134 = vst [vmem:[#allocation23_spill] sm:$0xff] %v7495_v44  ;;  %v7509_v52 = vpack.c.bf16 %v7497_v45, %v7495_v44  ;;  %v7523_v2 = vmax.f32 %v289_v57, 0.0  ;;  %v7525_v13 = vmax.f32 %v290_v60, 0.0  ;;  %v291_v37 = vld [vmem:[%s7284_s7 + $0x160] sm:$0xff]  ;;  %v292_v38 = vld [vmem:[%s7284_s7 + $0x168] sm:$0xff] }
  0x28   : > { %13133 = vst [vmem:[#allocation22_spill] sm:$0xff] %v7481_v30  ;;  %13135 = vst [vmem:[#allocation24_spill] sm:$0xff] %v7497_v45  ;;  %v7533_v14 = vpack.c.bf16 %v7521_v0, %v7519_v63  ;;  %v7547_v41 = vmax.f32 %v263_v16, 0.0  ;;  %v7549_v55 = vmax.f32 %v264_v31, 0.0  ;;  %v7551_v56 = vmax.f32 %v291_v37, 0.0  ;;  %v265_v31 = vld [vmem:[%s7284_s7 + $0x90] sm:$0xff] }
  0x29   : > { %13136 = vst [vmem:[#allocation25_spill] sm:$0xff] %v7505_v51  ;;  %13137 = vst [vmem:[#allocation26_spill] sm:$0xff] %v7509_v52  ;;  %v7537_v15 = vpack.c.bf16 %v7525_v13, %v7523_v2  ;;  %v7553_v57 = vmax.f32 %v292_v38, 0.0  ;;  %v266_v37 = vld [vmem:[%s7284_s7 + $0x98] sm:$0xff]  ;;  %v293_v38 = vld [vmem:[%s7284_s7 + $0x170] sm:$0xff]  ;;  %v7575_v54 = vmax.f32 %v265_v31, 0.0 }
  0x2a   : > { %13138 = vst [vmem:[#allocation27_spill] sm:$0xff] %v7523_v2  ;;  %13139 = vst [vmem:[#allocation28_spill] sm:$0xff] %v7525_v13  ;;  %v7561_v60 = vpack.c.bf16 %v7549_v55, %v7547_v41  ;;  %v294_v53 = vld [vmem:[%s7284_s7 + $0x178] sm:$0xff] }
  0x2b   : > { %13140 = vst [vmem:[#allocation29_spill] sm:$0xff] %v7533_v14  ;;  %13141 = vst [vmem:[#allocation30_spill] sm:$0xff] %v7537_v15  ;;  %v7565_v16 = vpack.c.bf16 %v7553_v57, %v7551_v56 }
  0x2c   : > { %5761 = vmatmul.mubr.msk.bf16.gmra.mrb[8].mxu0 %vm13066_vm2, %v7370_v39  ;;  %13142 = vst [vmem:[#allocation31_spill] sm:$0xff] %v7551_v56  ;;  %13143 = vst [vmem:[#allocation32_spill] sm:$0xff] %v7553_v57  ;;  %v7581_v57 = vmax.f32 %v294_v53, 0.0  ;;  %v13148_v56 = vmov 0.0   ;;  %v268_v53 = vld [vmem:[%s7284_s7 + $0xa8] sm:$0xff] }
  0x2d   : > { %5817 = vmatmul.mubr.msk.bf16.gmra.mrb[8].mxu1 %vm13066_vm2, %v7374_v40  ;;  %5764 = vmatprep.mubr.msk.bf16.mxu0 %vm7200_vm1, %v12750_v1  ;;  %13144 = vst [vmem:[#allocation33_spill] sm:$0xff] %v7561_v60  ;;  %13145 = vst [vmem:[#allocation34_spill] sm:$0xff] %v7565_v16 }
  0x2e   : > { %5820 = vmatprep.mubr.msk.bf16.mxu1 %vm7200_vm1, %v12750_v1  ;;  %13147 = vst [vmem:[#allocation36_spill] sm:$0xff] %v7581_v57 }
  0x34   : > { %5765 = vmatmul.mubr.msk.bf16.gmra.mrb[12].mxu0 %vm13066_vm2, %v7417_v58 }
  0x35   : > { %5821 = vmatmul.mubr.msk.bf16.gmra.mrb[12].mxu1 %vm13066_vm2, %v7421_v59  ;;  %5768 = vmatprep.mubr.msk.bf16.mxu0 %vm7200_vm1, %v12750_v1 }
  0x36   : > { %5824 = vmatprep.mubr.msk.bf16.mxu1 %vm7200_vm1, %v12750_v1 }
  0x3c   : > { %5769 = vmatmul.mubr.msk.bf16.gmra.mrb[16].mxu0 %vm13066_vm2, %v7449_v9 }
  0x3d   : > { %5825 = vmatmul.mubr.msk.bf16.gmra.mrb[16].mxu1 %vm13066_vm2, %v7453_v11  ;;  %5772 = vmatprep.mubr.msk.bf16.mxu0 %vm7200_vm1, %v12750_v1 }
  0x3e   : > { %5828 = vmatprep.mubr.msk.bf16.mxu1 %vm7200_vm1, %v12750_v1 }
  0x44   : > { %5773 = vmatmul.mubr.msk.bf16.gmra.mrb[20].mxu0 %vm13066_vm2, %v7477_v29 }
  0x45   : > { %5829 = vmatmul.mubr.msk.bf16.gmra.mrb[20].mxu1 %vm13066_vm2, %v7481_v30  ;;  %5776 = vmatprep.mubr.msk.bf16.mxu0 %vm7200_vm1, %v12750_v1 }
  0x46   : > { %5832 = vmatprep.mubr.msk.bf16.mxu1 %vm7200_vm1, %v12750_v1 }
  0x4c   : > { %5777 = vmatmul.mubr.msk.bf16.gmra.mrb[24].mxu0 %vm13066_vm2, %v7505_v51 }
  0x4d   : > { %5833 = vmatmul.mubr.msk.bf16.gmra.mrb[24].mxu1 %vm13066_vm2, %v7509_v52  ;;  %5780 = vmatprep.mubr.msk.bf16.mxu0 %vm7200_vm1, %v12750_v1  ;;  %v7605_v52 = vmax.f32 %v268_v53, 0.0  ;;  %v269_v53 = vld [vmem:[%s7284_s7 + $0xb0] sm:$0xff] }
  0x4e   : > { %5836 = vmatprep.mubr.msk.bf16.mxu1 %vm7200_vm1, %v12750_v1  ;;  %v7631_v44 = vmax.f32 %v269_v53, 0.0 }
  0x4f   : > { %13151 = vst [vmem:[#allocation39_spill] sm:$0xff] %v7605_v52 }
  0x54   : > { %5781 = vmatmul.mubr.msk.bf16.gmra.mrb[28].mxu0 %vm13066_vm2, %v7533_v14 }
  0x55   : > { %5837 = vmatmul.mubr.msk.bf16.gmra.mrb[28].mxu1 %vm13066_vm2, %v7537_v15  ;;  %5784 = vmatprep.mubr.msk.bf16.mxu0 %vm7200_vm1, %v12750_v1  ;;  %v7579_v15 = vmax.f32 %v293_v38, 0.0  ;;  %v295_v38 = vld [vmem:[%s7284_s7 + $0x180] sm:$0xff] }
  0x56   : > { %5840 = vmatprep.mubr.msk.bf16.mxu1 %vm7200_vm1, %v12750_v1  ;;  %v7577_v1 = vmax.f32 %v266_v37, 0.0  ;;  %v267_v37 = vld [vmem:[%s7284_s7 + $0xa0] sm:$0xff]  ;;  %v7607_v45 = vmax.f32 %v295_v38, 0.0  ;;  %v297_v38 = vld [vmem:[%s7284_s7 + $0x190] sm:$0xff] }
  0x57   : > { %13146 = vst [vmem:[#allocation35_spill] sm:$0xff] %v7579_v15  ;;  %v7593_v31 = vpack.c.bf16 %v7581_v57, %v7579_v15  ;;  %v7603_v2 = vmax.f32 %v267_v37, 0.0  ;;  %v7635_v28 = vmax.f32 %v297_v38, 0.0  ;;  %v272_v38 = vld [vmem:[%s7284_s7 + $0xc8] sm:$0xff] }
  0x58   : > { %v7589_v13 = vpack.c.bf16 %v7577_v1, %v7575_v54  ;;  %13152 = vst [vmem:[#allocation40_spill] sm:$0xff] %v7607_v45  ;;  %v7660_v27 = vmax.f32 %v272_v38, 0.0 }
  0x59   : > { %13150 = vst [vmem:[#allocation38_spill] sm:$0xff] %v7593_v31  ;;  %v7617_v15 = vpack.c.bf16 %v7605_v52, %v7603_v2  ;;  %13157 = vst [vmem:[#allocation45_spill] sm:$0xff] %v7635_v28 }
  0x5a   : > { %13149 = vst [vmem:[#allocation37_spill] sm:$0xff] %v7589_v13 }
  0x5b   : > { %13154 = vst [vmem:[#allocation42_spill] sm:$0xff] %v7617_v15 }
  0x5c   : > { %5785 = vmatmul.mubr.msk.bf16.gmra.mrb[32].mxu0 %vm13066_vm2, %v7561_v60 }
  0x5d   : > { %5841 = vmatmul.mubr.msk.bf16.gmra.mrb[32].mxu1 %vm13066_vm2, %v7565_v16  ;;  %5788 = vmatprep.mubr.msk.bf16.mxu0 %vm7200_vm1, %v13148_v56  ;;  %v296_v16 = vld [vmem:[%s7284_s7 + $0x188] sm:$0xff] }
  0x5e   : > { %5844 = vmatprep.mubr.msk.bf16.mxu1 %vm7200_vm1, %v13148_v56  ;;  %v7609_v57 = vmax.f32 %v296_v16, 0.0  ;;  %v270_v16 = vld [vmem:[%s7284_s7 + $0xb8] sm:$0xff] }
  0x5f   : > { %v7633_v30 = vmax.f32 %v270_v16, 0.0  ;;  %v271_v16 = vld [vmem:[%s7284_s7 + $0xc0] sm:$0xff] }
  0x60   : > { %13153 = vst [vmem:[#allocation41_spill] sm:$0xff] %v7609_v57  ;;  %v7621_v37 = vpack.c.bf16 %v7609_v57, %v7607_v45 }
  0x61   : > { %13156 = vst [vmem:[#allocation44_spill] sm:$0xff] %v7633_v30  ;;  %v7645_v45 = vpack.c.bf16 %v7633_v30, %v7631_v44 }
  0x62   : > { %13155 = vst [vmem:[#allocation43_spill] sm:$0xff] %v7621_v37 }
  0x63   : > { %13159 = vst [vmem:[#allocation47_spill] sm:$0xff] %v7645_v45 }
  0x64   : > { %5789 = vmatmul.mubr.msk.bf16.gmra.mrb[36].mxu0 %vm13066_vm2, %v7589_v13 }
  0x65   : > { %5845 = vmatmul.mubr.msk.bf16.gmra.mrb[36].mxu1 %vm13066_vm2, %v7593_v31  ;;  %5792 = vmatprep.mubr.msk.bf16.mxu0 %vm7200_vm1, %v13148_v56  ;;  %v298_v31 = vld [vmem:[%s7284_s7 + $0x198] sm:$0xff] }
  0x66   : > { %5848 = vmatprep.mubr.msk.bf16.mxu1 %vm7200_vm1, %v13148_v56  ;;  %v7637_v57 = vmax.f32 %v298_v31, 0.0  ;;  %v299_v31 = vld [vmem:[%s7284_s7 + $0x1a0] sm:$0xff] }
  0x67   : > { %v7662_v11 = vmax.f32 %v299_v31, 0.0 }
  0x68   : > { %13158 = vst [vmem:[#allocation46_spill] sm:$0xff] %v7637_v57  ;;  %v7649_v53 = vpack.c.bf16 %v7637_v57, %v7635_v28 }
  0x69   : > { %13161 = vst [vmem:[#allocation49_spill] sm:$0xff] %v7662_v11  ;;  %v7674_v28 = vpack.c.bf16 %v7386_v48, %v7662_v11  ;;  %v5165_v48 = vld [vmem:[%s12744_s1 + $0x6] sm:$0x3] }
  0x6a   : > { %13160 = vst [vmem:[#allocation48_spill] sm:$0xff] %v7649_v53 }
  0x6b   : > { %13163 = vst [vmem:[#allocation51_spill] sm:$0xff] %v7674_v28 }
  0x6c   : > { %5793 = vmatmul.mubr.msk.bf16.gmra.mrb[40].mxu0 %vm13066_vm2, %v7617_v15 }
  0x6d   : > { %5849 = vmatmul.mubr.msk.bf16.gmra.mrb[40].mxu1 %vm13066_vm2, %v7621_v37  ;;  %5796 = vmatprep.mubr.msk.bf16.mxu0 %vm7200_vm1, %v13148_v56  ;;  %v7658_v37 = vmax.f32 %v271_v16, 0.0  ;;  %v273_v16 = vld [vmem:[%s7284_s7 + $0xd0] sm:$0xff] }
  0x6e   : > { %5852 = vmatprep.mubr.msk.bf16.mxu1 %vm7200_vm1, %v13148_v56  ;;  %v7682_v38 = vmax.f32 %v273_v16, 0.0  ;;  %v360_v16 = vrot.slane %v7354_v33, 7  ;;  %v361_v33 = vrot.slane %v7382_v46, 7 }
  0x6f   : > { %v7670_v57 = vpack.c.bf16 %v7660_v27, %v7658_v37 }
  0x71   : > { %13162 = vst [vmem:[#allocation50_spill] sm:$0xff] %v7670_v57 }
  0x74   : > { %5797 = vmatmul.mubr.msk.bf16.gmra.mrb[44].mxu0 %vm13066_vm2, %v7645_v45 }
  0x75   : > { %5853 = vmatmul.mubr.msk.bf16.gmra.mrb[44].mxu1 %vm13066_vm2, %v7649_v53  ;;  %5800 = vmatprep.mubr.msk.bf16.mxu0 %vm7200_vm1, %v13148_v56  ;;  %v274_v53 = vld [vmem:[%s7284_s7 + $0xd8] sm:$0xff] }
  0x76   : > { %5856 = vmatprep.mubr.msk.bf16.mxu1 %vm7200_vm1, %v13148_v56  ;;  %v7684_v31 = vmax.f32 %v274_v53, 0.0  ;;  %v5137_v53 = vld [vmem:[%s12744_s1 + $0x4] sm:$0x3] }
  0x78   : > { %v7695_v11 = vpack.c.bf16 %v7684_v31, %v7682_v38 }
  0x7a   : > { %13164 = vst [vmem:[#allocation52_spill] sm:$0xff] %v7695_v11 }
  0x7c   : > { %5801 = vmatmul.mubr.msk.bf16.gmra.mrb[48].mxu0 %vm13066_vm2, %v7670_v57 }
  0x7d   : > { %5857 = vmatmul.mubr.msk.bf16.gmra.mrb[48].mxu1 %vm13066_vm2, %v7674_v28  ;;  %5804 = vmatprep.mubr.msk.bf16.mxu0 %vm7200_vm1, %v13148_v56  ;;  %v1973_v28 = vsel %vm741_vm0, %v5165_v48, 0  ;;  %v1411_v48 = vsel %vm741_vm0, %v5137_v53, 0 }
  0x7e   : > { %6082 = vmatprep.mubr.msk.bf16.mxu1 %vm7200_vm1, %v13148_v56 }
  0x84   : > { %5805 = vmatmul.mubr.msk.bf16.gmra.mrb[52].mxu0 %vm13066_vm2, %v7695_v11 }
  0x85   : > { %6083 = vmatmul.mubr.msk.bf16.vlgmr.msra.gmra.mrb[52].mxu1 %vm13066_vm2, %v7310_v17  ;;  %5862 = vmatprep.mubr.msk.bf16.mxu0 %vm7200_vm1, %v13148_v56 }
  0x86   : > { %6191 = vmatpush3.bf16.msra.mxu1 %v1973_v28  ;;  %6086 = vmatprep.mubr.msk.bf16.mxu1 %vm7200_vm1, %v13148_v56  ;;  %v359_v28 = vrot.slane %v7352_v32, 7 }
  0x87   : > { %6300 = vmatprep.subr.bf16.mxu1 %v13148_v56 }
  0x88   : > { %v460_v53 = vsel %vm411_vm3, %v359_v28, %v360_v16 }
  0x8c   : > { %5863 = vmatmul.mubr.msk.bf16.vlgmr.msra.gmra.mrb[0].mxu0 %vm13066_vm2, %v7424_v61 }
  0x8d   : > { %6087 = vmatmul.mubr.msk.bf16.gmra.mrb[56].mxu1 %vm13066_vm2, %v7338_v25  ;;  %5971 = vmatpush3.bf16.msra.mxu0 %v1411_v48  ;;  %v13165_v48 = vrot.slane %v7324_v22, 7 }
  0x8e   : > { %5866 = vmatprep.mubr.msk.bf16.mxu0 %vm7200_vm1, %v13148_v56  ;;  %6090 = vmatprep.mubr.msk.bf16.mxu1 %vm7200_vm1, %v13148_v56 }
  0x8f   : > { %6410 = vmatprep.subr.bf16.mxu0 %v13148_v56  ;;  %v461_v25 = vsel %vm411_vm3, %v13165_v48, %v359_v28  ;;  %v459_v28 = vsel %vm411_vm3, %v360_v16, %v361_v33  ;;  %v363_v48 = vrot.slane %v7435_v3, 7 }
  0x90   : > { %v7736_v17 = vpack.c.bf16 %v460_v53, %v461_v25 }
  0x94   : > { %5867 = vmatmul.mubr.msk.bf16.gmra.mrb[4].mxu0 %vm13066_vm2, %v7426_v62 }
  0x95   : > { %6091 = vmatmul.mubr.msk.bf16.gmra.mrb[60].mxu1 %vm13066_vm2, %v7370_v39  ;;  %5870 = vmatprep.mubr.msk.bf16.mxu0 %vm7200_vm1, %v13148_v56  ;;  %v362_v39 = vrot.slane %v7384_v47, 7  ;;  %v364_v47 = vrot.slane %v7437_v4, 7 }
  0x96   : > { %6094 = vmatprep.mubr.msk.bf16.mxu1 %vm7200_vm1, %v13148_v56 }
  0x97   : > { %v458_v25 = vsel %vm411_vm3, %v361_v33, %v362_v39  ;;  %v456_v33 = vsel %vm411_vm3, %v363_v48, %v364_v47  ;;  %v457_v16 = vsel %vm411_vm3, %v362_v39, %v363_v48 }
  0x98   : > { %v7752_v53 = vpack.c.bf16 %v458_v25, %v459_v28  ;;  %v7768_v25 = vpack.c.bf16 %v456_v33, %v457_v16  ;;  %v365_v28 = vrot.slane %v7463_v19, 7  ;;  %v367_v16 = vrot.slane %v7491_v42, 7 }
  0x9a   : > { %v455_v48 = vsel %vm411_vm3, %v364_v47, %v365_v28 }
  0x9c   : > { %5871 = vmatmul.mubr.msk.bf16.gmra.mrb[8].mxu0 %vm13066_vm2, %v7736_v17 }
  0x9d   : > { %6095 = vmatmul.mubr.msk.bf16.gmra.mrb[64].mxu1 %vm13066_vm2, %v7417_v58  ;;  %5874 = vmatprep.mubr.msk.bf16.mxu0 %vm7200_vm1, %v13148_v56  ;;  %v366_v58 = vrot.slane %v7465_v20, 7 }
  0x9e   : > { %6098 = vmatprep.mubr.msk.bf16.mxu1 %vm7200_vm1, %v13148_v56 }
  0x9f   : > { %v454_v39 = vsel %vm411_vm3, %v365_v28, %v366_v58  ;;  %v453_v28 = vsel %vm411_vm3, %v366_v58, %v367_v16 }
  0xa0   : > { %v7784_v33 = vpack.c.bf16 %v454_v39, %v455_v48  ;;  %v369_v48 = vrot.slane %v7519_v63, 7 }
  0xa4   : > { %5875 = vmatmul.mubr.msk.bf16.gmra.mrb[12].mxu0 %vm13066_vm2, %v7752_v53 }
  0xa5   : > { %6099 = vmatmul.mubr.msk.bf16.gmra.mrb[68].mxu1 %vm13066_vm2, %v7449_v9  ;;  %5878 = vmatprep.mubr.msk.bf16.mxu0 %vm7200_vm1, %v13148_v56  ;;  %v368_v9 = vrot.slane %v7493_v43, 7 }
  0xa6   : > { %6102 = vmatprep.mubr.msk.bf16.mxu1 %vm7200_vm1, %v13148_v56 }
  0xa7   : > { %v452_v47 = vsel %vm411_vm3, %v367_v16, %v368_v9  ;;  %v451_v16 = vsel %vm411_vm3, %v368_v9, %v369_v48 }
  0xa8   : > { %v7800_v39 = vpack.c.bf16 %v452_v47, %v453_v28  ;;  %v371_v28 = vrot.slane %v7547_v41, 7 }
  0xac   : > { %5879 = vmatmul.mubr.msk.bf16.gmra.mrb[16].mxu0 %vm13066_vm2, %v7768_v25 }
  0xad   : > { %6103 = vmatmul.mubr.msk.bf16.gmra.mrb[72].mxu1 %vm13066_vm2, %v7477_v29  ;;  %5882 = vmatprep.mubr.msk.bf16.mxu0 %vm7200_vm1, %v13148_v56  ;;  %v370_v29 = vrot.slane %v7521_v0, 7 }
  0xae   : > { %6106 = vmatprep.mubr.msk.bf16.mxu1 %vm7200_vm1, %v13148_v56 }
  0xaf   : > { %v450_v58 = vsel %vm411_vm3, %v369_v48, %v370_v29  ;;  %v449_v48 = vsel %vm411_vm3, %v370_v29, %v371_v28 }
  0xb0   : > { %v7816_v47 = vpack.c.bf16 %v450_v58, %v451_v16  ;;  %v373_v16 = vrot.slane %v7575_v54, 7 }
  0xb4   : > { %5883 = vmatmul.mubr.msk.bf16.gmra.mrb[20].mxu0 %vm13066_vm2, %v7784_v33 }
  0xb5   : > { %6107 = vmatmul.mubr.msk.bf16.gmra.mrb[76].mxu1 %vm13066_vm2, %v7505_v51  ;;  %5886 = vmatprep.mubr.msk.bf16.mxu0 %vm7200_vm1, %v13148_v56  ;;  %v372_v51 = vrot.slane %v7549_v55, 7 }
  0xb6   : > { %6110 = vmatprep.mubr.msk.bf16.mxu1 %vm7200_vm1, %v13148_v56 }
  0xb7   : > { %v448_v9 = vsel %vm411_vm3, %v371_v28, %v372_v51  ;;  %v447_v28 = vsel %vm411_vm3, %v372_v51, %v373_v16 }
  0xb8   : > { %v7832_v58 = vpack.c.bf16 %v448_v9, %v449_v48  ;;  %v375_v48 = vrot.slane %v7603_v2, 7 }
  0xbc   : > { %5887 = vmatmul.mubr.msk.bf16.gmra.mrb[24].mxu0 %vm13066_vm2, %v7800_v39 }
  0xbd   : > { %6111 = vmatmul.mubr.msk.bf16.gmra.mrb[80].mxu1 %vm13066_vm2, %v7533_v14  ;;  %5890 = vmatprep.mubr.msk.bf16.mxu0 %vm7200_vm1, %v13148_v56  ;;  %v374_v14 = vrot.slane %v7577_v1, 7 }
  0xbe   : > { %6114 = vmatprep.mubr.msk.bf16.mxu1 %vm7200_vm1, %v13148_v56 }
  0xbf   : > { %v446_v29 = vsel %vm411_vm3, %v373_v16, %v374_v14  ;;  %v445_v16 = vsel %vm411_vm3, %v374_v14, %v375_v48 }
  0xc0   : > { %v7848_v9 = vpack.c.bf16 %v446_v29, %v447_v28  ;;  %v377_v28 = vrot.slane %v7631_v44, 7 }
  0xc2   : > { %13166 = vst [vmem:[#allocation53_spill] sm:$0xff] %v7848_v9 }
  0xc4   : > { %5891 = vmatmul.mubr.msk.bf16.gmra.mrb[28].mxu0 %vm13066_vm2, %v7816_v47 }
  0xc5   : > { %6115 = vmatmul.mubr.msk.bf16.gmra.mrb[84].mxu1 %vm13066_vm2, %v7561_v60  ;;  %5894 = vmatprep.mubr.msk.bf16.mxu0 %vm7200_vm1, %v13148_v56  ;;  %v376_v60 = vrot.slane %v7605_v52, 7  ;;  %v467_v52 = vrot.slane %v7294_v8, 1 }
  0xc6   : > { %6118 = vmatprep.mubr.msk.bf16.mxu1 %vm7200_vm1, %v13148_v56 }
  0xc7   : > { %v444_v51 = vsel %vm411_vm3, %v375_v48, %v376_v60  ;;  %v443_v8 = vsel %vm411_vm3, %v376_v60, %v377_v28  ;;  %v380_v60 = vrot.slane %v7660_v27, 7 }
  0xc8   : > { %v7864_v29 = vpack.c.bf16 %v444_v51, %v445_v16 }
  0xca   : > { %13167 = vst [vmem:[#allocation54_spill] sm:$0xff] %v7864_v29 }
  0xcc   : > { %5895 = vmatmul.mubr.msk.bf16.gmra.mrb[32].mxu0 %vm13066_vm2, %v7832_v58 }
  0xcd   : > { %6119 = vmatmul.mubr.msk.bf16.gmra.mrb[88].mxu1 %vm13066_vm2, %v7589_v13  ;;  %5898 = vmatprep.mubr.msk.bf16.mxu0 %vm7200_vm1, %v13148_v56  ;;  %v378_v13 = vrot.slane %v7633_v30, 7  ;;  %v379_v30 = vrot.slane %v7658_v37, 7 }
  0xce   : > { %6122 = vmatprep.mubr.msk.bf16.mxu1 %vm7200_vm1, %v13148_v56 }
  0xcf   : > { %v442_v14 = vsel %vm411_vm3, %v377_v28, %v378_v13  ;;  %v441_v28 = vsel %vm411_vm3, %v378_v13, %v379_v30 }
  0xd0   : > { %v7892_v16 = vpack.c.bf16 %v442_v14, %v443_v8  ;;  %v381_v8 = vrot.slane %v7682_v38, 7 }
  0xd2   : > { %13168 = vst [vmem:[#allocation55_spill] sm:$0xff] %v7892_v16  ;;  %v439_v13 = vsel %vm411_vm3, %v380_v60, %v381_v8 }
  0xd4   : > { %5899 = vmatmul.mubr.msk.bf16.gmra.mrb[36].mxu0 %vm13066_vm2, %v7848_v9  ;;  %v12821_v9 = vrot.slane %v7322_v21, 1 }
  0xd5   : > { %6123 = vmatmul.mubr.msk.bf16.gmra.mrb[92].mxu1 %vm13066_vm2, %v7617_v15  ;;  %5902 = vmatprep.mubr.msk.bf16.mxu0 %vm7200_vm1, %v13148_v56  ;;  %v12820_v15 = vrot.slane %v7292_v7, 1  ;;  %v13185_v7 = vld [vmem:[#allocation18_spill] sm:$0xff] }
  0xd6   : > { %6126 = vmatprep.mubr.msk.bf16.mxu1 %vm7200_vm1, %v13148_v56  ;;  %v572_v48 = vsel %vm520_vm4, %v467_v52, %v12821_v9  ;;  %v383_v9 = vrot.slane %v7297_v10, 7 }
  0xd7   : > { %v573_v51 = vsel %vm520_vm4, %v12820_v15, %v467_v52  ;;  %v440_v52 = vsel %vm411_vm3, %v379_v30, %v380_v60 }
  0xd8   : > { %v7910_v14 = vpack.c.bf16 %v440_v52, %v441_v28 }
  0xda   : > { %13169 = vst [vmem:[#allocation56_spill] sm:$0xff] %v7910_v14 }
  0xdc   : > { %5903 = vmatmul.mubr.msk.bf16.gmra.mrb[40].mxu0 %vm13066_vm2, %v7864_v29 }
  0xdd   : > { %6127 = vmatmul.mubr.msk.bf16.gmra.mrb[96].mxu1 %vm13066_vm2, %v7645_v45  ;;  %5906 = vmatprep.mubr.msk.bf16.mxu0 %vm7200_vm1, %v13148_v56  ;;  %v7894_v45 = vpack.c.bf16 %v572_v48, %v573_v51  ;;  %v382_v48 = vrot.slane %v7684_v31, 7 }
  0xde   : > { %6130 = vmatprep.mubr.msk.bf16.mxu1 %vm7200_vm1, %v13148_v56 }
  0xdf   : > { %v438_v30 = vsel %vm411_vm3, %v381_v8, %v382_v48  ;;  %v437_v8 = vsel %vm411_vm3, %v382_v48, %v383_v9 }
  0xe0   : > { %v7928_v28 = vpack.c.bf16 %v438_v30, %v439_v13 }
  0xe2   : > { %13171 = vst [vmem:[#allocation58_spill] sm:$0xff] %v7928_v28 }
  0xe4   : > { %5907 = vmatmul.mubr.msk.bf16.gmra.mrb[44].mxu0 %vm13066_vm2, %v7892_v16 }
  0xe5   : > { %6131 = vmatmul.mubr.msk.bf16.gmra.mrb[100].mxu1 %vm13066_vm2, %v7670_v57  ;;  %5910 = vmatprep.mubr.msk.bf16.mxu0 %vm7200_vm1, %v13148_v56 }
  0xe6   : > { %6134 = vmatprep.mubr.msk.bf16.mxu1 %vm7200_vm1, %v13148_v56 }
  0xec   : > { %5911 = vmatmul.mubr.msk.bf16.gmra.mrb[48].mxu0 %vm13066_vm2, %v7910_v14 }
  0xed   : > { %6135 = vmatmul.mubr.msk.bf16.gmra.mrb[104].mxu1 %vm13066_vm2, %v7695_v11  ;;  %5914 = vmatprep.mubr.msk.bf16.mxu0 %vm7200_vm1, %v13148_v56  ;;  %v384_v11 = vrot.slane %v7302_v12, 7 }
  0xee   : > { %6138 = vmatprep.mubr.msk.bf16.mxu1 %vm7200_vm1, %v13148_v56 }
  0xef   : > { %v436_v60 = vsel %vm411_vm3, %v383_v9, %v384_v11 }
  0xf0   : > { %v7926_v51 = vpop.f32.mrb[0].mxu1  ;;  %v7948_v13 = vpack.c.bf16 %v436_v60, %v437_v8 }
  0xf1   : > { %13170 = vst [vmem:[#allocation57_spill] sm:$0xff] %v7926_v51  ;;  %v5810_v52 = vpop.f32.mrb[1].mxu1 }
  0xf2   : > { %v7930_v15 = vpop.f32.mrb[2].mxu1  ;;  %13174 = vst [vmem:[#allocation61_spill] sm:$0xff] %v7948_v13 }
  0xf3   : > { %13172 = vst [vmem:[#allocation59_spill] sm:$0xff] %v7930_v15  ;;  %v5811_v57 = vpop.f32.mrb[3].mxu1  ;;  %v386_v15 = vrot.slane %v7328_v24, 7 }
  0xf4   : > { %5915 = vmatmul.mubr.msk.bf16.gmra.mrb[52].mxu0 %vm13066_vm2, %v7928_v28 }
  0xf5   : > { %6139 = vmatmul.mubr.msk.bf16.gmra.mrb[108].mxu1 %vm13066_vm2, %v7314_v18  ;;  %5918 = vmatprep.mubr.msk.bf16.mxu0 %vm7200_vm1, %v13148_v56  ;;  %v385_v18 = vrot.slane %v7326_v23, 7 }
  0xf6   : > { %6142 = vmatprep.mubr.msk.bf16.mxu1 %vm7200_vm1, %v13148_v56 }
  0xf7   : > { %v434_v9 = vsel %vm411_vm3, %v385_v18, %v386_v15  ;;  %v435_v48 = vsel %vm411_vm3, %v384_v11, %v385_v18 }
  0xf8   : > { %v7946_v30 = vpop.f32.mrb[4].mxu1  ;;  %v7968_v8 = vpack.c.bf16 %v434_v9, %v435_v48 }
  0xf9   : > { %13173 = vst [vmem:[#allocation60_spill] sm:$0xff] %v7946_v30  ;;  %v5814_v57 = vpop.f32.mrb[5].mxu1 }
  0xfa   : > { %v7950_v52 = vpop.f32.mrb[6].mxu1  ;;  %13177 = vst [vmem:[#allocation64_spill] sm:$0xff] %v7968_v8 }
  0xfb   : > { %13175 = vst [vmem:[#allocation62_spill] sm:$0xff] %v7950_v52  ;;  %v5815_v51 = vpop.f32.mrb[7].mxu1  ;;  %v388_v52 = vrot.slane %v7358_v35, 7 }
  0xfc   : > { %5919 = vmatmul.mubr.msk.bf16.gmra.mrb[56].mxu0 %vm13066_vm2, %v7948_v13 }
  0xfd   : > { %6143 = vmatmul.mubr.msk.bf16.gmra.mrb[112].mxu1 %vm13066_vm2, %v7342_v26  ;;  %5922 = vmatprep.mubr.msk.bf16.mxu0 %vm7200_vm1, %v13148_v56  ;;  %v387_v26 = vrot.slane %v7356_v34, 7 }
  0xfe   : > { %6146 = vmatprep.mubr.msk.bf16.mxu1 %vm7200_vm1, %v13148_v56 }
  0xff   : > { %v432_v18 = vsel %vm411_vm3, %v387_v26, %v388_v52  ;;  %v433_v11 = vsel %vm411_vm3, %v386_v15, %v387_v26 }
 0x100   : > { %v7966_v60 = vpop.f32.mrb[8].mxu1  ;;  %v7988_v48 = vpack.c.bf16 %v432_v18, %v433_v11 }
 0x101   : > { %13176 = vst [vmem:[#allocation63_spill] sm:$0xff] %v7966_v60  ;;  %v5818_v51 = vpop.f32.mrb[9].mxu1 }
 0x102   : > { %v7970_v57 = vpop.f32.mrb[10].mxu1  ;;  %13180 = vst [vmem:[#allocation67_spill] sm:$0xff] %v7988_v48 }
 0x103   : > { %13178 = vst [vmem:[#allocation65_spill] sm:$0xff] %v7970_v57  ;;  %v5819_v30 = vpop.f32.mrb[11].mxu1  ;;  %v390_v57 = vrot.slane %v7394_v50, 7 }
 0x104   : > { %5923 = vmatmul.mubr.msk.bf16.gmra.mrb[60].mxu0 %vm13066_vm2, %v7968_v8 }
 0x105   : > { %6147 = vmatmul.mubr.msk.bf16.gmra.mrb[116].mxu1 %vm13066_vm2, %v7374_v40  ;;  %5926 = vmatprep.mubr.msk.bf16.mxu0 %vm7200_vm1, %v13148_v56  ;;  %v389_v40 = vrot.slane %v7392_v49, 7 }
 0x106   : > { %6150 = vmatprep.mubr.msk.bf16.mxu1 %vm7200_vm1, %v13148_v56 }
 0x107   : > { %v430_v26 = vsel %vm411_vm3, %v389_v40, %v390_v57  ;;  %v431_v15 = vsel %vm411_vm3, %v388_v52, %v389_v40 }
 0x108   : > { %v7986_v9 = vpop.f32.mrb[12].mxu1  ;;  %v8008_v11 = vpack.c.bf16 %v430_v26, %v431_v15 }
 0x109   : > { %13179 = vst [vmem:[#allocation66_spill] sm:$0xff] %v7986_v9  ;;  %v5822_v30 = vpop.f32.mrb[13].mxu1 }
 0x10a   : > { %v7990_v51 = vpop.f32.mrb[14].mxu1  ;;  %13183 = vst [vmem:[#allocation70_spill] sm:$0xff] %v8008_v11 }
 0x10b   : > { %13181 = vst [vmem:[#allocation68_spill] sm:$0xff] %v7990_v51  ;;  %v5823_v60 = vpop.f32.mrb[15].mxu1  ;;  %v392_v51 = vrot.slane %v7441_v6, 7 }
 0x10c   : > { %5927 = vmatmul.mubr.msk.bf16.gmra.mrb[64].mxu0 %vm13066_vm2, %v7988_v48 }
 0x10d   : > { %6151 = vmatmul.mubr.msk.bf16.gmra.mrb[120].mxu1 %vm13066_vm2, %v7421_v59  ;;  %5930 = vmatprep.mubr.msk.bf16.mxu0 %vm7200_vm1, %v13148_v56  ;;  %v391_v59 = vrot.slane %v7439_v5, 7  ;;  %v13191_v5 = vld [vmem:[#allocation22_spill] sm:$0xff] }
 0x10e   : > { %6154 = vmatprep.mubr.msk.bf16.mxu1 %vm7200_vm1, %v13148_v56 }
 0x10f   : > { %v428_v40 = vsel %vm411_vm3, %v391_v59, %v392_v51  ;;  %v429_v52 = vsel %vm411_vm3, %v390_v57, %v391_v59 }
 0x110   : > { %v8006_v18 = vpop.f32.mrb[16].mxu1  ;;  %v8028_v15 = vpack.c.bf16 %v428_v40, %v429_v52 }
 0x111   : > { %13182 = vst [vmem:[#allocation69_spill] sm:$0xff] %v8006_v18  ;;  %v5826_v60 = vpop.f32.mrb[17].mxu1  ;;  %v13190_v18 = vld [vmem:[#allocation20_spill] sm:$0xff] }
 0x112   : > { %v8010_v30 = vpop.f32.mrb[18].mxu1  ;;  %13187 = vst [vmem:[#allocation73_spill] sm:$0xff] %v8028_v15  ;;  %v394_v6 = vrot.slane %v13190_v18, 7 }
 0x113   : > { %13184 = vst [vmem:[#allocation71_spill] sm:$0xff] %v8010_v30  ;;  %v5827_v9 = vpop.f32.mrb[19].mxu1 }
 0x114   : > { %5931 = vmatmul.mubr.msk.bf16.gmra.mrb[68].mxu0 %vm13066_vm2, %v8008_v11 }
 0x115   : > { %6155 = vmatmul.mubr.msk.bf16.gmra.mrb[124].mxu1 %vm13066_vm2, %v13185_v7  ;;  %5934 = vmatprep.mubr.msk.bf16.mxu0 %vm7200_vm1, %v13148_v56  ;;  %v13189_v7 = vld [vmem:[#allocation19_spill] sm:$0xff] }
 0x116   : > { %6158 = vmatprep.mubr.msk.bf16.mxu1 %vm7200_vm1, %v13148_v56  ;;  %v393_v30 = vrot.slane %v13189_v7, 7  ;;  %v13197_v7 = vld [vmem:[#allocation26_spill] sm:$0xff] }
 0x118   : > { %v8026_v26 = vpop.f32.mrb[20].mxu1  ;;  %v426_v59 = vsel %vm411_vm3, %v393_v30, %v394_v6  ;;  %v427_v57 = vsel %vm411_vm3, %v392_v51, %v393_v30 }
 0x119   : > { %13186 = vst [vmem:[#allocation72_spill] sm:$0xff] %v8026_v26  ;;  %v5830_v9 = vpop.f32.mrb[21].mxu1  ;;  %v8048_v52 = vpack.c.bf16 %v426_v59, %v427_v57  ;;  %v13196_v26 = vld [vmem:[#allocation24_spill] sm:$0xff] }
 0x11a   : > { %v8030_v60 = vpop.f32.mrb[22].mxu1  ;;  %v396_v18 = vrot.slane %v13196_v26, 7 }
 0x11b   : > { %13188 = vst [vmem:[#allocation74_spill] sm:$0xff] %v8030_v60  ;;  %v5831_v11 = vpop.f32.mrb[23].mxu1  ;;  %13193 = vst [vmem:[#allocation76_spill] sm:$0xff] %v8048_v52 }
 0x11c   : > { %5935 = vmatmul.mubr.msk.bf16.gmra.mrb[72].mxu0 %vm13066_vm2, %v8028_v15 }
 0x11d   : > { %6159 = vmatmul.mubr.msk.bf16.gmra.mrb[128].mxu1 %vm13066_vm2, %v13191_v5  ;;  %5938 = vmatprep.mubr.msk.bf16.mxu0 %vm7200_vm1, %v13148_v56  ;;  %v13195_v5 = vld [vmem:[#allocation23_spill] sm:$0xff] }
 0x11e   : > { %6162 = vmatprep.mubr.msk.bf16.mxu1 %vm7200_vm1, %v13148_v56  ;;  %v395_v60 = vrot.slane %v13195_v5, 7  ;;  %v13203_v5 = vld [vmem:[#allocation30_spill] sm:$0xff] }
 0x120   : > { %v8046_v40 = vpop.f32.mrb[24].mxu1  ;;  %v424_v51 = vsel %vm411_vm3, %v395_v60, %v396_v18  ;;  %v425_v30 = vsel %vm411_vm3, %v394_v6, %v395_v60 }
 0x121   : > { %13192 = vst [vmem:[#allocation75_spill] sm:$0xff] %v8046_v40  ;;  %v5834_v11 = vpop.f32.mrb[25].mxu1  ;;  %v8068_v57 = vpack.c.bf16 %v424_v51, %v425_v30  ;;  %v13202_v40 = vld [vmem:[#allocation28_spill] sm:$0xff] }
 0x122   : > { %v8050_v9 = vpop.f32.mrb[26].mxu1  ;;  %v398_v26 = vrot.slane %v13202_v40, 7 }
 0x123   : > { %13194 = vst [vmem:[#allocation77_spill] sm:$0xff] %v8050_v9  ;;  %v5835_v15 = vpop.f32.mrb[27].mxu1  ;;  %13199 = vst [vmem:[#allocation79_spill] sm:$0xff] %v8068_v57 }
 0x124   : > { %5939 = vmatmul.mubr.msk.bf16.gmra.mrb[76].mxu0 %vm13066_vm2, %v8048_v52 }
 0x125   : > { %6163 = vmatmul.mubr.msk.bf16.gmra.mrb[132].mxu1 %vm13066_vm2, %v13197_v7  ;;  %5942 = vmatprep.mubr.msk.bf16.mxu0 %vm7200_vm1, %v13148_v56  ;;  %v13201_v7 = vld [vmem:[#allocation27_spill] sm:$0xff] }
 0x126   : > { %6166 = vmatprep.mubr.msk.bf16.mxu1 %vm7200_vm1, %v13148_v56  ;;  %v397_v9 = vrot.slane %v13201_v7, 7  ;;  %v13209_v7 = vld [vmem:[#allocation34_spill] sm:$0xff] }
 0x128   : > { %v8066_v59 = vpop.f32.mrb[28].mxu1  ;;  %v422_v6 = vsel %vm411_vm3, %v397_v9, %v398_v26  ;;  %v423_v60 = vsel %vm411_vm3, %v396_v18, %v397_v9 }
 0x129   : > { %13198 = vst [vmem:[#allocation78_spill] sm:$0xff] %v8066_v59  ;;  %v5838_v15 = vpop.f32.mrb[29].mxu1  ;;  %v8088_v30 = vpack.c.bf16 %v422_v6, %v423_v60  ;;  %v13208_v59 = vld [vmem:[#allocation32_spill] sm:$0xff] }
 0x12a   : > { %v8070_v11 = vpop.f32.mrb[30].mxu1  ;;  %v400_v40 = vrot.slane %v13208_v59, 7 }
 0x12b   : > { %13200 = vst [vmem:[#allocation80_spill] sm:$0xff] %v8070_v11  ;;  %v5839_v52 = vpop.f32.mrb[31].mxu1  ;;  %13205 = vst [vmem:[#allocation82_spill] sm:$0xff] %v8088_v30 }
 0x12c   : > { %5943 = vmatmul.mubr.msk.bf16.gmra.mrb[80].mxu0 %vm13066_vm2, %v8068_v57 }
 0x12d   : > { %6167 = vmatmul.mubr.msk.bf16.gmra.mrb[136].mxu1 %vm13066_vm2, %v13203_v5  ;;  %5946 = vmatprep.mubr.msk.bf16.mxu0 %vm7200_vm1, %v13148_v56  ;;  %v13207_v5 = vld [vmem:[#allocation31_spill] sm:$0xff] }
 0x12e   : > { %6170 = vmatprep.mubr.msk.bf16.mxu1 %vm7200_vm1, %v13148_v56  ;;  %v399_v11 = vrot.slane %v13207_v5, 7  ;;  %v13215_v5 = vld [vmem:[#allocation38_spill] sm:$0xff] }
 0x130   : > { %v8086_v51 = vpop.f32.mrb[32].mxu1  ;;  %v420_v18 = vsel %vm411_vm3, %v399_v11, %v400_v40  ;;  %v421_v9 = vsel %vm411_vm3, %v398_v26, %v399_v11 }
 0x131   : > { %13204 = vst [vmem:[#allocation81_spill] sm:$0xff] %v8086_v51  ;;  %v5842_v52 = vpop.f32.mrb[33].mxu1  ;;  %v8108_v60 = vpack.c.bf16 %v420_v18, %v421_v9  ;;  %v13214_v51 = vld [vmem:[#allocation36_spill] sm:$0xff] }
 0x132   : > { %v8090_v15 = vpop.f32.mrb[34].mxu1  ;;  %v402_v59 = vrot.slane %v13214_v51, 7 }
 0x133   : > { %13206 = vst [vmem:[#allocation83_spill] sm:$0xff] %v8090_v15  ;;  %v5843_v57 = vpop.f32.mrb[35].mxu1  ;;  %13211 = vst [vmem:[#allocation85_spill] sm:$0xff] %v8108_v60 }
 0x134   : > { %5947 = vmatmul.mubr.msk.bf16.gmra.mrb[84].mxu0 %vm13066_vm2, %v8088_v30 }
 0x135   : > { %6171 = vmatmul.mubr.msk.bf16.gmra.mrb[140].mxu1 %vm13066_vm2, %v13209_v7  ;;  %5950 = vmatprep.mubr.msk.bf16.mxu0 %vm7200_vm1, %v13148_v56  ;;  %v13213_v7 = vld [vmem:[#allocation35_spill] sm:$0xff] }
 0x136   : > { %6174 = vmatprep.mubr.msk.bf16.mxu1 %vm7200_vm1, %v13148_v56  ;;  %v401_v15 = vrot.slane %v13213_v7, 7  ;;  %v13221_v7 = vld [vmem:[#allocation43_spill] sm:$0xff] }
 0x138   : > { %v8106_v6 = vpop.f32.mrb[36].mxu1  ;;  %v418_v26 = vsel %vm411_vm3, %v401_v15, %v402_v59  ;;  %v419_v11 = vsel %vm411_vm3, %v400_v40, %v401_v15 }
 0x139   : > { %13210 = vst [vmem:[#allocation84_spill] sm:$0xff] %v8106_v6  ;;  %v5846_v57 = vpop.f32.mrb[37].mxu1  ;;  %v8128_v9 = vpack.c.bf16 %v418_v26, %v419_v11  ;;  %v13220_v6 = vld [vmem:[#allocation41_spill] sm:$0xff] }
 0x13a   : > { %v8110_v52 = vpop.f32.mrb[38].mxu1  ;;  %v404_v51 = vrot.slane %v13220_v6, 7 }
 0x13b   : > { %13212 = vst [vmem:[#allocation86_spill] sm:$0xff] %v8110_v52  ;;  %v5847_v30 = vpop.f32.mrb[39].mxu1  ;;  %13217 = vst [vmem:[#allocation88_spill] sm:$0xff] %v8128_v9 }
 0x13c   : > { %5951 = vmatmul.mubr.msk.bf16.gmra.mrb[88].mxu0 %vm13066_vm2, %v8108_v60 }
 0x13d   : > { %6175 = vmatmul.mubr.msk.bf16.gmra.mrb[144].mxu1 %vm13066_vm2, %v13215_v5  ;;  %5954 = vmatprep.mubr.msk.bf16.mxu0 %vm7200_vm1, %v13148_v56  ;;  %v13219_v5 = vld [vmem:[#allocation40_spill] sm:$0xff] }
 0x13e   : > { %6178 = vmatprep.mubr.msk.bf16.mxu1 %vm7200_vm1, %v13148_v56  ;;  %v403_v52 = vrot.slane %v13219_v5, 7  ;;  %v13227_v5 = vld [vmem:[#allocation48_spill] sm:$0xff] }
 0x140   : > { %v8126_v18 = vpop.f32.mrb[40].mxu1  ;;  %v416_v40 = vsel %vm411_vm3, %v403_v52, %v404_v51  ;;  %v417_v15 = vsel %vm411_vm3, %v402_v59, %v403_v52 }
 0x141   : > { %13216 = vst [vmem:[#allocation87_spill] sm:$0xff] %v8126_v18  ;;  %v5850_v30 = vpop.f32.mrb[41].mxu1  ;;  %v8148_v11 = vpack.c.bf16 %v416_v40, %v417_v15  ;;  %v13226_v18 = vld [vmem:[#allocation46_spill] sm:$0xff] }
 0x142   : > { %v8130_v57 = vpop.f32.mrb[42].mxu1  ;;  %v406_v6 = vrot.slane %v13226_v18, 7  ;;  %v13230_v18 = vld [vmem:[#allocation51_spill] sm:$0xff] }
 0x143   : > { %13218 = vst [vmem:[#allocation89_spill] sm:$0xff] %v8130_v57  ;;  %v5851_v60 = vpop.f32.mrb[43].mxu1  ;;  %13223 = vst [vmem:[#allocation91_spill] sm:$0xff] %v8148_v11 }
 0x144   : > { %5955 = vmatmul.mubr.msk.bf16.gmra.mrb[92].mxu0 %vm13066_vm2, %v8128_v9 }
 0x145   : > { %6179 = vmatmul.mubr.msk.bf16.gmra.mrb[148].mxu1 %vm13066_vm2, %v13221_v7  ;;  %5958 = vmatprep.mubr.msk.bf16.mxu0 %vm7200_vm1, %v13148_v56  ;;  %v13225_v7 = vld [vmem:[#allocation45_spill] sm:$0xff] }
 0x146   : > { %6182 = vmatprep.mubr.msk.bf16.mxu1 %vm7200_vm1, %v13148_v56  ;;  %v405_v57 = vrot.slane %v13225_v7, 7 }
 0x148   : > { %v8146_v26 = vpop.f32.mrb[44].mxu1  ;;  %v414_v59 = vsel %vm411_vm3, %v405_v57, %v406_v6  ;;  %v415_v52 = vsel %vm411_vm3, %v404_v51, %v405_v57  ;;  %v13231_v51 = vld [vmem:[#allocation12_spill] sm:$0xff] }
 0x149   : > { %13222 = vst [vmem:[#allocation90_spill] sm:$0xff] %v8146_v26  ;;  %v5854_v60 = vpop.f32.mrb[45].mxu1  ;;  %v8168_v15 = vpack.c.bf16 %v414_v59, %v415_v52  ;;  %v13232_v57 = vrot.slane %v13231_v51, 7  ;;  %v5221_v52 = vld [vmem:[%s12744_s1 + $0xa] sm:$0x3] }
 0x14a   : > { %v8150_v30 = vpop.f32.mrb[46].mxu1 }
 0x14b   : > { %13224 = vst [vmem:[#allocation92_spill] sm:$0xff] %v8150_v30  ;;  %v5855_v9 = vpop.f32.mrb[47].mxu1  ;;  %13228 = vst [vmem:[#allocation45_spill] sm:$0xff] %v8168_v15 }
 0x14c   : > { %5959 = vmatmul.mubr.msk.bf16.gmra.mrb[96].mxu0 %vm13066_vm2, %v8148_v11 }
 0x14d   : > { %6183 = vmatmul.mubr.msk.bf16.gmra.mrb[152].mxu1 %vm13066_vm2, %v13227_v5  ;;  %5962 = vmatprep.mubr.msk.bf16.mxu0 %vm7200_vm1, %v13148_v56  ;;  %v13229_v5 = vld [vmem:[#allocation49_spill] sm:$0xff] }
 0x14e   : > { %6186 = vmatprep.mubr.msk.bf16.mxu1 %vm7200_vm1, %v13148_v56  ;;  %v407_v30 = vrot.slane %v13229_v5, 7 }
 0x150   : > { %v8166_v40 = vpop.f32.mrb[48].mxu1  ;;  %v412_v59 = vsel %vm411_vm3, %v407_v30, %v13232_v57  ;;  %v470_v57 = vrot.slane %v7352_v32, 1 }
 0x151   : > { %v5858_v9 = vpop.f32.mrb[49].mxu1 }
 0x152   : > { %v8170_v60 = vpop.f32.mrb[50].mxu1 }
 0x153   : > { %v5859_v26 = vpop.f32.mrb[51].mxu1 }
 0x154   : > { %5963 = vmatmul.mubr.msk.bf16.gmra.mrb[100].mxu0 %vm13066_vm2, %v8168_v15  ;;  %v413_v26 = vsel %vm411_vm3, %v406_v6, %v407_v30  ;;  %v5250_v6 = vld [vmem:[%s12744_s1 + $0xe] sm:$0x3]  ;;  %v469_v30 = vrot.slane %v7324_v22, 1 }
 0x155   : > { %6187 = vmatmul.mubr.msk.bf16.gmra.mrb[156].mxu1 %vm13066_vm2, %v13230_v18  ;;  %5966 = vmatprep.mubr.msk.bf16.mxu0 %vm7200_vm1, %v13148_v56  ;;  %v8190_v9 = vpack.c.bf16 %v412_v59, %v413_v26  ;;  %v2227_v18 = vsel %vm741_vm0, %v5221_v52, 0  ;;  %v2537_v59 = vsel %vm741_vm0, %v5250_v6, 0  ;;  %v13234_v26 = vrot.slane %v7322_v21, 1  ;;  %v13235_v52 = vld [vmem:[#allocation7_spill] sm:$0xff] }
 0x156   : > { %6192 = vmatprep.mubr.msk.bf16.mxu1 %vm7200_vm1, %v13148_v56  ;;  %v471_v6 = vrot.slane %v13235_v52, 1 }
 0x157   : > { %13233 = vst [vmem:[#allocation49_spill] sm:$0xff] %v8190_v9  ;;  %v571_v22 = vsel %vm520_vm4, %v13234_v26, %v469_v30 }
 0x15c   : > { %5967 = vmatmul.mubr.msk.bf16.gmra.mrb[104].mxu0 %vm13066_vm2, %v8190_v9 }
 0x15d   : > { %6193 = vmatmul.mubr.msk.bf16.vlgmr.msra.gmra.mrb[52].mxu1 %vm13066_vm2, %v7424_v61  ;;  %5972 = vmatprep.mubr.msk.bf16.mxu0 %vm7200_vm1, %v13148_v56 }
 0x15e   : > { %6301 = vmatpush3.bf16.msra.mxu1 %v2227_v18  ;;  %6196 = vmatprep.mubr.msk.bf16.mxu1 %vm7200_vm1, %v13148_v56  ;;  %v570_v18 = vsel %vm520_vm4, %v469_v30, %v470_v57  ;;  %v569_v30 = vsel %vm520_vm4, %v470_v57, %v471_v6 }
 0x15f   : > { %6520 = vmatprep.subr.bf16.mxu1 %v13148_v56  ;;  %v8223_v32 = vpack.c.bf16 %v570_v18, %v571_v22  ;;  %v474_v22 = vrot.slane %v7435_v3, 1  ;;  %v475_v3 = vrot.slane %v7437_v4, 1 }
 0x161   : > { %v565_v4 = vsel %vm520_vm4, %v474_v22, %v475_v3 }
 0x164   : > { %5973 = vmatmul.mubr.msk.bf16.vlgmr.msra.gmra.mrb[0].mxu0 %vm13066_vm2, %v7894_v45 }
 0x165   : > { %6197 = vmatmul.mubr.msk.bf16.gmra.mrb[56].mxu1 %vm13066_vm2, %v7426_v62  ;;  %6411 = vmatpush3.bf16.msra.mxu0 %v2537_v59  ;;  %v472_v59 = vrot.slane %v7382_v46, 1  ;;  %v13236_v46 = vld [vmem:[#allocation11_spill] sm:$0xff] }
 0x166   : > { %5976 = vmatprep.mubr.msk.bf16.mxu0 %vm7200_vm1, %v13148_v56  ;;  %6200 = vmatprep.mubr.msk.bf16.mxu1 %vm7200_vm1, %v13148_v56  ;;  %v473_v26 = vrot.slane %v13236_v46, 1  ;;  %v478_v46 = vrot.slane %v7491_v42, 1  ;;  %v479_v42 = vrot.slane %v7493_v43, 1 }
 0x167   : > { %6630 = vmatprep.subr.bf16.mxu0 %v13148_v56  ;;  %v568_v21 = vsel %vm520_vm4, %v471_v6, %v472_v59 }
 0x168   : > { %v8239_v18 = vpack.c.bf16 %v568_v21, %v569_v30  ;;  %v566_v57 = vsel %vm520_vm4, %v473_v26, %v474_v22  ;;  %v567_v52 = vsel %vm520_vm4, %v472_v59, %v473_v26  ;;  %v476_v21 = vrot.slane %v7463_v19, 1 }
 0x169   : > { %v8255_v6 = vpack.c.bf16 %v566_v57, %v567_v52  ;;  %v477_v19 = vrot.slane %v7465_v20, 1  ;;  %v480_v57 = vrot.slane %v7519_v63, 1  ;;  %v561_v43 = vsel %vm520_vm4, %v478_v46, %v479_v42 }
 0x16a   : > { %v564_v59 = vsel %vm520_vm4, %v475_v3, %v476_v21  ;;  %v481_v63 = vrot.slane %v7521_v0, 1 }
 0x16b   : > { %v8271_v30 = vpack.c.bf16 %v564_v59, %v565_v4  ;;  %v562_v26 = vsel %vm520_vm4, %v477_v19, %v478_v46  ;;  %v563_v20 = vsel %vm520_vm4, %v476_v21, %v477_v19  ;;  %v560_v52 = vsel %vm520_vm4, %v479_v42, %v480_v57  ;;  %v13237_v42 = vld [vmem:[#allocation53_spill] sm:$0xff] }
 0x16c   : > { %5977 = vmatmul.mubr.msk.bf16.gmra.mrb[4].mxu0 %vm13066_vm2, %v8223_v32  ;;  %v8287_v22 = vpack.c.bf16 %v562_v26, %v563_v20  ;;  %v8303_v3 = vpack.c.bf16 %v560_v52, %v561_v43  ;;  %v482_v21 = vrot.slane %v7547_v41, 1  ;;  %v559_v0 = vsel %vm520_vm4, %v480_v57, %v481_v63 }
 0x16d   : > { %6201 = vmatmul.mubr.msk.bf16.gmra.mrb[60].mxu1 %vm13066_vm2, %v7736_v17  ;;  %5980 = vmatprep.mubr.msk.bf16.mxu0 %vm7200_vm1, %v13148_v56  ;;  %v483_v41 = vrot.slane %v7549_v55, 1  ;;  %v484_v19 = vrot.slane %v7575_v54, 1  ;;  %v485_v54 = vrot.slane %v7577_v1, 1  ;;  %v486_v20 = vrot.slane %v7603_v2, 1  ;;  %v13239_v2 = vld [vmem:[#allocation39_spill] sm:$0xff] }
 0x16e   : > { %6204 = vmatprep.mubr.msk.bf16.mxu1 %vm7200_vm1, %v13148_v56  ;;  %v558_v59 = vsel %vm520_vm4, %v481_v63, %v482_v21  ;;  %v487_v43 = vrot.slane %v13239_v2, 1  ;;  %v488_v63 = vrot.slane %v7631_v44, 1  ;;  %v13241_v44 = vld [vmem:[#allocation44_spill] sm:$0xff]  ;;  %v494_v2 = vrot.slane %v7297_v10, 1 }
 0x16f   : > { %v8319_v4 = vpack.c.bf16 %v558_v59, %v559_v0  ;;  %v556_v46 = vsel %vm520_vm4, %v483_v41, %v484_v19  ;;  %v557_v55 = vsel %vm520_vm4, %v482_v21, %v483_v41  ;;  %v554_v57 = vsel %vm520_vm4, %v485_v54, %v486_v20 }
 0x170   : > { %v8335_v26 = vpack.c.bf16 %v556_v46, %v557_v55  ;;  %v555_v1 = vsel %vm520_vm4, %v484_v19, %v485_v54  ;;  %v552_v21 = vsel %vm520_vm4, %v487_v43, %v488_v63  ;;  %v553_v59 = vsel %vm520_vm4, %v486_v20, %v487_v43 }
 0x171   : > { %v8351_v52 = vpack.c.bf16 %v554_v57, %v555_v1  ;;  %v8367_v0 = vpack.c.bf16 %v552_v21, %v553_v59  ;;  %v489_v41 = vrot.slane %v13241_v44, 1  ;;  %v490_v19 = vrot.slane %v7658_v37, 1 }
 0x172   : > { %v491_v37 = vrot.slane %v7660_v27, 1  ;;  %v492_v20 = vrot.slane %v7682_v38, 1  ;;  %v493_v38 = vrot.slane %v7684_v31, 1  ;;  %v495_v10 = vrot.slane %v7302_v12, 1 }
 0x173   : > { %13238 = vst [vmem:[#allocation12_spill] sm:$0xff] %v8351_v52  ;;  %13240 = vst [vmem:[#allocation7_spill] sm:$0xff] %v8367_v0  ;;  %v550_v46 = vsel %vm520_vm4, %v489_v41, %v490_v19  ;;  %v551_v55 = vsel %vm520_vm4, %v488_v63, %v489_v41  ;;  %v496_v21 = vrot.slane %v7326_v23, 1  ;;  %v497_v23 = vrot.slane %v7328_v24, 1 }
 0x174   : > { %5981 = vmatmul.mubr.msk.bf16.gmra.mrb[8].mxu0 %vm13066_vm2, %v8239_v18  ;;  %v8383_v54 = vpack.c.bf16 %v550_v46, %v551_v55  ;;  %v548_v57 = vsel %vm520_vm4, %v491_v37, %v492_v20  ;;  %v549_v27 = vsel %vm520_vm4, %v490_v19, %v491_v37  ;;  %v546_v43 = vsel %vm520_vm4, %v493_v38, %v494_v2 }
 0x175   : > { %6205 = vmatmul.mubr.msk.bf16.gmra.mrb[64].mxu1 %vm13066_vm2, %v7752_v53  ;;  %5984 = vmatprep.mubr.msk.bf16.mxu0 %vm7200_vm1, %v13148_v56  ;;  %v8399_v1 = vpack.c.bf16 %v548_v57, %v549_v27  ;;  %v547_v31 = vsel %vm520_vm4, %v492_v20, %v493_v38  ;;  %v544_v59 = vsel %vm520_vm4, %v495_v10, %v496_v21  ;;  %v498_v41 = vrot.slane %v7356_v34, 1  ;;  %v13248_v57 = vld [vmem:[#allocation15_spill] sm:$0xff]  ;;  %v13249_v38 = vld [vmem:[#allocation70_spill] sm:$0xff] }
 0x176   : > { %6208 = vmatprep.mubr.msk.bf16.mxu1 %vm7200_vm1, %v13148_v56  ;;  %13242 = vst [vmem:[#allocation11_spill] sm:$0xff] %v8383_v54  ;;  %v8415_v63 = vpack.c.bf16 %v546_v43, %v547_v31  ;;  %v545_v12 = vsel %vm520_vm4, %v494_v2, %v495_v10  ;;  %v543_v24 = vsel %vm520_vm4, %v496_v21, %v497_v23  ;;  %v499_v34 = vrot.slane %v7358_v35, 1  ;;  %v13251_v31 = vld [vmem:[#allocation16_spill] sm:$0xff]  ;;  %v13252_v21 = vld [vmem:[#allocation19_spill] sm:$0xff] }
 0x177   : > { %13243 = vst [vmem:[#allocation53_spill] sm:$0xff] %v8399_v1  ;;  %v8431_v44 = vpack.c.bf16 %v544_v59, %v545_v12  ;;  %v542_v19 = vsel %vm520_vm4, %v497_v23, %v498_v41  ;;  %v500_v55 = vrot.slane %v7392_v49, 1  ;;  %v501_v49 = vrot.slane %v7394_v50, 1  ;;  %v13253_v12 = vld [vmem:[#allocation73_spill] sm:$0xff] }
 0x178   : > { %13244 = vst [vmem:[#allocation39_spill] sm:$0xff] %v8415_v63  ;;  %v8447_v46 = vpack.c.bf16 %v542_v19, %v543_v24  ;;  %v541_v35 = vsel %vm520_vm4, %v498_v41, %v499_v34  ;;  %v502_v27 = vrot.slane %v13248_v57, 1  ;;  %v503_v10 = vrot.slane %v13251_v31, 1  ;;  %v13255_v24 = vld [vmem:[#allocation20_spill] sm:$0xff]  ;;  %v13260_v31 = vld [vmem:[#allocation27_spill] sm:$0xff] }
 0x179   : > { %13245 = vst [vmem:[#allocation44_spill] sm:$0xff] %v8431_v44  ;;  %v540_v37 = vsel %vm520_vm4, %v499_v34, %v500_v55  ;;  %v539_v50 = vsel %vm520_vm4, %v500_v55, %v501_v49  ;;  %v504_v59 = vrot.slane %v13252_v21, 1  ;;  %v505_v34 = vrot.slane %v13255_v24, 1  ;;  %v13256_v55 = vld [vmem:[#allocation23_spill] sm:$0xff]  ;;  %v13263_v24 = vld [vmem:[#allocation28_spill] sm:$0xff] }
 0x17a   : > { %13246 = vst [vmem:[#allocation93_spill] sm:$0xff] %v8447_v46  ;;  %v8463_v20 = vpack.c.bf16 %v540_v37, %v541_v35  ;;  %v538_v2 = vsel %vm520_vm4, %v501_v49, %v502_v27  ;;  %v537_v41 = vsel %vm520_vm4, %v502_v27, %v503_v10  ;;  %v506_v37 = vrot.slane %v13256_v55, 1  ;;  %v13257_v35 = vld [vmem:[#allocation76_spill] sm:$0xff]  ;;  %v13261_v21 = vld [vmem:[#allocation79_spill] sm:$0xff] }
 0x17b   : > { %v8479_v43 = vpack.c.bf16 %v538_v2, %v539_v50  ;;  %v536_v23 = vsel %vm520_vm4, %v503_v10, %v504_v59  ;;  %v535_v57 = vsel %vm520_vm4, %v504_v59, %v505_v34  ;;  %v13259_v2 = vld [vmem:[#allocation24_spill] sm:$0xff]  ;;  %v508_v10 = vrot.slane %v13260_v31, 1  ;;  %v13264_v55 = vld [vmem:[#allocation31_spill] sm:$0xff] }
 0x17c   : > { %5985 = vmatmul.mubr.msk.bf16.gmra.mrb[12].mxu0 %vm13066_vm2, %v8255_v6  ;;  %13247 = vst [vmem:[#allocation94_spill] sm:$0xff] %v8463_v20  ;;  %v8495_v19 = vpack.c.bf16 %v536_v23, %v537_v41  ;;  %v534_v49 = vsel %vm520_vm4, %v505_v34, %v506_v37  ;;  %v507_v50 = vrot.slane %v13259_v2, 1  ;;  %v509_v34 = vrot.slane %v13263_v24, 1  ;;  %v13267_v31 = vld [vmem:[#allocation32_spill] sm:$0xff] }
 0x17d   : > { %6209 = vmatmul.mubr.msk.bf16.gmra.mrb[68].mxu1 %vm13066_vm2, %v7768_v25  ;;  %5988 = vmatprep.mubr.msk.bf16.mxu0 %vm7200_vm1, %v13148_v56  ;;  %13250 = vst [vmem:[#allocation15_spill] sm:$0xff] %v8479_v43  ;;  %v8511_v27 = vpack.c.bf16 %v534_v49, %v535_v57  ;;  %v510_v49 = vrot.slane %v13264_v55, 1  ;;  %v13265_v57 = vld [vmem:[#allocation82_spill] sm:$0xff]  ;;  %v13269_v55 = vld [vmem:[#allocation85_spill] sm:$0xff] }
 0x17e   : > { %6212 = vmatprep.mubr.msk.bf16.mxu1 %vm7200_vm1, %v13148_v56  ;;  %13254 = vst [vmem:[#allocation16_spill] sm:$0xff] %v8495_v19  ;;  %v532_v59 = vsel %vm520_vm4, %v507_v50, %v508_v10  ;;  %v533_v23 = vsel %vm520_vm4, %v506_v37, %v507_v50  ;;  %v531_v2 = vsel %vm520_vm4, %v508_v10, %v509_v34 }
 0x17f   : > { %13258 = vst [vmem:[#allocation19_spill] sm:$0xff] %v8511_v27  ;;  %v8527_v41 = vpack.c.bf16 %v532_v59, %v533_v23  ;;  %v530_v37 = vsel %vm520_vm4, %v509_v34, %v510_v49  ;;  %v511_v59 = vrot.slane %v13267_v31, 1  ;;  %v13268_v23 = vld [vmem:[#allocation35_spill] sm:$0xff] }
 0x180   : > { %v8543_v50 = vpack.c.bf16 %v530_v37, %v531_v2  ;;  %v512_v24 = vrot.slane %v13268_v23, 1  ;;  %v13271_v2 = vld [vmem:[#allocation36_spill] sm:$0xff] }
 0x181   : > { %13262 = vst [vmem:[#allocation20_spill] sm:$0xff] %v8527_v41  ;;  %v529_v34 = vsel %vm520_vm4, %v510_v49, %v511_v59  ;;  %v513_v31 = vrot.slane %v13271_v2, 1  ;;  %v13272_v23 = vld [vmem:[#allocation40_spill] sm:$0xff] }
 0x182   : > { %13266 = vst [vmem:[#allocation23_spill] sm:$0xff] %v8543_v50  ;;  %v528_v10 = vsel %vm520_vm4, %v511_v59, %v512_v24 }
 0x183   : > { %v8559_v37 = vpack.c.bf16 %v528_v10, %v529_v34  ;;  %v527_v59 = vsel %vm520_vm4, %v512_v24, %v513_v31  ;;  %v13275_v34 = vld [vmem:[#allocation41_spill] sm:$0xff] }
 0x184   : > { %5989 = vmatmul.mubr.msk.bf16.gmra.mrb[16].mxu0 %vm13066_vm2, %v8271_v30  ;;  %v515_v2 = vrot.slane %v13275_v34, 1  ;;  %v518_v34 = vrot.slane %v13229_v5, 1  ;;  %v519_v5 = vrot.slane %v13231_v51, 1 }
 0x185   : > { %6213 = vmatmul.mubr.msk.bf16.gmra.mrb[72].mxu1 %vm13066_vm2, %v7784_v33  ;;  %5992 = vmatprep.mubr.msk.bf16.mxu0 %vm7200_vm1, %v13148_v56  ;;  %13270 = vst [vmem:[#allocation24_spill] sm:$0xff] %v8559_v37 }
 0x186   : > { %6216 = vmatprep.mubr.msk.bf16.mxu1 %vm7200_vm1, %v13148_v56 }
 0x18c   : > { %5993 = vmatmul.mubr.msk.bf16.gmra.mrb[20].mxu0 %vm13066_vm2, %v8287_v22 }
 0x18d   : > { %6217 = vmatmul.mubr.msk.bf16.gmra.mrb[76].mxu1 %vm13066_vm2, %v7800_v39  ;;  %5996 = vmatprep.mubr.msk.bf16.mxu0 %vm7200_vm1, %v13148_v56 }
 0x18e   : > { %6220 = vmatprep.mubr.msk.bf16.mxu1 %vm7200_vm1, %v13148_v56 }
 0x194   : > { %5997 = vmatmul.mubr.msk.bf16.gmra.mrb[24].mxu0 %vm13066_vm2, %v8303_v3 }
 0x195   : > { %6221 = vmatmul.mubr.msk.bf16.gmra.mrb[80].mxu1 %vm13066_vm2, %v7816_v47  ;;  %6000 = vmatprep.mubr.msk.bf16.mxu0 %vm7200_vm1, %v13148_v56 }
 0x196   : > { %6224 = vmatprep.mubr.msk.bf16.mxu1 %vm7200_vm1, %v13148_v56 }
 0x19c   : > { %6001 = vmatmul.mubr.msk.bf16.gmra.mrb[28].mxu0 %vm13066_vm2, %v8319_v4 }
 0x19d   : > { %6225 = vmatmul.mubr.msk.bf16.gmra.mrb[84].mxu1 %vm13066_vm2, %v7832_v58  ;;  %6004 = vmatprep.mubr.msk.bf16.mxu0 %vm7200_vm1, %v13148_v56 }
 0x19e   : > { %6228 = vmatprep.mubr.msk.bf16.mxu1 %vm7200_vm1, %v13148_v56 }
 0x1a4   : > { %6005 = vmatmul.mubr.msk.bf16.gmra.mrb[32].mxu0 %vm13066_vm2, %v8335_v26 }
 0x1a5   : > { %6229 = vmatmul.mubr.msk.bf16.gmra.mrb[88].mxu1 %vm13066_vm2, %v13237_v42  ;;  %6008 = vmatprep.mubr.msk.bf16.mxu0 %vm7200_vm1, %v13148_v56 }
 0x1a6   : > { %6232 = vmatprep.mubr.msk.bf16.mxu1 %vm7200_vm1, %v13148_v56 }
 0x1ac   : > { %6009 = vmatmul.mubr.msk.bf16.gmra.mrb[36].mxu0 %vm13066_vm2, %v8351_v52 }
 0x1ad   : > { %6233 = vmatmul.mubr.msk.bf16.gmra.mrb[92].mxu1 %vm13066_vm2, %v7864_v29  ;;  %6012 = vmatprep.mubr.msk.bf16.mxu0 %vm7200_vm1, %v13148_v56 }
 0x1ae   : > { %6236 = vmatprep.mubr.msk.bf16.mxu1 %vm7200_vm1, %v13148_v56 }
 0x1b4   : > { %6013 = vmatmul.mubr.msk.bf16.gmra.mrb[40].mxu0 %vm13066_vm2, %v8367_v0 }
 0x1b5   : > { %6237 = vmatmul.mubr.msk.bf16.gmra.mrb[96].mxu1 %vm13066_vm2, %v7892_v16  ;;  %6016 = vmatprep.mubr.msk.bf16.mxu0 %vm7200_vm1, %v13148_v56 }
 0x1b6   : > { %6240 = vmatprep.mubr.msk.bf16.mxu1 %vm7200_vm1, %v13148_v56 }
 0x1bc   : > { %6017 = vmatmul.mubr.msk.bf16.gmra.mrb[44].mxu0 %vm13066_vm2, %v8383_v54 }
 0x1bd   : > { %6241 = vmatmul.mubr.msk.bf16.gmra.mrb[100].mxu1 %vm13066_vm2, %v7910_v14  ;;  %6020 = vmatprep.mubr.msk.bf16.mxu0 %vm7200_vm1, %v13148_v56 }
 0x1be   : > { %6244 = vmatprep.mubr.msk.bf16.mxu1 %vm7200_vm1, %v13148_v56 }
 0x1c4   : > { %6021 = vmatmul.mubr.msk.bf16.gmra.mrb[48].mxu0 %vm13066_vm2, %v8399_v1 }
 0x1c5   : > { %6245 = vmatmul.mubr.msk.bf16.gmra.mrb[104].mxu1 %vm13066_vm2, %v7928_v28  ;;  %6024 = vmatprep.mubr.msk.bf16.mxu0 %vm7200_vm1, %v13148_v56 }
 0x1c6   : > { %6248 = vmatprep.mubr.msk.bf16.mxu1 %vm7200_vm1, %v13148_v56 }
 0x1cc   : > { %6025 = vmatmul.mubr.msk.bf16.gmra.mrb[52].mxu0 %vm13066_vm2, %v8415_v63 }
 0x1cd   : > { %6249 = vmatmul.mubr.msk.bf16.gmra.mrb[108].mxu1 %vm13066_vm2, %v7948_v13  ;;  %6028 = vmatprep.mubr.msk.bf16.mxu0 %vm7200_vm1, %v13148_v56 }
 0x1ce   : > { %6252 = vmatprep.mubr.msk.bf16.mxu1 %vm7200_vm1, %v13148_v56 }
 0x1d4   : > { %6029 = vmatmul.mubr.msk.bf16.gmra.mrb[56].mxu0 %vm13066_vm2, %v8431_v44 }
 0x1d5   : > { %6253 = vmatmul.mubr.msk.bf16.gmra.mrb[112].mxu1 %vm13066_vm2, %v7968_v8  ;;  %6032 = vmatprep.mubr.msk.bf16.mxu0 %vm7200_vm1, %v13148_v56 }
 0x1d6   : > { %6256 = vmatprep.mubr.msk.bf16.mxu1 %vm7200_vm1, %v13148_v56 }
 0x1dc   : > { %6033 = vmatmul.mubr.msk.bf16.gmra.mrb[60].mxu0 %vm13066_vm2, %v8447_v46 }
 0x1dd   : > { %6257 = vmatmul.mubr.msk.bf16.gmra.mrb[116].mxu1 %vm13066_vm2, %v7988_v48  ;;  %6036 = vmatprep.mubr.msk.bf16.mxu0 %vm7200_vm1, %v13148_v56 }
 0x1de   : > { %6260 = vmatprep.mubr.msk.bf16.mxu1 %vm7200_vm1, %v13148_v56 }
 0x1e4   : > { %6037 = vmatmul.mubr.msk.bf16.gmra.mrb[64].mxu0 %vm13066_vm2, %v8463_v20 }
 0x1e5   : > { %6261 = vmatmul.mubr.msk.bf16.gmra.mrb[120].mxu1 %vm13066_vm2, %v13249_v38  ;;  %6040 = vmatprep.mubr.msk.bf16.mxu0 %vm7200_vm1, %v13148_v56 }
 0x1e6   : > { %6264 = vmatprep.mubr.msk.bf16.mxu1 %vm7200_vm1, %v13148_v56 }
 0x1ec   : > { %6041 = vmatmul.mubr.msk.bf16.gmra.mrb[68].mxu0 %vm13066_vm2, %v8479_v43 }
 0x1ed   : > { %6265 = vmatmul.mubr.msk.bf16.gmra.mrb[124].mxu1 %vm13066_vm2, %v13253_v12  ;;  %6044 = vmatprep.mubr.msk.bf16.mxu0 %vm7200_vm1, %v13148_v56 }
 0x1ee   : > { %6268 = vmatprep.mubr.msk.bf16.mxu1 %vm7200_vm1, %v13148_v56 }
 0x1f4   : > { %6045 = vmatmul.mubr.msk.bf16.gmra.mrb[72].mxu0 %vm13066_vm2, %v8495_v19 }
 0x1f5   : > { %6269 = vmatmul.mubr.msk.bf16.gmra.mrb[128].mxu1 %vm13066_vm2, %v13257_v35  ;;  %6048 = vmatprep.mubr.msk.bf16.mxu0 %vm7200_vm1, %v13148_v56 }
 0x1f6   : > { %6272 = vmatprep.mubr.msk.bf16.mxu1 %vm7200_vm1, %v13148_v56 }
 0x1fc   : > { %6049 = vmatmul.mubr.msk.bf16.gmra.mrb[76].mxu0 %vm13066_vm2, %v8511_v27 }
 0x1fd   : > { %6273 = vmatmul.mubr.msk.bf16.gmra.mrb[132].mxu1 %vm13066_vm2, %v13261_v21  ;;  %6052 = vmatprep.mubr.msk.bf16.mxu0 %vm7200_vm1, %v13148_v56 }
 0x1fe   : > { %6276 = vmatprep.mubr.msk.bf16.mxu1 %vm7200_vm1, %v13148_v56 }
 0x204   : > { %6053 = vmatmul.mubr.msk.bf16.gmra.mrb[80].mxu0 %vm13066_vm2, %v8527_v41 }
 0x205   : > { %6277 = vmatmul.mubr.msk.bf16.gmra.mrb[136].mxu1 %vm13066_vm2, %v13265_v57  ;;  %6056 = vmatprep.mubr.msk.bf16.mxu0 %vm7200_vm1, %v13148_v56  ;;  %v514_v57 = vrot.slane %v13272_v23, 1  ;;  %v516_v23 = vrot.slane %v13225_v7, 1  ;;  %v13277_v7 = vld [vmem:[#allocation46_spill] sm:$0xff] }
 0x206   : > { %6280 = vmatprep.mubr.msk.bf16.mxu1 %vm7200_vm1, %v13148_v56 }
 0x207   : > { %v526_v49 = vsel %vm520_vm4, %v513_v31, %v514_v57  ;;  %v524_v24 = vsel %vm520_vm4, %v515_v2, %v516_v23  ;;  %v525_v31 = vsel %vm520_vm4, %v514_v57, %v515_v2 }
 0x208   : > { %v8575_v10 = vpack.c.bf16 %v526_v49, %v527_v59  ;;  %v8591_v49 = vpack.c.bf16 %v524_v24, %v525_v31  ;;  %v517_v59 = vrot.slane %v13277_v7, 1  ;;  %v521_v31 = vsel %vm520_vm4, %v518_v34, %v519_v5 }
 0x20a   : > { %13274 = vst [vmem:[#allocation27_spill] sm:$0xff] %v8575_v10  ;;  %13276 = vst [vmem:[#allocation28_spill] sm:$0xff] %v8591_v49  ;;  %v522_v57 = vsel %vm520_vm4, %v517_v59, %v518_v34  ;;  %v523_v2 = vsel %vm520_vm4, %v516_v23, %v517_v59  ;;  %v13279_v23 = vld [vmem:[#allocation2_spill] sm:$0xff]  ;;  %v5249_v59 = vld [vmem:[%s12744_s1 + $0xc] sm:$0x3] }
 0x20b   : > { %v8607_v24 = vpack.c.bf16 %v522_v57, %v523_v2  ;;  %v13280_v7 = vrot.slane %v13279_v23, 1  ;;  %v2789_v2 = vsel %vm741_vm0, %v5249_v59, 0  ;;  %v13282_v59 = vld [vmem:[#allocation3_spill] sm:$0xff] }
 0x20c   : > { %6057 = vmatmul.mubr.msk.bf16.gmra.mrb[84].mxu0 %vm13066_vm2, %v8543_v50 }
 0x20d   : > { %6281 = vmatmul.mubr.msk.bf16.gmra.mrb[140].mxu1 %vm13066_vm2, %v13269_v55  ;;  %6060 = vmatprep.mubr.msk.bf16.mxu0 %vm7200_vm1, %v13148_v56  ;;  %v13273_v55 = vld [vmem:[#allocation88_spill] sm:$0xff]  ;;  %13278 = vst [vmem:[#allocation31_spill] sm:$0xff] %v8607_v24  ;;  %v574_v51 = vsel %vm520_vm4, %v519_v5, %v13280_v7 }
 0x20e   : > { %6284 = vmatprep.mubr.msk.bf16.mxu1 %vm7200_vm1, %v13148_v56  ;;  %v8627_v57 = vpack.c.bf16 %v574_v51, %v521_v31  ;;  %v5305_v5 = vld [vmem:[%s12744_s1 + $0x10] sm:$0x3] }
 0x20f   : > { %v3043_v51 = vsel %vm741_vm0, %v5305_v5, 0  ;;  %v13283_v5 = vld [vmem:[#allocation5_spill] sm:$0xff] }
 0x210   : > { %13281 = vst [vmem:[#allocation32_spill] sm:$0xff] %v8627_v57 }
 0x214   : > { %6061 = vmatmul.mubr.msk.bf16.gmra.mrb[88].mxu0 %vm13066_vm2, %v8559_v37 }
 0x215   : > { %6285 = vmatmul.mubr.msk.bf16.gmra.mrb[144].mxu1 %vm13066_vm2, %v13273_v55  ;;  %6064 = vmatprep.mubr.msk.bf16.mxu0 %vm7200_vm1, %v13148_v56 }
 0x216   : > { %6288 = vmatprep.mubr.msk.bf16.mxu1 %vm7200_vm1, %v13148_v56 }
 0x21c   : > { %6065 = vmatmul.mubr.msk.bf16.gmra.mrb[92].mxu0 %vm13066_vm2, %v8575_v10 }
 0x21d   : > { %6289 = vmatmul.mubr.msk.bf16.gmra.mrb[148].mxu1 %vm13066_vm2, %v8148_v11  ;;  %6068 = vmatprep.mubr.msk.bf16.mxu0 %vm7200_vm1, %v13148_v56 }
 0x21e   : > { %6292 = vmatprep.mubr.msk.bf16.mxu1 %vm7200_vm1, %v13148_v56 }
 0x224   : > { %6069 = vmatmul.mubr.msk.bf16.gmra.mrb[96].mxu0 %vm13066_vm2, %v8591_v49 }
 0x225   : > { %6293 = vmatmul.mubr.msk.bf16.gmra.mrb[152].mxu1 %vm13066_vm2, %v8168_v15  ;;  %6072 = vmatprep.mubr.msk.bf16.mxu0 %vm7200_vm1, %v13148_v56 }
 0x226   : > { %6296 = vmatprep.mubr.msk.bf16.mxu1 %vm7200_vm1, %v13148_v56 }
 0x22c   : > { %6073 = vmatmul.mubr.msk.bf16.gmra.mrb[100].mxu0 %vm13066_vm2, %v8607_v24 }
 0x22d   : > { %6297 = vmatmul.mubr.msk.bf16.gmra.mrb[156].mxu1 %vm13066_vm2, %v8190_v9  ;;  %6076 = vmatprep.mubr.msk.bf16.mxu0 %vm7200_vm1, %v13148_v56 }
 0x22e   : > { %6302 = vmatprep.mubr.msk.bf16.mxu1 %vm7200_vm1, %v13148_v56 }
 0x234   : > { %6077 = vmatmul.mubr.msk.bf16.gmra.mrb[104].mxu0 %vm13066_vm2, %v8627_v57 }
 0x235   : > { %6303 = vmatmul.mubr.msk.bf16.vlgmr.msra.gmra.mrb[52].mxu1 %vm13066_vm2, %v7894_v45  ;;  %6412 = vmatprep.mubr.msk.bf16.mxu0 %vm7200_vm1, %v13148_v56 }
 0x236   : > { %6521 = vmatpush3.bf16.msra.mxu1 %v2789_v2  ;;  %6306 = vmatprep.mubr.msk.bf16.mxu1 %vm7200_vm1, %v13148_v56 }
 0x237   : > { %v8638_v34 = vpop.f32.mrb[0].mxu0 }
 0x238   : > { %v5974_v31 = vpop.f32.mrb[1].mxu0 }
 0x239   : > { %v8643_v23 = vpop.f32.mrb[2].mxu0 }
 0x23a   : > { %v5975_v7 = vpop.f32.mrb[3].mxu0 }
 0x23c   : > { %6413 = vmatmul.mubr.msk.bf16.vlgmr.msra.gmra.mrb[108].mxu0 %vm13066_vm2, %v13282_v59 }
 0x23d   : > { %6307 = vmatmul.mubr.msk.bf16.gmra.mrb[56].mxu1 %vm13066_vm2, %v8223_v32  ;;  %6631 = vmatpush3.bf16.msra.mxu0 %v3043_v51 }
 0x23e   : > { %6310 = vmatprep.mubr.msk.bf16.mxu1 %vm7200_vm1, %v13148_v56  ;;  %6416 = vmatprep.mubr.msk.bf16.mxu0 %vm7200_vm1, %v13148_v56 }
 0x23f   : > { %v8654_v2 = vpop.f32.mrb[4].mxu0 }
 0x240   : > { %v5978_v31 = vpop.f32.mrb[5].mxu0 }
 0x241   : > { %v8656_v36 = vpop.f32.mrb[6].mxu0 }
 0x242   : > { %v5979_v7 = vpop.f32.mrb[7].mxu0 }
 0x243   : > { %v13284_v7 = vld [vmem:[#allocation9_spill] sm:$0xff] }
 0x244   : > { %6417 = vmatmul.mubr.msk.bf16.gmra.mrb[112].mxu0 %vm13066_vm2, %v13283_v5 }
 0x245   : > { %6311 = vmatmul.mubr.msk.bf16.gmra.mrb[60].mxu1 %vm13066_vm2, %v8239_v18  ;;  %6420 = vmatprep.mubr.msk.bf16.mxu0 %vm7200_vm1, %v13148_v56 }
 0x246   : > { %6314 = vmatprep.mubr.msk.bf16.mxu1 %vm7200_vm1, %v13148_v56 }
 0x247   : > { %v8666_v51 = vpop.f32.mrb[8].mxu0 }
 0x248   : > { %v5982_v59 = vpop.f32.mrb[9].mxu0 }
 0x249   : > { %v8668_v9 = vpop.f32.mrb[10].mxu0 }
 0x24a   : > { %v5983_v31 = vpop.f32.mrb[11].mxu0 }
 0x24b   : > { %v13285_v31 = vld [vmem:[#allocation13_spill] sm:$0xff] }
 0x24c   : > { %6421 = vmatmul.mubr.msk.bf16.gmra.mrb[116].mxu0 %vm13066_vm2, %v13284_v7 }
 0x24d   : > { %6315 = vmatmul.mubr.msk.bf16.gmra.mrb[64].mxu1 %vm13066_vm2, %v8255_v6  ;;  %6424 = vmatprep.mubr.msk.bf16.mxu0 %vm7200_vm1, %v13148_v56 }
 0x24e   : > { %6318 = vmatprep.mubr.msk.bf16.mxu1 %vm7200_vm1, %v13148_v56 }
 0x24f   : > { %v8678_v5 = vpop.f32.mrb[12].mxu0 }
 0x250   : > { %v5986_v15 = vpop.f32.mrb[13].mxu0 }
 0x251   : > { %v8680_v11 = vpop.f32.mrb[14].mxu0 }
 0x252   : > { %v5987_v59 = vpop.f32.mrb[15].mxu0 }
 0x253   : > { %v13286_v59 = vld [vmem:[#allocation17_spill] sm:$0xff] }
 0x254   : > { %6425 = vmatmul.mubr.msk.bf16.gmra.mrb[120].mxu0 %vm13066_vm2, %v13285_v31 }
 0x255   : > { %6319 = vmatmul.mubr.msk.bf16.gmra.mrb[68].mxu1 %vm13066_vm2, %v8271_v30  ;;  %6428 = vmatprep.mubr.msk.bf16.mxu0 %vm7200_vm1, %v13148_v56 }
 0x256   : > { %6322 = vmatprep.mubr.msk.bf16.mxu1 %vm7200_vm1, %v13148_v56 }
 0x257   : > { %v8690_v7 = vpop.f32.mrb[16].mxu0 }
 0x258   : > { %v5990_v55 = vpop.f32.mrb[17].mxu0 }
 0x259   : > { %v8692_v21 = vpop.f32.mrb[18].mxu0 }
 0x25a   : > { %v5991_v15 = vpop.f32.mrb[19].mxu0 }
 0x25b   : > { %v13287_v15 = vld [vmem:[#allocation21_spill] sm:$0xff] }
 0x25c   : > { %6429 = vmatmul.mubr.msk.bf16.gmra.mrb[124].mxu0 %vm13066_vm2, %v13286_v59 }
 0x25d   : > { %6323 = vmatmul.mubr.msk.bf16.gmra.mrb[72].mxu1 %vm13066_vm2, %v8287_v22  ;;  %6432 = vmatprep.mubr.msk.bf16.mxu0 %vm7200_vm1, %v13148_v56 }
 0x25e   : > { %6326 = vmatprep.mubr.msk.bf16.mxu1 %vm7200_vm1, %v13148_v56 }
 0x25f   : > { %v8702_v31 = vpop.f32.mrb[20].mxu0 }
 0x260   : > { %v5994_v35 = vpop.f32.mrb[21].mxu0 }
 0x261   : > { %v8704_v12 = vpop.f32.mrb[22].mxu0 }
 0x262   : > { %v5995_v55 = vpop.f32.mrb[23].mxu0 }
 0x263   : > { %v13288_v55 = vld [vmem:[#allocation25_spill] sm:$0xff] }
 0x264   : > { %6433 = vmatmul.mubr.msk.bf16.gmra.mrb[128].mxu0 %vm13066_vm2, %v13287_v15 }
 0x265   : > { %6327 = vmatmul.mubr.msk.bf16.gmra.mrb[76].mxu1 %vm13066_vm2, %v8303_v3  ;;  %6436 = vmatprep.mubr.msk.bf16.mxu0 %vm7200_vm1, %v13148_v56 }
 0x266   : > { %6330 = vmatprep.mubr.msk.bf16.mxu1 %vm7200_vm1, %v13148_v56 }
 0x267   : > { %v8714_v59 = vpop.f32.mrb[24].mxu0 }
 0x268   : > { %v5998_v38 = vpop.f32.mrb[25].mxu0 }
 0x269   : > { %v8716_v48 = vpop.f32.mrb[26].mxu0 }
 0x26a   : > { %v5999_v35 = vpop.f32.mrb[27].mxu0 }
 0x26b   : > { %v13289_v35 = vld [vmem:[#allocation29_spill] sm:$0xff] }
 0x26c   : > { %6437 = vmatmul.mubr.msk.bf16.gmra.mrb[132].mxu0 %vm13066_vm2, %v13288_v55 }
 0x26d   : > { %6331 = vmatmul.mubr.msk.bf16.gmra.mrb[80].mxu1 %vm13066_vm2, %v8319_v4  ;;  %6440 = vmatprep.mubr.msk.bf16.mxu0 %vm7200_vm1, %v13148_v56 }
 0x26e   : > { %6334 = vmatprep.mubr.msk.bf16.mxu1 %vm7200_vm1, %v13148_v56 }
 0x26f   : > { %v8726_v15 = vpop.f32.mrb[28].mxu0 }
 0x270   : > { %v6002_v8 = vpop.f32.mrb[29].mxu0 }
 0x271   : > { %v8728_v13 = vpop.f32.mrb[30].mxu0 }
 0x272   : > { %v6003_v38 = vpop.f32.mrb[31].mxu0 }
 0x273   : > { %v13290_v38 = vld [vmem:[#allocation33_spill] sm:$0xff] }
 0x274   : > { %6441 = vmatmul.mubr.msk.bf16.gmra.mrb[136].mxu0 %vm13066_vm2, %v13289_v35 }
 0x275   : > { %6335 = vmatmul.mubr.msk.bf16.gmra.mrb[84].mxu1 %vm13066_vm2, %v8335_v26  ;;  %6444 = vmatprep.mubr.msk.bf16.mxu0 %vm7200_vm1, %v13148_v56 }
 0x276   : > { %6338 = vmatprep.mubr.msk.bf16.mxu1 %vm7200_vm1, %v13148_v56 }
 0x277   : > { %v8738_v55 = vpop.f32.mrb[32].mxu0 }
 0x278   : > { %v6006_v28 = vpop.f32.mrb[33].mxu0 }
 0x279   : > { %v8740_v14 = vpop.f32.mrb[34].mxu0 }
 0x27a   : > { %v6007_v8 = vpop.f32.mrb[35].mxu0 }
 0x27b   : > { %v13292_v8 = vld [vmem:[#allocation37_spill] sm:$0xff] }
 0x27c   : > { %6445 = vmatmul.mubr.msk.bf16.gmra.mrb[140].mxu0 %vm13066_vm2, %v13290_v38 }
 0x27d   : > { %6339 = vmatmul.mubr.msk.bf16.gmra.mrb[88].mxu1 %vm13066_vm2, %v8351_v52  ;;  %6448 = vmatprep.mubr.msk.bf16.mxu0 %vm7200_vm1, %v13148_v56 }
 0x27e   : > { %6342 = vmatprep.mubr.msk.bf16.mxu1 %vm7200_vm1, %v13148_v56 }
 0x27f   : > { %v8750_v35 = vpop.f32.mrb[36].mxu0 }
 0x280   : > { %13291 = vst [vmem:[#allocation35_spill] sm:$0xff] %v8750_v35  ;;  %v6010_v16 = vpop.f32.mrb[37].mxu0 }
 0x281   : > { %v8752_v29 = vpop.f32.mrb[38].mxu0 }
 0x282   : > { %v6011_v28 = vpop.f32.mrb[39].mxu0 }
 0x283   : > { %v13294_v28 = vld [vmem:[#allocation42_spill] sm:$0xff] }
 0x284   : > { %6449 = vmatmul.mubr.msk.bf16.gmra.mrb[144].mxu0 %vm13066_vm2, %v13292_v8 }
 0x285   : > { %6343 = vmatmul.mubr.msk.bf16.gmra.mrb[92].mxu1 %vm13066_vm2, %v8367_v0  ;;  %6452 = vmatprep.mubr.msk.bf16.mxu0 %vm7200_vm1, %v13148_v56 }
 0x286   : > { %6346 = vmatprep.mubr.msk.bf16.mxu1 %vm7200_vm1, %v13148_v56 }
 0x287   : > { %v8762_v38 = vpop.f32.mrb[40].mxu0 }
 0x288   : > { %13293 = vst [vmem:[#allocation36_spill] sm:$0xff] %v8762_v38  ;;  %v6014_v52 = vpop.f32.mrb[41].mxu0 }
 0x289   : > { %v8764_v35 = vpop.f32.mrb[42].mxu0 }
 0x28a   : > { %v6015_v16 = vpop.f32.mrb[43].mxu0 }
 0x28b   : > { %v13297_v16 = vld [vmem:[#allocation47_spill] sm:$0xff] }
 0x28c   : > { %6453 = vmatmul.mubr.msk.bf16.gmra.mrb[148].mxu0 %vm13066_vm2, %v13294_v28 }
 0x28d   : > { %6347 = vmatmul.mubr.msk.bf16.gmra.mrb[96].mxu1 %vm13066_vm2, %v8383_v54  ;;  %6456 = vmatprep.mubr.msk.bf16.mxu0 %vm7200_vm1, %v13148_v56 }
 0x28e   : > { %6350 = vmatprep.mubr.msk.bf16.mxu1 %vm7200_vm1, %v13148_v56 }
 0x28f   : > { %v8774_v8 = vpop.f32.mrb[44].mxu0 }
 0x290   : > { %13295 = vst [vmem:[#allocation40_spill] sm:$0xff] %v8774_v8  ;;  %v6018_v0 = vpop.f32.mrb[45].mxu0 }
 0x291   : > { %v8776_v38 = vpop.f32.mrb[46].mxu0 }
 0x292   : > { %13296 = vst [vmem:[#allocation41_spill] sm:$0xff] %v8776_v38  ;;  %v6019_v52 = vpop.f32.mrb[47].mxu0 }
 0x293   : > { %v13300_v52 = vld [vmem:[#allocation50_spill] sm:$0xff] }
 0x294   : > { %6457 = vmatmul.mubr.msk.bf16.gmra.mrb[152].mxu0 %vm13066_vm2, %v13297_v16 }
 0x295   : > { %6351 = vmatmul.mubr.msk.bf16.gmra.mrb[100].mxu1 %vm13066_vm2, %v8399_v1  ;;  %6460 = vmatprep.mubr.msk.bf16.mxu0 %vm7200_vm1, %v13148_v56 }
 0x296   : > { %6354 = vmatprep.mubr.msk.bf16.mxu1 %vm7200_vm1, %v13148_v56 }
 0x297   : > { %v8786_v28 = vpop.f32.mrb[48].mxu0 }
 0x298   : > { %13298 = vst [vmem:[#allocation46_spill] sm:$0xff] %v8786_v28  ;;  %v6022_v54 = vpop.f32.mrb[49].mxu0 }
 0x299   : > { %v8788_v8 = vpop.f32.mrb[50].mxu0 }
 0x29a   : > { %13299 = vst [vmem:[#allocation2_spill] sm:$0xff] %v8788_v8  ;;  %v6023_v0 = vpop.f32.mrb[51].mxu0  ;;  %v13304_v8 = vld [vmem:[#allocation57_spill] sm:$0xff] }
 0x29b   : > { %v13303_v0 = vld [vmem:[#allocation52_spill] sm:$0xff] }
 0x29c   : > { %6461 = vmatmul.mubr.msk.bf16.gmra.mrb[156].mxu0 %vm13066_vm2, %v13300_v52 }
 0x29d   : > { %6355 = vmatmul.mubr.msk.bf16.gmra.mrb[104].mxu1 %vm13066_vm2, %v8415_v63  ;;  %6464 = vmatprep.mubr.msk.bf16.mxu0 %vm7200_vm1, %v13148_v56 }
 0x29e   : > { %6358 = vmatprep.mubr.msk.bf16.mxu1 %vm7200_vm1, %v13148_v56 }
 0x29f   : > { %v8798_v16 = vpop.f32.mrb[52].mxu0 }
 0x2a0   : > { %13301 = vst [vmem:[#allocation3_spill] sm:$0xff] %v8798_v16  ;;  %v6026_v1 = vpop.f32.mrb[53].mxu0 }
 0x2a1   : > { %v8800_v28 = vpop.f32.mrb[54].mxu0 }
 0x2a2   : > { %13302 = vst [vmem:[#allocation5_spill] sm:$0xff] %v8800_v28  ;;  %v6027_v54 = vpop.f32.mrb[55].mxu0 }
 0x2a3   : > { %v13305_v54 = vld [vmem:[#allocation59_spill] sm:$0xff] }
 0x2a4   : > { %6465 = vmatmul.mubr.msk.bf16.gmra.mrb[160].mxu0 %vm13066_vm2, %v13303_v0  ;;  %v13307_v0 = vld [vmem:[#allocation4_spill] sm:$0xff] }
 0x2a5   : > { %6359 = vmatmul.mubr.msk.bf16.gmra.mrb[108].mxu1 %vm13066_vm2, %v8431_v44  ;;  %6468 = vmatprep.mubr.msk.bf16.mxu0 %vm7200_vm1, %v13148_v56 }
 0x2a6   : > { %6362 = vmatprep.mubr.msk.bf16.mxu1 %vm7200_vm1, %v13148_v56 }
 0x2a7   : > { %v1559_v52 = vpop.f32.mrb[56].mxu0 }
 0x2a8   : > { %v6030_v63 = vpop.f32.mrb[57].mxu0  ;;  %v8811_v16 = vadd.f32 %v1559_v52, %v13304_v8  ;;  %v13308_v52 = vld [vmem:[#allocation60_spill] sm:$0xff] }
 0x2a9   : > { %v1562_v1 = vpop.f32.mrb[58].mxu0 }
 0x2aa   : > { %v6031_v28 = vpop.f32.mrb[59].mxu0  ;;  %v8814_v38 = vadd.f32 %v1562_v1, %v13305_v54  ;;  %v13309_v54 = vld [vmem:[#allocation62_spill] sm:$0xff] }
 0x2ac   : > { %13306 = vst [vmem:[#allocation9_spill] sm:$0xff] %v8814_v38  ;;  %6469 = vmatmul.mubr.msk.bf16.gmra.mrb[164].mxu0 %vm13066_vm2, %v13307_v0  ;;  %v13311_v0 = vld [vmem:[#allocation6_spill] sm:$0xff] }
 0x2ad   : > { %6363 = vmatmul.mubr.msk.bf16.gmra.mrb[112].mxu1 %vm13066_vm2, %v8447_v46  ;;  %6472 = vmatprep.mubr.msk.bf16.mxu0 %vm7200_vm1, %v13148_v56 }
 0x2ae   : > { %6366 = vmatprep.mubr.msk.bf16.mxu1 %vm7200_vm1, %v13148_v56 }
 0x2af   : > { %v1567_v63 = vpop.f32.mrb[60].mxu0 }
 0x2b0   : > { %v6034_v8 = vpop.f32.mrb[61].mxu0  ;;  %v8825_v44 = vadd.f32 %v1567_v63, %v13308_v52  ;;  %v13312_v52 = vld [vmem:[#allocation63_spill] sm:$0xff] }
 0x2b1   : > { %v1570_v28 = vpop.f32.mrb[62].mxu0 }
 0x2b2   : > { %v6035_v1 = vpop.f32.mrb[63].mxu0  ;;  %v8828_v38 = vadd.f32 %v1570_v28, %v13309_v54  ;;  %v13313_v54 = vld [vmem:[#allocation65_spill] sm:$0xff] }
 0x2b4   : > { %13310 = vst [vmem:[#allocation13_spill] sm:$0xff] %v8828_v38  ;;  %6473 = vmatmul.mubr.msk.bf16.gmra.mrb[168].mxu0 %vm13066_vm2, %v13311_v0  ;;  %v13315_v0 = vld [vmem:[#allocation10_spill] sm:$0xff] }
 0x2b5   : > { %6367 = vmatmul.mubr.msk.bf16.gmra.mrb[116].mxu1 %vm13066_vm2, %v8463_v20  ;;  %6476 = vmatprep.mubr.msk.bf16.mxu0 %vm7200_vm1, %v13148_v56 }
 0x2b6   : > { %6370 = vmatprep.mubr.msk.bf16.mxu1 %vm7200_vm1, %v13148_v56 }
 0x2b7   : > { %v1575_v8 = vpop.f32.mrb[64].mxu0 }
 0x2b8   : > { %v6038_v63 = vpop.f32.mrb[65].mxu0  ;;  %v8839_v46 = vadd.f32 %v1575_v8, %v13312_v52  ;;  %v13316_v8 = vld [vmem:[#allocation66_spill] sm:$0xff] }
 0x2b9   : > { %v1578_v1 = vpop.f32.mrb[66].mxu0 }
 0x2ba   : > { %v6039_v28 = vpop.f32.mrb[67].mxu0  ;;  %v8842_v38 = vadd.f32 %v1578_v1, %v13313_v54  ;;  %v13317_v1 = vld [vmem:[#allocation68_spill] sm:$0xff] }
 0x2bc   : > { %13314 = vst [vmem:[#allocation17_spill] sm:$0xff] %v8842_v38  ;;  %6477 = vmatmul.mubr.msk.bf16.gmra.mrb[172].mxu0 %vm13066_vm2, %v13315_v0  ;;  %v13319_v0 = vld [vmem:[#allocation14_spill] sm:$0xff] }
 0x2bd   : > { %6371 = vmatmul.mubr.msk.bf16.gmra.mrb[120].mxu1 %vm13066_vm2, %v8479_v43  ;;  %6480 = vmatprep.mubr.msk.bf16.mxu0 %vm7200_vm1, %v13148_v56 }
 0x2be   : > { %6374 = vmatprep.mubr.msk.bf16.mxu1 %vm7200_vm1, %v13148_v56 }
 0x2bf   : > { %v1583_v63 = vpop.f32.mrb[68].mxu0 }
 0x2c0   : > { %v8853_v52 = vadd.f32 %v1583_v63, %v13316_v8  ;;  %v6042_v28 = vpop.f32.mrb[69].mxu0  ;;  %v13320_v8 = vld [vmem:[#allocation69_spill] sm:$0xff] }
 0x2c1   : > { %v1586_v20 = vpop.f32.mrb[70].mxu0 }
 0x2c2   : > { %v8856_v54 = vadd.f32 %v1586_v20, %v13317_v1  ;;  %v6043_v38 = vpop.f32.mrb[71].mxu0  ;;  %v13321_v1 = vld [vmem:[#allocation71_spill] sm:$0xff] }
 0x2c4   : > { %13318 = vst [vmem:[#allocation21_spill] sm:$0xff] %v8856_v54  ;;  %6481 = vmatmul.mubr.msk.bf16.gmra.mrb[176].mxu0 %vm13066_vm2, %v13319_v0  ;;  %v13323_v0 = vld [vmem:[#allocation18_spill] sm:$0xff] }
 0x2c5   : > { %6375 = vmatmul.mubr.msk.bf16.gmra.mrb[124].mxu1 %vm13066_vm2, %v8495_v19  ;;  %6484 = vmatprep.mubr.msk.bf16.mxu0 %vm7200_vm1, %v13148_v56 }
 0x2c6   : > { %6378 = vmatprep.mubr.msk.bf16.mxu1 %vm7200_vm1, %v13148_v56 }
 0x2c7   : > { %v1591_v63 = vpop.f32.mrb[72].mxu0 }
 0x2c8   : > { %v8867_v28 = vadd.f32 %v1591_v63, %v13320_v8  ;;  %v6046_v43 = vpop.f32.mrb[73].mxu0  ;;  %v13324_v8 = vld [vmem:[#allocation72_spill] sm:$0xff] }
 0x2c9   : > { %v1594_v20 = vpop.f32.mrb[74].mxu0 }
 0x2ca   : > { %v8870_v38 = vadd.f32 %v1594_v20, %v13321_v1  ;;  %v6047_v54 = vpop.f32.mrb[75].mxu0  ;;  %v13325_v1 = vld [vmem:[#allocation74_spill] sm:$0xff] }
 0x2cc   : > { %13322 = vst [vmem:[#allocation25_spill] sm:$0xff] %v8870_v38  ;;  %6485 = vmatmul.mubr.msk.bf16.gmra.mrb[180].mxu0 %vm13066_vm2, %v13323_v0  ;;  %v13327_v0 = vld [vmem:[#allocation22_spill] sm:$0xff] }
 0x2cd   : > { %6379 = vmatmul.mubr.msk.bf16.gmra.mrb[128].mxu1 %vm13066_vm2, %v8511_v27  ;;  %6488 = vmatprep.mubr.msk.bf16.mxu0 %vm7200_vm1, %v13148_v56 }
 0x2ce   : > { %6382 = vmatprep.mubr.msk.bf16.mxu1 %vm7200_vm1, %v13148_v56 }
 0x2cf   : > { %v1599_v63 = vpop.f32.mrb[76].mxu0 }
 0x2d0   : > { %v8881_v43 = vadd.f32 %v1599_v63, %v13324_v8  ;;  %v6050_v19 = vpop.f32.mrb[77].mxu0  ;;  %v13328_v8 = vld [vmem:[#allocation75_spill] sm:$0xff] }
 0x2d1   : > { %v1602_v20 = vpop.f32.mrb[78].mxu0 }
 0x2d2   : > { %v8884_v54 = vadd.f32 %v1602_v20, %v13325_v1  ;;  %v6051_v38 = vpop.f32.mrb[79].mxu0  ;;  %v13329_v1 = vld [vmem:[#allocation77_spill] sm:$0xff] }
 0x2d4   : > { %13326 = vst [vmem:[#allocation29_spill] sm:$0xff] %v8884_v54  ;;  %6489 = vmatmul.mubr.msk.bf16.gmra.mrb[184].mxu0 %vm13066_vm2, %v13327_v0  ;;  %v13331_v0 = vld [vmem:[#allocation26_spill] sm:$0xff] }
 0x2d5   : > { %6383 = vmatmul.mubr.msk.bf16.gmra.mrb[132].mxu1 %vm13066_vm2, %v8527_v41  ;;  %6492 = vmatprep.mubr.msk.bf16.mxu0 %vm7200_vm1, %v13148_v56 }
 0x2d6   : > { %6386 = vmatprep.mubr.msk.bf16.mxu1 %vm7200_vm1, %v13148_v56 }
 0x2d7   : > { %v1607_v63 = vpop.f32.mrb[80].mxu0 }
 0x2d8   : > { %v8895_v19 = vadd.f32 %v1607_v63, %v13328_v8  ;;  %v6054_v27 = vpop.f32.mrb[81].mxu0  ;;  %v13332_v8 = vld [vmem:[#allocation78_spill] sm:$0xff] }
 0x2d9   : > { %v1610_v20 = vpop.f32.mrb[82].mxu0 }
 0x2da   : > { %v8898_v38 = vadd.f32 %v1610_v20, %v13329_v1  ;;  %v6055_v54 = vpop.f32.mrb[83].mxu0  ;;  %v13333_v1 = vld [vmem:[#allocation80_spill] sm:$0xff] }
 0x2dc   : > { %13330 = vst [vmem:[#allocation33_spill] sm:$0xff] %v8898_v38  ;;  %6493 = vmatmul.mubr.msk.bf16.gmra.mrb[188].mxu0 %vm13066_vm2, %v13331_v0  ;;  %v13335_v0 = vld [vmem:[#allocation30_spill] sm:$0xff] }
 0x2dd   : > { %6387 = vmatmul.mubr.msk.bf16.gmra.mrb[136].mxu1 %vm13066_vm2, %v8543_v50  ;;  %6496 = vmatprep.mubr.msk.bf16.mxu0 %vm7200_vm1, %v13148_v56 }
 0x2de   : > { %6390 = vmatprep.mubr.msk.bf16.mxu1 %vm7200_vm1, %v13148_v56 }
 0x2df   : > { %v1615_v63 = vpop.f32.mrb[84].mxu0 }
 0x2e0   : > { %v8909_v27 = vadd.f32 %v1615_v63, %v13332_v8  ;;  %v6058_v41 = vpop.f32.mrb[85].mxu0  ;;  %v13336_v8 = vld [vmem:[#allocation81_spill] sm:$0xff] }
 0x2e1   : > { %v1618_v20 = vpop.f32.mrb[86].mxu0 }
 0x2e2   : > { %v8912_v54 = vadd.f32 %v1618_v20, %v13333_v1  ;;  %v6059_v38 = vpop.f32.mrb[87].mxu0  ;;  %v13338_v1 = vld [vmem:[#allocation83_spill] sm:$0xff] }
 0x2e4   : > { %13334 = vst [vmem:[#allocation37_spill] sm:$0xff] %v8912_v54  ;;  %6497 = vmatmul.mubr.msk.bf16.gmra.mrb[192].mxu0 %vm13066_vm2, %v13335_v0  ;;  %v13340_v0 = vld [vmem:[#allocation34_spill] sm:$0xff] }
 0x2e5   : > { %6391 = vmatmul.mubr.msk.bf16.gmra.mrb[140].mxu1 %vm13066_vm2, %v8559_v37  ;;  %6500 = vmatprep.mubr.msk.bf16.mxu0 %vm7200_vm1, %v13148_v56 }
 0x2e6   : > { %6394 = vmatprep.mubr.msk.bf16.mxu1 %vm7200_vm1, %v13148_v56 }
 0x2e7   : > { %v1623_v63 = vpop.f32.mrb[88].mxu0 }
 0x2e8   : > { %v8923_v41 = vadd.f32 %v1623_v63, %v13336_v8  ;;  %v6062_v50 = vpop.f32.mrb[89].mxu0  ;;  %v13341_v8 = vld [vmem:[#allocation84_spill] sm:$0xff] }
 0x2e9   : > { %v1626_v20 = vpop.f32.mrb[90].mxu0 }
 0x2ea   : > { %13337 = vst [vmem:[#allocation42_spill] sm:$0xff] %v8923_v41  ;;  %v8926_v38 = vadd.f32 %v1626_v20, %v13338_v1  ;;  %v6063_v54 = vpop.f32.mrb[91].mxu0  ;;  %v13343_v1 = vld [vmem:[#allocation86_spill] sm:$0xff]  ;;  %v13355_v41 = vld [vmem:[#allocation51_spill] sm:$0xff] }
 0x2ec   : > { %13339 = vst [vmem:[#allocation47_spill] sm:$0xff] %v8926_v38  ;;  %6501 = vmatmul.mubr.msk.bf16.gmra.mrb[196].mxu0 %vm13066_vm2, %v13340_v0  ;;  %v13345_v0 = vld [vmem:[#allocation38_spill] sm:$0xff] }
 0x2ed   : > { %6395 = vmatmul.mubr.msk.bf16.gmra.mrb[144].mxu1 %vm13066_vm2, %v8575_v10  ;;  %6504 = vmatprep.mubr.msk.bf16.mxu0 %vm7200_vm1, %v13148_v56 }
 0x2ee   : > { %6398 = vmatprep.mubr.msk.bf16.mxu1 %vm7200_vm1, %v13148_v56 }
 0x2ef   : > { %v1631_v63 = vpop.f32.mrb[92].mxu0 }
 0x2f0   : > { %v8937_v50 = vadd.f32 %v1631_v63, %v13341_v8  ;;  %v6066_v37 = vpop.f32.mrb[93].mxu0  ;;  %v13346_v8 = vld [vmem:[#allocation87_spill] sm:$0xff] }
 0x2f1   : > { %v1634_v20 = vpop.f32.mrb[94].mxu0 }
 0x2f2   : > { %13342 = vst [vmem:[#allocation50_spill] sm:$0xff] %v8937_v50  ;;  %v8940_v54 = vadd.f32 %v1634_v20, %v13343_v1  ;;  %v6067_v38 = vpop.f32.mrb[95].mxu0  ;;  %v13348_v1 = vld [vmem:[#allocation89_spill] sm:$0xff] }
 0x2f4   : > { %13344 = vst [vmem:[#allocation52_spill] sm:$0xff] %v8940_v54  ;;  %6505 = vmatmul.mubr.msk.bf16.gmra.mrb[200].mxu0 %vm13066_vm2, %v13345_v0  ;;  %v13350_v0 = vld [vmem:[#allocation43_spill] sm:$0xff] }
 0x2f5   : > { %6399 = vmatmul.mubr.msk.bf16.gmra.mrb[148].mxu1 %vm13066_vm2, %v8591_v49  ;;  %6508 = vmatprep.mubr.msk.bf16.mxu0 %vm7200_vm1, %v13148_v56 }
 0x2f6   : > { %6402 = vmatprep.mubr.msk.bf16.mxu1 %vm7200_vm1, %v13148_v56 }
 0x2f7   : > { %v1639_v63 = vpop.f32.mrb[96].mxu0 }
 0x2f8   : > { %v8951_v37 = vadd.f32 %v1639_v63, %v13346_v8  ;;  %v6070_v10 = vpop.f32.mrb[97].mxu0  ;;  %v13351_v8 = vld [vmem:[#allocation90_spill] sm:$0xff] }
 0x2f9   : > { %v1642_v20 = vpop.f32.mrb[98].mxu0 }
 0x2fa   : > { %13347 = vst [vmem:[#allocation57_spill] sm:$0xff] %v8951_v37  ;;  %v8954_v38 = vadd.f32 %v1642_v20, %v13348_v1  ;;  %v6071_v54 = vpop.f32.mrb[99].mxu0  ;;  %v13353_v1 = vld [vmem:[#allocation92_spill] sm:$0xff] }
 0x2fc   : > { %13349 = vst [vmem:[#allocation59_spill] sm:$0xff] %v8954_v38  ;;  %6509 = vmatmul.mubr.msk.bf16.gmra.mrb[204].mxu0 %vm13066_vm2, %v13350_v0 }
 0x2fd   : > { %6403 = vmatmul.mubr.msk.bf16.gmra.mrb[152].mxu1 %vm13066_vm2, %v8607_v24  ;;  %6512 = vmatprep.mubr.msk.bf16.mxu0 %vm7200_vm1, %v13148_v56  ;;  %v13354_v24 = vld [vmem:[#allocation48_spill] sm:$0xff] }
 0x2fe   : > { %6406 = vmatprep.mubr.msk.bf16.mxu1 %vm7200_vm1, %v13148_v56 }
 0x2ff   : > { %v1647_v63 = vpop.f32.mrb[100].mxu0 }
 0x300   : > { %v8965_v10 = vadd.f32 %v1647_v63, %v13351_v8  ;;  %v6074_v49 = vpop.f32.mrb[101].mxu0 }
 0x301   : > { %v1650_v20 = vpop.f32.mrb[102].mxu0 }
 0x302   : > { %13352 = vst [vmem:[#allocation4_spill] sm:$0xff] %v8965_v10  ;;  %v6765_v54 = vadd.f32 %v1650_v20, %v13353_v1  ;;  %v6075_v38 = vpop.f32.mrb[103].mxu0 }
 0x304   : > { %6513 = vmatmul.mubr.msk.bf16.gmra.mrb[208].mxu0 %vm13066_vm2, %v13354_v24 }
 0x305   : > { %6407 = vmatmul.mubr.msk.bf16.gmra.mrb[156].mxu1 %vm13066_vm2, %v8627_v57  ;;  %6516 = vmatprep.mubr.msk.bf16.mxu0 %vm7200_vm1, %v13148_v56 }
 0x306   : > { %6522 = vmatprep.mubr.msk.bf16.mxu1 %vm7200_vm1, %v13148_v56 }
 0x307   : > { %v1655_v0 = vpop.f32.mrb[104].mxu0 }
 0x308   : > { %v2263_v63 = vpop.f32.mrb[52].mxu1  ;;  %v6766_v49 = vadd.f32 %v1655_v0, %v8166_v40  ;;  %v6078_v20 = vpop.f32.mrb[105].mxu0 }
 0x309   : > { %v8977_v8 = vadd.f32 %v6765_v54, %v2263_v63  ;;  %v6304_v38 = vpop.f32.mrb[53].mxu1  ;;  %v1658_v1 = vpop.f32.mrb[106].mxu0 }
 0x30a   : > { %v2266_v10 = vpop.f32.mrb[54].mxu1  ;;  %v6767_v57 = vadd.f32 %v1658_v1, %v8170_v60  ;;  %v6079_v24 = vpop.f32.mrb[107].mxu0 }
 0x30b   : > { %v8980_v37 = vadd.f32 %v6766_v49, %v2266_v10  ;;  %v6305_v50 = vpop.f32.mrb[55].mxu1 }
 0x30c   : > { %6517 = vmatmul.mubr.msk.bf16.gmra.mrb[212].mxu0 %vm13066_vm2, %v13355_v41 }
 0x30d   : > { %6523 = vmatmul.mubr.msk.bf16.vlgmr.msra.gmra.mrb[160].mxu1 %vm13066_vm2, %v7424_v61  ;;  %6632 = vmatprep.mubr.msk.bf16.mxu0 %vm7200_vm1, %v13148_v56 }
 0x30e   : > { %6526 = vmatprep.mubr.msk.bf16.mxu1 %vm7200_vm1, %v13148_v56 }
 0x30f   : > { %v8990_v54 = vpop.f32.mrb[108].mxu0 }
 0x310   : > { %v2271_v40 = vpop.f32.mrb[56].mxu1  ;;  %v6414_v0 = vpop.f32.mrb[109].mxu0 }
 0x311   : > { %v8992_v60 = vadd.f32 %v6767_v57, %v2271_v40  ;;  %v6308_v10 = vpop.f32.mrb[57].mxu1  ;;  %v8994_v63 = vpop.f32.mrb[110].mxu0 }
 0x312   : > { %v2274_v50 = vpop.f32.mrb[58].mxu1  ;;  %v6415_v49 = vpop.f32.mrb[111].mxu0 }
 0x313   : > { %v8997_v41 = vadd.f32 %v2274_v50, %v8638_v34  ;;  %v6309_v61 = vpop.f32.mrb[59].mxu1 }
 0x314   : > { %6633 = vmatmul.mubr.msk.bf16.vlgmr.msra.gmra.mrb[216].mxu0 %vm13066_vm2, %v7894_v45 }
 0x315   : > { %6527 = vmatmul.mubr.msk.bf16.gmra.mrb[164].mxu1 %vm13066_vm2, %v7426_v62  ;;  %6636 = vmatprep.mubr.msk.bf16.mxu0 %vm7200_vm1, %v13148_v56 }
 0x316   : > { %6530 = vmatprep.mubr.msk.bf16.mxu1 %vm7200_vm1, %v13148_v56 }
 0x317   : > { %v9007_v20 = vpop.f32.mrb[112].mxu0 }
 0x318   : > { %v2279_v57 = vpop.f32.mrb[60].mxu1  ;;  %v6418_v1 = vpop.f32.mrb[113].mxu0 }
 0x319   : > { %v9010_v34 = vadd.f32 %v2279_v57, %v8643_v23  ;;  %v6312_v38 = vpop.f32.mrb[61].mxu1  ;;  %v9012_v40 = vpop.f32.mrb[114].mxu0 }
 0x31a   : > { %v2282_v24 = vpop.f32.mrb[62].mxu1  ;;  %v6419_v10 = vpop.f32.mrb[115].mxu0 }
 0x31b   : > { %v9015_v62 = vadd.f32 %v2282_v24, %v8654_v2  ;;  %v6313_v45 = vpop.f32.mrb[63].mxu1 }
 0x31c   : > { %6637 = vmatmul.mubr.msk.bf16.gmra.mrb[220].mxu0 %vm13066_vm2, %v8223_v32 }
 0x31d   : > { %6531 = vmatmul.mubr.msk.bf16.gmra.mrb[168].mxu1 %vm13066_vm2, %v7736_v17  ;;  %6640 = vmatprep.mubr.msk.bf16.mxu0 %vm7200_vm1, %v13148_v56 }
 0x31e   : > { %6534 = vmatprep.mubr.msk.bf16.mxu1 %vm7200_vm1, %v13148_v56 }
 0x31f   : > { %v9025_v0 = vpop.f32.mrb[116].mxu0 }
 0x320   : > { %v2287_v23 = vpop.f32.mrb[64].mxu1  ;;  %v6422_v61 = vpop.f32.mrb[117].mxu0 }
 0x321   : > { %v9028_v2 = vadd.f32 %v2287_v23, %v8656_v36  ;;  %v6316_v50 = vpop.f32.mrb[65].mxu1  ;;  %v9030_v57 = vpop.f32.mrb[118].mxu0 }
 0x322   : > { %v2290_v49 = vpop.f32.mrb[66].mxu1  ;;  %v6423_v38 = vpop.f32.mrb[119].mxu0 }
 0x323   : > { %v9033_v17 = vadd.f32 %v2290_v49, %v8666_v51  ;;  %v6317_v32 = vpop.f32.mrb[67].mxu1 }
 0x324   : > { %6641 = vmatmul.mubr.msk.bf16.gmra.mrb[224].mxu0 %vm13066_vm2, %v8239_v18 }
 0x325   : > { %6535 = vmatmul.mubr.msk.bf16.gmra.mrb[172].mxu1 %vm13066_vm2, %v7752_v53  ;;  %6644 = vmatprep.mubr.msk.bf16.mxu0 %vm7200_vm1, %v13148_v56 }
 0x326   : > { %6538 = vmatprep.mubr.msk.bf16.mxu1 %vm7200_vm1, %v13148_v56 }
 0x327   : > { %v9043_v1 = vpop.f32.mrb[120].mxu0 }
 0x328   : > { %v2295_v36 = vpop.f32.mrb[68].mxu1  ;;  %v6426_v45 = vpop.f32.mrb[121].mxu0 }
 0x329   : > { %v9046_v51 = vadd.f32 %v2295_v36, %v8668_v9  ;;  %v6320_v24 = vpop.f32.mrb[69].mxu1  ;;  %v9048_v23 = vpop.f32.mrb[122].mxu0 }
 0x32a   : > { %v2298_v10 = vpop.f32.mrb[70].mxu1  ;;  %v6427_v50 = vpop.f32.mrb[123].mxu0 }
 0x32b   : > { %v9051_v53 = vadd.f32 %v2298_v10, %v8678_v5  ;;  %v6321_v18 = vpop.f32.mrb[71].mxu1 }
 0x32c   : > { %6645 = vmatmul.mubr.msk.bf16.gmra.mrb[228].mxu0 %vm13066_vm2, %v8255_v6 }
 0x32d   : > { %6539 = vmatmul.mubr.msk.bf16.gmra.mrb[176].mxu1 %vm13066_vm2, %v7768_v25  ;;  %6648 = vmatprep.mubr.msk.bf16.mxu0 %vm7200_vm1, %v13148_v56 }
 0x32e   : > { %6542 = vmatprep.mubr.msk.bf16.mxu1 %vm7200_vm1, %v13148_v56 }
 0x32f   : > { %v9061_v61 = vpop.f32.mrb[124].mxu0 }
 0x330   : > { %v2303_v9 = vpop.f32.mrb[72].mxu1  ;;  %v6430_v32 = vpop.f32.mrb[125].mxu0 }
 0x331   : > { %v9064_v5 = vadd.f32 %v2303_v9, %v8680_v11  ;;  %v6324_v49 = vpop.f32.mrb[73].mxu1  ;;  %v9066_v36 = vpop.f32.mrb[126].mxu0 }
 0x332   : > { %v2306_v38 = vpop.f32.mrb[74].mxu1  ;;  %v6431_v24 = vpop.f32.mrb[127].mxu0 }
 0x333   : > { %v9069_v25 = vadd.f32 %v2306_v38, %v8690_v7  ;;  %v6325_v6 = vpop.f32.mrb[75].mxu1 }
 0x334   : > { %6649 = vmatmul.mubr.msk.bf16.gmra.mrb[232].mxu0 %vm13066_vm2, %v8271_v30 }
 0x335   : > { %6543 = vmatmul.mubr.msk.bf16.gmra.mrb[180].mxu1 %vm13066_vm2, %v7784_v33  ;;  %6652 = vmatprep.mubr.msk.bf16.mxu0 %vm7200_vm1, %v13148_v56 }
 0x336   : > { %6546 = vmatprep.mubr.msk.bf16.mxu1 %vm7200_vm1, %v13148_v56 }
 0x337   : > { %v9079_v45 = vpop.f32.mrb[128].mxu0 }
 0x338   : > { %v2311_v11 = vpop.f32.mrb[76].mxu1  ;;  %v6434_v18 = vpop.f32.mrb[129].mxu0 }
 0x339   : > { %v9082_v7 = vadd.f32 %v2311_v11, %v8692_v21  ;;  %v6328_v10 = vpop.f32.mrb[77].mxu1  ;;  %v9084_v9 = vpop.f32.mrb[130].mxu0 }
 0x33a   : > { %v2314_v50 = vpop.f32.mrb[78].mxu1  ;;  %v6435_v49 = vpop.f32.mrb[131].mxu0 }
 0x33b   : > { %v9087_v33 = vadd.f32 %v2314_v50, %v8702_v31  ;;  %v6329_v30 = vpop.f32.mrb[79].mxu1 }
 0x33c   : > { %6653 = vmatmul.mubr.msk.bf16.gmra.mrb[236].mxu0 %vm13066_vm2, %v8287_v22 }
 0x33d   : > { %6547 = vmatmul.mubr.msk.bf16.gmra.mrb[184].mxu1 %vm13066_vm2, %v7800_v39  ;;  %6656 = vmatprep.mubr.msk.bf16.mxu0 %vm7200_vm1, %v13148_v56 }
 0x33e   : > { %6550 = vmatprep.mubr.msk.bf16.mxu1 %vm7200_vm1, %v13148_v56 }
 0x33f   : > { %v9097_v32 = vpop.f32.mrb[132].mxu0 }
 0x340   : > { %v2319_v21 = vpop.f32.mrb[80].mxu1  ;;  %v6438_v6 = vpop.f32.mrb[133].mxu0 }
 0x341   : > { %v9100_v31 = vadd.f32 %v2319_v21, %v8704_v12  ;;  %v6332_v38 = vpop.f32.mrb[81].mxu1  ;;  %v9102_v11 = vpop.f32.mrb[134].mxu0 }
 0x342   : > { %v2322_v24 = vpop.f32.mrb[82].mxu1  ;;  %v6439_v10 = vpop.f32.mrb[135].mxu0 }
 0x343   : > { %v9105_v39 = vadd.f32 %v2322_v24, %v8714_v59  ;;  %v6333_v22 = vpop.f32.mrb[83].mxu1 }
 0x344   : > { %6657 = vmatmul.mubr.msk.bf16.gmra.mrb[240].mxu0 %vm13066_vm2, %v8303_v3 }
 0x345   : > { %6551 = vmatmul.mubr.msk.bf16.gmra.mrb[188].mxu1 %vm13066_vm2, %v7816_v47  ;;  %6660 = vmatprep.mubr.msk.bf16.mxu0 %vm7200_vm1, %v13148_v56 }
 0x346   : > { %6554 = vmatprep.mubr.msk.bf16.mxu1 %vm7200_vm1, %v13148_v56 }
 0x347   : > { %v9115_v18 = vpop.f32.mrb[136].mxu0 }
 0x348   : > { %v2327_v12 = vpop.f32.mrb[84].mxu1  ;;  %v6442_v30 = vpop.f32.mrb[137].mxu0 }
 0x349   : > { %v9118_v59 = vadd.f32 %v2327_v12, %v8716_v48  ;;  %v6336_v50 = vpop.f32.mrb[85].mxu1  ;;  %v9120_v21 = vpop.f32.mrb[138].mxu0 }
 0x34a   : > { %v2330_v49 = vpop.f32.mrb[86].mxu1  ;;  %v6443_v38 = vpop.f32.mrb[139].mxu0 }
 0x34b   : > { %v9123_v47 = vadd.f32 %v2330_v49, %v8726_v15  ;;  %v6337_v3 = vpop.f32.mrb[87].mxu1 }
 0x34c   : > { %6661 = vmatmul.mubr.msk.bf16.gmra.mrb[244].mxu0 %vm13066_vm2, %v8319_v4 }
 0x34d   : > { %6555 = vmatmul.mubr.msk.bf16.gmra.mrb[192].mxu1 %vm13066_vm2, %v7832_v58  ;;  %6664 = vmatprep.mubr.msk.bf16.mxu0 %vm7200_vm1, %v13148_v56 }
 0x34e   : > { %6558 = vmatprep.mubr.msk.bf16.mxu1 %vm7200_vm1, %v13148_v56 }
 0x34f   : > { %v9133_v6 = vpop.f32.mrb[140].mxu0 }
 0x350   : > { %v2335_v48 = vpop.f32.mrb[88].mxu1  ;;  %v6446_v22 = vpop.f32.mrb[141].mxu0 }
 0x351   : > { %v9136_v15 = vadd.f32 %v2335_v48, %v8728_v13  ;;  %v6340_v24 = vpop.f32.mrb[89].mxu1  ;;  %v9138_v12 = vpop.f32.mrb[142].mxu0 }
 0x352   : > { %v2338_v10 = vpop.f32.mrb[90].mxu1  ;;  %v6447_v50 = vpop.f32.mrb[143].mxu0 }
 0x353   : > { %13356 = vst [vmem:[#allocation60_spill] sm:$0xff] %v9136_v15  ;;  %v9141_v58 = vadd.f32 %v2338_v10, %v8738_v55  ;;  %v6341_v4 = vpop.f32.mrb[91].mxu1  ;;  %v13361_v10 = vld [vmem:[#allocation54_spill] sm:$0xff] }
 0x354   : > { %6665 = vmatmul.mubr.msk.bf16.gmra.mrb[248].mxu0 %vm13066_vm2, %v8335_v26  ;;  %v13362_v4 = vld [vmem:[#allocation12_spill] sm:$0xff]  ;;  %v13380_v15 = vld [vmem:[#allocation58_spill] sm:$0xff] }
 0x355   : > { %13357 = vst [vmem:[#allocation62_spill] sm:$0xff] %v9141_v58  ;;  %6559 = vmatmul.mubr.msk.bf16.gmra.mrb[196].mxu1 %vm13066_vm2, %v13237_v42  ;;  %6668 = vmatprep.mubr.msk.bf16.mxu0 %vm7200_vm1, %v13148_v56  ;;  %v13359_v42 = vld [vmem:[#allocation35_spill] sm:$0xff] }
 0x356   : > { %6562 = vmatprep.mubr.msk.bf16.mxu1 %vm7200_vm1, %v13148_v56  ;;  %v13373_v58 = vld [vmem:[#allocation11_spill] sm:$0xff] }
 0x357   : > { %v9151_v30 = vpop.f32.mrb[144].mxu0 }
 0x358   : > { %v2343_v13 = vpop.f32.mrb[92].mxu1  ;;  %v6450_v3 = vpop.f32.mrb[145].mxu0 }
 0x359   : > { %v9154_v55 = vadd.f32 %v2343_v13, %v8740_v14  ;;  %v6344_v49 = vpop.f32.mrb[93].mxu1  ;;  %v9156_v48 = vpop.f32.mrb[146].mxu0 }
 0x35a   : > { %v2346_v38 = vpop.f32.mrb[94].mxu1  ;;  %v6451_v22 = vpop.f32.mrb[147].mxu0 }
 0x35b   : > { %13358 = vst [vmem:[#allocation6_spill] sm:$0xff] %v9154_v55  ;;  %v9159_v24 = vadd.f32 %v2346_v38, %v13359_v42  ;;  %v6345_v26 = vpop.f32.mrb[95].mxu1  ;;  %v13367_v55 = vld [vmem:[#allocation7_spill] sm:$0xff] }
 0x35c   : > { %6669 = vmatmul.mubr.msk.bf16.gmra.mrb[252].mxu0 %vm13066_vm2, %v13362_v4  ;;  %v13364_v26 = vld [vmem:[#allocation36_spill] sm:$0xff] }
 0x35d   : > { %13360 = vst [vmem:[#allocation63_spill] sm:$0xff] %v9159_v24  ;;  %6563 = vmatmul.mubr.msk.bf16.gmra.mrb[200].mxu1 %vm13066_vm2, %v13361_v10  ;;  %6672 = vmatprep.mubr.msk.bf16.mxu0 %vm7200_vm1, %v13148_v56  ;;  %v13366_v24 = vld [vmem:[#allocation55_spill] sm:$0xff] }
 0x35e   : > { %6566 = vmatprep.mubr.msk.bf16.mxu1 %vm7200_vm1, %v13148_v56 }
 0x35f   : > { %v9169_v50 = vpop.f32.mrb[148].mxu0 }
 0x360   : > { %v2351_v14 = vpop.f32.mrb[96].mxu1  ;;  %v6454_v3 = vpop.f32.mrb[149].mxu0 }
 0x361   : > { %v9172_v13 = vadd.f32 %v2351_v14, %v8752_v29  ;;  %v6348_v49 = vpop.f32.mrb[97].mxu1  ;;  %v9174_v42 = vpop.f32.mrb[150].mxu0 }
 0x362   : > { %v2354_v38 = vpop.f32.mrb[98].mxu1  ;;  %v6455_v4 = vpop.f32.mrb[151].mxu0 }
 0x363   : > { %13363 = vst [vmem:[#allocation65_spill] sm:$0xff] %v9172_v13  ;;  %v9177_v22 = vadd.f32 %v2354_v38, %v13364_v26  ;;  %v6349_v10 = vpop.f32.mrb[99].mxu1  ;;  %v13372_v13 = vld [vmem:[#allocation56_spill] sm:$0xff] }
 0x364   : > { %6673 = vmatmul.mubr.msk.bf16.gmra.mrb[0].mxu0 %vm13066_vm2, %v13367_v55 }
 0x365   : > { %13365 = vst [vmem:[#allocation10_spill] sm:$0xff] %v9177_v22  ;;  %6567 = vmatmul.mubr.msk.bf16.gmra.mrb[204].mxu1 %vm13066_vm2, %v13366_v24  ;;  %6676 = vmatprep.mubr.msk.bf16.mxu0 %vm7200_vm1, %v13148_v56  ;;  %v13370_v24 = vld [vmem:[#allocation40_spill] sm:$0xff] }
 0x366   : > { %6570 = vmatprep.mubr.msk.bf16.mxu1 %vm7200_vm1, %v13148_v56 }
 0x367   : > { %v9187_v14 = vpop.f32.mrb[152].mxu0 }
 0x368   : > { %v2359_v29 = vpop.f32.mrb[100].mxu1  ;;  %v6458_v38 = vpop.f32.mrb[153].mxu0 }
 0x369   : > { %v9190_v49 = vadd.f32 %v2359_v29, %v8764_v35  ;;  %v6352_v3 = vpop.f32.mrb[101].mxu1  ;;  %v9192_v10 = vpop.f32.mrb[154].mxu0 }
 0x36a   : > { %v2362_v26 = vpop.f32.mrb[102].mxu1  ;;  %13369 = vst [vmem:[#allocation68_spill] sm:$0xff] %v9192_v10  ;;  %v6459_v22 = vpop.f32.mrb[155].mxu0  ;;  %v13375_v3 = vld [vmem:[#allocation41_spill] sm:$0xff] }
 0x36b   : > { %13368 = vst [vmem:[#allocation66_spill] sm:$0xff] %v9190_v49  ;;  %v9195_v4 = vadd.f32 %v2362_v26, %v13370_v24  ;;  %v6353_v55 = vpop.f32.mrb[103].mxu1  ;;  %v13381_v10 = vld [vmem:[#allocation53_spill] sm:$0xff] }
 0x36c   : > { %6677 = vmatmul.mubr.msk.bf16.gmra.mrb[4].mxu0 %vm13066_vm2, %v13373_v58 }
 0x36d   : > { %13371 = vst [vmem:[#allocation14_spill] sm:$0xff] %v9195_v4  ;;  %6571 = vmatmul.mubr.msk.bf16.gmra.mrb[208].mxu1 %vm13066_vm2, %v13372_v13  ;;  %6680 = vmatprep.mubr.msk.bf16.mxu0 %vm7200_vm1, %v13148_v56  ;;  %v13378_v13 = vld [vmem:[#allocation46_spill] sm:$0xff] }
 0x36e   : > { %6574 = vmatprep.mubr.msk.bf16.mxu1 %vm7200_vm1, %v13148_v56 }
 0x36f   : > { %v9205_v29 = vpop.f32.mrb[156].mxu0 }
 0x370   : > { %v2367_v35 = vpop.f32.mrb[104].mxu1  ;;  %13374 = vst [vmem:[#allocation69_spill] sm:$0xff] %v9205_v29  ;;  %v6462_v22 = vpop.f32.mrb[157].mxu0  ;;  %v13388_v29 = vld [vmem:[#allocation39_spill] sm:$0xff] }
 0x371   : > { %v9208_v38 = vadd.f32 %v2367_v35, %v13375_v3  ;;  %v6356_v26 = vpop.f32.mrb[105].mxu1  ;;  %v9210_v55 = vpop.f32.mrb[158].mxu0 }
 0x372   : > { %v2370_v24 = vpop.f32.mrb[106].mxu1  ;;  %13377 = vst [vmem:[#allocation18_spill] sm:$0xff] %v9210_v55  ;;  %v6463_v49 = vpop.f32.mrb[159].mxu0  ;;  %v13382_v26 = vld [vmem:[#allocation2_spill] sm:$0xff]  ;;  %v13387_v55 = vld [vmem:[#allocation61_spill] sm:$0xff] }
 0x373   : > { %13376 = vst [vmem:[#allocation71_spill] sm:$0xff] %v9208_v38  ;;  %v9213_v4 = vadd.f32 %v2370_v24, %v13378_v13  ;;  %v6357_v58 = vpop.f32.mrb[107].mxu1 }
 0x374   : > { %6681 = vmatmul.mubr.msk.bf16.gmra.mrb[8].mxu0 %vm13066_vm2, %v13381_v10 }
 0x375   : > { %13379 = vst [vmem:[#allocation72_spill] sm:$0xff] %v9213_v4  ;;  %6575 = vmatmul.mubr.msk.bf16.gmra.mrb[212].mxu1 %vm13066_vm2, %v13380_v15  ;;  %6684 = vmatprep.mubr.msk.bf16.mxu0 %vm7200_vm1, %v13148_v56  ;;  %v13385_v15 = vld [vmem:[#allocation3_spill] sm:$0xff] }
 0x376   : > { %6578 = vmatprep.mubr.msk.bf16.mxu1 %vm7200_vm1, %v13148_v56 }
 0x377   : > { %v9223_v3 = vpop.f32.mrb[160].mxu0 }
 0x378   : > { %v2375_v35 = vpop.f32.mrb[108].mxu1  ;;  %v6466_v49 = vpop.f32.mrb[161].mxu0 }
 0x379   : > { %v9226_v22 = vadd.f32 %v2375_v35, %v13382_v26  ;;  %v6360_v24 = vpop.f32.mrb[109].mxu1  ;;  %v9228_v58 = vpop.f32.mrb[162].mxu0 }
 0x37a   : > { %v2378_v13 = vpop.f32.mrb[110].mxu1  ;;  %13384 = vst [vmem:[#allocation22_spill] sm:$0xff] %v9228_v58  ;;  %v6467_v38 = vpop.f32.mrb[163].mxu0  ;;  %v13389_v24 = vld [vmem:[#allocation5_spill] sm:$0xff]  ;;  %v13394_v58 = vld [vmem:[#allocation44_spill] sm:$0xff] }
 0x37b   : > { %13383 = vst [vmem:[#allocation74_spill] sm:$0xff] %v9226_v22  ;;  %v9231_v4 = vadd.f32 %v2378_v13, %v13385_v15  ;;  %v6361_v10 = vpop.f32.mrb[111].mxu1  ;;  %v13393_v22 = vld [vmem:[#allocation64_spill] sm:$0xff] }
 0x37c   : > { %6685 = vmatmul.mubr.msk.bf16.gmra.mrb[12].mxu0 %vm13066_vm2, %v13388_v29 }
 0x37d   : > { %13386 = vst [vmem:[#allocation75_spill] sm:$0xff] %v9231_v4  ;;  %6579 = vmatmul.mubr.msk.bf16.gmra.mrb[216].mxu1 %vm13066_vm2, %v13387_v55  ;;  %6688 = vmatprep.mubr.msk.bf16.mxu0 %vm7200_vm1, %v13148_v56 }
 0x37e   : > { %6582 = vmatprep.mubr.msk.bf16.mxu1 %vm7200_vm1, %v13148_v56 }
 0x37f   : > { %v9241_v26 = vpop.f32.mrb[164].mxu0 }
 0x380   : > { %v2383_v35 = vpop.f32.mrb[112].mxu1  ;;  %v6470_v38 = vpop.f32.mrb[165].mxu0 }
 0x381   : > { %v9244_v49 = vadd.f32 %v2383_v35, %v13389_v24  ;;  %v6364_v13 = vpop.f32.mrb[113].mxu1  ;;  %v9246_v10 = vpop.f32.mrb[166].mxu0 }
 0x382   : > { %v2386_v15 = vpop.f32.mrb[114].mxu1  ;;  %13391 = vst [vmem:[#allocation26_spill] sm:$0xff] %v9246_v10  ;;  %v6471_v4 = vpop.f32.mrb[167].mxu0  ;;  %v13395_v13 = vld [vmem:[#allocation9_spill] sm:$0xff] }
 0x383   : > { %13390 = vst [vmem:[#allocation77_spill] sm:$0xff] %v9244_v49  ;;  %v9249_v55 = vadd.f32 %v8811_v16, %v2386_v15  ;;  %v6365_v29 = vpop.f32.mrb[115].mxu1  ;;  %v13399_v49 = vld [vmem:[#allocation67_spill] sm:$0xff]  ;;  %v13400_v10 = vld [vmem:[#allocation93_spill] sm:$0xff] }
 0x384   : > { %6689 = vmatmul.mubr.msk.bf16.gmra.mrb[16].mxu0 %vm13066_vm2, %v13394_v58 }
 0x385   : > { %13392 = vst [vmem:[#allocation78_spill] sm:$0xff] %v9249_v55  ;;  %6583 = vmatmul.mubr.msk.bf16.gmra.mrb[220].mxu1 %vm13066_vm2, %v13393_v22  ;;  %6692 = vmatprep.mubr.msk.bf16.mxu0 %vm7200_vm1, %v13148_v56 }
 0x386   : > { %6586 = vmatprep.mubr.msk.bf16.mxu1 %vm7200_vm1, %v13148_v56 }
 0x387   : > { %v9259_v24 = vpop.f32.mrb[168].mxu0 }
 0x388   : > { %v2391_v35 = vpop.f32.mrb[116].mxu1  ;;  %v6474_v4 = vpop.f32.mrb[169].mxu0 }
 0x389   : > { %v9262_v16 = vadd.f32 %v13395_v13, %v2391_v35  ;;  %v6368_v38 = vpop.f32.mrb[117].mxu1  ;;  %v9264_v29 = vpop.f32.mrb[170].mxu0 }
 0x38a   : > { %v2394_v15 = vpop.f32.mrb[118].mxu1  ;;  %13397 = vst [vmem:[#allocation30_spill] sm:$0xff] %v9264_v29  ;;  %v6475_v55 = vpop.f32.mrb[171].mxu0  ;;  %v13401_v38 = vld [vmem:[#allocation13_spill] sm:$0xff]  ;;  %v13406_v29 = vld [vmem:[#allocation94_spill] sm:$0xff] }
 0x38b   : > { %13396 = vst [vmem:[#allocation80_spill] sm:$0xff] %v9262_v16  ;;  %v9267_v22 = vadd.f32 %v8825_v44, %v2394_v15  ;;  %v6369_v58 = vpop.f32.mrb[119].mxu1  ;;  %v13405_v16 = vld [vmem:[#allocation70_spill] sm:$0xff] }
 0x38c   : > { %6693 = vmatmul.mubr.msk.bf16.gmra.mrb[20].mxu0 %vm13066_vm2, %v13400_v10 }
 0x38d   : > { %13398 = vst [vmem:[#allocation81_spill] sm:$0xff] %v9267_v22  ;;  %6587 = vmatmul.mubr.msk.bf16.gmra.mrb[224].mxu1 %vm13066_vm2, %v13399_v49  ;;  %6696 = vmatprep.mubr.msk.bf16.mxu0 %vm7200_vm1, %v13148_v56 }
 0x38e   : > { %6590 = vmatprep.mubr.msk.bf16.mxu1 %vm7200_vm1, %v13148_v56 }
 0x38f   : > { %v9277_v13 = vpop.f32.mrb[172].mxu0 }
 0x390   : > { %v2399_v35 = vpop.f32.mrb[120].mxu1  ;;  %v6478_v55 = vpop.f32.mrb[173].mxu0 }
 0x391   : > { %v9280_v44 = vadd.f32 %v13401_v38, %v2399_v35  ;;  %v6372_v4 = vpop.f32.mrb[121].mxu1  ;;  %v9282_v58 = vpop.f32.mrb[174].mxu0 }
 0x392   : > { %v2402_v15 = vpop.f32.mrb[122].mxu1  ;;  %13403 = vst [vmem:[#allocation34_spill] sm:$0xff] %v9282_v58  ;;  %v6479_v22 = vpop.f32.mrb[175].mxu0  ;;  %v13407_v4 = vld [vmem:[#allocation17_spill] sm:$0xff]  ;;  %v13412_v58 = vld [vmem:[#allocation15_spill] sm:$0xff] }
 0x393   : > { %13402 = vst [vmem:[#allocation83_spill] sm:$0xff] %v9280_v44  ;;  %v9285_v49 = vadd.f32 %v8839_v46, %v2402_v15  ;;  %v6373_v10 = vpop.f32.mrb[123].mxu1  ;;  %v13411_v44 = vld [vmem:[#allocation73_spill] sm:$0xff] }
 0x394   : > { %6697 = vmatmul.mubr.msk.bf16.gmra.mrb[24].mxu0 %vm13066_vm2, %v13406_v29 }
 0x395   : > { %13404 = vst [vmem:[#allocation84_spill] sm:$0xff] %v9285_v49  ;;  %6591 = vmatmul.mubr.msk.bf16.gmra.mrb[228].mxu1 %vm13066_vm2, %v13405_v16  ;;  %6700 = vmatprep.mubr.msk.bf16.mxu0 %vm7200_vm1, %v13148_v56 }
 0x396   : > { %6594 = vmatprep.mubr.msk.bf16.mxu1 %vm7200_vm1, %v13148_v56 }
 0x397   : > { %v9295_v38 = vpop.f32.mrb[176].mxu0 }
 0x398   : > { %v2407_v35 = vpop.f32.mrb[124].mxu1  ;;  %v6482_v22 = vpop.f32.mrb[177].mxu0 }
 0x399   : > { %v9298_v46 = vadd.f32 %v13407_v4, %v2407_v35  ;;  %v6376_v55 = vpop.f32.mrb[125].mxu1  ;;  %v9300_v10 = vpop.f32.mrb[178].mxu0 }
 0x39a   : > { %v2410_v15 = vpop.f32.mrb[126].mxu1  ;;  %13409 = vst [vmem:[#allocation38_spill] sm:$0xff] %v9300_v10  ;;  %v6483_v49 = vpop.f32.mrb[179].mxu0  ;;  %v13414_v55 = vld [vmem:[#allocation21_spill] sm:$0xff]  ;;  %v13419_v10 = vld [vmem:[#allocation16_spill] sm:$0xff] }
 0x39b   : > { %13408 = vst [vmem:[#allocation86_spill] sm:$0xff] %v9298_v46  ;;  %v9303_v16 = vadd.f32 %v8853_v52, %v2410_v15  ;;  %v6377_v29 = vpop.f32.mrb[127].mxu1  ;;  %v13418_v46 = vld [vmem:[#allocation76_spill] sm:$0xff] }
 0x39c   : > { %6701 = vmatmul.mubr.msk.bf16.gmra.mrb[28].mxu0 %vm13066_vm2, %v13412_v58 }
 0x39d   : > { %13410 = vst [vmem:[#allocation87_spill] sm:$0xff] %v9303_v16  ;;  %6595 = vmatmul.mubr.msk.bf16.gmra.mrb[232].mxu1 %vm13066_vm2, %v13411_v44  ;;  %6704 = vmatprep.mubr.msk.bf16.mxu0 %vm7200_vm1, %v13148_v56 }
 0x39e   : > { %6598 = vmatprep.mubr.msk.bf16.mxu1 %vm7200_vm1, %v13148_v56 }
 0x39f   : > { %v9313_v4 = vpop.f32.mrb[180].mxu0 }
 0x3a0   : > { %v2415_v35 = vpop.f32.mrb[128].mxu1  ;;  %13413 = vst [vmem:[#allocation89_spill] sm:$0xff] %v9313_v4  ;;  %v6486_v49 = vpop.f32.mrb[181].mxu0 }
 0x3a1   : > { %v9316_v52 = vadd.f32 %v13414_v55, %v2415_v35  ;;  %v6380_v22 = vpop.f32.mrb[129].mxu1  ;;  %v9318_v29 = vpop.f32.mrb[182].mxu0 }
 0x3a2   : > { %v2418_v15 = vpop.f32.mrb[130].mxu1  ;;  %13416 = vst [vmem:[#allocation90_spill] sm:$0xff] %v9318_v29  ;;  %v6487_v16 = vpop.f32.mrb[183].mxu0  ;;  %v13421_v22 = vld [vmem:[#allocation25_spill] sm:$0xff]  ;;  %v13426_v29 = vld [vmem:[#allocation19_spill] sm:$0xff] }
 0x3a3   : > { %13415 = vst [vmem:[#allocation43_spill] sm:$0xff] %v9316_v52  ;;  %v9321_v44 = vadd.f32 %v8867_v28, %v2418_v15  ;;  %v6381_v58 = vpop.f32.mrb[131].mxu1  ;;  %v13425_v52 = vld [vmem:[#allocation79_spill] sm:$0xff] }
 0x3a4   : > { %6705 = vmatmul.mubr.msk.bf16.gmra.mrb[32].mxu0 %vm13066_vm2, %v13419_v10 }
 0x3a5   : > { %13417 = vst [vmem:[#allocation92_spill] sm:$0xff] %v9321_v44  ;;  %6599 = vmatmul.mubr.msk.bf16.gmra.mrb[236].mxu1 %vm13066_vm2, %v13418_v46  ;;  %6708 = vmatprep.mubr.msk.bf16.mxu0 %vm7200_vm1, %v13148_v56 }
 0x3a6   : > { %6602 = vmatprep.mubr.msk.bf16.mxu1 %vm7200_vm1, %v13148_v56 }
 0x3a7   : > { %v9331_v55 = vpop.f32.mrb[184].mxu0 }
 0x3a8   : > { %v2423_v35 = vpop.f32.mrb[132].mxu1  ;;  %13420 = vst [vmem:[#allocation48_spill] sm:$0xff] %v9331_v55  ;;  %v6490_v16 = vpop.f32.mrb[185].mxu0 }
 0x3a9   : > { %v9334_v28 = vadd.f32 %v13421_v22, %v2423_v35  ;;  %v6384_v49 = vpop.f32.mrb[133].mxu1  ;;  %v9336_v58 = vpop.f32.mrb[186].mxu0 }
 0x3aa   : > { %v2426_v15 = vpop.f32.mrb[134].mxu1  ;;  %13423 = vst [vmem:[#allocation35_spill] sm:$0xff] %v9336_v58  ;;  %v6491_v44 = vpop.f32.mrb[187].mxu0  ;;  %v13428_v49 = vld [vmem:[#allocation29_spill] sm:$0xff]  ;;  %v13433_v58 = vld [vmem:[#allocation20_spill] sm:$0xff] }
 0x3ab   : > { %13422 = vst [vmem:[#allocation51_spill] sm:$0xff] %v9334_v28  ;;  %v9339_v46 = vadd.f32 %v8881_v43, %v2426_v15  ;;  %v6385_v10 = vpop.f32.mrb[135].mxu1  ;;  %v13432_v28 = vld [vmem:[#allocation82_spill] sm:$0xff] }
 0x3ac   : > { %6709 = vmatmul.mubr.msk.bf16.gmra.mrb[36].mxu0 %vm13066_vm2, %v13426_v29 }
 0x3ad   : > { %13424 = vst [vmem:[#allocation54_spill] sm:$0xff] %v9339_v46  ;;  %6603 = vmatmul.mubr.msk.bf16.gmra.mrb[240].mxu1 %vm13066_vm2, %v13425_v52  ;;  %6712 = vmatprep.mubr.msk.bf16.mxu0 %vm7200_vm1, %v13148_v56 }
 0x3ae   : > { %6606 = vmatprep.mubr.msk.bf16.mxu1 %vm7200_vm1, %v13148_v56 }
 0x3af   : > { %v9349_v22 = vpop.f32.mrb[188].mxu0 }
 0x3b0   : > { %v2431_v35 = vpop.f32.mrb[136].mxu1  ;;  %13427 = vst [vmem:[#allocation12_spill] sm:$0xff] %v9349_v22  ;;  %v6494_v44 = vpop.f32.mrb[189].mxu0  ;;  %v13469_v22 = vld [vmem:[#allocation31_spill] sm:$0xff] }
 0x3b1   : > { %v9352_v43 = vadd.f32 %v13428_v49, %v2431_v35  ;;  %v6388_v16 = vpop.f32.mrb[137].mxu1  ;;  %v9354_v10 = vpop.f32.mrb[190].mxu0 }
 0x3b2   : > { %v2434_v15 = vpop.f32.mrb[138].mxu1  ;;  %13430 = vst [vmem:[#allocation55_spill] sm:$0xff] %v9354_v10  ;;  %v6495_v46 = vpop.f32.mrb[191].mxu0  ;;  %v13435_v16 = vld [vmem:[#allocation33_spill] sm:$0xff]  ;;  %v13440_v10 = vld [vmem:[#allocation23_spill] sm:$0xff] }
 0x3b3   : > { %13429 = vst [vmem:[#allocation36_spill] sm:$0xff] %v9352_v43  ;;  %v9357_v52 = vadd.f32 %v8895_v19, %v2434_v15  ;;  %v6389_v29 = vpop.f32.mrb[139].mxu1  ;;  %v13439_v43 = vld [vmem:[#allocation85_spill] sm:$0xff] }
 0x3b4   : > { %6713 = vmatmul.mubr.msk.bf16.gmra.mrb[40].mxu0 %vm13066_vm2, %v13433_v58 }
 0x3b5   : > { %13431 = vst [vmem:[#allocation7_spill] sm:$0xff] %v9357_v52  ;;  %6607 = vmatmul.mubr.msk.bf16.gmra.mrb[244].mxu1 %vm13066_vm2, %v13432_v28  ;;  %6716 = vmatprep.mubr.msk.bf16.mxu0 %vm7200_vm1, %v13148_v56 }
 0x3b6   : > { %6610 = vmatprep.mubr.msk.bf16.mxu1 %vm7200_vm1, %v13148_v56 }
 0x3b7   : > { %v9367_v49 = vpop.f32.mrb[192].mxu0 }
 0x3b8   : > { %v2439_v35 = vpop.f32.mrb[140].mxu1  ;;  %13434 = vst [vmem:[#allocation40_spill] sm:$0xff] %v9367_v49  ;;  %v6498_v46 = vpop.f32.mrb[193].mxu0  ;;  %v13448_v49 = vld [vmem:[#allocation24_spill] sm:$0xff] }
 0x3b9   : > { %v9370_v19 = vadd.f32 %v13435_v16, %v2439_v35  ;;  %v6392_v44 = vpop.f32.mrb[141].mxu1  ;;  %v9372_v29 = vpop.f32.mrb[194].mxu0 }
 0x3ba   : > { %v2442_v15 = vpop.f32.mrb[142].mxu1  ;;  %13437 = vst [vmem:[#allocation11_spill] sm:$0xff] %v9372_v29  ;;  %v6499_v52 = vpop.f32.mrb[195].mxu0  ;;  %v13442_v44 = vld [vmem:[#allocation37_spill] sm:$0xff]  ;;  %v13447_v29 = vld [vmem:[#allocation88_spill] sm:$0xff] }
 0x3bb   : > { %13436 = vst [vmem:[#allocation56_spill] sm:$0xff] %v9370_v19  ;;  %v9375_v28 = vadd.f32 %v8909_v27, %v2442_v15  ;;  %v6393_v58 = vpop.f32.mrb[143].mxu1 }
 0x3bc   : > { %6717 = vmatmul.mubr.msk.bf16.gmra.mrb[44].mxu0 %vm13066_vm2, %v13440_v10 }
 0x3bd   : > { %13438 = vst [vmem:[#allocation41_spill] sm:$0xff] %v9375_v28  ;;  %6611 = vmatmul.mubr.msk.bf16.gmra.mrb[248].mxu1 %vm13066_vm2, %v13439_v43  ;;  %6720 = vmatprep.mubr.msk.bf16.mxu0 %vm7200_vm1, %v13148_v56  ;;  %v13445_v43 = vld [vmem:[#allocation42_spill] sm:$0xff] }
 0x3be   : > { %6614 = vmatprep.mubr.msk.bf16.mxu1 %vm7200_vm1, %v13148_v56 }
 0x3bf   : > { %v9385_v16 = vpop.f32.mrb[196].mxu0 }
 0x3c0   : > { %v2447_v35 = vpop.f32.mrb[144].mxu1  ;;  %13441 = vst [vmem:[#allocation46_spill] sm:$0xff] %v9385_v16  ;;  %v6502_v52 = vpop.f32.mrb[197].mxu0  ;;  %v13456_v16 = vld [vmem:[#allocation27_spill] sm:$0xff] }
 0x3c1   : > { %v9388_v27 = vadd.f32 %v13442_v44, %v2447_v35  ;;  %v6396_v46 = vpop.f32.mrb[145].mxu1  ;;  %v9390_v58 = vpop.f32.mrb[198].mxu0 }
 0x3c2   : > { %v2450_v15 = vpop.f32.mrb[146].mxu1  ;;  %13444 = vst [vmem:[#allocation53_spill] sm:$0xff] %v9390_v58  ;;  %v6503_v19 = vpop.f32.mrb[199].mxu0  ;;  %v13450_v46 = vld [vmem:[#allocation47_spill] sm:$0xff] }
 0x3c3   : > { %13443 = vst [vmem:[#allocation58_spill] sm:$0xff] %v9388_v27  ;;  %v9393_v28 = vadd.f32 %v13445_v43, %v2450_v15  ;;  %v6397_v10 = vpop.f32.mrb[147].mxu1  ;;  %v13455_v58 = vld [vmem:[#allocation91_spill] sm:$0xff] }
 0x3c4   : > { %6721 = vmatmul.mubr.msk.bf16.gmra.mrb[48].mxu0 %vm13066_vm2, %v13448_v49 }
 0x3c5   : > { %13446 = vst [vmem:[#allocation2_spill] sm:$0xff] %v9393_v28  ;;  %6615 = vmatmul.mubr.msk.bf16.gmra.mrb[252].mxu1 %vm13066_vm2, %v13447_v29  ;;  %6724 = vmatprep.mubr.msk.bf16.mxu0 %vm7200_vm1, %v13148_v56  ;;  %v13453_v29 = vld [vmem:[#allocation50_spill] sm:$0xff] }
 0x3c6   : > { %6618 = vmatprep.mubr.msk.bf16.mxu1 %vm7200_vm1, %v13148_v56 }
 0x3c7   : > { %v9403_v44 = vpop.f32.mrb[200].mxu0 }
 0x3c8   : > { %v2455_v35 = vpop.f32.mrb[148].mxu1  ;;  %13449 = vst [vmem:[#allocation3_spill] sm:$0xff] %v9403_v44  ;;  %v6506_v19 = vpop.f32.mrb[201].mxu0  ;;  %v13463_v44 = vld [vmem:[#allocation28_spill] sm:$0xff] }
 0x3c9   : > { %v9406_v52 = vadd.f32 %v13450_v46, %v2455_v35  ;;  %v6400_v15 = vpop.f32.mrb[149].mxu1  ;;  %v9408_v10 = vpop.f32.mrb[202].mxu0 }
 0x3ca   : > { %v2458_v43 = vpop.f32.mrb[150].mxu1  ;;  %13452 = vst [vmem:[#allocation39_spill] sm:$0xff] %v9408_v10  ;;  %v6507_v27 = vpop.f32.mrb[203].mxu0  ;;  %v13458_v15 = vld [vmem:[#allocation52_spill] sm:$0xff]  ;;  %v13462_v10 = vld [vmem:[#allocation45_spill] sm:$0xff] }
 0x3cb   : > { %13451 = vst [vmem:[#allocation61_spill] sm:$0xff] %v9406_v52  ;;  %v9411_v28 = vadd.f32 %v13453_v29, %v2458_v43  ;;  %v6401_v49 = vpop.f32.mrb[151].mxu1 }
 0x3cc   : > { %6725 = vmatmul.mubr.msk.bf16.gmra.mrb[52].mxu0 %vm13066_vm2, %v13456_v16 }
 0x3cd   : > { %13454 = vst [vmem:[#allocation5_spill] sm:$0xff] %v9411_v28  ;;  %6619 = vmatmul.mubr.msk.bf16.gmra.mrb[0].mxu1 %vm13066_vm2, %v13455_v58  ;;  %6728 = vmatprep.mubr.msk.bf16.mxu0 %vm7200_vm1, %v13148_v56  ;;  %v13461_v58 = vld [vmem:[#allocation57_spill] sm:$0xff] }
 0x3ce   : > { %6622 = vmatprep.mubr.msk.bf16.mxu1 %vm7200_vm1, %v13148_v56 }
 0x3cf   : > { %v9421_v46 = vpop.f32.mrb[204].mxu0 }
 0x3d0   : > { %v2463_v35 = vpop.f32.mrb[152].mxu1  ;;  %13457 = vst [vmem:[#allocation64_spill] sm:$0xff] %v9421_v46  ;;  %v6510_v27 = vpop.f32.mrb[205].mxu0  ;;  %v13468_v46 = vld [vmem:[#allocation49_spill] sm:$0xff] }
 0x3d1   : > { %v9424_v19 = vadd.f32 %v13458_v15, %v2463_v35  ;;  %v6404_v43 = vpop.f32.mrb[153].mxu1  ;;  %v9426_v49 = vpop.f32.mrb[206].mxu0 }
 0x3d2   : > { %v2466_v29 = vpop.f32.mrb[154].mxu1  ;;  %13460 = vst [vmem:[#allocation9_spill] sm:$0xff] %v9426_v49  ;;  %v6511_v52 = vpop.f32.mrb[207].mxu0  ;;  %v13465_v43 = vld [vmem:[#allocation59_spill] sm:$0xff] }
 0x3d3   : > { %13459 = vst [vmem:[#allocation44_spill] sm:$0xff] %v9424_v19  ;;  %v3399_v28 = vadd.f32 %v13461_v58, %v2466_v29  ;;  %v6405_v16 = vpop.f32.mrb[155].mxu1 }
 0x3d4   : > { %6729 = vmatmul.mubr.msk.bf16.gmra.mrb[56].mxu0 %vm13066_vm2, %v13463_v44 }
 0x3d5   : > { %6623 = vmatmul.mubr.msk.bf16.gmra.mrb[4].mxu1 %vm13066_vm2, %v13462_v10  ;;  %6732 = vmatprep.mubr.msk.bf16.mxu0 %vm7200_vm1, %v13148_v56  ;;  %v13467_v10 = vld [vmem:[#allocation4_spill] sm:$0xff] }
 0x3d6   : > { %6626 = vmatprep.mubr.msk.bf16.mxu1 %vm7200_vm1, %v13148_v56 }
 0x3d7   : > { %v9437_v15 = vpop.f32.mrb[208].mxu0 }
 0x3d8   : > { %v2471_v35 = vpop.f32.mrb[156].mxu1  ;;  %13464 = vst [vmem:[#allocation67_spill] sm:$0xff] %v9437_v15  ;;  %v6514_v58 = vpop.f32.mrb[209].mxu0  ;;  %v13472_v15 = vld [vmem:[#allocation32_spill] sm:$0xff] }
 0x3d9   : > { %v3400_v27 = vadd.f32 %v13465_v43, %v2471_v35  ;;  %v6408_v29 = vpop.f32.mrb[157].mxu1  ;;  %v9440_v16 = vpop.f32.mrb[210].mxu0 }
 0x3da   : > { %v2474_v52 = vpop.f32.mrb[158].mxu1  ;;  %13466 = vst [vmem:[#allocation93_spill] sm:$0xff] %v9440_v16  ;;  %v6515_v44 = vpop.f32.mrb[211].mxu0 }
 0x3db   : > { %v3401_v19 = vadd.f32 %v13467_v10, %v2474_v52  ;;  %v6409_v49 = vpop.f32.mrb[159].mxu1 }
 0x3dc   : > { %6733 = vmatmul.mubr.msk.bf16.gmra.mrb[60].mxu0 %vm13066_vm2, %v13469_v22 }
 0x3dd   : > { %6627 = vmatmul.mubr.msk.bf16.gmra.mrb[8].mxu1 %vm13066_vm2, %v13468_v46  ;;  %6736 = vmatprep.mubr.msk.bf16.mxu0 %vm7200_vm1, %v13148_v56 }
 0x3df   : > { %v9449_v35 = vpop.f32.mrb[212].mxu0 }
 0x3e0   : > { %13470 = vst [vmem:[#allocation13_spill] sm:$0xff] %v9449_v35  ;;  %v2825_v43 = vpop.f32.mrb[160].mxu1  ;;  %v6518_v58 = vpop.f32.mrb[213].mxu0 }
 0x3e1   : > { %v2826_v29 = vadd.f32 %v2825_v43, %v8990_v54  ;;  %v6524_v16 = vpop.f32.mrb[161].mxu1  ;;  %v9452_v52 = vpop.f32.mrb[214].mxu0 }
 0x3e2   : > { %13471 = vst [vmem:[#allocation70_spill] sm:$0xff] %v9452_v52  ;;  %v2828_v49 = vpop.f32.mrb[162].mxu1  ;;  %v6519_v46 = vpop.f32.mrb[215].mxu0 }
 0x3e3   : > { %v2829_v10 = vadd.f32 %v2828_v49, %v8994_v63  ;;  %v6525_v44 = vpop.f32.mrb[163].mxu1 }
 0x3e4   : > { %6737 = vmatmul.mubr.msk.bf16.gmra.mrb[64].mxu0 %vm13066_vm2, %v13472_v15 }
 0x3e7   : > { %v3079_v55 = vpop.f32.mrb[216].mxu0 }
 0x3e8   : > { %v2833_v22 = vpop.f32.mrb[164].mxu1  ;;  %v3294_v35 = vadd.f32 %v3079_v55, %v2826_v29  ;;  %v6634_v54 = vpop.f32.mrb[217].mxu0 }
 0x3e9   : > { %v2834_v56 = vadd.f32 %v2833_v22, %v9007_v20  ;;  %v6528_v4 = vpop.f32.mrb[165].mxu1  ;;  %v3082_v16 = vpop.f32.mrb[218].mxu0 }
 0x3ea   : > { %v2836_v43 = vpop.f32.mrb[166].mxu1  ;;  %v9459_v58 = vadd.f32 %v3399_v28, %v3294_v35  ;;  %v3295_v63 = vadd.f32 %v3082_v16, %v2829_v10  ;;  %v6635_v49 = vpop.f32.mrb[219].mxu0 }
 0x3eb   : > { %v2837_v52 = vadd.f32 %v2836_v43, %v9012_v40  ;;  %v6529_v46 = vpop.f32.mrb[167].mxu1 }
 0x3ec   : > { %v5495_v20 = vpack.c.bf16 %v9459_v58, %v9459_v58  ;;  %v3454_v4 = vadd.f32 %v3400_v27, %v3295_v63 }
 0x3ee   : > { %3724 = vst.msk [vmem:[%s9465_s8 + $0xcc] sm:$0xf] %vm3672_vm5, %v5495_v20  ;;  %v5496_v55 = vpack.c.bf16 %v3454_v4, %v3454_v4 }
 0x3ef   : > { %v3087_v40 = vpop.f32.mrb[220].mxu0 }
 0x3f0   : > { %v2841_v28 = vpop.f32.mrb[168].mxu1  ;;  %3725 = vst.msk [vmem:[%s9465_s8 + $0xd0] sm:$0xf] %vm3672_vm5, %v5496_v55  ;;  %v3296_v35 = vadd.f32 %v3087_v40, %v2834_v56  ;;  %v6638_v10 = vpop.f32.mrb[221].mxu0 }
 0x3f1   : > { %v2842_v15 = vadd.f32 %v2841_v28, %v9025_v0  ;;  %v6532_v29 = vpop.f32.mrb[169].mxu1  ;;  %v3090_v22 = vpop.f32.mrb[222].mxu0 }
 0x3f2   : > { %v2844_v44 = vpop.f32.mrb[170].mxu1  ;;  %v3455_v54 = vadd.f32 %v3401_v19, %v3296_v35  ;;  %v3297_v27 = vadd.f32 %v3090_v22, %v2837_v52  ;;  %v6639_v16 = vpop.f32.mrb[223].mxu0 }
 0x3f3   : > { %v2845_v43 = vadd.f32 %v2844_v44, %v9030_v57  ;;  %v6533_v63 = vpop.f32.mrb[171].mxu1 }
 0x3f4   : > { %v9475_v49 = vpack.c.bf16 %v3455_v54, %v3454_v4  ;;  %v5497_v46 = vpack.c.bf16 %v3455_v54, %v3455_v54  ;;  %v3402_v20 = vadd.f32 %v8977_v8, %v3297_v27 }
 0x3f6   : > { %13473 = vst [vmem:[#allocation94_spill] sm:$0xff] %v9475_v49  ;;  %3726 = vst.msk [vmem:[%s9465_s8 + $0xd4] sm:$0xf] %vm3672_vm5, %v5497_v46  ;;  %v5444_v0 = vpack.c.bf16 %v3402_v20, %v3402_v20 }
 0x3f7   : > { %v3095_v55 = vpop.f32.mrb[224].mxu0 }
 0x3f8   : > { %v2849_v56 = vpop.f32.mrb[172].mxu1  ;;  %3673 = vst.msk [vmem:[%s9465_s8] sm:$0xf] %vm3672_vm5, %v5444_v0  ;;  %v3298_v28 = vadd.f32 %v3095_v55, %v2842_v15  ;;  %v6642_v52 = vpop.f32.mrb[225].mxu0 }
 0x3f9   : > { %v2850_v19 = vadd.f32 %v2849_v56, %v9043_v1  ;;  %v6536_v57 = vpop.f32.mrb[173].mxu1  ;;  %v3098_v4 = vpop.f32.mrb[226].mxu0 }
 0x3fa   : > { %v2852_v40 = vpop.f32.mrb[174].mxu1  ;;  %v3403_v35 = vadd.f32 %v8980_v37, %v3298_v28  ;;  %v3299_v29 = vadd.f32 %v3098_v4, %v2845_v43  ;;  %v6643_v10 = vpop.f32.mrb[227].mxu0 }
 0x3fb   : > { %v2853_v8 = vadd.f32 %v2852_v40, %v9048_v23  ;;  %v6537_v44 = vpop.f32.mrb[175].mxu1 }
 0x3fc   : > { %v9485_v22 = vpack.c.bf16 %v3403_v35, %v3402_v20  ;;  %v5445_v54 = vpack.c.bf16 %v3403_v35, %v3403_v35  ;;  %v3404_v27 = vadd.f32 %v8992_v60, %v3299_v29 }
 0x3fe   : > { %13474 = vst [vmem:[#allocation17_spill] sm:$0xff] %v9485_v22  ;;  %3674 = vst.msk [vmem:[%s9465_s8 + $0x4] sm:$0xf] %vm3672_vm5, %v5445_v54  ;;  %v5446_v1 = vpack.c.bf16 %v3404_v27, %v3404_v27 }
 0x3ff   : > { %v3103_v16 = vpop.f32.mrb[228].mxu0 }
 0x400   : > { %v2857_v15 = vpop.f32.mrb[176].mxu1  ;;  %3675 = vst.msk [vmem:[%s9465_s8 + $0x8] sm:$0xf] %vm3672_vm5, %v5446_v1  ;;  %v3300_v63 = vadd.f32 %v3103_v16, %v2850_v19  ;;  %v6646_v43 = vpop.f32.mrb[229].mxu0 }
 0x401   : > { %v2858_v37 = vadd.f32 %v2857_v15, %v9061_v61  ;;  %v6540_v23 = vpop.f32.mrb[177].mxu1  ;;  %v3106_v20 = vpop.f32.mrb[230].mxu0 }
 0x402   : > { %v2860_v46 = vpop.f32.mrb[178].mxu1  ;;  %v3405_v0 = vadd.f32 %v8997_v41, %v3300_v63  ;;  %v3301_v56 = vadd.f32 %v3106_v20, %v2853_v8  ;;  %v6647_v55 = vpop.f32.mrb[231].mxu0 }
 0x403   : > { %v2861_v60 = vadd.f32 %v2860_v46, %v9066_v36  ;;  %v6541_v28 = vpop.f32.mrb[179].mxu1 }
 0x404   : > { %v9495_v57 = vpack.c.bf16 %v3405_v0, %v3404_v27  ;;  %v5447_v52 = vpack.c.bf16 %v3405_v0, %v3405_v0  ;;  %v3406_v40 = vadd.f32 %v9010_v34, %v3301_v56 }
 0x406   : > { %13475 = vst [vmem:[#allocation73_spill] sm:$0xff] %v9495_v57  ;;  %3676 = vst.msk [vmem:[%s9465_s8 + $0xc] sm:$0xf] %vm3672_vm5, %v5447_v52  ;;  %v5448_v61 = vpack.c.bf16 %v3406_v40, %v3406_v40 }
 0x407   : > { %v3111_v4 = vpop.f32.mrb[232].mxu0 }
 0x408   : > { %v2865_v19 = vpop.f32.mrb[180].mxu1  ;;  %3677 = vst.msk [vmem:[%s9465_s8 + $0x10] sm:$0xf] %vm3672_vm5, %v5448_v61  ;;  %v3302_v35 = vadd.f32 %v3111_v4, %v2858_v37  ;;  %v6650_v8 = vpop.f32.mrb[233].mxu0 }
 0x409   : > { %v2866_v41 = vadd.f32 %v2865_v19, %v9079_v45  ;;  %v6544_v36 = vpop.f32.mrb[181].mxu1  ;;  %v3114_v10 = vpop.f32.mrb[234].mxu0 }
 0x40a   : > { %v2868_v29 = vpop.f32.mrb[182].mxu1  ;;  %v3407_v44 = vadd.f32 %v9015_v62, %v3302_v35  ;;  %v3303_v54 = vadd.f32 %v3114_v10, %v2861_v60  ;;  %v6651_v27 = vpop.f32.mrb[235].mxu0 }
 0x40b   : > { %v2869_v34 = vadd.f32 %v2868_v29, %v9084_v9  ;;  %v6545_v1 = vpop.f32.mrb[183].mxu1 }
 0x40c   : > { %v9505_v15 = vpack.c.bf16 %v3407_v44, %v3406_v40  ;;  %v5449_v16 = vpack.c.bf16 %v3407_v44, %v3407_v44  ;;  %v3408_v63 = vadd.f32 %v9028_v2, %v3303_v54 }
 0x40e   : > { %13476 = vst [vmem:[#allocation15_spill] sm:$0xff] %v9505_v15  ;;  %3678 = vst.msk [vmem:[%s9465_s8 + $0x14] sm:$0xf] %vm3672_vm5, %v5449_v16  ;;  %v5450_v45 = vpack.c.bf16 %v3408_v63, %v3408_v63 }
 0x40f   : > { %v3119_v23 = vpop.f32.mrb[236].mxu0 }
 0x410   : > { %v2873_v37 = vpop.f32.mrb[184].mxu1  ;;  %3679 = vst.msk [vmem:[%s9465_s8 + $0x18] sm:$0xf] %vm3672_vm5, %v5450_v45  ;;  %v3304_v43 = vadd.f32 %v3119_v23, %v2866_v41  ;;  %v6654_v46 = vpop.f32.mrb[237].mxu0 }
 0x411   : > { %v2874_v62 = vadd.f32 %v2873_v37, %v9097_v32  ;;  %v6548_v9 = vpop.f32.mrb[185].mxu1  ;;  %v3122_v0 = vpop.f32.mrb[238].mxu0 }
 0x412   : > { %v2876_v20 = vpop.f32.mrb[186].mxu1  ;;  %v3409_v60 = vadd.f32 %v9033_v17, %v3304_v43  ;;  %v3305_v56 = vadd.f32 %v3122_v0, %v2869_v34  ;;  %v6655_v55 = vpop.f32.mrb[239].mxu0 }
 0x413   : > { %v2877_v2 = vadd.f32 %v2876_v20, %v9102_v11  ;;  %v6549_v28 = vpop.f32.mrb[187].mxu1 }
 0x414   : > { %v9515_v52 = vpack.c.bf16 %v3409_v60, %v3408_v63  ;;  %v5451_v40 = vpack.c.bf16 %v3409_v60, %v3409_v60  ;;  %v3410_v61 = vadd.f32 %v9046_v51, %v3305_v56 }
 0x416   : > { %13477 = vst [vmem:[#allocation21_spill] sm:$0xff] %v9515_v52  ;;  %3680 = vst.msk [vmem:[%s9465_s8 + $0x1c] sm:$0xf] %vm3672_vm5, %v5451_v40  ;;  %v5452_v32 = vpack.c.bf16 %v3410_v61, %v3410_v61 }
 0x417   : > { %v3127_v4 = vpop.f32.mrb[240].mxu0 }
 0x418   : > { %v2881_v19 = vpop.f32.mrb[188].mxu1  ;;  %3681 = vst.msk [vmem:[%s9465_s8 + $0x20] sm:$0xf] %vm3672_vm5, %v5452_v32  ;;  %v3306_v41 = vadd.f32 %v3127_v4, %v2874_v62  ;;  %v6658_v35 = vpop.f32.mrb[241].mxu0 }
 0x419   : > { %v2882_v17 = vadd.f32 %v2881_v19, %v9115_v18  ;;  %v6552_v11 = vpop.f32.mrb[189].mxu1  ;;  %v3130_v8 = vpop.f32.mrb[242].mxu0 }
 0x41a   : > { %v2884_v36 = vpop.f32.mrb[190].mxu1  ;;  %v3411_v29 = vadd.f32 %v9051_v53, %v3306_v41  ;;  %v3307_v10 = vadd.f32 %v3130_v8, %v2877_v2  ;;  %v6659_v44 = vpop.f32.mrb[243].mxu0 }
 0x41b   : > { %v2885_v51 = vadd.f32 %v2884_v36, %v9120_v21  ;;  %v6553_v34 = vpop.f32.mrb[191].mxu1 }
 0x41c   : > { %v9525_v54 = vpack.c.bf16 %v3411_v29, %v3410_v61  ;;  %v5453_v27 = vpack.c.bf16 %v3411_v29, %v3411_v29  ;;  %v3412_v1 = vadd.f32 %v9064_v5, %v3307_v10 }
 0x41e   : > { %13478 = vst [vmem:[#allocation76_spill] sm:$0xff] %v9525_v54  ;;  %3682 = vst.msk [vmem:[%s9465_s8 + $0x24] sm:$0xf] %vm3672_vm5, %v5453_v27  ;;  %v5454_v18 = vpack.c.bf16 %v3412_v1, %v3412_v1 }
 0x41f   : > { %v3135_v63 = vpop.f32.mrb[244].mxu0 }
 0x420   : > { %v2889_v16 = vpop.f32.mrb[192].mxu1  ;;  %3683 = vst.msk [vmem:[%s9465_s8 + $0x28] sm:$0xf] %vm3672_vm5, %v5454_v18  ;;  %v3308_v45 = vadd.f32 %v3135_v63, %v2882_v17  ;;  %v6662_v37 = vpop.f32.mrb[245].mxu0 }
 0x421   : > { %v2890_v53 = vadd.f32 %v2889_v16, %v9133_v6  ;;  %v6556_v21 = vpop.f32.mrb[193].mxu1  ;;  %v3138_v62 = vpop.f32.mrb[246].mxu0 }
 0x422   : > { %v2892_v23 = vpop.f32.mrb[194].mxu1  ;;  %v3413_v43 = vadd.f32 %v9069_v25, %v3308_v45  ;;  %v3309_v9 = vadd.f32 %v3138_v62, %v2885_v51  ;;  %v6663_v46 = vpop.f32.mrb[247].mxu0 }
 0x423   : > { %v2893_v5 = vadd.f32 %v2892_v23, %v9138_v12  ;;  %v6557_v20 = vpop.f32.mrb[195].mxu1  ;;  %v13482_v46 = vld [vmem:[#allocation68_spill] sm:$0xff] }
 0x424   : > { %v9535_v0 = vpack.c.bf16 %v3413_v43, %v3412_v1  ;;  %v5455_v60 = vpack.c.bf16 %v3413_v43, %v3413_v43  ;;  %v3414_v2 = vadd.f32 %v9082_v7, %v3309_v9 }
 0x426   : > { %13479 = vst [vmem:[#allocation16_spill] sm:$0xff] %v9535_v0  ;;  %3684 = vst.msk [vmem:[%s9465_s8 + $0x2c] sm:$0xf] %vm3672_vm5, %v5455_v60  ;;  %v5456_v6 = vpack.c.bf16 %v3414_v2, %v3414_v2 }
 0x427   : > { %v3143_v55 = vpop.f32.mrb[248].mxu0 }
 0x428   : > { %v2897_v56 = vpop.f32.mrb[196].mxu1  ;;  %3685 = vst.msk [vmem:[%s9465_s8 + $0x30] sm:$0xf] %vm3672_vm5, %v5456_v6  ;;  %v3310_v28 = vadd.f32 %v3143_v55, %v2890_v53  ;;  %v6666_v40 = vpop.f32.mrb[249].mxu0  ;;  %v13484_v55 = vld [vmem:[#allocation60_spill] sm:$0xff] }
 0x429   : > { %v2898_v25 = vadd.f32 %v2897_v56, %v9151_v30  ;;  %v6560_v12 = vpop.f32.mrb[197].mxu1  ;;  %v3146_v32 = vpop.f32.mrb[250].mxu0  ;;  %v13485_v40 = vld [vmem:[#allocation69_spill] sm:$0xff] }
 0x42a   : > { %v2900_v61 = vpop.f32.mrb[198].mxu1  ;;  %v3415_v19 = vadd.f32 %v9087_v33, %v3310_v28  ;;  %v3311_v4 = vadd.f32 %v3146_v32, %v2893_v5  ;;  %v6667_v17 = vpop.f32.mrb[251].mxu0 }
 0x42b   : > { %v2901_v7 = vadd.f32 %v2900_v61, %v9156_v48  ;;  %v6561_v41 = vpop.f32.mrb[199].mxu1  ;;  %v13486_v17 = vld [vmem:[#allocation62_spill] sm:$0xff] }
 0x42c   : > { %v9545_v11 = vpack.c.bf16 %v3415_v19, %v3414_v2  ;;  %v5457_v35 = vpack.c.bf16 %v3415_v19, %v3415_v19  ;;  %v3416_v36 = vadd.f32 %v9100_v31, %v3311_v4 }
 0x42e   : > { %13480 = vst [vmem:[#allocation25_spill] sm:$0xff] %v9545_v11  ;;  %3686 = vst.msk [vmem:[%s9465_s8 + $0x34] sm:$0xf] %vm3672_vm5, %v5457_v35  ;;  %v5458_v30 = vpack.c.bf16 %v3416_v36, %v3416_v36  ;;  %v13487_v35 = vld [vmem:[#allocation18_spill] sm:$0xff] }
 0x42f   : > { %v3151_v29 = vpop.f32.mrb[252].mxu0 }
 0x430   : > { %v2905_v8 = vpop.f32.mrb[200].mxu1  ;;  %3687 = vst.msk [vmem:[%s9465_s8 + $0x38] sm:$0xf] %vm3672_vm5, %v5458_v30  ;;  %v3312_v51 = vadd.f32 %v3151_v29, %v2898_v25  ;;  %v6670_v10 = vpop.f32.mrb[253].mxu0 }
 0x431   : > { %v2906_v33 = vadd.f32 %v2905_v8, %v9169_v50  ;;  %v6564_v48 = vpop.f32.mrb[201].mxu1  ;;  %v3154_v34 = vpop.f32.mrb[254].mxu0 }
 0x432   : > { %v2908_v44 = vpop.f32.mrb[202].mxu1  ;;  %v3417_v27 = vadd.f32 %v9105_v39, %v3312_v51  ;;  %v3313_v1 = vadd.f32 %v3154_v34, %v2901_v7  ;;  %v6671_v18 = vpop.f32.mrb[255].mxu0  ;;  %v13489_v48 = vld [vmem:[#allocation6_spill] sm:$0xff] }
 0x433   : > { %v2909_v31 = vadd.f32 %v2908_v44, %v9174_v42  ;;  %v6565_v16 = vpop.f32.mrb[203].mxu1 }
 0x434   : > { %v9555_v63 = vpack.c.bf16 %v3417_v27, %v3416_v36  ;;  %v5459_v53 = vpack.c.bf16 %v3417_v27, %v3417_v27  ;;  %v3418_v45 = vadd.f32 %v9118_v59, %v3313_v1 }
 0x436   : > { %13481 = vst [vmem:[#allocation79_spill] sm:$0xff] %v9555_v63  ;;  %3688 = vst.msk [vmem:[%s9465_s8 + $0x3c] sm:$0xf] %vm3672_vm5, %v5459_v53  ;;  %v5460_v50 = vpack.c.bf16 %v3418_v45, %v3418_v45 }
 0x437   : > { %v3159_v37 = vpop.f32.mrb[0].mxu0 }
 0x438   : > { %v2913_v21 = vpop.f32.mrb[204].mxu1  ;;  %3689 = vst.msk [vmem:[%s9465_s8 + $0x40] sm:$0xf] %vm3672_vm5, %v5460_v50  ;;  %v3314_v23 = vadd.f32 %v3159_v37, %v2906_v33  ;;  %v6674_v62 = vpop.f32.mrb[1].mxu0  ;;  %v13490_v50 = vld [vmem:[#allocation63_spill] sm:$0xff]  ;;  %v13491_v37 = vld [vmem:[#allocation22_spill] sm:$0xff] }
 0x439   : > { %v2914_v39 = vadd.f32 %v2913_v21, %v9187_v14  ;;  %v6568_v42 = vpop.f32.mrb[205].mxu1  ;;  %v3162_v5 = vpop.f32.mrb[2].mxu0 }
 0x43a   : > { %v2916_v43 = vpop.f32.mrb[206].mxu1  ;;  %v3419_v9 = vadd.f32 %v9123_v47, %v3314_v23  ;;  %v3315_v20 = vadd.f32 %v3162_v5, %v2909_v31  ;;  %v6675_v60 = vpop.f32.mrb[3].mxu0 }
 0x43b   : > { %v2917_v59 = vadd.f32 %v2916_v43, %v13482_v46  ;;  %v6569_v2 = vpop.f32.mrb[207].mxu1 }
 0x43c   : > { %v9565_v6 = vpack.c.bf16 %v3419_v9, %v3418_v45  ;;  %v5461_v56 = vpack.c.bf16 %v3419_v9, %v3419_v9  ;;  %v3420_v25 = vadd.f32 %v13484_v55, %v3315_v20  ;;  %v13493_v9 = vld [vmem:[#allocation65_spill] sm:$0xff] }
 0x43e   : > { %13483 = vst [vmem:[#allocation19_spill] sm:$0xff] %v9565_v6  ;;  %3690 = vst.msk [vmem:[%s9465_s8 + $0x44] sm:$0xf] %vm3672_vm5, %v5461_v56  ;;  %v5462_v14 = vpack.c.bf16 %v3420_v25, %v3420_v25 }
 0x43f   : > { %v3167_v12 = vpop.f32.mrb[4].mxu0 }
 0x440   : > { %v2921_v28 = vpop.f32.mrb[208].mxu1  ;;  %3691 = vst.msk [vmem:[%s9465_s8 + $0x48] sm:$0xf] %vm3672_vm5, %v5462_v14  ;;  %v3316_v61 = vadd.f32 %v3167_v12, %v2914_v39  ;;  %v6678_v19 = vpop.f32.mrb[5].mxu0 }
 0x441   : > { %v2922_v47 = vadd.f32 %v2921_v28, %v13485_v40  ;;  %v6572_v32 = vpop.f32.mrb[209].mxu1  ;;  %v3170_v4 = vpop.f32.mrb[6].mxu0  ;;  %v13494_v28 = vld [vmem:[#allocation10_spill] sm:$0xff] }
 0x442   : > { %v2924_v7 = vpop.f32.mrb[210].mxu1  ;;  %v3421_v41 = vadd.f32 %v13486_v17, %v3316_v61  ;;  %v3317_v30 = vadd.f32 %v3170_v4, %v2917_v59  ;;  %v6679_v8 = vpop.f32.mrb[7].mxu0  ;;  %v13495_v40 = vld [vmem:[#allocation26_spill] sm:$0xff] }
 0x443   : > { %v2925_v36 = vadd.f32 %v2924_v7, %v13487_v35  ;;  %v6573_v29 = vpop.f32.mrb[211].mxu1  ;;  %v13497_v17 = vld [vmem:[#allocation66_spill] sm:$0xff] }
 0x444   : > { %v9575_v33 = vpack.c.bf16 %v3421_v41, %v3420_v25  ;;  %v5463_v51 = vpack.c.bf16 %v3421_v41, %v3421_v41  ;;  %v3422_v10 = vadd.f32 %v13489_v48, %v3317_v30 }
 0x446   : > { %13488 = vst [vmem:[#allocation29_spill] sm:$0xff] %v9575_v33  ;;  %3692 = vst.msk [vmem:[%s9465_s8 + $0x4c] sm:$0xf] %vm3672_vm5, %v5463_v51  ;;  %v5464_v44 = vpack.c.bf16 %v3422_v10, %v3422_v10 }
 0x447   : > { %v3175_v27 = vpop.f32.mrb[8].mxu0 }
 0x448   : > { %v2929_v34 = vpop.f32.mrb[212].mxu1  ;;  %3693 = vst.msk [vmem:[%s9465_s8 + $0x50] sm:$0xf] %vm3672_vm5, %v5464_v44  ;;  %v3318_v1 = vadd.f32 %v3175_v27, %v2922_v47  ;;  %v6682_v16 = vpop.f32.mrb[9].mxu0  ;;  %v13498_v44 = vld [vmem:[#allocation14_spill] sm:$0xff] }
 0x449   : > { %v2930_v31 = vadd.f32 %v2929_v34, %v9223_v3  ;;  %v6576_v18 = vpop.f32.mrb[213].mxu1  ;;  %v3178_v45 = vpop.f32.mrb[10].mxu0  ;;  %v13499_v27 = vld [vmem:[#allocation30_spill] sm:$0xff] }
 0x44a   : > { %v2932_v53 = vpop.f32.mrb[214].mxu1  ;;  %v3423_v21 = vadd.f32 %v13490_v50, %v3318_v1  ;;  %v3319_v23 = vadd.f32 %v3178_v45, %v2925_v36  ;;  %v6683_v42 = vpop.f32.mrb[11].mxu0  ;;  %v13501_v50 = vld [vmem:[#allocation71_spill] sm:$0xff] }
 0x44b   : > { %v2933_v39 = vadd.f32 %v2932_v53, %v13491_v37  ;;  %v6577_v62 = vpop.f32.mrb[215].mxu1 }
 0x44c   : > { %v9585_v43 = vpack.c.bf16 %v3423_v21, %v3422_v10  ;;  %v5465_v5 = vpack.c.bf16 %v3423_v21, %v3423_v21  ;;  %v3424_v46 = vadd.f32 %v13493_v9, %v3319_v23 }
 0x44e   : > { %13492 = vst [vmem:[#allocation82_spill] sm:$0xff] %v9585_v43  ;;  %3694 = vst.msk [vmem:[%s9465_s8 + $0x54] sm:$0xf] %vm3672_vm5, %v5465_v5  ;;  %v5466_v3 = vpack.c.bf16 %v3424_v46, %v3424_v46 }
 0x44f   : > { %v3183_v20 = vpop.f32.mrb[12].mxu0 }
 0x450   : > { %v2937_v59 = vpop.f32.mrb[216].mxu1  ;;  %3695 = vst.msk [vmem:[%s9465_s8 + $0x58] sm:$0xf] %vm3672_vm5, %v5466_v3  ;;  %v3320_v2 = vadd.f32 %v3183_v20, %v2930_v31  ;;  %v6686_v55 = vpop.f32.mrb[13].mxu0  ;;  %v13502_v3 = vld [vmem:[#allocation72_spill] sm:$0xff]  ;;  %v13503_v20 = vld [vmem:[#allocation34_spill] sm:$0xff] }
 0x451   : > { %v2938_v60 = vadd.f32 %v2937_v59, %v9241_v26  ;;  %v6580_v56 = vpop.f32.mrb[217].mxu1  ;;  %v3186_v14 = vpop.f32.mrb[14].mxu0 }
 0x452   : > { %v2940_v25 = vpop.f32.mrb[218].mxu1  ;;  %v3425_v12 = vadd.f32 %v13494_v28, %v3320_v2  ;;  %v3321_v61 = vadd.f32 %v3186_v14, %v2933_v39  ;;  %v6687_v32 = vpop.f32.mrb[15].mxu0  ;;  %v13505_v28 = vld [vmem:[#allocation74_spill] sm:$0xff] }
 0x453   : > { %v2941_v47 = vadd.f32 %v2940_v25, %v13495_v40  ;;  %v6581_v19 = vpop.f32.mrb[219].mxu1 }
 0x454   : > { %v9595_v7 = vpack.c.bf16 %v3425_v12, %v3424_v46  ;;  %v5467_v4 = vpack.c.bf16 %v3425_v12, %v3425_v12  ;;  %v3426_v41 = vadd.f32 %v13497_v17, %v3321_v61 }
 0x456   : > { %13496 = vst [vmem:[#allocation20_spill] sm:$0xff] %v9595_v7  ;;  %3696 = vst.msk [vmem:[%s9465_s8 + $0x5c] sm:$0xf] %vm3672_vm5, %v5467_v4  ;;  %v5468_v26 = vpack.c.bf16 %v3426_v41, %v3426_v41 }
 0x457   : > { %v3191_v36 = vpop.f32.mrb[16].mxu0 }
 0x458   : > { %v2945_v35 = vpop.f32.mrb[220].mxu1  ;;  %3697 = vst.msk [vmem:[%s9465_s8 + $0x60] sm:$0xf] %vm3672_vm5, %v5468_v26  ;;  %v3322_v8 = vadd.f32 %v3191_v36, %v2938_v60  ;;  %v6690_v51 = vpop.f32.mrb[17].mxu0  ;;  %v13506_v26 = vld [vmem:[#allocation75_spill] sm:$0xff]  ;;  %v13507_v36 = vld [vmem:[#allocation38_spill] sm:$0xff] }
 0x459   : > { %v2946_v30 = vadd.f32 %v2945_v35, %v9259_v24  ;;  %v6584_v29 = vpop.f32.mrb[221].mxu1  ;;  %v3194_v10 = vpop.f32.mrb[18].mxu0 }
 0x45a   : > { %v2948_v48 = vpop.f32.mrb[222].mxu1  ;;  %v3427_v34 = vadd.f32 %v13498_v44, %v3322_v8  ;;  %v3323_v1 = vadd.f32 %v3194_v10, %v2941_v47  ;;  %v6691_v18 = vpop.f32.mrb[19].mxu0  ;;  %v13509_v44 = vld [vmem:[#allocation77_spill] sm:$0xff] }
 0x45b   : > { %v2949_v31 = vadd.f32 %v2948_v48, %v13499_v27  ;;  %v6585_v16 = vpop.f32.mrb[223].mxu1 }
 0x45c   : > { %v9605_v53 = vpack.c.bf16 %v3427_v34, %v3426_v41  ;;  %v5469_v45 = vpack.c.bf16 %v3427_v34, %v3427_v34  ;;  %v3428_v21 = vadd.f32 %v13501_v50, %v3323_v1  ;;  %v13510_v1 = vld [vmem:[#allocation89_spill] sm:$0xff] }
 0x45e   : > { %13500 = vst [vmem:[#allocation33_spill] sm:$0xff] %v9605_v53  ;;  %3698 = vst.msk [vmem:[%s9465_s8 + $0x64] sm:$0xf] %vm3672_vm5, %v5469_v45  ;;  %v5470_v24 = vpack.c.bf16 %v3428_v21, %v3428_v21 }
 0x45f   : > { %v3199_v39 = vpop.f32.mrb[20].mxu0 }
 0x460   : > { %v2953_v37 = vpop.f32.mrb[224].mxu1  ;;  %3699 = vst.msk [vmem:[%s9465_s8 + $0x68] sm:$0xf] %vm3672_vm5, %v5470_v24  ;;  %v3324_v42 = vadd.f32 %v3199_v39, %v2946_v30  ;;  %v6694_v5 = vpop.f32.mrb[21].mxu0 }
 0x461   : > { %v2954_v23 = vadd.f32 %v2953_v37, %v9277_v13  ;;  %v6588_v62 = vpop.f32.mrb[225].mxu1  ;;  %v3202_v46 = vpop.f32.mrb[22].mxu0  ;;  %v13511_v37 = vld [vmem:[#allocation78_spill] sm:$0xff] }
 0x462   : > { %v2956_v9 = vpop.f32.mrb[226].mxu1  ;;  %v3429_v59 = vadd.f32 %v13502_v3, %v3324_v42  ;;  %v3325_v2 = vadd.f32 %v3202_v46, %v2949_v31  ;;  %v6695_v56 = vpop.f32.mrb[23].mxu0 }
 0x463   : > { %v2957_v60 = vadd.f32 %v2956_v9, %v13503_v20  ;;  %v6589_v55 = vpop.f32.mrb[227].mxu1 }
 0x464   : > { %v9615_v25 = vpack.c.bf16 %v3429_v59, %v3428_v21  ;;  %v5471_v14 = vpack.c.bf16 %v3429_v59, %v3429_v59  ;;  %v3430_v12 = vadd.f32 %v13505_v28, %v3325_v2  ;;  %v13514_v59 = vld [vmem:[#allocation80_spill] sm:$0xff] }
 0x465   : > { %v13515_v55 = vld [vmem:[#allocation48_spill] sm:$0xff] }
 0x466   : > { %13504 = vst [vmem:[#allocation85_spill] sm:$0xff] %v9615_v25  ;;  %3700 = vst.msk [vmem:[%s9465_s8 + $0x6c] sm:$0xf] %vm3672_vm5, %v5471_v14  ;;  %v5472_v13 = vpack.c.bf16 %v3430_v12, %v3430_v12 }
 0x467   : > { %v3207_v47 = vpop.f32.mrb[24].mxu0 }
 0x468   : > { %v2961_v40 = vpop.f32.mrb[228].mxu1  ;;  %3701 = vst.msk [vmem:[%s9465_s8 + $0x70] sm:$0xf] %vm3672_vm5, %v5472_v13  ;;  %v3326_v32 = vadd.f32 %v3207_v47, %v2954_v23  ;;  %v6698_v4 = vpop.f32.mrb[25].mxu0  ;;  %v13512_v23 = vld [vmem:[#allocation90_spill] sm:$0xff] }
 0x469   : > { %v2962_v61 = vadd.f32 %v2961_v40, %v9295_v38  ;;  %v6592_v19 = vpop.f32.mrb[229].mxu1  ;;  %v3210_v41 = vpop.f32.mrb[26].mxu0 }
 0x46a   : > { %v2964_v17 = vpop.f32.mrb[230].mxu1  ;;  %v3431_v35 = vadd.f32 %v13506_v26, %v3326_v32  ;;  %v3327_v8 = vadd.f32 %v3210_v41, %v2957_v60  ;;  %v6699_v29 = vpop.f32.mrb[27].mxu0  ;;  %v13517_v19 = vld [vmem:[#allocation35_spill] sm:$0xff] }
 0x46b   : > { %v2965_v30 = vadd.f32 %v2964_v17, %v13507_v36  ;;  %v6593_v51 = vpop.f32.mrb[231].mxu1 }
 0x46c   : > { %v9625_v48 = vpack.c.bf16 %v3431_v35, %v3430_v12  ;;  %v5473_v10 = vpack.c.bf16 %v3431_v35, %v3431_v35  ;;  %v3432_v34 = vadd.f32 %v13509_v44, %v3327_v8  ;;  %v13520_v44 = vld [vmem:[#allocation12_spill] sm:$0xff] }
 0x46e   : > { %13508 = vst [vmem:[#allocation23_spill] sm:$0xff] %v9625_v48  ;;  %3702 = vst.msk [vmem:[%s9465_s8 + $0x74] sm:$0xf] %vm3672_vm5, %v5473_v10  ;;  %v5474_v38 = vpack.c.bf16 %v3432_v34, %v3432_v34 }
 0x46f   : > { %v3215_v31 = vpop.f32.mrb[28].mxu0 }
 0x470   : > { %v2969_v27 = vpop.f32.mrb[232].mxu1  ;;  %3703 = vst.msk [vmem:[%s9465_s8 + $0x78] sm:$0xf] %vm3672_vm5, %v5474_v38  ;;  %v3328_v16 = vadd.f32 %v3215_v31, %v2962_v61  ;;  %v6702_v50 = vpop.f32.mrb[29].mxu0  ;;  %v13516_v61 = vld [vmem:[#allocation81_spill] sm:$0xff] }
 0x471   : > { %v2970_v18 = vadd.f32 %v2969_v27, %v13510_v1  ;;  %v6596_v45 = vpop.f32.mrb[233].mxu1  ;;  %v3218_v24 = vpop.f32.mrb[30].mxu0  ;;  %v13522_v50 = vld [vmem:[#allocation55_spill] sm:$0xff] }
 0x472   : > { %v2972_v21 = vpop.f32.mrb[234].mxu1  ;;  %v3433_v39 = vadd.f32 %v13511_v37, %v3328_v16  ;;  %v3329_v62 = vadd.f32 %v3218_v24, %v2965_v30  ;;  %v6703_v5 = vpop.f32.mrb[31].mxu0  ;;  %v13519_v30 = vld [vmem:[#allocation83_spill] sm:$0xff]  ;;  %v13521_v16 = vld [vmem:[#allocation84_spill] sm:$0xff] }
 0x473   : > { %v2973_v42 = vadd.f32 %v2972_v21, %v13512_v23  ;;  %v6597_v9 = vpop.f32.mrb[235].mxu1 }
 0x474   : > { %v9635_v46 = vpack.c.bf16 %v3433_v39, %v3432_v34  ;;  %v5475_v3 = vpack.c.bf16 %v3433_v39, %v3433_v39  ;;  %v3434_v20 = vadd.f32 %v13514_v59, %v3329_v62  ;;  %v13524_v62 = vld [vmem:[#allocation86_spill] sm:$0xff] }
 0x476   : > { %13513 = vst [vmem:[#allocation37_spill] sm:$0xff] %v9635_v46  ;;  %3704 = vst.msk [vmem:[%s9465_s8 + $0x7c] sm:$0xf] %vm3672_vm5, %v5475_v3  ;;  %v5476_v60 = vpack.c.bf16 %v3434_v20, %v3434_v20 }
 0x477   : > { %v3223_v56 = vpop.f32.mrb[32].mxu0 }
 0x478   : > { %v2977_v2 = vpop.f32.mrb[236].mxu1  ;;  %3705 = vst.msk [vmem:[%s9465_s8 + $0x80] sm:$0xf] %vm3672_vm5, %v5476_v60  ;;  %v3330_v28 = vadd.f32 %v3223_v56, %v2970_v18  ;;  %v6706_v13 = vpop.f32.mrb[33].mxu0 }
 0x479   : > { %v2978_v14 = vadd.f32 %v2977_v2, %v13515_v55  ;;  %v6600_v12 = vpop.f32.mrb[237].mxu1  ;;  %v3226_v47 = vpop.f32.mrb[34].mxu0 }
 0x47a   : > { %v2980_v40 = vpop.f32.mrb[238].mxu1  ;;  %v3435_v32 = vadd.f32 %v13516_v61, %v3330_v28  ;;  %v3331_v17 = vadd.f32 %v3226_v47, %v2973_v42  ;;  %v6707_v41 = vpop.f32.mrb[35].mxu0  ;;  %v13526_v12 = vld [vmem:[#allocation87_spill] sm:$0xff] }
 0x47b   : > { %v2981_v4 = vadd.f32 %v2980_v40, %v13517_v19  ;;  %v6601_v26 = vpop.f32.mrb[239].mxu1  ;;  %v13527_v40 = vld [vmem:[#allocation11_spill] sm:$0xff] }
 0x47c   : > { %v9645_v35 = vpack.c.bf16 %v3435_v32, %v3434_v20  ;;  %v5477_v36 = vpack.c.bf16 %v3435_v32, %v3435_v32  ;;  %v3436_v8 = vadd.f32 %v13519_v30, %v3331_v17  ;;  %v13525_v20 = vld [vmem:[#allocation40_spill] sm:$0xff]  ;;  %v13529_v41 = vld [vmem:[#allocation43_spill] sm:$0xff] }
 0x47e   : > { %13518 = vst [vmem:[#allocation42_spill] sm:$0xff] %v9645_v35  ;;  %3706 = vst.msk [vmem:[%s9465_s8 + $0x84] sm:$0xf] %vm3672_vm5, %v5477_v36  ;;  %v5478_v29 = vpack.c.bf16 %v3436_v8, %v3436_v8 }
 0x47f   : > { %v3231_v10 = vpop.f32.mrb[36].mxu0 }
 0x480   : > { %v2985_v51 = vpop.f32.mrb[240].mxu1  ;;  %3707 = vst.msk [vmem:[%s9465_s8 + $0x88] sm:$0xf] %vm3672_vm5, %v5478_v29  ;;  %v3332_v38 = vadd.f32 %v3231_v10, %v2978_v14  ;;  %v6710_v31 = vpop.f32.mrb[37].mxu0  ;;  %v13530_v29 = vld [vmem:[#allocation46_spill] sm:$0xff] }
 0x481   : > { %v2986_v34 = vadd.f32 %v2985_v51, %v13520_v44  ;;  %v6604_v27 = vpop.f32.mrb[241].mxu1  ;;  %v3234_v18 = vpop.f32.mrb[38].mxu0  ;;  %v13531_v31 = vld [vmem:[#allocation92_spill] sm:$0xff] }
 0x482   : > { %v2988_v1 = vpop.f32.mrb[242].mxu1  ;;  %v3437_v45 = vadd.f32 %v13521_v16, %v3332_v38  ;;  %v3333_v24 = vadd.f32 %v3234_v18, %v2981_v4  ;;  %v6711_v37 = vpop.f32.mrb[39].mxu0  ;;  %v13532_v18 = vld [vmem:[#allocation53_spill] sm:$0xff] }
 0x483   : > { %v2989_v21 = vadd.f32 %v2988_v1, %v13522_v50  ;;  %v6605_v39 = vpop.f32.mrb[243].mxu1 }
 0x484   : > { %v9655_v23 = vpack.c.bf16 %v3437_v45, %v3436_v8  ;;  %v5479_v42 = vpack.c.bf16 %v3437_v45, %v3437_v45  ;;  %v3438_v5 = vadd.f32 %v13524_v62, %v3333_v24  ;;  %v13534_v39 = vld [vmem:[#allocation51_spill] sm:$0xff] }
 0x486   : > { %13523 = vst [vmem:[#allocation88_spill] sm:$0xff] %v9655_v23  ;;  %3708 = vst.msk [vmem:[%s9465_s8 + $0x8c] sm:$0xf] %vm3672_vm5, %v5479_v42  ;;  %v5480_v9 = vpack.c.bf16 %v3438_v5, %v3438_v5 }
 0x487   : > { %v3239_v59 = vpop.f32.mrb[40].mxu0 }
 0x488   : > { %v2993_v3 = vpop.f32.mrb[244].mxu1  ;;  %3709 = vst.msk [vmem:[%s9465_s8 + $0x90] sm:$0xf] %vm3672_vm5, %v5480_v9  ;;  %v3334_v2 = vadd.f32 %v3239_v59, %v2986_v34  ;;  %v6714_v55 = vpop.f32.mrb[41].mxu0 }
 0x489   : > { %v2994_v60 = vadd.f32 %v2993_v3, %v13525_v20  ;;  %v6608_v56 = vpop.f32.mrb[245].mxu1  ;;  %v3242_v28 = vpop.f32.mrb[42].mxu0  ;;  %v13535_v3 = vld [vmem:[#allocation3_spill] sm:$0xff] }
 0x48a   : > { %v2996_v14 = vpop.f32.mrb[246].mxu1  ;;  %v3439_v13 = vadd.f32 %v13526_v12, %v3334_v2  ;;  %v3335_v61 = vadd.f32 %v3242_v28, %v2989_v21  ;;  %v6715_v32 = vpop.f32.mrb[43].mxu0  ;;  %v13537_v12 = vld [vmem:[#allocation39_spill] sm:$0xff] }
 0x48b   : > { %v2997_v47 = vadd.f32 %v2996_v14, %v13527_v40  ;;  %v6609_v19 = vpop.f32.mrb[247].mxu1  ;;  %v13536_v14 = vld [vmem:[#allocation54_spill] sm:$0xff] }
 0x48c   : > { %v9665_v4 = vpack.c.bf16 %v3439_v13, %v3438_v5  ;;  %v5481_v17 = vpack.c.bf16 %v3439_v13, %v3439_v13  ;;  %v3440_v26 = vadd.f32 %v13529_v41, %v3335_v61 }
 0x48e   : > { %13528 = vst [vmem:[#allocation24_spill] sm:$0xff] %v9665_v4  ;;  %3710 = vst.msk [vmem:[%s9465_s8 + $0x94] sm:$0xf] %vm3672_vm5, %v5481_v17  ;;  %v5482_v36 = vpack.c.bf16 %v3440_v26, %v3440_v26  ;;  %v13539_v17 = vld [vmem:[#allocation36_spill] sm:$0xff] }
 0x48f   : > { %v3247_v8 = vpop.f32.mrb[44].mxu0 }
 0x490   : > { %v3001_v30 = vpop.f32.mrb[248].mxu1  ;;  %3711 = vst.msk [vmem:[%s9465_s8 + $0x98] sm:$0xf] %vm3672_vm5, %v5482_v36  ;;  %v3336_v10 = vadd.f32 %v3247_v8, %v2994_v60  ;;  %v6718_v34 = vpop.f32.mrb[45].mxu0  ;;  %v13540_v8 = vld [vmem:[#allocation64_spill] sm:$0xff] }
 0x491   : > { %v3002_v51 = vadd.f32 %v3001_v30, %v13530_v29  ;;  %v6612_v44 = vpop.f32.mrb[249].mxu1  ;;  %v3250_v27 = vpop.f32.mrb[46].mxu0 }
 0x492   : > { %v3004_v38 = vpop.f32.mrb[250].mxu1  ;;  %v3441_v1 = vadd.f32 %v13531_v31, %v3336_v10  ;;  %v3337_v45 = vadd.f32 %v3250_v27, %v2997_v47  ;;  %v6719_v50 = vpop.f32.mrb[47].mxu0  ;;  %v13541_v27 = vld [vmem:[#allocation7_spill] sm:$0xff] }
 0x493   : > { %v3005_v16 = vadd.f32 %v3004_v38, %v13532_v18  ;;  %v6613_v21 = vpop.f32.mrb[251].mxu1 }
 0x494   : > { %v9675_v24 = vpack.c.bf16 %v3441_v1, %v3440_v26  ;;  %v5483_v37 = vpack.c.bf16 %v3441_v1, %v3441_v1  ;;  %v3442_v42 = vadd.f32 %v13534_v39, %v3337_v45  ;;  %v13542_v1 = vld [vmem:[#allocation9_spill] sm:$0xff]  ;;  %v13544_v39 = vld [vmem:[#allocation56_spill] sm:$0xff] }
 0x496   : > { %13533 = vst [vmem:[#allocation47_spill] sm:$0xff] %v9675_v24  ;;  %3712 = vst.msk [vmem:[%s9465_s8 + $0x9c] sm:$0xf] %vm3672_vm5, %v5483_v37  ;;  %v5484_v62 = vpack.c.bf16 %v3442_v42, %v3442_v42 }
 0x497   : > { %v3255_v9 = vpop.f32.mrb[48].mxu0 }
 0x498   : > { %v3009_v5 = vpop.f32.mrb[252].mxu1  ;;  %3713 = vst.msk [vmem:[%s9465_s8 + $0xa0] sm:$0xf] %vm3672_vm5, %v5484_v62  ;;  %v3338_v20 = vadd.f32 %v3255_v9, %v3002_v51  ;;  %v6722_v2 = vpop.f32.mrb[49].mxu0 }
 0x499   : > { %v3010_v59 = vadd.f32 %v3009_v5, %v13535_v3  ;;  %v6616_v60 = vpop.f32.mrb[253].mxu1  ;;  %v3258_v55 = vpop.f32.mrb[50].mxu0  ;;  %v13545_v3 = vld [vmem:[#allocation67_spill] sm:$0xff] }
 0x49a   : > { %v3012_v56 = vpop.f32.mrb[254].mxu1  ;;  %v3443_v28 = vadd.f32 %v13536_v14, %v3338_v20  ;;  %v3339_v40 = vadd.f32 %v3258_v55, %v3005_v16  ;;  %v6723_v47 = vpop.f32.mrb[51].mxu0  ;;  %v13546_v14 = vld [vmem:[#allocation41_spill] sm:$0xff] }
 0x49b   : > { %v3013_v13 = vadd.f32 %v3012_v56, %v13537_v12  ;;  %v6617_v61 = vpop.f32.mrb[255].mxu1  ;;  %v13547_v12 = vld [vmem:[#allocation93_spill] sm:$0xff] }
 0x49c   : > { %v9685_v32 = vpack.c.bf16 %v3443_v28, %v3442_v42  ;;  %v5485_v19 = vpack.c.bf16 %v3443_v28, %v3443_v28  ;;  %v3444_v41 = vadd.f32 %v13539_v17, %v3339_v40 }
 0x49e   : > { %13538 = vst [vmem:[#allocation50_spill] sm:$0xff] %v9685_v32  ;;  %3714 = vst.msk [vmem:[%s9465_s8 + $0xa4] sm:$0xf] %vm3672_vm5, %v5485_v19  ;;  %v5486_v26 = vpack.c.bf16 %v3444_v41, %v3444_v41 }
 0x49f   : > { %v3263_v30 = vpop.f32.mrb[52].mxu0 }
 0x4a0   : > { %v3017_v36 = vpop.f32.mrb[0].mxu1  ;;  %3715 = vst.msk [vmem:[%s9465_s8 + $0xa8] sm:$0xf] %vm3672_vm5, %v5486_v26  ;;  %v3340_v51 = vadd.f32 %v3263_v30, %v3010_v59  ;;  %v6726_v44 = vpop.f32.mrb[53].mxu0 }
 0x4a1   : > { %v3018_v29 = vadd.f32 %v3017_v36, %v13540_v8  ;;  %v6620_v10 = vpop.f32.mrb[1].mxu1  ;;  %v3266_v38 = vpop.f32.mrb[54].mxu0 }
 0x4a2   : > { %v3020_v34 = vpop.f32.mrb[2].mxu1  ;;  %v3445_v31 = vadd.f32 %v13541_v27, %v3340_v51  ;;  %v3341_v16 = vadd.f32 %v3266_v38, %v3013_v13  ;;  %v6727_v45 = vpop.f32.mrb[55].mxu0 }
 0x4a3   : > { %v3021_v18 = vadd.f32 %v3020_v34, %v13542_v1  ;;  %v6621_v50 = vpop.f32.mrb[3].mxu1 }
 0x4a4   : > { %v9695_v21 = vpack.c.bf16 %v3445_v31, %v3444_v41  ;;  %v5487_v37 = vpack.c.bf16 %v3445_v31, %v3445_v31  ;;  %v3446_v42 = vadd.f32 %v13544_v39, %v3341_v16  ;;  %v13549_v41 = vld [vmem:[#allocation58_spill] sm:$0xff] }
 0x4a5   : > { %v13551_v31 = vld [vmem:[#allocation2_spill] sm:$0xff] }
 0x4a6   : > { %13543 = vst [vmem:[#allocation91_spill] sm:$0xff] %v9695_v21  ;;  %3716 = vst.msk [vmem:[%s9465_s8 + $0xac] sm:$0xf] %vm3672_vm5, %v5487_v37  ;;  %v5488_v62 = vpack.c.bf16 %v3446_v42, %v3446_v42 }
 0x4a7   : > { %v3271_v9 = vpop.f32.mrb[56].mxu0 }
 0x4a8   : > { %v3025_v5 = vpop.f32.mrb[4].mxu1  ;;  %3717 = vst.msk [vmem:[%s9465_s8 + $0xb0] sm:$0xf] %vm3672_vm5, %v5488_v62  ;;  %v3342_v20 = vadd.f32 %v3271_v9, %v3018_v29  ;;  %v6730_v2 = vpop.f32.mrb[57].mxu0  ;;  %v13550_v29 = vld [vmem:[#allocation13_spill] sm:$0xff] }
 0x4a9   : > { %v3026_v59 = vadd.f32 %v3025_v5, %v13545_v3  ;;  %v6624_v60 = vpop.f32.mrb[5].mxu1  ;;  %v3274_v55 = vpop.f32.mrb[58].mxu0  ;;  %v13554_v62 = vld [vmem:[#allocation61_spill] sm:$0xff] }
 0x4aa   : > { %v3028_v56 = vpop.f32.mrb[6].mxu1  ;;  %v3447_v28 = vadd.f32 %v13546_v14, %v3342_v20  ;;  %v3343_v40 = vadd.f32 %v3274_v55, %v3021_v18  ;;  %v6731_v47 = vpop.f32.mrb[59].mxu0  ;;  %v13552_v18 = vld [vmem:[#allocation70_spill] sm:$0xff]  ;;  %v13555_v2 = vld [vmem:[#allocation5_spill] sm:$0xff] }
 0x4ab   : > { %v3029_v13 = vadd.f32 %v3028_v56, %v13547_v12  ;;  %v6625_v61 = vpop.f32.mrb[7].mxu1 }
 0x4ac   : > { %v9705_v19 = vpack.c.bf16 %v3447_v28, %v3446_v42  ;;  %v5489_v17 = vpack.c.bf16 %v3447_v28, %v3447_v28  ;;  %v3448_v26 = vadd.f32 %v13549_v41, %v3343_v40 }
 0x4ae   : > { %13548 = vst [vmem:[#allocation27_spill] sm:$0xff] %v9705_v19  ;;  %3718 = vst.msk [vmem:[%s9465_s8 + $0xb4] sm:$0xf] %vm3672_vm5, %v5489_v17  ;;  %v5490_v36 = vpack.c.bf16 %v3448_v26, %v3448_v26 }
 0x4af   : > { %v3279_v8 = vpop.f32.mrb[60].mxu0 }
 0x4b0   : > { %v3033_v30 = vpop.f32.mrb[8].mxu1  ;;  %3719 = vst.msk [vmem:[%s9465_s8 + $0xb8] sm:$0xf] %vm3672_vm5, %v5490_v36  ;;  %v3344_v10 = vadd.f32 %v3279_v8, %v3026_v59  ;;  %v6734_v34 = vpop.f32.mrb[61].mxu0 }
 0x4b1   : > { %v3034_v51 = vadd.f32 %v3033_v30, %v13550_v29  ;;  %v6628_v44 = vpop.f32.mrb[9].mxu1  ;;  %v3282_v27 = vpop.f32.mrb[62].mxu0 }
 0x4b2   : > { %v3036_v38 = vpop.f32.mrb[10].mxu1  ;;  %v3449_v1 = vadd.f32 %v13551_v31, %v3344_v10  ;;  %v3345_v45 = vadd.f32 %v3282_v27, %v3029_v13  ;;  %v6735_v50 = vpop.f32.mrb[63].mxu0  ;;  %v13557_v13 = vld [vmem:[#allocation44_spill] sm:$0xff] }
 0x4b3   : > { %v3037_v16 = vadd.f32 %v3036_v38, %v13552_v18  ;;  %v6629_v37 = vpop.f32.mrb[11].mxu1 }
 0x4b4   : > { %v9715_v39 = vpack.c.bf16 %v3449_v1, %v3448_v26  ;;  %v5491_v42 = vpack.c.bf16 %v3449_v1, %v3449_v1  ;;  %v3450_v5 = vadd.f32 %v13554_v62, %v3345_v45 }
 0x4b6   : > { %13553 = vst [vmem:[#allocation52_spill] sm:$0xff] %v9715_v39  ;;  %3720 = vst.msk [vmem:[%s9465_s8 + $0xbc] sm:$0xf] %vm3672_vm5, %v5491_v42  ;;  %v5492_v9 = vpack.c.bf16 %v3450_v5, %v3450_v5 }
 0x4b7   : > { %v3287_v3 = vpop.f32.mrb[64].mxu0 }
 0x4b8   : > { %3721 = vst.msk [vmem:[%s9465_s8 + $0xc0] sm:$0xf] %vm3672_vm5, %v5492_v9  ;;  %v3346_v59 = vadd.f32 %v3287_v3, %v3034_v51  ;;  %v6738_v20 = vpop.f32.mrb[65].mxu0 }
 0x4b9   : > { %v3290_v60 = vpop.f32.mrb[66].mxu0 }
 0x4ba   : > { %v3451_v56 = vadd.f32 %v13555_v2, %v3346_v59  ;;  %v3347_v55 = vadd.f32 %v3290_v60, %v3037_v16  ;;  %v6739_v14 = vpop.f32.mrb[67].mxu0  ;;  %3737 = sbr.rel (%p5387_p6) target bundleno = 1600 (0x640), region = 36 }
 0x4bc   : > { %v9723_v28 = vpack.c.bf16 %v3451_v56, %v3450_v5  ;;  %v5493_v12 = vpack.c.bf16 %v3451_v56, %v3451_v56  ;;  %v3452_v40 = vadd.f32 %v13557_v13, %v3347_v55 }
 0x4be   : > { %13556 = vst [vmem:[#allocation57_spill] sm:$0xff] %v9723_v28  ;;  %3722 = vst.msk [vmem:[%s9465_s8 + $0xc4] sm:$0xf] %vm3672_vm5, %v5493_v12  ;;  %v9729_v47 = vpack.c.bf16 %v9459_v58, %v3452_v40  ;;  %v5494_v61 = vpack.c.bf16 %v3452_v40, %v3452_v40 }
 0x4c0   : > { %13558 = vst [vmem:[#allocation45_spill] sm:$0xff] %v9729_v47  ;;  %3723 = vst.msk [vmem:[%s9465_s8 + $0xc8] sm:$0xf] %vm3672_vm5, %v5494_v61 }
 0x4c1   : > { %v13559_v17 = vld [vmem:[#allocation8_spill] sm:$0xff] }
 0x4c2   : > { %v9735_v41 = vadd.s32 8, %v13559_v17  ;;  %v9738_v26 = vadd.s32 16, %v13559_v17  ;;  %v9741_v36 = vadd.s32 24, %v13559_v17  ;;  %v9744_v30 = vadd.s32 32, %v13559_v17 }
 0x4c3   : > { %v9747_v58 = vadd.s32 40, %v13559_v17  ;;  %v9750_v8 = vadd.s32 48, %v13559_v17  ;;  %v9753_v29 = vadd.s32 56, %v13559_v17  ;;  %v9756_v51 = vadd.s32 64, %v13559_v17 }
 0x4c4   : > { %13560 = vst [vmem:[#allocation95_spill] sm:$0xff] %v9735_v41  ;;  %13561 = vst [vmem:[#allocation96_spill] sm:$0xff] %v9738_v26  ;;  %v9759_v10 = vadd.s32 72, %v13559_v17  ;;  %v9762_v44 = vadd.s32 80, %v13559_v17  ;;  %v9765_v34 = vadd.s32 88, %v13559_v17  ;;  %v9768_v38 = vadd.s32 96, %v13559_v17 }
 0x4c5   : > { %13562 = vst [vmem:[#allocation97_spill] sm:$0xff] %v9741_v36  ;;  %13563 = vst [vmem:[#allocation98_spill] sm:$0xff] %v9744_v30  ;;  %v9771_v27 = vadd.s32 104, %v13559_v17  ;;  %v9774_v31 = vadd.s32 112, %v13559_v17  ;;  %v9777_v1 = vadd.s32 120, %v13559_v17  ;;  %v9780_v18 = vadd.s32 128, %v13559_v17 }
 0x4c6   : > { %13564 = vst [vmem:[#allocation99_spill] sm:$0xff] %v9747_v58  ;;  %13565 = vst [vmem:[#allocation100_spill] sm:$0xff] %v9750_v8  ;;  %v9783_v16 = vadd.s32 136, %v13559_v17  ;;  %v9786_v45 = vadd.s32 144, %v13559_v17  ;;  %v9789_v50 = vadd.s32 152, %v13559_v17  ;;  %v9792_v37 = vadd.s32 160, %v13559_v17 }
 0x4c7   : > { %13566 = vst [vmem:[#allocation101_spill] sm:$0xff] %v9753_v29  ;;  %13567 = vst [vmem:[#allocation102_spill] sm:$0xff] %v9756_v51  ;;  %v9795_v42 = vadd.s32 168, %v13559_v17  ;;  %v9798_v62 = vadd.s32 176, %v13559_v17  ;;  %v9801_v5 = vadd.s32 184, %v13559_v17  ;;  %v9804_v9 = vadd.s32 192, %v13559_v17 }
 0x4c8   : > { %13568 = vst [vmem:[#allocation103_spill] sm:$0xff] %v9759_v10  ;;  %13569 = vst [vmem:[#allocation104_spill] sm:$0xff] %v9762_v44  ;;  %v9807_v3 = vadd.s32 200, %v13559_v17  ;;  %v9810_v59 = vadd.s32 208, %v13559_v17  ;;  %v9813_v20 = vadd.s32 216, %v13559_v17  ;;  %v9816_v60 = vadd.s32 224, %v13559_v17 }
 0x4c9   : > { %13570 = vst [vmem:[#allocation105_spill] sm:$0xff] %v9765_v34  ;;  %13571 = vst [vmem:[#allocation106_spill] sm:$0xff] %v9768_v38  ;;  %v9819_v2 = vadd.s32 232, %v13559_v17  ;;  %v9822_v56 = vadd.s32 240, %v13559_v17  ;;  %v9825_v55 = vadd.s32 248, %v13559_v17  ;;  %v9828_v14 = vadd.s32 256, %v13559_v17 }
 0x4ca   : > { %13572 = vst [vmem:[#allocation107_spill] sm:$0xff] %v9771_v27  ;;  %13573 = vst [vmem:[#allocation108_spill] sm:$0xff] %v9774_v31  ;;  %v9831_v12 = vadd.s32 264, %v13559_v17  ;;  %v9834_v13 = vadd.s32 272, %v13559_v17  ;;  %v9837_v40 = vadd.s32 280, %v13559_v17  ;;  %v9840_v61 = vadd.s32 288, %v13559_v17 }
 0x4cb   : > { %13574 = vst [vmem:[#allocation109_spill] sm:$0xff] %v9777_v1  ;;  %13575 = vst [vmem:[#allocation110_spill] sm:$0xff] %v9780_v18  ;;  %v9843_v49 = vadd.s32 296, %v13559_v17  ;;  %v9846_v47 = vadd.s32 304, %v13559_v17  ;;  %v9849_v28 = vadd.s32 312, %v13559_v17  ;;  %v9852_v39 = vadd.s32 320, %v13559_v17 }
 0x4cc   : > { %13576 = vst [vmem:[#allocation111_spill] sm:$0xff] %v9783_v16  ;;  %13577 = vst [vmem:[#allocation112_spill] sm:$0xff] %v9786_v45  ;;  %v9855_v19 = vadd.s32 328, %v13559_v17  ;;  %v9858_v21 = vadd.s32 336, %v13559_v17  ;;  %v9861_v32 = vadd.s32 344, %v13559_v17  ;;  %v9864_v24 = vadd.s32 352, %v13559_v17 }
 0x4cd   : > { %13578 = vst [vmem:[#allocation113_spill] sm:$0xff] %v9789_v50  ;;  %13579 = vst [vmem:[#allocation114_spill] sm:$0xff] %v9792_v37  ;;  %v9867_v4 = vadd.s32 360, %v13559_v17  ;;  %v9870_v23 = vadd.s32 368, %v13559_v17  ;;  %v9873_v35 = vadd.s32 376, %v13559_v17  ;;  %v9876_v46 = vadd.s32 384, %v13559_v17 }
 0x4ce   : > { %13580 = vst [vmem:[#allocation115_spill] sm:$0xff] %v9795_v42  ;;  %13581 = vst [vmem:[#allocation116_spill] sm:$0xff] %v9798_v62  ;;  %v9879_v48 = vadd.s32 392, %v13559_v17  ;;  %v9882_v25 = vadd.s32 400, %v13559_v17  ;;  %v9885_v53 = vadd.s32 408, %v13559_v17  ;;  %v9888_v7 = vadd.s32 416, %v13559_v17 }
 0x4cf   : > { %13582 = vst [vmem:[#allocation117_spill] sm:$0xff] %v9801_v5  ;;  %13583 = vst [vmem:[#allocation118_spill] sm:$0xff] %v9804_v9  ;;  %v9891_v43 = vadd.s32 424, %v13559_v17  ;;  %v13613_v57 = vcvt.s32.f32 %v13559_v17  ;;  %v13614_v63 = vcvt.s32.f32 %v9735_v41  ;;  %v13615_v52 = vcvt.s32.f32 %v9738_v26 }
 0x4d0   : > { %13584 = vst [vmem:[#allocation119_spill] sm:$0xff] %v9807_v3  ;;  %13585 = vst [vmem:[#allocation120_spill] sm:$0xff] %v9810_v59  ;;  %v13616_v15 = vcvt.s32.f32 %v9741_v36  ;;  %v13617_v22 = vcvt.s32.f32 %v9744_v30  ;;  %v13618_v6 = vcvt.s32.f32 %v9747_v58  ;;  %v13620_v0 = vcvt.s32.f32 %v9753_v29 }
 0x4d1   : > { %13586 = vst [vmem:[#allocation121_spill] sm:$0xff] %v9813_v20  ;;  %13587 = vst [vmem:[#allocation122_spill] sm:$0xff] %v9816_v60  ;;  %v3847_v11 = vmul.f32 0.041666668, %v13614_v63  ;;  %v13619_v63 = vcvt.s32.f32 %v9750_v8  ;;  %v13621_v26 = vcvt.s32.f32 %v9756_v51  ;;  %v13622_v36 = vcvt.s32.f32 %v9759_v10 }
 0x4d2   : > { %13588 = vst [vmem:[#allocation123_spill] sm:$0xff] %v9819_v2  ;;  %13589 = vst [vmem:[#allocation124_spill] sm:$0xff] %v9822_v56  ;;  %v3849_v17 = vmul.f32 0.041666668, %v13616_v15  ;;  %v3850_v33 = vmul.f32 0.041666668, %v13617_v22  ;;  %v13625_v58 = vcvt.s32.f32 %v9765_v34  ;;  %v13626_v8 = vcvt.s32.f32 %v9768_v38 }
 0x4d3   : > { %13590 = vst [vmem:[#allocation125_spill] sm:$0xff] %v9825_v55  ;;  %13591 = vst [vmem:[#allocation126_spill] sm:$0xff] %v9828_v14  ;;  %v3852_v41 = vmul.f32 0.041666668, %v13619_v63  ;;  %v3853_v54 = vmul.f32 0.041666668, %v13620_v0  ;;  %v9975_v30 = vfloor.f32 %v3847_v11  ;;  %v13628_v0 = vcvt.s32.f32 %v9771_v27 }
 0x4d4   : > { %13592 = vst [vmem:[#allocation127_spill] sm:$0xff] %v9831_v12  ;;  %13593 = vst [vmem:[#allocation128_spill] sm:$0xff] %v9834_v13  ;;  %v3855_v15 = vmul.f32 0.041666668, %v13622_v36  ;;  %v3858_v63 = vmul.f32 0.041666668, %v13626_v8  ;;  %v13634_v11 = vcvt.s32.f32 %v9786_v45  ;;  %v9999_v27 = vfloor.f32 %v3850_v33 }
 0x4d5   : > { %13594 = vst [vmem:[#allocation129_spill] sm:$0xff] %v9837_v40  ;;  %13595 = vst [vmem:[#allocation130_spill] sm:$0xff] %v9840_v61  ;;  %v3859_v51 = vmul.f32 0.041666668, %v13628_v0  ;;  %v13636_v0 = vcvt.s32.f32 %v9789_v50  ;;  %v13646_v33 = vcvt.s32.f32 %v9813_v20  ;;  %v10015_v50 = vfloor.f32 %v3852_v41 }
 0x4d6   : > { %13596 = vst [vmem:[#allocation131_spill] sm:$0xff] %v9843_v49  ;;  %13597 = vst [vmem:[#allocation132_spill] sm:$0xff] %v9846_v47  ;;  %v3846_v47 = vmul.f32 0.041666668, %v13613_v57  ;;  %v13624_v57 = vcvt.s32.f32 %v9762_v44  ;;  %v3864_v8 = vmul.f32 0.041666668, %v13634_v11  ;;  %v9991_v44 = vfloor.f32 %v3849_v17 }
 0x4d7   : > { %13598 = vst [vmem:[#allocation133_spill] sm:$0xff] %v9849_v28  ;;  %13599 = vst [vmem:[#allocation134_spill] sm:$0xff] %v9852_v39  ;;  %v13642_v17 = vcvt.s32.f32 %v9804_v9  ;;  %v13654_v41 = vcvt.s32.f32 %v9831_v12 }
 0x4d8   : > { %13600 = vst [vmem:[#allocation135_spill] sm:$0xff] %v9855_v19  ;;  %13601 = vst [vmem:[#allocation136_spill] sm:$0xff] %v9858_v21  ;;  %v3856_v22 = vmul.f32 0.041666668, %v13624_v57  ;;  %v13632_v57 = vcvt.s32.f32 %v9780_v18 }
 0x4d9   : > { %13602 = vst [vmem:[#allocation137_spill] sm:$0xff] %v9861_v32  ;;  %13603 = vst [vmem:[#allocation138_spill] sm:$0xff] %v9864_v24  ;;  %v3870_v11 = vmul.f32 0.041666668, %v13642_v17 }
 0x4da   : > { %13604 = vst [vmem:[#allocation139_spill] sm:$0xff] %v9867_v4  ;;  %13605 = vst [vmem:[#allocation140_spill] sm:$0xff] %v9870_v23  ;;  %v3848_v23 = vmul.f32 0.041666668, %v13615_v52  ;;  %v3854_v52 = vmul.f32 0.041666668, %v13621_v26  ;;  %v13629_v26 = vcvt.s32.f32 %v9774_v31 }
 0x4db   : > { %13606 = vst [vmem:[#allocation141_spill] sm:$0xff] %v9873_v35  ;;  %13607 = vst [vmem:[#allocation142_spill] sm:$0xff] %v9876_v46  ;;  %v3862_v34 = vmul.f32 0.041666668, %v13632_v57  ;;  %v3865_v31 = vmul.f32 0.041666668, %v13636_v0  ;;  %v13640_v57 = vcvt.s32.f32 %v9798_v62  ;;  %v13644_v0 = vcvt.s32.f32 %v9807_v3 }
 0x4dc   : > { %13608 = vst [vmem:[#allocation143_spill] sm:$0xff] %v9879_v48  ;;  %13609 = vst [vmem:[#allocation144_spill] sm:$0xff] %v9882_v25  ;;  %v3851_v25 = vmul.f32 0.041666668, %v13618_v6  ;;  %v3857_v6 = vmul.f32 0.041666668, %v13625_v58  ;;  %v9983_v29 = vfloor.f32 %v3848_v23  ;;  %v13633_v58 = vcvt.s32.f32 %v9783_v16 }
 0x4dd   : > { %13610 = vst [vmem:[#allocation145_spill] sm:$0xff] %v9885_v53  ;;  %13611 = vst [vmem:[#allocation146_spill] sm:$0xff] %v9888_v7  ;;  %v9967_v7 = vfloor.f32 %v3846_v47  ;;  %v3860_v10 = vmul.f32 0.041666668, %v13629_v26  ;;  %v13630_v47 = vcvt.s32.f32 %v9777_v1  ;;  %v13637_v26 = vcvt.s32.f32 %v9792_v37 }
 0x4de   : > { %13612 = vst [vmem:[#allocation147_spill] sm:$0xff] %v9891_v43  ;;  %13627 = vst [vmem:[#allocation149_spill] sm:$0xff] %v9975_v30  ;;  %v3863_v38 = vmul.f32 0.041666668, %v13633_v58  ;;  %v13638_v23 = vcvt.s32.f32 %v9795_v42  ;;  %v3868_v16 = vmul.f32 0.041666668, %v13640_v57  ;;  %v13641_v58 = vcvt.s32.f32 %v9801_v5 }
 0x4df   : > { %13623 = vst [vmem:[#allocation148_spill] sm:$0xff] %v9967_v7  ;;  %v3861_v36 = vmul.f32 0.041666668, %v13630_v47  ;;  %13631 = vst [vmem:[#allocation150_spill] sm:$0xff] %v9983_v29  ;;  %v3866_v1 = vmul.f32 0.041666668, %v13637_v26  ;;  %v10007_v18 = vfloor.f32 %v3851_v25  ;;  %v13645_v26 = vcvt.s32.f32 %v9810_v59 }
 0x4e0   : > { %13635 = vst [vmem:[#allocation151_spill] sm:$0xff] %v9991_v44  ;;  %v3867_v47 = vmul.f32 0.041666668, %v13638_v23  ;;  %13639 = vst [vmem:[#allocation152_spill] sm:$0xff] %v9999_v27  ;;  %v3869_v45 = vmul.f32 0.041666668, %v13641_v58  ;;  %v13648_v57 = vcvt.s32.f32 %v9816_v60  ;;  %v13649_v58 = vcvt.s32.f32 %v9819_v2 }
 0x4e1   : > { %13643 = vst [vmem:[#allocation153_spill] sm:$0xff] %v10007_v18  ;;  %v3871_v37 = vmul.f32 0.041666668, %v13644_v0  ;;  %v3872_v42 = vmul.f32 0.041666668, %v13645_v26  ;;  %13647 = vst [vmem:[#allocation154_spill] sm:$0xff] %v10015_v50  ;;  %v13650_v25 = vcvt.s32.f32 %v9822_v56  ;;  %v10023_v62 = vfloor.f32 %v3853_v54 }
 0x4e2   : > { %v3873_v23 = vmul.f32 0.041666668, %v13646_v33  ;;  %v3874_v5 = vmul.f32 0.041666668, %v13648_v57  ;;  %v3875_v9 = vmul.f32 0.041666668, %v13649_v58  ;;  %v13652_v0 = vcvt.s32.f32 %v9825_v55 }
 0x4e3   : > { %v3876_v17 = vmul.f32 0.041666668, %v13650_v25  ;;  %13651 = vst [vmem:[#allocation155_spill] sm:$0xff] %v10023_v62  ;;  %v13653_v26 = vcvt.s32.f32 %v9828_v14  ;;  %v3879_v33 = vmul.f32 0.041666668, %v13654_v41  ;;  %v10031_v3 = vfloor.f32 %v3854_v52 }
 0x4e4   : > { %v3877_v59 = vmul.f32 0.041666668, %v13652_v0  ;;  %v13656_v57 = vcvt.s32.f32 %v9834_v13  ;;  %v13657_v58 = vcvt.s32.f32 %v9837_v40  ;;  %v13658_v54 = vcvt.s32.f32 %v9840_v61 }
 0x4e5   : > { %v3878_v20 = vmul.f32 0.041666668, %v13653_v26  ;;  %13655 = vst [vmem:[#allocation156_spill] sm:$0xff] %v10031_v3  ;;  %v10039_v60 = vfloor.f32 %v3855_v15  ;;  %v13660_v0 = vcvt.s32.f32 %v9843_v49  ;;  %v13661_v26 = vld [vmem:[#allocation132_spill] sm:$0xff]  ;;  %v13663_v52 = vcvt.s32.f32 %v9849_v28 }
 0x4e6   : > { %v3880_v2 = vmul.f32 0.041666668, %v13656_v57  ;;  %v3881_v56 = vmul.f32 0.041666668, %v13657_v58  ;;  %v3882_v25 = vmul.f32 0.041666668, %v13658_v54  ;;  %v13662_v55 = vcvt.s32.f32 %v13661_v26 }
 0x4e7   : > { %13659 = vst [vmem:[#allocation157_spill] sm:$0xff] %v10039_v60  ;;  %v3883_v14 = vmul.f32 0.041666668, %v13660_v0  ;;  %v3885_v41 = vmul.f32 0.041666668, %v13663_v52  ;;  %v10047_v3 = vfloor.f32 %v3856_v22  ;;  %v13665_v57 = vcvt.s32.f32 %v9852_v39 }
 0x4e8   : > { %v3884_v12 = vmul.f32 0.041666668, %v13662_v55  ;;  %v13666_v58 = vcvt.s32.f32 %v9855_v19  ;;  %v13667_v15 = vcvt.s32.f32 %v9858_v21  ;;  %v10055_v13 = vfloor.f32 %v3857_v6 }
 0x4e9   : > { %13664 = vst [vmem:[#allocation158_spill] sm:$0xff] %v10047_v3  ;;  %v3886_v40 = vmul.f32 0.041666668, %v13665_v57  ;;  %v13669_v0 = vcvt.s32.f32 %v9861_v32  ;;  %v13670_v55 = vcvt.s32.f32 %v9864_v24  ;;  %v13671_v22 = vcvt.s32.f32 %v9867_v4  ;;  %v13673_v57 = vld [vmem:[#allocation140_spill] sm:$0xff] }
 0x4ea   : > { %v3887_v61 = vmul.f32 0.041666668, %v13666_v58  ;;  %v3888_v54 = vmul.f32 0.041666668, %v13667_v15  ;;  %13668 = vst [vmem:[#allocation159_spill] sm:$0xff] %v10055_v13  ;;  %v10063_v49 = vfloor.f32 %v3858_v63  ;;  %v13674_v39 = vcvt.s32.f32 %v13673_v57 }
 0x4eb   : > { %v3889_v26 = vmul.f32 0.041666668, %v13669_v0  ;;  %v3890_v28 = vmul.f32 0.041666668, %v13670_v55  ;;  %v3891_v52 = vmul.f32 0.041666668, %v13671_v22  ;;  %v13675_v58 = vcvt.s32.f32 %v9873_v35 }
 0x4ec   : > { %13672 = vst [vmem:[#allocation160_spill] sm:$0xff] %v10063_v49  ;;  %v3892_v19 = vmul.f32 0.041666668, %v13674_v39  ;;  %v13676_v6 = vcvt.s32.f32 %v9876_v46  ;;  %v10071_v13 = vfloor.f32 %v3859_v51  ;;  %v13678_v0 = vcvt.s32.f32 %v9879_v48  ;;  %v13679_v55 = vld [vmem:[#allocation144_spill] sm:$0xff]  ;;  %v13683_v39 = vld [vmem:[#allocation146_spill] sm:$0xff] }
 0x4ed   : > { %v3893_v21 = vmul.f32 0.041666668, %v13675_v58  ;;  %v13680_v32 = vcvt.s32.f32 %v13679_v55  ;;  %v13681_v63 = vcvt.s32.f32 %v9885_v53  ;;  %v10079_v49 = vfloor.f32 %v3860_v10 }
 0x4ee   : > { %v3894_v15 = vmul.f32 0.041666668, %v13676_v6  ;;  %13677 = vst [vmem:[#allocation161_spill] sm:$0xff] %v10071_v13  ;;  %v3895_v24 = vmul.f32 0.041666668, %v13678_v0  ;;  %v13684_v57 = vcvt.s32.f32 %v13683_v39  ;;  %v13685_v58 = vcvt.s32.f32 %v9891_v43 }
 0x4ef   : > { %v3896_v4 = vmul.f32 0.041666668, %v13680_v32  ;;  %v3897_v22 = vmul.f32 0.041666668, %v13681_v63  ;;  %13682 = vst [vmem:[#allocation162_spill] sm:$0xff] %v10079_v49  ;;  %v10085_v6 = vfloor.f32 %v3861_v36  ;;  %v10087_v51 = vfloor.f32 %v3862_v34 }
 0x4f0   : > { %v3898_v35 = vmul.f32 0.041666668, %v13684_v57  ;;  %v3899_v46 = vmul.f32 0.041666668, %v13685_v58  ;;  %v10089_v48 = vfloor.f32 %v3863_v38  ;;  %v10091_v0 = vfloor.f32 %v3864_v8 }
 0x4f1   : > { %13686 = vst [vmem:[#allocation163_spill] sm:$0xff] %v10085_v6  ;;  %13687 = vst [vmem:[#allocation164_spill] sm:$0xff] %v10087_v51  ;;  %v10093_v32 = vfloor.f32 %v3865_v31  ;;  %v10095_v53 = vfloor.f32 %v3866_v1  ;;  %v10097_v10 = vfloor.f32 %v3867_v47  ;;  %v10099_v63 = vfloor.f32 %v3868_v16  ;;  %v13726_v55 = vld [vmem:[#allocation159_spill] sm:$0xff] }
 0x4f2   : > { %13688 = vst [vmem:[#allocation165_spill] sm:$0xff] %v10089_v48  ;;  %13689 = vst [vmem:[#allocation166_spill] sm:$0xff] %v10091_v0  ;;  %v10101_v57 = vfloor.f32 %v3869_v45  ;;  %v10103_v43 = vfloor.f32 %v3870_v11  ;;  %v10105_v36 = vfloor.f32 %v3871_v37  ;;  %v10107_v34 = vfloor.f32 %v3872_v42 }
 0x4f3   : > { %13690 = vst [vmem:[#allocation167_spill] sm:$0xff] %v10093_v32  ;;  %13691 = vst [vmem:[#allocation168_spill] sm:$0xff] %v10095_v53  ;;  %v10109_v38 = vfloor.f32 %v3873_v23  ;;  %v10111_v8 = vfloor.f32 %v3874_v5  ;;  %v10113_v31 = vfloor.f32 %v3875_v9  ;;  %v10115_v1 = vfloor.f32 %v3876_v17 }
 0x4f4   : > { %13692 = vst [vmem:[#allocation169_spill] sm:$0xff] %v10097_v10  ;;  %13693 = vst [vmem:[#allocation170_spill] sm:$0xff] %v10099_v63  ;;  %v10117_v47 = vfloor.f32 %v3877_v59  ;;  %v10119_v16 = vfloor.f32 %v3878_v20  ;;  %v10121_v45 = vfloor.f32 %v3879_v33  ;;  %v10123_v11 = vfloor.f32 %v3880_v2 }
 0x4f5   : > { %13694 = vst [vmem:[#allocation171_spill] sm:$0xff] %v10101_v57  ;;  %13695 = vst [vmem:[#allocation172_spill] sm:$0xff] %v10103_v43  ;;  %v10125_v37 = vfloor.f32 %v3881_v56  ;;  %v10127_v42 = vfloor.f32 %v3882_v25  ;;  %v10129_v23 = vfloor.f32 %v3883_v14  ;;  %v10131_v5 = vfloor.f32 %v3884_v12 }
 0x4f6   : > { %13696 = vst [vmem:[#allocation173_spill] sm:$0xff] %v10105_v36  ;;  %13697 = vst [vmem:[#allocation174_spill] sm:$0xff] %v10107_v34  ;;  %v10133_v9 = vfloor.f32 %v3885_v41  ;;  %v10135_v17 = vfloor.f32 %v3886_v40  ;;  %v10137_v59 = vfloor.f32 %v3887_v61  ;;  %v10139_v20 = vfloor.f32 %v3888_v54 }
 0x4f7   : > { %13698 = vst [vmem:[#allocation175_spill] sm:$0xff] %v10109_v38  ;;  %13699 = vst [vmem:[#allocation176_spill] sm:$0xff] %v10111_v8  ;;  %v10141_v33 = vfloor.f32 %v3889_v26  ;;  %v10143_v2 = vfloor.f32 %v3890_v28  ;;  %v10145_v56 = vfloor.f32 %v3891_v52  ;;  %v10147_v25 = vfloor.f32 %v3892_v19 }
 0x4f8   : > { %13700 = vst [vmem:[#allocation177_spill] sm:$0xff] %v10113_v31  ;;  %13701 = vst [vmem:[#allocation178_spill] sm:$0xff] %v10115_v1  ;;  %v10149_v14 = vfloor.f32 %v3893_v21  ;;  %v10151_v12 = vfloor.f32 %v3894_v15  ;;  %v10153_v41 = vfloor.f32 %v3895_v24  ;;  %v10155_v40 = vfloor.f32 %v3896_v4 }
 0x4f9   : > { %13702 = vst [vmem:[#allocation179_spill] sm:$0xff] %v10117_v47  ;;  %13703 = vst [vmem:[#allocation180_spill] sm:$0xff] %v10119_v16  ;;  %v10157_v61 = vfloor.f32 %v3897_v22  ;;  %v10159_v54 = vfloor.f32 %v3898_v35  ;;  %v10161_v26 = vfloor.f32 %v3899_v46  ;;  %v3954_v28 = vmul.f32 24.0, %v9967_v7  ;;  %v13725_v35 = vld [vmem:[#allocation156_spill] sm:$0xff] }
 0x4fa   : > { %13704 = vst [vmem:[#allocation181_spill] sm:$0xff] %v10121_v45  ;;  %13705 = vst [vmem:[#allocation182_spill] sm:$0xff] %v10123_v11  ;;  %v3955_v52 = vmul.f32 24.0, %v9975_v30  ;;  %v3956_v19 = vmul.f32 24.0, %v9983_v29  ;;  %v3957_v21 = vmul.f32 24.0, %v9991_v44  ;;  %v3958_v15 = vmul.f32 24.0, %v9999_v27 }
 0x4fb   : > { %13706 = vst [vmem:[#allocation183_spill] sm:$0xff] %v10125_v37  ;;  %13707 = vst [vmem:[#allocation184_spill] sm:$0xff] %v10127_v42  ;;  %v3959_v24 = vmul.f32 24.0, %v10007_v18  ;;  %v3960_v4 = vmul.f32 24.0, %v10015_v50  ;;  %v3961_v22 = vmul.f32 24.0, %v10023_v62  ;;  %v3962_v58 = vmul.f32 24.0, %v13725_v35 }
 0x4fc   : > { %13708 = vst [vmem:[#allocation185_spill] sm:$0xff] %v10129_v23  ;;  %13709 = vst [vmem:[#allocation186_spill] sm:$0xff] %v10131_v5  ;;  %v3963_v46 = vmul.f32 24.0, %v10039_v60  ;;  %v3964_v39 = vmul.f32 24.0, %v10047_v3  ;;  %v3965_v30 = vmul.f32 24.0, %v13726_v55  ;;  %v13727_v7 = vld [vmem:[#allocation160_spill] sm:$0xff] }
 0x4fd   : > { %13710 = vst [vmem:[#allocation187_spill] sm:$0xff] %v10133_v9  ;;  %13711 = vst [vmem:[#allocation188_spill] sm:$0xff] %v10135_v17  ;;  %v3966_v29 = vmul.f32 24.0, %v13727_v7  ;;  %v3967_v44 = vmul.f32 24.0, %v10071_v13  ;;  %v3968_v27 = vmul.f32 24.0, %v10079_v49  ;;  %v3969_v18 = vmul.f32 24.0, %v10085_v6 }
 0x4fe   : > { %13712 = vst [vmem:[#allocation189_spill] sm:$0xff] %v10137_v59  ;;  %13713 = vst [vmem:[#allocation190_spill] sm:$0xff] %v10139_v20  ;;  %v3970_v50 = vmul.f32 24.0, %v10087_v51  ;;  %v3971_v62 = vmul.f32 24.0, %v10089_v48  ;;  %v3972_v35 = vmul.f32 24.0, %v10091_v0  ;;  %v3973_v60 = vmul.f32 24.0, %v10093_v32 }
 0x4ff   : > { %13714 = vst [vmem:[#allocation191_spill] sm:$0xff] %v10141_v33  ;;  %13715 = vst [vmem:[#allocation192_spill] sm:$0xff] %v10143_v2  ;;  %v3974_v3 = vmul.f32 24.0, %v10095_v53  ;;  %v10185_v55 = vmul.f32 24.0, %v10097_v10  ;;  %v10188_v7 = vmul.f32 24.0, %v10099_v63  ;;  %v10191_v49 = vmul.f32 24.0, %v10101_v57 }
 0x500   : > { %13716 = vst [vmem:[#allocation193_spill] sm:$0xff] %v10145_v56  ;;  %13717 = vst [vmem:[#allocation194_spill] sm:$0xff] %v10147_v25  ;;  %v10194_v6 = vmul.f32 24.0, %v10103_v43  ;;  %v10197_v48 = vmul.f32 24.0, %v10105_v36  ;;  %v10200_v0 = vmul.f32 24.0, %v10107_v34  ;;  %v10203_v53 = vmul.f32 24.0, %v10109_v38 }
 0x501   : > { %13718 = vst [vmem:[#allocation195_spill] sm:$0xff] %v10149_v14  ;;  %13719 = vst [vmem:[#allocation196_spill] sm:$0xff] %v10151_v12  ;;  %v10206_v10 = vmul.f32 24.0, %v10111_v8  ;;  %v10209_v63 = vmul.f32 24.0, %v10113_v31  ;;  %v10212_v57 = vmul.f32 24.0, %v10115_v1  ;;  %v10215_v43 = vmul.f32 24.0, %v10117_v47 }
 0x502   : > { %13720 = vst [vmem:[#allocation197_spill] sm:$0xff] %v10153_v41  ;;  %13721 = vst [vmem:[#allocation198_spill] sm:$0xff] %v10155_v40  ;;  %v10218_v36 = vmul.f32 24.0, %v10119_v16  ;;  %v10221_v34 = vmul.f32 24.0, %v10121_v45  ;;  %v10224_v38 = vmul.f32 24.0, %v10123_v11  ;;  %v10227_v8 = vmul.f32 24.0, %v10125_v37 }
 0x503   : > { %13722 = vst [vmem:[#allocation199_spill] sm:$0xff] %v10157_v61  ;;  %13723 = vst [vmem:[#allocation200_spill] sm:$0xff] %v10159_v54  ;;  %v10230_v31 = vmul.f32 24.0, %v10127_v42  ;;  %v10233_v1 = vmul.f32 24.0, %v10129_v23  ;;  %v10236_v47 = vmul.f32 24.0, %v10131_v5  ;;  %v10239_v16 = vmul.f32 24.0, %v10133_v9 }
 0x504   : > { %13724 = vst [vmem:[#allocation201_spill] sm:$0xff] %v10161_v26  ;;  %v10242_v45 = vmul.f32 24.0, %v10135_v17  ;;  %v10245_v11 = vmul.f32 24.0, %v10137_v59  ;;  %v10248_v37 = vmul.f32 24.0, %v10139_v20  ;;  %v10251_v42 = vmul.f32 24.0, %v10141_v33 }
 0x505   : > { %v10254_v23 = vmul.f32 24.0, %v10143_v2  ;;  %v10257_v5 = vmul.f32 24.0, %v10145_v56  ;;  %v10260_v9 = vmul.f32 24.0, %v10147_v25  ;;  %v10263_v17 = vmul.f32 24.0, %v10149_v14  ;;  %v13734_v14 = vld [vmem:[#allocation8_spill] sm:$0xff] }
 0x506   : > { %v10266_v59 = vmul.f32 24.0, %v10151_v12  ;;  %v10269_v20 = vmul.f32 24.0, %v10153_v41  ;;  %v10272_v33 = vmul.f32 24.0, %v10155_v40  ;;  %v10275_v2 = vmul.f32 24.0, %v10157_v61  ;;  %v13736_v12 = vld [vmem:[#allocation95_spill] sm:$0xff]  ;;  %v13740_v61 = vld [vmem:[#allocation97_spill] sm:$0xff] }
 0x507   : > { %v10278_v56 = vmul.f32 24.0, %v10159_v54  ;;  %v10281_v25 = vmul.f32 24.0, %v10161_v26  ;;  %v13735_v32 = vcvt.s32.f32 %v13734_v14  ;;  %v13737_v13 = vcvt.s32.f32 %v13736_v12  ;;  %v13742_v54 = vld [vmem:[#allocation98_spill] sm:$0xff] }
 0x508   : > { %13728 = vst [vmem:[#allocation202_spill] sm:$0xff] %v10266_v59  ;;  %13729 = vst [vmem:[#allocation203_spill] sm:$0xff] %v10269_v20  ;;  %v13738_v20 = vld [vmem:[#allocation96_spill] sm:$0xff] }
 0x509   : > { %13730 = vst [vmem:[#allocation204_spill] sm:$0xff] %v10272_v33  ;;  %13731 = vst [vmem:[#allocation205_spill] sm:$0xff] %v10275_v2  ;;  %v10285_v51 = vsub.f32 %v13735_v32, %v3954_v28  ;;  %v10289_v41 = vsub.f32 %v13737_v13, %v3955_v52  ;;  %v13739_v40 = vcvt.s32.f32 %v13738_v20  ;;  %v13741_v2 = vcvt.s32.f32 %v13740_v61  ;;  %v13746_v28 = vld [vmem:[#allocation100_spill] sm:$0xff]  ;;  %v13748_v52 = vld [vmem:[#allocation101_spill] sm:$0xff] }
 0x50a   : > { %13732 = vst [vmem:[#allocation206_spill] sm:$0xff] %v10278_v56  ;;  %13733 = vst [vmem:[#allocation207_spill] sm:$0xff] %v10281_v25  ;;  %v13743_v56 = vcvt.s32.f32 %v13742_v54  ;;  %v13744_v25 = vld [vmem:[#allocation99_spill] sm:$0xff]  ;;  %v13747_v12 = vcvt.s32.f32 %v13746_v28  ;;  %v13749_v20 = vcvt.s32.f32 %v13748_v52 }
 0x50b   : > { %v10293_v33 = vsub.f32 %v13739_v40, %v3956_v19  ;;  %v10297_v59 = vsub.f32 %v13741_v2, %v3957_v21  ;;  %v13745_v14 = vcvt.s32.f32 %v13744_v25  ;;  %v13750_v19 = vld [vmem:[#allocation102_spill] sm:$0xff]  ;;  %v13752_v21 = vld [vmem:[#allocation103_spill] sm:$0xff] }
 0x50c   : > { %v10301_v26 = vsub.f32 %v13743_v56, %v3958_v15  ;;  %v10309_v13 = vsub.f32 %v13747_v12, %v3960_v4  ;;  %v10313_v40 = vsub.f32 %v13749_v20, %v3961_v22  ;;  %v13751_v61 = vcvt.s32.f32 %v13750_v19  ;;  %v13754_v15 = vld [vmem:[#allocation104_spill] sm:$0xff]  ;;  %v13758_v12 = vld [vmem:[#allocation106_spill] sm:$0xff]  ;;  %v13760_v20 = vld [vmem:[#allocation107_spill] sm:$0xff] }
 0x50d   : > { %v10305_v32 = vsub.f32 %v13745_v14, %v3959_v24  ;;  %v13753_v54 = vcvt.s32.f32 %v13752_v21  ;;  %v13755_v25 = vcvt.s32.f32 %v13754_v15  ;;  %v13756_v14 = vld [vmem:[#allocation105_spill] sm:$0xff]  ;;  %v13759_v52 = vcvt.s32.f32 %v13758_v12 }
 0x50e   : > { %v10317_v2 = vsub.f32 %v13751_v61, %v3962_v58  ;;  %v13757_v28 = vcvt.s32.f32 %v13756_v14  ;;  %v13761_v19 = vcvt.s32.f32 %v13760_v20  ;;  %v13762_v61 = vld [vmem:[#allocation108_spill] sm:$0xff] }
 0x50f   : > { %v10321_v56 = vsub.f32 %v13753_v54, %v3963_v46  ;;  %v10325_v24 = vsub.f32 %v13755_v25, %v3964_v39  ;;  %v10333_v22 = vsub.f32 %v13759_v52, %v3966_v29  ;;  %v13763_v21 = vcvt.s32.f32 %v13762_v61  ;;  %v13764_v54 = vld [vmem:[#allocation148_spill] sm:$0xff]  ;;  %v13765_v39 = vld [vmem:[#allocation109_spill] sm:$0xff]  ;;  %v13767_v25 = vld [vmem:[#allocation110_spill] sm:$0xff] }
 0x510   : > { %v10329_v4 = vsub.f32 %v13757_v28, %v3965_v30  ;;  %v10337_v58 = vsub.f32 %v13761_v19, %v3967_v44  ;;  %vm4062_vm6 = vcmp.ge.f32.partialorder %v13764_v54, 1.0  ;;  %vm4116_vm7 = vcmp.le.f32.partialorder %v13764_v54, 16.0  ;;  %v13769_v28 = vld [vmem:[#allocation149_spill] sm:$0xff]  ;;  %v13770_v44 = vld [vmem:[#allocation111_spill] sm:$0xff]  ;;  %v13772_v52 = vld [vmem:[#allocation112_spill] sm:$0xff] }
 0x511   : > { %v10341_v46 = vsub.f32 %v13763_v21, %v3968_v27  ;;  %v13766_v15 = vcvt.s32.f32 %v13765_v39  ;;  %v13768_v14 = vcvt.s32.f32 %v13767_v25  ;;  %vm4063_vm8 = vcmp.ge.f32.partialorder %v13769_v28, 1.0  ;;  %v13774_v61 = vld [vmem:[#allocation150_spill] sm:$0xff]  ;;  %v13779_v25 = vld [vmem:[#allocation151_spill] sm:$0xff]  ;;  %vm10375_vm14 = vmand %vm4062_vm6, %vm4116_vm7 }
 0x512   : > { %vm4117_vm9 = vcmp.le.f32.partialorder %v13769_v28, 16.0  ;;  %v13771_v12 = vcvt.s32.f32 %v13770_v44  ;;  %v13773_v20 = vcvt.s32.f32 %v13772_v52  ;;  %vm4064_vm10 = vcmp.ge.f32.partialorder %v13774_v61, 1.0  ;;  %v13777_v54 = vld [vmem:[#allocation114_spill] sm:$0xff] }
 0x513   : > { %v10347_v30 = vsub.f32 %v13766_v15, %v3969_v18  ;;  %v10351_v29 = vsub.f32 %v13768_v14, %v3970_v50  ;;  %vm4118_vm11 = vcmp.le.f32.partialorder %v13774_v61, 16.0  ;;  %v13775_v18 = vld [vmem:[#allocation113_spill] sm:$0xff]  ;;  %v13778_v39 = vcvt.s32.f32 %v13777_v54  ;;  %vm10393_vm1 = vmand %vm4063_vm8, %vm4117_vm9  ;;  %v13791_v54 = vld [vmem:[#allocation118_spill] sm:$0xff] }
 0x514   : > { %v10357_v27 = vsub.f32 %v13771_v12, %v3971_v62  ;;  %v10361_v19 = vsub.f32 %v13773_v20, %v3972_v35  ;;  %v13776_v21 = vcvt.s32.f32 %v13775_v18  ;;  %vm4065_vm12 = vcmp.ge.f32.partialorder %v13779_v25, 1.0  ;;  %v13782_v35 = vld [vmem:[#allocation115_spill] sm:$0xff]  ;;  %v13789_v18 = vld [vmem:[#allocation117_spill] sm:$0xff]  ;;  %vm10413_vm5 = vmand %vm4064_vm10, %vm4118_vm11 }
 0x515   : > { %v10371_v15 = vsub.f32 %v13778_v39, %v3974_v3  ;;  %vm4119_vm13 = vcmp.le.f32.partialorder %v13779_v25, 16.0  ;;  %v13783_v14 = vcvt.s32.f32 %v13782_v35  ;;  %v13786_v3 = vld [vmem:[#allocation152_spill] sm:$0xff]  ;;  %v13792_v39 = vcvt.s32.f32 %v13791_v54  ;;  %v13793_v35 = vld [vmem:[#allocation153_spill] sm:$0xff]  ;;  %v13913_v25 = vld [vmem:[#allocation162_spill] sm:$0xff] }
 0x516   : > { %v10367_v50 = vsub.f32 %v13776_v21, %v3973_v60  ;;  %v13784_v60 = vld [vmem:[#allocation116_spill] sm:$0xff]  ;;  %vm4066_vm15 = vcmp.ge.f32.partialorder %v13786_v3, 1.0  ;;  %vm4120_vm0 = vcmp.le.f32.partialorder %v13786_v3, 16.0  ;;  %v13790_v21 = vcvt.s32.f32 %v13789_v18  ;;  %vm10433_vm8 = vmand %vm4065_vm12, %vm4119_vm13  ;;  %v13955_v20 = vld [vmem:[#allocation15_spill] sm:$0xff] }
 0x517   : > { %v10382_v44 = vsub.f32 %v13783_v14, %v10185_v55  ;;  %v13785_v12 = vcvt.s32.f32 %v13784_v60  ;;  %vm4067_vm3 = vcmp.ge.f32.partialorder %v13793_v35, 1.0  ;;  %vm4121_vm4 = vcmp.le.f32.partialorder %v13793_v35, 16.0  ;;  %vm10453_vm11 = vmand %vm4066_vm15, %vm4120_vm0  ;;  %v13926_v35 = vld [vmem:[#allocation17_spill] sm:$0xff] }
 0x518   : > { %v10400_v55 = vsub.f32 %v13790_v21, %v10191_v49  ;;  %v13796_v49 = vld [vmem:[#allocation119_spill] sm:$0xff]  ;;  %v13800_v21 = vld [vmem:[#allocation154_spill] sm:$0xff]  ;;  %vm10473_vm15 = vmand %vm4067_vm3, %vm4121_vm4  ;;  %v13872_v62 = vmov 0  ;;  %v13894_v28 = vmov 0  ;;  %v13906_v61 = vmov 0 }
 0x519   : > { %v10387_v52 = vsub.f32 %v13785_v12, %v10188_v7  ;;  %v10405_v7 = vsub.f32 %v13792_v39, %v10194_v6  ;;  %v13797_v14 = vcvt.s32.f32 %v13796_v49  ;;  %v13798_v6 = vld [vmem:[#allocation120_spill] sm:$0xff]  ;;  %vm4068_vm6 = vcmp.ge.f32.partialorder %v13800_v21, 1.0  ;;  %v13979_v3 = vld [vmem:[#allocation21_spill] sm:$0xff] }
 0x51a   : > { %v13799_v12 = vcvt.s32.f32 %v13798_v6  ;;  %vm4122_vm7 = vcmp.le.f32.partialorder %v13800_v21, 16.0  ;;  %v13807_v6 = vld [vmem:[#allocation155_spill] sm:$0xff]  ;;  %v13932_v21 = vmov 0 }
 0x51b   : > { %v10420_v60 = vsub.f32 %v13797_v14, %v10197_v48  ;;  %v13803_v48 = vld [vmem:[#allocation121_spill] sm:$0xff]  ;;  %vm4069_vm9 = vcmp.ge.f32.partialorder %v13807_v6, 1.0  ;;  %vm4123_vm10 = vcmp.le.f32.partialorder %v13807_v6, 16.0  ;;  %vm10493_vm3 = vmand %vm4068_vm6, %vm4122_vm7  ;;  %vm4224_vm6 = vcmp.ge.f32.partialorder %v10285_v51, 1.0 }
 0x51c   : > { %v10425_v18 = vsub.f32 %v13799_v12, %v10200_v0  ;;  %v13804_v54 = vcvt.s32.f32 %v13803_v48  ;;  %v13805_v0 = vld [vmem:[#allocation122_spill] sm:$0xff]  ;;  %vm10516_vm4 = vmand %vm4069_vm9, %vm4123_vm10  ;;  %vm4225_vm9 = vcmp.ge.f32.partialorder %v10289_v41, 1.0 }
 0x51d   : > { %v13806_v49 = vcvt.s32.f32 %v13805_v0 }
 0x51e   : > { %v10440_v39 = vsub.f32 %v13804_v54, %v10203_v53  ;;  %v13810_v53 = vld [vmem:[#allocation123_spill] sm:$0xff] }
 0x51f   : > { %v10445_v14 = vsub.f32 %v13806_v49, %v10206_v10  ;;  %v13811_v12 = vcvt.s32.f32 %v13810_v53  ;;  %v13813_v10 = vld [vmem:[#allocation124_spill] sm:$0xff] }
 0x520   : > { %v13814_v54 = vcvt.s32.f32 %v13813_v10  ;;  %v13816_v49 = vld [vmem:[#allocation156_spill] sm:$0xff] }
 0x521   : > { %v10460_v48 = vsub.f32 %v13811_v12, %v10209_v63  ;;  %vm4070_vm12 = vcmp.ge.f32.partialorder %v13816_v49, 1.0  ;;  %vm4124_vm13 = vcmp.le.f32.partialorder %v13816_v49, 16.0  ;;  %v13819_v63 = vld [vmem:[#allocation125_spill] sm:$0xff] }
 0x522   : > { %v10465_v0 = vsub.f32 %v13814_v54, %v10212_v57  ;;  %v13820_v53 = vcvt.s32.f32 %v13819_v63  ;;  %v13822_v57 = vld [vmem:[#allocation126_spill] sm:$0xff]  ;;  %vm10540_vm7 = vmand %vm4070_vm12, %vm4124_vm13  ;;  %vm4226_vm12 = vcmp.ge.f32.partialorder %v10293_v33, 1.0 }
 0x523   : > { %13812 = vst [vmem:[#allocation95_spill] sm:$0xff] %v10460_v48  ;;  %v13823_v10 = vcvt.s32.f32 %v13822_v57  ;;  %vm10589_vm13 = vmand %vm10375_vm14, %vm4224_vm6  ;;  %vm13919_vm14 = vcmp.ge.f32.partialorder %v10309_v13, 1.0 }
 0x524   : > { %13815 = vst [vmem:[#allocation96_spill] sm:$0xff] %v10465_v0  ;;  %v10480_v12 = vsub.f32 %v13820_v53, %v10215_v43  ;;  %v13825_v0 = vld [vmem:[#allocation157_spill] sm:$0xff]  ;;  %v13828_v43 = vld [vmem:[#allocation127_spill] sm:$0xff]  ;;  %vm10637_vm6 = vmand %vm10413_vm5, %vm4226_vm12  ;;  %vm13910_vm5 = vcmp.ge.f32.partialorder %v10305_v32, 1.0 }
 0x525   : > { %v10485_v54 = vsub.f32 %v13823_v10, %v10218_v36  ;;  %vm4071_vm0 = vcmp.ge.f32.partialorder %v13825_v0, 1.0  ;;  %vm4125_vm2 = vcmp.le.f32.partialorder %v13825_v0, 16.0  ;;  %v13829_v63 = vcvt.s32.f32 %v13828_v43  ;;  %v13830_v36 = vld [vmem:[#allocation128_spill] sm:$0xff]  ;;  %vm10685_vm12 = vmand %vm10473_vm15, %vm13910_vm5 }
 0x526   : > { %13821 = vst [vmem:[#allocation97_spill] sm:$0xff] %v10480_v12  ;;  %v13831_v57 = vcvt.s32.f32 %v13830_v36  ;;  %vm10564_vm10 = vmand %vm4071_vm0, %vm4125_vm2  ;;  %vm13905_vm2 = vcmp.ge.f32.partialorder %v10301_v26, 1.0 }
 0x527   : > { %13824 = vst [vmem:[#allocation98_spill] sm:$0xff] %v10485_v54  ;;  %v10500_v53 = vsub.f32 %v13829_v63, %v10221_v34  ;;  %v13832_v54 = vld [vmem:[#allocation129_spill] sm:$0xff]  ;;  %v13836_v34 = vld [vmem:[#allocation130_spill] sm:$0xff]  ;;  %v13838_v63 = vld [vmem:[#allocation131_spill] sm:$0xff] }
 0x528   : > { %v10505_v10 = vsub.f32 %v13831_v57, %v10224_v38  ;;  %v13833_v12 = vcvt.s32.f32 %v13832_v54  ;;  %v13837_v43 = vcvt.s32.f32 %v13836_v34  ;;  %v13839_v54 = vcvt.s32.f32 %v13838_v63  ;;  %vm10613_vm0 = vmand %vm10393_vm1, %vm4225_vm9 }
 0x529   : > { %v13873_v62 = vsel %vm10613_vm0, 4294967295, %v13872_v62  ;;  %vm13893_vm1 = vcmp.ge.f32.partialorder %v10297_v59, 1.0  ;;  %vm10704_vm15 = vmand %vm10493_vm3, %vm13919_vm14  ;;  %v13936_v57 = vmov 0  ;;  %vm13947_vm14 = vcmp.le.f32.partialorder %v10293_v33, 16.0 }
 0x52a   : > { %v10510_v48 = vsub.f32 %v13833_v12, %v10227_v8  ;;  %v10524_v38 = vsub.f32 %v13837_v43, %v10230_v31  ;;  %v10529_v8 = vsub.f32 %v13839_v54, %v10233_v1  ;;  %v13840_v12 = vld [vmem:[#allocation132_spill] sm:$0xff]  ;;  %v13844_v31 = vld [vmem:[#allocation133_spill] sm:$0xff]  ;;  %v13846_v43 = vld [vmem:[#allocation134_spill] sm:$0xff] }
 0x52b   : > { %v13841_v36 = vcvt.s32.f32 %v13840_v12  ;;  %v13845_v34 = vcvt.s32.f32 %v13844_v31  ;;  %v13847_v63 = vcvt.s32.f32 %v13846_v43  ;;  %v13848_v54 = vld [vmem:[#allocation135_spill] sm:$0xff]  ;;  %vm10653_vm0 = vmand %vm10433_vm8, %vm13893_vm1 }
 0x52c   : > { %v13849_v12 = vcvt.s32.f32 %v13848_v54  ;;  %v13895_v28 = vsel %vm10653_vm0, 4294967295, %v13894_v28  ;;  %vm10673_vm8 = vmand %vm10453_vm11, %vm13905_vm2 }
 0x52d   : > { %v10534_v6 = vsub.f32 %v13841_v36, %v10236_v47  ;;  %v10548_v1 = vsub.f32 %v13845_v34, %v10239_v16  ;;  %v10553_v47 = vsub.f32 %v13847_v63, %v10242_v45  ;;  %v13852_v16 = vld [vmem:[#allocation136_spill] sm:$0xff]  ;;  %v13855_v34 = vld [vmem:[#allocation137_spill] sm:$0xff]  ;;  %v13858_v63 = vld [vmem:[#allocation138_spill] sm:$0xff]  ;;  %v13907_v61 = vsel %vm10673_vm8, 4294967295, %v13906_v61 }
 0x52e   : > { %v10558_v49 = vsub.f32 %v13849_v12, %v10245_v11  ;;  %v13853_v31 = vcvt.s32.f32 %v13852_v16  ;;  %v13856_v43 = vcvt.s32.f32 %v13855_v34  ;;  %v13859_v54 = vcvt.s32.f32 %v13858_v63 }
 0x530   : > { %v10572_v45 = vsub.f32 %v13853_v31, %v10248_v37  ;;  %v10577_v11 = vsub.f32 %v13856_v43, %v10251_v42  ;;  %v10582_v0 = vsub.f32 %v13859_v54, %v10254_v23  ;;  %v13863_v37 = vld [vmem:[#allocation139_spill] sm:$0xff]  ;;  %v13866_v31 = vld [vmem:[#allocation140_spill] sm:$0xff]  ;;  %v13869_v43 = vld [vmem:[#allocation141_spill] sm:$0xff] }
 0x531   : > { %v13864_v16 = vcvt.s32.f32 %v13863_v37  ;;  %v13867_v34 = vcvt.s32.f32 %v13866_v31  ;;  %v13870_v63 = vcvt.s32.f32 %v13869_v43  ;;  %v13875_v37 = vld [vmem:[#allocation142_spill] sm:$0xff]  ;;  %v13878_v31 = vld [vmem:[#allocation203_spill] sm:$0xff] }
 0x532   : > { %13854 = vst [vmem:[#allocation99_spill] sm:$0xff] %v10572_v45  ;;  %13857 = vst [vmem:[#allocation100_spill] sm:$0xff] %v10577_v11  ;;  %v13970_v11 = vld [vmem:[#allocation168_spill] sm:$0xff] }
 0x533   : > { %13860 = vst [vmem:[#allocation101_spill] sm:$0xff] %v10582_v0  ;;  %v10596_v42 = vsub.f32 %v13864_v16, %v10257_v5  ;;  %v10601_v23 = vsub.f32 %v13867_v34, %v10260_v9  ;;  %v10606_v54 = vsub.f32 %v13870_v63, %v10263_v17  ;;  %v13874_v5 = vld [vmem:[#allocation202_spill] sm:$0xff]  ;;  %v13876_v16 = vcvt.s32.f32 %v13875_v37  ;;  %v13879_v34 = vld [vmem:[#allocation143_spill] sm:$0xff]  ;;  %v13882_v63 = vld [vmem:[#allocation204_spill] sm:$0xff] }
 0x534   : > { %v13880_v43 = vcvt.s32.f32 %v13879_v34  ;;  %v13889_v37 = vld [vmem:[#allocation145_spill] sm:$0xff]  ;;  %v13892_v34 = vld [vmem:[#allocation158_spill] sm:$0xff] }
 0x535   : > { %13865 = vst [vmem:[#allocation102_spill] sm:$0xff] %v10596_v42  ;;  %13868 = vst [vmem:[#allocation103_spill] sm:$0xff] %v10601_v23  ;;  %v10620_v9 = vsub.f32 %v13876_v16, %v13874_v5  ;;  %v13888_v5 = vld [vmem:[#allocation205_spill] sm:$0xff]  ;;  %v13890_v16 = vcvt.s32.f32 %v13889_v37  ;;  %v13901_v37 = vld [vmem:[#allocation147_spill] sm:$0xff]  ;;  %vm13915_vm1 = vcmp.le.f32.partialorder %v13892_v34, 16.0  ;;  %vm13916_vm9 = vcmp.ge.f32.partialorder %v13892_v34, 1.0 }
 0x536   : > { %13871 = vst [vmem:[#allocation104_spill] sm:$0xff] %v10606_v54  ;;  %v10625_v17 = vsub.f32 %v13880_v43, %v13878_v31  ;;  %v13883_v54 = vld [vmem:[#allocation144_spill] sm:$0xff]  ;;  %vm10695_vm8 = vmand %vm13916_vm9, %vm13915_vm1  ;;  %vm13923_vm9 = vcmp.ge.f32.partialorder %v10313_v40, 1.0  ;;  %v13987_v34 = vmov 0.0  }
 0x537   : > { %13877 = vst [vmem:[#allocation105_spill] sm:$0xff] %v10620_v9  ;;  %v13884_v23 = vcvt.s32.f32 %v13883_v54  ;;  %v10644_v31 = vsub.f32 %v13890_v16, %v13888_v5  ;;  %v13897_v54 = vld [vmem:[#allocation146_spill] sm:$0xff]  ;;  %v13900_v5 = vld [vmem:[#allocation207_spill] sm:$0xff]  ;;  %v13902_v16 = vcvt.s32.f32 %v13901_v37  ;;  %vm10715_vm1 = vmand %vm10516_vm4, %vm13923_vm9  ;;  %vm13931_vm4 = vcmp.ge.f32.partialorder %v10317_v2, 1.0 }
 0x538   : > { %13881 = vst [vmem:[#allocation106_spill] sm:$0xff] %v10625_v17  ;;  %v13898_v43 = vcvt.s32.f32 %v13897_v54  ;;  %v13908_v54 = vld [vmem:[#allocation160_spill] sm:$0xff]  ;;  %vm10735_vm9 = vmand %vm10540_vm7, %vm13931_vm4  ;;  %v13934_v17 = vld [vmem:[#allocation165_spill] sm:$0xff]  ;;  %vm13938_vm4 = vcmp.le.f32.partialorder %v10285_v51, 16.0  ;;  %vm13945_vm7 = vnez %v13873_v62  ;;  %v13081_v51 = vmov 0.0  }
 0x539   : > { %v10630_v42 = vsub.f32 %v13884_v23, %v13882_v63  ;;  %13891 = vst [vmem:[#allocation108_spill] sm:$0xff] %v10644_v31  ;;  %v13896_v23 = vld [vmem:[#allocation206_spill] sm:$0xff]  ;;  %v10665_v31 = vsub.f32 %v13902_v16, %v13900_v5  ;;  %v13914_v5 = vld [vmem:[#allocation163_spill] sm:$0xff]  ;;  %v13922_v16 = vld [vmem:[#allocation164_spill] sm:$0xff]  ;;  %v13933_v21 = vsel %vm10735_vm9, 4294967295, %v13932_v21  ;;  %vm13941_vm0 = vcmp.ge.f32.partialorder %v13908_v54, 1.0 }
 0x53a   : > { %v10660_v63 = vsub.f32 %v13898_v43, %v13896_v23  ;;  %v13909_v23 = vld [vmem:[#allocation161_spill] sm:$0xff]  ;;  %vm4386_vm3 = vmand %vm10589_vm13, %vm13938_vm4  ;;  %v13946_v9 = vld [vmem:[#allocation166_spill] sm:$0xff]  ;;  %v13948_v62 = vunpack.c.l.bf16 %v13926_v35  ;;  %vm13953_vm4 = vcmp.le.f32.partialorder %v10297_v59, 16.0  ;;  %vm13959_vm13 = vnez %v13907_v61 }
 0x53b   : > { %13885 = vst [vmem:[#allocation107_spill] sm:$0xff] %v10630_v42  ;;  %13903 = vst [vmem:[#allocation109_spill] sm:$0xff] %v10665_v31  ;;  %v13904_v42 = vld [vmem:[#allocation159_spill] sm:$0xff]  ;;  %v5388_v12 = vsel %vm4386_vm3, 1.0, %v13081_v51  ;;  %vm13949_vm3 = vcmp.le.f32.partialorder %v13909_v23, 16.0  ;;  %v14064_v31 = vld [vmem:[#allocation25_spill] sm:$0xff] }
 0x53c   : > { %13899 = vst [vmem:[#allocation148_spill] sm:$0xff] %v10660_v63  ;;  %vm13927_vm2 = vcmp.le.f32.partialorder %v13904_v42, 16.0  ;;  %vm13928_vm11 = vcmp.ge.f32.partialorder %v13904_v42, 1.0  ;;  %v13929_v63 = vmov 0  ;;  %v13939_v42 = vld [vmem:[#allocation73_spill] sm:$0xff] }
 0x53d   : > { %vm10727_vm5 = vmand %vm13928_vm11, %vm13927_vm2  ;;  %vm13935_vm2 = vcmp.ge.f32.partialorder %v10321_v56, 1.0  ;;  %vm13940_vm11 = vcmp.le.f32.partialorder %v13908_v54, 16.0  ;;  %v10785_v54 = vmul.f32 %v5388_v12, %v13948_v62  ;;  %v13956_v62 = vunpack.c.h.bf16 %v13926_v35 }
 0x53e   : > { %v13930_v63 = vsel %vm10727_vm5, 4294967295, %v13929_v63  ;;  %vm10748_vm5 = vmand %vm10564_vm10, %vm13935_vm2  ;;  %vm13944_vm2 = vcmp.le.f32.partialorder %v10289_v41, 16.0 }
 0x53f   : > { %v13937_v57 = vsel %vm10748_vm5, 4294967295, %v13936_v57  ;;  %vm10763_vm9 = vmand %vm13941_vm0, %vm13940_vm11  ;;  %vm13958_vm0 = vcmp.le.f32.partialorder %v10301_v26, 16.0 }
 0x540   : > { %vm4387_vm5 = vmand %vm13945_vm7, %vm13944_vm2  ;;  %vm13950_vm7 = vcmp.ge.f32.partialorder %v13909_v23, 1.0  ;;  %v13957_v23 = vld [vmem:[#allocation167_spill] sm:$0xff] }
 0x541   : > { %vm4388_vm10 = vmand %vm10637_vm6, %vm13947_vm14  ;;  %v5389_v41 = vsel %vm4387_vm5, 1.0, %v13081_v51  ;;  %vm13954_vm6 = vnez %v13895_v28  ;;  %v13960_v28 = vunpack.c.l.bf16 %v13939_v42 }
 0x542   : > { %vm10791_vm2 = vmand %vm13950_vm7, %vm13949_vm3  ;;  %v5390_v33 = vsel %vm4388_vm10, 1.0, %v13081_v51  ;;  %v10804_v0 = vmul.f32 %v5389_v41, %v13956_v62  ;;  %vm4339_vm7 = vcmp.le.f32.partialorder %v10313_v40, 16.0  ;;  %vm13961_vm10 = vcmask 31744  }
 0x543   : > { %vm4389_vm14 = vmand %vm13954_vm6, %vm13953_vm4  ;;  %v10816_v12 = vmul.f32 %v5390_v33, %v13960_v28  ;;  %v4657_v41 = vsel %vm13961_vm10, %v10785_v54, 0.0  ;;  %vm13962_vm4 = vcmp.le.f32.partialorder %v13913_v25, 16.0  ;;  %vm13963_vm6 = vcmp.ge.f32.partialorder %v13913_v25, 1.0 }
 0x544   : > { %vm4390_vm11 = vmand %vm13959_vm13, %vm13958_vm0  ;;  %v5391_v59 = vsel %vm4389_vm14, 1.0, %v13081_v51  ;;  %vm13966_vm3 = vcmp.le.f32.partialorder %v10305_v32, 16.0  ;;  %v13967_v33 = vunpack.c.h.bf16 %v13939_v42  ;;  %vm4235_vm14 = vcmp.ge.f32.partialorder %v10329_v4, 1.0 }
 0x545   : > { %vm10824_vm5 = vmand %vm13963_vm6, %vm13962_vm4  ;;  %v5392_v26 = vsel %vm4390_vm11, 1.0, %v13081_v51  ;;  %vm13971_vm4 = vcmp.le.f32.partialorder %v10309_v13, 16.0  ;;  %vm13974_vm6 = vcmp.ge.f32.partialorder %v13914_v5, 1.0  ;;  %v14008_v13 = vld [vmem:[#allocation76_spill] sm:$0xff] }
 0x546   : > { %vm4391_vm13 = vmand %vm10685_vm12, %vm13966_vm3  ;;  %v10836_v28 = vmul.f32 %v5391_v59, %v13967_v33  ;;  %vm13973_vm3 = vcmp.le.f32.partialorder %v13914_v5, 16.0  ;;  %v13980_v33 = vunpack.c.l.bf16 %v13955_v20  ;;  %v14092_v59 = vld [vmem:[#allocation79_spill] sm:$0xff] }
 0x547   : > { %vm13969_vm0 = vmmov %vm13961_vm10  ;;  %vm4340_vm10 = vcmp.le.f32.partialorder %v10317_v2, 16.0  ;;  %v5393_v32 = vsel %vm4391_vm13, 1.0, %v13081_v51  ;;  %v13983_v51 = vld [vmem:[#allocation169_spill] sm:$0xff] }
 0x548   : > { %13968 = vst [vmem:[#allocation110_spill] sm:$0xff] %v10836_v28  ;;  %v4658_v25 = vsel %vm13969_vm0, %v10804_v0, 0.0  ;;  %vm4392_vm12 = vmand %vm10704_vm15, %vm13971_vm4 }
 0x549   : > { %v4659_v43 = vadd.f32 %v4658_v25, %v4657_v41  ;;  %vm13972_vm11 = vmmov %vm13969_vm0  ;;  %v10869_v25 = vmul.f32 %v5392_v26, %v13980_v33  ;;  %v5394_v26 = vsel %vm4392_vm12, 1.0, %v13987_v34 }
 0x54a   : > { %v4660_v61 = vsel %vm13972_vm11, %v10816_v12, 0.0  ;;  %vm10853_vm0 = vmand %vm13974_vm6, %vm13973_vm3  ;;  %vm13984_vm3 = vcmp.ge.f32.partialorder %v10325_v24, 1.0  ;;  %vm13988_vm6 = vcmp.le.f32.partialorder %v13922_v16, 16.0 }
 0x54b   : > { %vm10862_vm15 = vmand %vm10715_vm1, %vm4339_vm7  ;;  %13981 = vst [vmem:[#allocation149_spill] sm:$0xff] %v10869_v25  ;;  %vm4341_vm7 = vcmp.le.f32.partialorder %v10321_v56, 16.0  ;;  %v4661_v33 = vadd.f32 %v4660_v61, %v4659_v43  ;;  %v13995_v43 = vunpack.c.h.bf16 %v13955_v20 }
 0x54c   : > { %vm13982_vm13 = vmmov %vm13972_vm11 }
 0x54d   : > { %v4662_v5 = vsel %vm13982_vm13, %v10836_v28, 0.0  ;;  %vm10879_vm1 = vmand %vm10695_vm8, %vm13984_vm3  ;;  %vm13989_vm13 = vcmp.ge.f32.partialorder %v13922_v16, 1.0  ;;  %vm13992_vm8 = vnez %v13933_v21  ;;  %v10905_v45 = vmul.f32 %v5393_v32, %v13995_v43  ;;  %v13997_v28 = vld [vmem:[#allocation170_spill] sm:$0xff]  ;;  %v14120_v43 = vld [vmem:[#allocation19_spill] sm:$0xff] }
 0x54e   : > { %vm10889_vm4 = vmand %vm13989_vm13, %vm13988_vm6  ;;  %v5395_v21 = vsel %vm10862_vm15, 1.0, %v13987_v34  ;;  %v4663_v32 = vadd.f32 %v4662_v5, %v4661_v33  ;;  %vm14002_vm6 = vcmp.ge.f32.partialorder %v13934_v17, 1.0  ;;  %v14009_v33 = vunpack.c.l.bf16 %v13979_v3  ;;  %v14025_v5 = vld [vmem:[#allocation172_spill] sm:$0xff] }
 0x54f   : > { %vm10898_vm3 = vmand %vm13992_vm8, %vm4340_vm10  ;;  %vm13998_vm10 = vnez %v13930_v63  ;;  %vm14011_vm15 = vcmask 31744   ;;  %v14036_v63 = vld [vmem:[#allocation16_spill] sm:$0xff] }
 0x550   : > { %vm13996_vm12 = vmmov %vm13972_vm11  ;;  %v10943_v61 = vmul.f32 %v5394_v26, %v14009_v33 }
 0x551   : > { %v4664_v16 = vsel %vm13996_vm12, %v10869_v25, 0.0  ;;  %vm10915_vm8 = vmand %vm13998_vm10, %vm4235_vm14  ;;  %vm14001_vm12 = vcmp.le.f32.partialorder %v13934_v17, 16.0  ;;  %vm14005_vm10 = vnez %v13937_v57  ;;  %v4666_v17 = vsel %vm14011_vm15, %v10905_v45, 0.0  ;;  %v14012_v25 = vld [vmem:[#allocation171_spill] sm:$0xff] }
 0x552   : > { %vm10927_vm13 = vmand %vm14002_vm6, %vm14001_vm12  ;;  %14010 = vst [vmem:[#allocation111_spill] sm:$0xff] %v10943_v61  ;;  %vm14013_vm14 = vcmp.ge.f32.partialorder %v10333_v22, 1.0  ;;  %v5396_v57 = vsel %vm10898_vm3, 1.0, %v13987_v34  ;;  %v4665_v26 = vadd.f32 %v4664_v16, %v4663_v32  ;;  %vm14016_vm15 = vcmp.le.f32.partialorder %v13946_v9, 16.0 }
 0x553   : > { %vm10936_vm11 = vmand %vm14005_vm10, %vm4341_vm7  ;;  %vm14017_vm6 = vcmp.ge.f32.partialorder %v13946_v9, 1.0  ;;  %v14023_v16 = vunpack.c.h.bf16 %v13979_v3  ;;  %vm14024_vm3 = vcmask 31744  }
 0x554   : > { %vm10953_vm7 = vmand %vm10763_vm9, %vm14013_vm14  ;;  %vm14020_vm14 = vcmp.le.f32.partialorder %v10325_v24, 16.0  ;;  %v4668_v9 = vsel %vm14024_vm3, %v10943_v61, 0.0  ;;  %vm14026_vm9 = vcmp.ge.f32.partialorder %v10337_v58, 1.0  ;;  %v5397_v40 = vsel %vm10936_vm11, 1.0, %v13987_v34  ;;  %v14040_v61 = vld [vmem:[#allocation173_spill] sm:$0xff] }
 0x555   : > { %vm10965_vm12 = vmand %vm14017_vm6, %vm14016_vm15  ;;  %v10981_v32 = vmul.f32 %v5395_v21, %v14023_v16  ;;  %v4667_v21 = vadd.f32 %v4666_v17, %v4665_v26  ;;  %vm14029_vm3 = vcmp.le.f32.partialorder %v13957_v23, 16.0  ;;  %vm14030_vm6 = vcmp.ge.f32.partialorder %v13957_v23, 1.0  ;;  %v14053_v17 = vld [vmem:[#allocation174_spill] sm:$0xff]  ;;  %v14148_v16 = vld [vmem:[#allocation29_spill] sm:$0xff] }
 0x556   : > { %vm10974_vm10 = vmand %vm10879_vm1, %vm14020_vm14  ;;  %v14037_v26 = vunpack.c.l.bf16 %v14008_v13  ;;  %vm14039_vm11 = vcmask 31744  }
 0x557   : > { %vm10991_vm1 = vmand %vm10791_vm2, %vm14026_vm9  ;;  %vm14033_vm9 = vcmp.le.f32.partialorder %v10329_v4, 16.0  ;;  %v4670_v23 = vsel %vm14039_vm11, %v10981_v32, 0.0  ;;  %vm14041_vm2 = vcmp.ge.f32.partialorder %v10341_v46, 1.0  ;;  %v5398_v2 = vsel %vm10974_vm10, 1.0, %v13987_v34 }
 0x558   : > { %vm11003_vm15 = vmand %vm14030_vm6, %vm14029_vm3  ;;  %v11019_v37 = vmul.f32 %v5396_v57, %v14037_v26  ;;  %v4669_v57 = vadd.f32 %v4668_v9, %v4667_v21  ;;  %vm14044_vm11 = vcmp.le.f32.partialorder %v13970_v11, 16.0  ;;  %vm14045_vm6 = vcmp.ge.f32.partialorder %v13970_v11, 1.0 }
 0x559   : > { %vm11012_vm14 = vmand %vm10915_vm8, %vm14033_vm9  ;;  %v14051_v9 = vunpack.c.h.bf16 %v14008_v13  ;;  %vm14052_vm10 = vcmask 31744  }
 0x55a   : > { %14038 = vst [vmem:[#allocation112_spill] sm:$0xff] %v11019_v37  ;;  %vm11029_vm8 = vmand %vm10824_vm5, %vm14041_vm2  ;;  %vm14048_vm2 = vcmp.le.f32.partialorder %v10333_v22, 16.0  ;;  %v4672_v11 = vsel %vm14052_vm10, %v11019_v37, 0.0  ;;  %vm14054_vm5 = vcmp.ge.f32.partialorder %v10347_v30, 1.0  ;;  %v5399_v56 = vsel %vm11012_vm14, 1.0, %v13987_v34  ;;  %v14068_v37 = vld [vmem:[#allocation175_spill] sm:$0xff] }
 0x55b   : > { %vm11041_vm3 = vmand %vm14045_vm6, %vm14044_vm11  ;;  %v11057_v21 = vmul.f32 %v5397_v40, %v14051_v9  ;;  %v4671_v40 = vadd.f32 %v4670_v23, %v4669_v57  ;;  %vm14057_vm10 = vcmp.le.f32.partialorder %v13983_v51, 16.0  ;;  %vm14058_vm6 = vcmp.ge.f32.partialorder %v13983_v51, 1.0  ;;  %v14081_v23 = vld [vmem:[#allocation176_spill] sm:$0xff]  ;;  %v14176_v9 = vld [vmem:[#allocation82_spill] sm:$0xff] }
 0x55c   : > { %vm11050_vm9 = vmand %vm10953_vm7, %vm14048_vm2  ;;  %v14065_v57 = vunpack.c.l.bf16 %v14036_v63  ;;  %vm14067_vm14 = vcmask 31744  }
 0x55d   : > { %vm11067_vm7 = vmand %vm10853_vm0, %vm14054_vm5  ;;  %vm14061_vm5 = vcmp.le.f32.partialorder %v10337_v58, 16.0  ;;  %v4674_v51 = vsel %vm14067_vm14, %v11057_v21, 0.0  ;;  %vm14069_vm0 = vcmp.ge.f32.partialorder %v10351_v29, 1.0  ;;  %v5400_v24 = vsel %vm11050_vm9, 1.0, %v13987_v34 }
 0x55e   : > { %vm11079_vm11 = vmand %vm14058_vm6, %vm14057_vm10  ;;  %v11095_v36 = vmul.f32 %v5398_v2, %v14065_v57  ;;  %v4673_v2 = vadd.f32 %v4672_v11, %v4671_v40  ;;  %vm14072_vm14 = vcmp.le.f32.partialorder %v13997_v28, 16.0  ;;  %vm14073_vm6 = vcmp.ge.f32.partialorder %v13997_v28, 1.0  ;;  %v14206_v57 = vld [vmem:[#allocation184_spill] sm:$0xff] }
 0x55f   : > { %vm11088_vm2 = vmand %vm10991_vm1, %vm14061_vm5  ;;  %v14079_v11 = vunpack.c.h.bf16 %v14036_v63  ;;  %vm14080_vm9 = vcmask 31744  }
 0x560   : > { %14066 = vst [vmem:[#allocation150_spill] sm:$0xff] %v11095_v36  ;;  %vm11105_vm1 = vmand %vm10889_vm4, %vm14069_vm0  ;;  %vm14076_vm0 = vcmp.le.f32.partialorder %v10341_v46, 16.0  ;;  %v4676_v28 = vsel %vm14080_vm9, %v11095_v36, 0.0  ;;  %vm14082_vm4 = vcmp.ge.f32.partialorder %v10357_v27, 1.0  ;;  %v5401_v4 = vsel %vm11088_vm2, 1.0, %v13987_v34  ;;  %v14096_v36 = vld [vmem:[#allocation177_spill] sm:$0xff] }
 0x561   : > { %vm11117_vm10 = vmand %vm14073_vm6, %vm14072_vm14  ;;  %v11133_v40 = vmul.f32 %v5399_v56, %v14079_v11  ;;  %v4675_v56 = vadd.f32 %v4674_v51, %v4673_v2  ;;  %vm14085_vm9 = vcmp.le.f32.partialorder %v14012_v25, 16.0  ;;  %vm14086_vm6 = vcmp.ge.f32.partialorder %v14012_v25, 1.0  ;;  %v14109_v51 = vld [vmem:[#allocation178_spill] sm:$0xff]  ;;  %v14203_v11 = vld [vmem:[#allocation20_spill] sm:$0xff] }
 0x562   : > { %vm11126_vm5 = vmand %vm11029_vm8, %vm14076_vm0  ;;  %v14093_v2 = vunpack.c.l.bf16 %v14064_v31  ;;  %vm14095_vm2 = vcmask 31744  }
 0x563   : > { %vm11143_vm8 = vmand %vm10927_vm13, %vm14082_vm4  ;;  %vm14089_vm4 = vcmp.le.f32.partialorder %v10347_v30, 16.0  ;;  %v4678_v25 = vsel %vm14095_vm2, %v11133_v40, 0.0  ;;  %vm14097_vm13 = vcmp.ge.f32.partialorder %v10361_v19, 1.0  ;;  %v5402_v22 = vsel %vm11126_vm5, 1.0, %v13987_v34 }
 0x564   : > { %vm11155_vm14 = vmand %vm14086_vm6, %vm14085_vm9  ;;  %v11171_v62 = vmul.f32 %v5400_v24, %v14093_v2  ;;  %v4677_v24 = vadd.f32 %v4676_v28, %v4675_v56  ;;  %vm14100_vm2 = vcmp.le.f32.partialorder %v14025_v5, 16.0  ;;  %vm14101_vm6 = vcmp.ge.f32.partialorder %v14025_v5, 1.0  ;;  %v14263_v2 = vld [vmem:[#allocation85_spill] sm:$0xff] }
 0x565   : > { %vm11164_vm0 = vmand %vm11067_vm7, %vm14089_vm4  ;;  %v14107_v28 = vunpack.c.h.bf16 %v14064_v31  ;;  %vm14108_vm5 = vcmask 31744  }
 0x566   : > { %14094 = vst [vmem:[#allocation113_spill] sm:$0xff] %v11171_v62  ;;  %vm11181_vm7 = vmand %vm10965_vm12, %vm14097_vm13  ;;  %vm14104_vm13 = vcmp.le.f32.partialorder %v10351_v29, 16.0  ;;  %v4680_v5 = vsel %vm14108_vm5, %v11171_v62, 0.0  ;;  %vm14110_vm12 = vcmp.ge.f32.partialorder %v10367_v50, 1.0  ;;  %v5403_v58 = vsel %vm11164_vm0, 1.0, %v13987_v34  ;;  %v14124_v62 = vld [vmem:[#allocation179_spill] sm:$0xff] }
 0x567   : > { %vm11193_vm9 = vmand %vm14101_vm6, %vm14100_vm2  ;;  %v11209_v56 = vmul.f32 %v5401_v4, %v14107_v28  ;;  %v4679_v4 = vadd.f32 %v4678_v25, %v4677_v24  ;;  %vm14113_vm5 = vcmp.le.f32.partialorder %v14040_v61, 16.0  ;;  %vm14114_vm6 = vcmp.ge.f32.partialorder %v14040_v61, 1.0  ;;  %v14137_v25 = vld [vmem:[#allocation180_spill] sm:$0xff]  ;;  %v14232_v28 = vld [vmem:[#allocation33_spill] sm:$0xff] }
 0x568   : > { %vm11202_vm4 = vmand %vm11105_vm1, %vm14104_vm13  ;;  %v14121_v24 = vunpack.c.l.bf16 %v14092_v59  ;;  %vm14123_vm0 = vcmask 31744  }
 0x569   : > { %vm11219_vm1 = vmand %vm11003_vm15, %vm14110_vm12  ;;  %vm14117_vm12 = vcmp.le.f32.partialorder %v10357_v27, 16.0  ;;  %v4682_v61 = vsel %vm14123_vm0, %v11209_v56, 0.0  ;;  %vm14125_vm15 = vcmp.ge.f32.partialorder %v10371_v15, 1.0  ;;  %v5404_v46 = vsel %vm11202_vm4, 1.0, %v13987_v34 }
 0x56a   : > { %vm11231_vm2 = vmand %vm14114_vm6, %vm14113_vm5  ;;  %v11247_v41 = vmul.f32 %v5402_v22, %v14121_v24  ;;  %v4681_v22 = vadd.f32 %v4680_v5, %v4679_v4  ;;  %vm14128_vm0 = vcmp.le.f32.partialorder %v14053_v17, 16.0  ;;  %vm14129_vm6 = vcmp.ge.f32.partialorder %v14053_v17, 1.0  ;;  %v14287_v24 = vld [vmem:[#allocation23_spill] sm:$0xff] }
 0x56b   : > { %vm11240_vm13 = vmand %vm11143_vm8, %vm14117_vm12  ;;  %v14135_v5 = vunpack.c.h.bf16 %v14092_v59  ;;  %vm14136_vm4 = vcmask 31744  }
 0x56c   : > { %14122 = vst [vmem:[#allocation114_spill] sm:$0xff] %v11247_v41  ;;  %vm11257_vm8 = vmand %vm11041_vm3, %vm14125_vm15  ;;  %vm14132_vm15 = vcmp.le.f32.partialorder %v10361_v19, 16.0  ;;  %v4684_v17 = vsel %vm14136_vm4, %v11247_v41, 0.0  ;;  %vm14138_vm3 = vcmp.ge.f32.partialorder %v10382_v44, 1.0  ;;  %v5405_v30 = vsel %vm11240_vm13, 1.0, %v13987_v34  ;;  %v14152_v41 = vld [vmem:[#allocation181_spill] sm:$0xff] }
 0x56d   : > { %vm11269_vm5 = vmand %vm14129_vm6, %vm14128_vm0  ;;  %v11285_v4 = vmul.f32 %v5403_v58, %v14135_v5  ;;  %v4683_v58 = vadd.f32 %v4682_v61, %v4681_v22  ;;  %vm14141_vm4 = vcmp.le.f32.partialorder %v14068_v37, 16.0  ;;  %vm14142_vm6 = vcmp.ge.f32.partialorder %v14068_v37, 1.0  ;;  %v14165_v61 = vld [vmem:[#allocation182_spill] sm:$0xff]  ;;  %v14228_v5 = vld [vmem:[#allocation95_spill] sm:$0xff] }
 0x56e   : > { %vm11278_vm12 = vmand %vm11181_vm7, %vm14132_vm15  ;;  %v14149_v22 = vunpack.c.l.bf16 %v14120_v43  ;;  %vm14151_vm13 = vcmask 31744  }
 0x56f   : > { %vm11295_vm7 = vmand %vm11079_vm11, %vm14138_vm3  ;;  %vm14145_vm3 = vcmp.le.f32.partialorder %v10367_v50, 16.0  ;;  %v4686_v37 = vsel %vm14151_vm13, %v11285_v4, 0.0  ;;  %vm14153_vm11 = vcmp.ge.f32.partialorder %v10387_v52, 1.0  ;;  %v5406_v29 = vsel %vm11278_vm12, 1.0, %v13987_v34 }
 0x570   : > { %vm11307_vm0 = vmand %vm14142_vm6, %vm14141_vm4  ;;  %v11323_v33 = vmul.f32 %v5404_v46, %v14149_v22  ;;  %v4685_v46 = vadd.f32 %v4684_v17, %v4683_v58  ;;  %vm14156_vm13 = vcmp.le.f32.partialorder %v14081_v23, 16.0  ;;  %vm14157_vm6 = vcmp.ge.f32.partialorder %v14081_v23, 1.0  ;;  %v14244_v22 = vld [vmem:[#allocation96_spill] sm:$0xff] }
 0x571   : > { %vm11316_vm15 = vmand %vm11219_vm1, %vm14145_vm3  ;;  %v14163_v17 = vunpack.c.h.bf16 %v14120_v43  ;;  %vm14164_vm12 = vcmask 31744  }
 0x572   : > { %14150 = vst [vmem:[#allocation151_spill] sm:$0xff] %v11323_v33  ;;  %vm11333_vm1 = vmand %vm11117_vm10, %vm14153_vm11  ;;  %vm14160_vm11 = vcmp.le.f32.partialorder %v10371_v15, 16.0  ;;  %v4688_v23 = vsel %vm14164_vm12, %v11323_v33, 0.0  ;;  %vm14166_vm10 = vcmp.ge.f32.partialorder %v10400_v55, 1.0  ;;  %v5407_v27 = vsel %vm11316_vm15, 1.0, %v13987_v34  ;;  %v14179_v33 = vld [vmem:[#allocation183_spill] sm:$0xff] }
 0x573   : > { %vm11345_vm4 = vmand %vm14157_vm6, %vm14156_vm13  ;;  %v11361_v58 = vmul.f32 %v5405_v30, %v14163_v17  ;;  %v4687_v30 = vadd.f32 %v4686_v37, %v4685_v46  ;;  %vm14169_vm12 = vcmp.le.f32.partialorder %v14096_v36, 16.0  ;;  %vm14170_vm6 = vcmp.ge.f32.partialorder %v14096_v36, 1.0  ;;  %v14259_v17 = vld [vmem:[#allocation97_spill] sm:$0xff] }
 0x574   : > { %vm11354_vm3 = vmand %vm11257_vm8, %vm14160_vm11  ;;  %v13092_v37 = vunpack.c.l.bf16 %v14176_v9  ;;  %v14177_v46 = vunpack.c.l.bf16 %v14148_v16  ;;  %vm14178_vm15 = vcmask 31744  }
 0x575   : > { %vm11371_vm8 = vmand %vm11155_vm14, %vm14166_vm10  ;;  %vm14173_vm10 = vcmp.le.f32.partialorder %v10382_v44, 16.0  ;;  %v4690_v36 = vsel %vm14178_vm15, %v11361_v58, 0.0  ;;  %vm14180_vm14 = vcmp.ge.f32.partialorder %v10405_v7, 1.0  ;;  %v5408_v19 = vsel %vm11354_vm3, 1.0, %v13987_v34 }
 0x576   : > { %vm11383_vm13 = vmand %vm14170_vm6, %vm14169_vm12  ;;  %v11399_v26 = vmul.f32 %v5406_v29, %v14177_v46  ;;  %v4689_v29 = vadd.f32 %v4688_v23, %v4687_v30  ;;  %vm14183_vm15 = vcmp.le.f32.partialorder %v14109_v51, 16.0  ;;  %vm14184_vm6 = vcmp.ge.f32.partialorder %v14109_v51, 1.0  ;;  %v14291_v46 = vld [vmem:[#allocation190_spill] sm:$0xff] }
 0x577   : > { %vm11392_vm11 = vmand %vm11295_vm7, %vm14173_vm10  ;;  %v14190_v23 = vunpack.c.h.bf16 %v14148_v16  ;;  %vm14192_vm3 = vcmask 31744  }
 0x578   : > { %vm11409_vm7 = vmand %vm11193_vm9, %vm14180_vm14  ;;  %vm14187_vm14 = vcmp.le.f32.partialorder %v10387_v52, 16.0  ;;  %v4692_v51 = vsel %vm14192_vm3, %v11399_v26, 0.0  ;;  %v5409_v50 = vsel %vm11392_vm11, 1.0, %v13987_v34  ;;  %vm14197_vm3 = vcmp.ge.f32.partialorder %v14124_v62, 1.0 }
 0x579   : > { %vm11421_vm12 = vmand %vm14184_vm6, %vm14183_vm15  ;;  %v11437_v30 = vmul.f32 %v5407_v27, %v14190_v23  ;;  %vm14193_vm15 = vcmp.ge.f32.partialorder %v10420_v60, 1.0  ;;  %v4691_v27 = vadd.f32 %v4690_v36, %v4689_v29  ;;  %v11474_v29 = vmul.f32 %v5408_v19, %v13092_v37  ;;  %v14220_v36 = vld [vmem:[#allocation185_spill] sm:$0xff] }
 0x57a   : > { %vm11430_vm10 = vmand %vm11333_vm1, %vm14187_vm14  ;;  %vm14196_vm14 = vcmp.le.f32.partialorder %v14124_v62, 16.0  ;;  %vm14205_vm11 = vcmask 31744   ;;  %v14315_v23 = vld [vmem:[#allocation37_spill] sm:$0xff] }
 0x57b   : > { %14191 = vst [vmem:[#allocation115_spill] sm:$0xff] %v11437_v30  ;;  %vm11446_vm9 = vmand %vm11231_vm2, %vm14193_vm15  ;;  %vm14200_vm15 = vcmp.le.f32.partialorder %v10400_v55, 16.0  ;;  %v4694_v62 = vsel %vm14205_vm11, %v11437_v30, 0.0  ;;  %vm14207_vm2 = vcmp.ge.f32.partialorder %v10425_v18, 1.0  ;;  %v5410_v15 = vsel %vm11430_vm10, 1.0, %v13987_v34 }
 0x57c   : > { %vm11458_vm6 = vmand %vm14197_vm3, %vm14196_vm14  ;;  %14204 = vst [vmem:[#allocation116_spill] sm:$0xff] %v11474_v29  ;;  %v4693_v19 = vadd.f32 %v4692_v51, %v4691_v27  ;;  %vm14210_vm11 = vcmp.le.f32.partialorder %v14137_v25, 16.0  ;;  %vm14211_vm14 = vcmp.ge.f32.partialorder %v14137_v25, 1.0  ;;  %v14217_v51 = vunpack.c.h.bf16 %v14176_v9  ;;  %v14236_v9 = vld [vmem:[#allocation186_spill] sm:$0xff] }
 0x57d   : > { %vm11467_vm1 = vmand %vm11371_vm8, %vm14200_vm15  ;;  %vm14219_vm10 = vcmask 31744  }
 0x57e   : > { %vm11484_vm8 = vmand %vm11269_vm5, %vm14207_vm2  ;;  %vm14214_vm2 = vcmp.le.f32.partialorder %v10405_v7, 16.0  ;;  %v11512_v27 = vmul.f32 %v5409_v50, %v14217_v51  ;;  %v4696_v25 = vsel %vm14219_vm10, %v11474_v29, 0.0  ;;  %vm14221_vm5 = vcmp.ge.f32.partialorder %v10440_v39, 1.0  ;;  %v14344_v51 = vld [vmem:[#allocation42_spill] sm:$0xff] }
 0x57f   : > { %vm11496_vm3 = vmand %vm14211_vm14, %vm14210_vm11  ;;  %v5411_v44 = vsel %vm11467_vm1, 1.0, %v13987_v34  ;;  %v4695_v50 = vadd.f32 %v4694_v62, %v4693_v19  ;;  %vm14224_vm10 = vcmp.le.f32.partialorder %v14152_v41, 16.0  ;;  %vm14225_vm14 = vcmp.ge.f32.partialorder %v14152_v41, 1.0 }
 0x580   : > { %vm11505_vm15 = vmand %vm11409_vm7, %vm14214_vm2  ;;  %14218 = vst [vmem:[#allocation152_spill] sm:$0xff] %v11512_v27  ;;  %v14233_v19 = vunpack.c.l.bf16 %v14203_v11  ;;  %vm14235_vm1 = vcmask 31744  }
 0x581   : > { %vm11522_vm7 = vmand %vm11307_vm0, %vm14221_vm5  ;;  %vm14229_vm5 = vcmp.le.f32.partialorder %v10420_v60, 16.0  ;;  %v4698_v41 = vsel %vm14235_vm1, %v11512_v27, 0.0  ;;  %vm14237_vm0 = vcmp.ge.f32.partialorder %v10445_v14, 1.0  ;;  %v5412_v52 = vsel %vm11505_vm15, 1.0, %v13987_v34  ;;  %v14251_v27 = vld [vmem:[#allocation187_spill] sm:$0xff] }
 0x582   : > { %vm11534_vm11 = vmand %vm14225_vm14, %vm14224_vm10  ;;  %v11550_v29 = vmul.f32 %v5410_v15, %v14233_v19  ;;  %v4697_v15 = vadd.f32 %v4696_v25, %v4695_v50  ;;  %vm14240_vm1 = vcmp.le.f32.partialorder %v14165_v61, 16.0  ;;  %vm14241_vm14 = vcmp.ge.f32.partialorder %v14165_v61, 1.0  ;;  %v14362_v19 = vld [vmem:[#allocation195_spill] sm:$0xff] }
 0x583   : > { %vm11543_vm2 = vmand %vm11446_vm9, %vm14229_vm5  ;;  %v14248_v25 = vunpack.c.h.bf16 %v14203_v11  ;;  %vm14250_vm15 = vcmask 31744   ;;  %v14266_v11 = vld [vmem:[#allocation188_spill] sm:$0xff] }
 0x584   : > { %14234 = vst [vmem:[#allocation117_spill] sm:$0xff] %v11550_v29  ;;  %vm11560_vm9 = vmand %vm11345_vm4, %vm14237_vm0  ;;  %vm14245_vm0 = vcmp.le.f32.partialorder %v10425_v18, 16.0  ;;  %v4700_v61 = vsel %vm14250_vm15, %v11550_v29, 0.0  ;;  %vm14252_vm4 = vcmp.ge.f32.partialorder %v14228_v5, 1.0  ;;  %v5413_v55 = vsel %vm11543_vm2, 1.0, %v13987_v34 }
 0x585   : > { %vm11572_vm10 = vmand %vm14241_vm14, %vm14240_vm1  ;;  %v11588_v50 = vmul.f32 %v5411_v44, %v14248_v25  ;;  %v4699_v44 = vadd.f32 %v4698_v41, %v4697_v15  ;;  %vm14255_vm15 = vcmp.le.f32.partialorder %v14179_v33, 16.0  ;;  %vm14256_vm14 = vcmp.ge.f32.partialorder %v14179_v33, 1.0 }
 0x586   : > { %vm11581_vm5 = vmand %vm11484_vm8, %vm14245_vm0  ;;  %v14264_v15 = vunpack.c.l.bf16 %v14232_v28  ;;  %vm14265_vm2 = vcmask 31744  }
 0x587   : > { %14249 = vst [vmem:[#allocation118_spill] sm:$0xff] %v11588_v50  ;;  %vm11598_vm8 = vmand %vm11383_vm13, %vm14252_vm4  ;;  %vm14260_vm4 = vcmp.le.f32.partialorder %v10440_v39, 16.0  ;;  %v4702_v33 = vsel %vm14265_vm2, %v11588_v50, 0.0  ;;  %vm14267_vm13 = vcmp.ge.f32.partialorder %v14244_v22, 1.0  ;;  %v5414_v7 = vsel %vm11581_vm5, 1.0, %v13987_v34 }
 0x588   : > { %vm11610_vm1 = vmand %vm14256_vm14, %vm14255_vm15  ;;  %v11626_v29 = vmul.f32 %v5412_v52, %v14264_v15  ;;  %v4701_v52 = vadd.f32 %v4700_v61, %v4699_v44  ;;  %v14270_v15 = vld [vmem:[#allocation98_spill] sm:$0xff]  ;;  %vm14271_vm14 = vcmp.le.f32.partialorder %v10445_v14, 16.0  ;;  %v14274_v50 = vunpack.c.h.bf16 %v14232_v28  ;;  %v14276_v61 = vld [vmem:[#allocation189_spill] sm:$0xff] }
 0x589   : > { %vm11619_vm0 = vmand %vm11522_vm7, %vm14260_vm4  ;;  %vm14281_vm5 = vcmp.ge.f32.partialorder %v14206_v57, 1.0  ;;  %v14304_v44 = vld [vmem:[#allocation191_spill] sm:$0xff] }
 0x58a   : > { %vm11636_vm7 = vmand %vm11421_vm12, %vm14267_vm13  ;;  %v11656_v30 = vmul.f32 %v5413_v55, %v14274_v50  ;;  %v5415_v60 = vsel %vm11619_vm0, 1.0, %v13987_v34  ;;  %v4703_v50 = vadd.f32 %v4702_v33, %v4701_v52  ;;  %v14288_v33 = vunpack.c.l.bf16 %v14263_v2 }
 0x58b   : > { %vm11649_vm15 = vmand %vm11560_vm9, %vm14271_vm14  ;;  %vm14277_vm9 = vcmp.ge.f32.partialorder %v14259_v17, 1.0  ;;  %vm14290_vm0 = vcmask 31744   ;;  %v14371_v55 = vmov 0 }
 0x58c   : > { %vm14275_vm12 = vmmov %vm14265_vm2  ;;  %v11695_v52 = vmul.f32 %v5414_v7, %v14288_v33  ;;  %v5416_v18 = vsel %vm11649_vm15, 1.0, %v13987_v34  ;;  %vm14303_vm15 = vcmask 31744   ;;  %v14391_v33 = vld [vmem:[#allocation100_spill] sm:$0xff] }
 0x58d   : > { %v4704_v62 = vsel %vm14275_vm12, %v11626_v29, 0.0  ;;  %vm11667_vm14 = vmand %vm11458_vm6, %vm14277_vm9  ;;  %vm14280_vm12 = vcmp.le.f32.partialorder %v14206_v57, 16.0  ;;  %vm14284_vm9 = vcmp.le.f32.partialorder %v14228_v5, 16.0  ;;  %v4706_v57 = vsel %vm14290_vm0, %v11656_v30, 0.0 }
 0x58e   : > { %vm11679_vm13 = vmand %vm14281_vm5, %vm14280_vm12  ;;  %14289 = vst [vmem:[#allocation153_spill] sm:$0xff] %v11695_v52  ;;  %v4705_v7 = vadd.f32 %v4704_v62, %v4703_v50  ;;  %vm14295_vm0 = vcmp.le.f32.partialorder %v14220_v36, 16.0  ;;  %vm14296_vm5 = vcmp.ge.f32.partialorder %v14220_v36, 1.0  ;;  %v14302_v62 = vunpack.c.h.bf16 %v14263_v2 }
 0x58f   : > { %vm11688_vm2 = vmand %vm11598_vm8, %vm14284_vm9  ;;  %vm14292_vm8 = vcmp.ge.f32.partialorder %v14270_v15, 1.0  ;;  %v4708_v36 = vsel %vm14303_vm15, %v11695_v52, 0.0  ;;  %vm14308_vm15 = vcmp.le.f32.partialorder %v14236_v9, 16.0  ;;  %v14319_v52 = vld [vmem:[#allocation192_spill] sm:$0xff] }
 0x590   : > { %vm11706_vm9 = vmand %vm11496_vm3, %vm14292_vm8  ;;  %vm14299_vm8 = vcmp.le.f32.partialorder %v14244_v22, 16.0  ;;  %v11734_v50 = vmul.f32 %v5415_v60, %v14302_v62  ;;  %v5417_v39 = vsel %vm11688_vm2, 1.0, %v13987_v34  ;;  %v4707_v60 = vadd.f32 %v4706_v57, %v4705_v7  ;;  %v14333_v57 = vld [vmem:[#allocation193_spill] sm:$0xff] }
 0x591   : > { %vm11718_vm12 = vmand %vm14296_vm5, %vm14295_vm0  ;;  %vm14309_vm5 = vcmp.ge.f32.partialorder %v14236_v9, 1.0  ;;  %vm14312_vm3 = vcmp.le.f32.partialorder %v14259_v17, 16.0  ;;  %v14316_v9 = vunpack.c.l.bf16 %v14287_v24  ;;  %vm14318_vm2 = vcmask 31744  }
 0x592   : > { %vm11727_vm6 = vmand %vm11636_vm7, %vm14299_vm8  ;;  %vm14305_vm7 = vcmp.ge.f32.partialorder %v10500_v53, 1.0  ;;  %v4710_v41 = vsel %vm14318_vm2, %v11734_v50, 0.0  ;;  %vm14323_vm2 = vcmp.le.f32.partialorder %v14251_v27, 16.0 }
 0x593   : > { %vm11745_vm8 = vmand %vm11534_vm11, %vm14305_vm7  ;;  %v11774_v7 = vmul.f32 %v5416_v18, %v14316_v9  ;;  %vm14320_vm11 = vcmp.ge.f32.partialorder %v10505_v10, 1.0  ;;  %v5418_v14 = vsel %vm11727_vm6, 1.0, %v13987_v34  ;;  %v4709_v18 = vadd.f32 %v4708_v36, %v4707_v60 }
 0x594   : > { %vm11757_vm0 = vmand %vm14309_vm5, %vm14308_vm15  ;;  %vm14324_vm5 = vcmp.ge.f32.partialorder %v14251_v27, 1.0  ;;  %v14330_v27 = vunpack.c.h.bf16 %v14287_v24  ;;  %vm14332_vm6 = vcmask 31744  }
 0x595   : > { %vm11767_vm4 = vmand %vm11667_vm14, %vm14312_vm3  ;;  %14317 = vst [vmem:[#allocation119_spill] sm:$0xff] %v11774_v7  ;;  %vm14327_vm3 = vcmp.le.f32.partialorder %v14270_v15, 16.0  ;;  %v4712_v60 = vsel %vm14332_vm6, %v11774_v7, 0.0  ;;  %vm14337_vm6 = vcmp.le.f32.partialorder %v14266_v11, 16.0  ;;  %v14348_v7 = vunpack.c.l.bf16 %v13926_v35  ;;  %v14381_v15 = vld [vmem:[#allocation196_spill] sm:$0xff] }
 0x596   : > { %vm11784_vm14 = vmand %vm11572_vm10, %vm14320_vm11  ;;  %v11814_v36 = vmul.f32 %v5417_v39, %v14330_v27  ;;  %vm14334_vm10 = vcmp.ge.f32.partialorder %v10510_v48, 1.0  ;;  %v5419_v5 = vsel %vm11767_vm4, 1.0, %v13987_v34  ;;  %v4711_v39 = vadd.f32 %v4710_v41, %v4709_v18  ;;  %v14598_v27 = vld [vmem:[#allocation45_spill] sm:$0xff] }
 0x597   : > { %vm11797_vm15 = vmand %vm14324_vm5, %vm14323_vm2  ;;  %vm14338_vm5 = vcmp.ge.f32.partialorder %v14266_v11, 1.0  ;;  %v14345_v18 = vunpack.c.l.bf16 %v14315_v23  ;;  %vm14347_vm4 = vcmask 31744   ;;  %v4774_v24 = vmul.f32 %v10785_v54, %v14348_v7 }
 0x598   : > { %vm11807_vm7 = vmand %vm11706_vm9, %vm14327_vm3  ;;  %14331 = vst [vmem:[#allocation120_spill] sm:$0xff] %v11814_v36  ;;  %v4714_v11 = vsel %vm14347_vm4, %v11814_v36, 0.0  ;;  %v14353_v41 = vunpack.c.h.bf16 %v13926_v35  ;;  %v14354_v7 = vunpack.c.l.bf16 %v13939_v42  ;;  %vm14355_vm4 = vcmp.le.f32.partialorder %v14276_v61, 16.0 }
 0x599   : > { %vm11824_vm9 = vmand %vm11610_vm1, %vm14334_vm10  ;;  %vm14341_vm10 = vcmp.le.f32.partialorder %v10500_v53, 16.0  ;;  %v11853_v37 = vmul.f32 %v5418_v14, %v14345_v18  ;;  %v14349_v53 = vld [vmem:[#allocation194_spill] sm:$0xff]  ;;  %v5420_v14 = vsel %vm11807_vm7, 1.0, %v13987_v34  ;;  %v4713_v18 = vadd.f32 %v4712_v60, %v4711_v39 }
 0x59a   : > { %vm11837_vm2 = vmand %vm14338_vm5, %vm14337_vm6  ;;  %vm14350_vm6 = vcmp.le.f32.partialorder %v10505_v10, 16.0  ;;  %v4775_v54 = vmul.f32 %v10804_v0, %v14353_v41  ;;  %v4776_v36 = vmul.f32 %v10816_v12, %v14354_v7  ;;  %v14359_v0 = vunpack.c.h.bf16 %v14315_v23 }
 0x59b   : > { %vm11846_vm11 = vmand %vm11745_vm8, %vm14341_vm10  ;;  %14346 = vst [vmem:[#allocation154_spill] sm:$0xff] %v11853_v37  ;;  %vm14361_vm8 = vcmask 31744   ;;  %v4715_v41 = vadd.f32 %v4714_v11, %v4713_v18  ;;  %v14367_v7 = vunpack.c.h.bf16 %v13939_v42  ;;  %vm14374_vm1 = vcmp.le.f32.partialorder %v10510_v48, 16.0  ;;  %v14380_v48 = vld [vmem:[#allocation149_spill] sm:$0xff] }
 0x59c   : > { %vm11866_vm10 = vmand %vm11784_vm14, %vm14350_vm6  ;;  %vm14356_vm14 = vcmp.ge.f32.partialorder %v14276_v61, 1.0  ;;  %v11892_v17 = vmul.f32 %v5419_v5, %v14359_v0  ;;  %v4716_v12 = vsel %vm14361_vm8, %v11853_v37, 0.0  ;;  %v5421_v60 = vsel %vm11846_vm11, 1.0, %v13987_v34  ;;  %v14366_v5 = vld [vmem:[#allocation88_spill] sm:$0xff]  ;;  %v14368_v0 = vld [vmem:[#allocation110_spill] sm:$0xff] }
 0x59d   : > { %vm11883_vm6 = vmand %vm14356_vm14, %vm14355_vm4  ;;  %vm14363_vm14 = vcmp.ge.f32.partialorder %v10524_v38, 1.0  ;;  %v4777_v35 = vmul.f32 %v14368_v0, %v14367_v7  ;;  %vm14369_vm8 = vcmp.le.f32.partialorder %v14291_v46, 16.0  ;;  %v14373_v37 = vld [vmem:[#allocation99_spill] sm:$0xff]  ;;  %v5422_v42 = vsel %vm11866_vm10, 1.0, %v13987_v34 }
 0x59e   : > { %14360 = vst [vmem:[#allocation121_spill] sm:$0xff] %v11892_v17  ;;  %vm11902_vm5 = vmand %vm11679_vm13, %vm14363_vm14  ;;  %vm14370_vm13 = vcmp.ge.f32.partialorder %v14291_v46, 1.0  ;;  %v14377_v46 = vunpack.c.l.bf16 %v14344_v51  ;;  %v14379_v7 = vunpack.c.l.bf16 %v13955_v20  ;;  %v14412_v25 = vunpack.c.l.bf16 %v14366_v5 }
 0x59f   : > { %vm11918_vm14 = vmand %vm14370_vm13, %vm14369_vm8  ;;  %vm14378_vm8 = vcmask 31744   ;;  %vm14382_vm13 = vcmp.ge.f32.partialorder %v10529_v8, 1.0 }
 0x5a0   : > { %v14372_v55 = vsel %vm11918_vm14, 4294967295, %v14371_v55  ;;  %vm11927_vm11 = vmand %vm11824_vm9, %vm14374_vm1  ;;  %v11936_v11 = vmul.f32 %v5420_v14, %v14377_v46  ;;  %v4718_v18 = vsel %vm14378_vm8, %v11892_v17, 0.0  ;;  %v4778_v0 = vmul.f32 %v14380_v48, %v14379_v7  ;;  %v14397_v17 = vld [vmem:[#allocation197_spill] sm:$0xff] }
 0x5a1   : > { %vm11949_vm10 = vmand %vm11718_vm12, %vm14382_vm13  ;;  %v4717_v14 = vadd.f32 %v4716_v12, %v4715_v41  ;;  %v4828_v46 = vsel %vm14378_vm8, %v4774_v24, 0.0  ;;  %vm14387_vm9 = vcmp.le.f32.partialorder %v14304_v44, 16.0  ;;  %vm14388_vm1 = vcmp.ge.f32.partialorder %v14304_v44, 1.0 }
 0x5a2   : > { %vm14385_vm4 = vmmov %vm14378_vm8  ;;  %vm4267_vm12 = vcmp.ge.f32.partialorder %v14391_v33, 1.0  ;;  %vm14392_vm13 = vcmp.le.f32.partialorder %v10524_v38, 16.0  ;;  %v5423_v61 = vsel %vm11927_vm11, 1.0, %v13987_v34 }
 0x5a3   : > { %v4829_v39 = vsel %vm14385_vm4, %v4775_v54, 0.0  ;;  %vm14386_vm3 = vmmov %vm14385_vm4  ;;  %v14395_v54 = vunpack.c.h.bf16 %v14344_v51  ;;  %vm14408_vm4 = vcmp.le.f32.partialorder %v10529_v8, 16.0 }
 0x5a4   : > { %v4831_v7 = vsel %vm14386_vm3, %v4776_v36, 0.0  ;;  %vm11961_vm14 = vmand %vm14388_vm1, %vm14387_vm9  ;;  %v4720_v44 = vsel %vm14386_vm3, %v11936_v11, 0.0  ;;  %v4830_v41 = vadd.f32 %v4829_v39, %v4828_v46  ;;  %vm14398_vm1 = vcmp.ge.f32.partialorder %v10534_v6, 1.0  ;;  %v14407_v36 = vld [vmem:[#allocation101_spill] sm:$0xff] }
 0x5a5   : > { %vm11970_vm7 = vmand %vm11902_vm5, %vm14392_vm13  ;;  %v11977_v12 = vmul.f32 %v5421_v60, %v14395_v54  ;;  %v4719_v60 = vadd.f32 %v4718_v18, %v4717_v14  ;;  %v14401_v39 = vunpack.c.h.bf16 %v13955_v20  ;;  %v12019_v18 = vmul.f32 %v5422_v42, %v14412_v25 }
 0x5a6   : > { %vm11987_vm5 = vmand %vm11757_vm0, %vm14398_vm1  ;;  %vm14404_vm0 = vcmp.ge.f32.partialorder %v14319_v52, 1.0  ;;  %v4832_v14 = vadd.f32 %v4831_v7, %v4830_v41  ;;  %v5424_v42 = vsel %vm11970_vm7, 1.0, %v13987_v34  ;;  %v14418_v7 = vunpack.c.l.bf16 %v13979_v3  ;;  %v14419_v41 = vld [vmem:[#allocation111_spill] sm:$0xff] }
 0x5a7   : > { %14396 = vst [vmem:[#allocation122_spill] sm:$0xff] %v11977_v12  ;;  %v4779_v46 = vmul.f32 %v10905_v45, %v14401_v39  ;;  %vm14402_vm13 = vmmov %vm14386_vm3  ;;  %vm14403_vm3 = vcmp.le.f32.partialorder %v14319_v52, 16.0  ;;  %v14411_v45 = vld [vmem:[#allocation24_spill] sm:$0xff]  ;;  %v14414_v39 = vld [vmem:[#allocation198_spill] sm:$0xff]  ;;  %v4721_v22 = vadd.f32 %v4720_v44, %v4719_v60  ;;  %v14428_v44 = vunpack.c.h.bf16 %v14366_v5 }
 0x5a8   : > { %v4833_v54 = vsel %vm14402_vm13, %v4777_v35, 0.0  ;;  %vm12003_vm1 = vmand %vm14404_vm0, %vm14403_vm3  ;;  %v4780_v25 = vmul.f32 %v14419_v41, %v14418_v7  ;;  %vm14420_vm3 = vcmp.le.f32.partialorder %v14333_v57, 16.0  ;;  %vm14425_vm0 = vcmp.le.f32.partialorder %v10534_v6, 16.0  ;;  %v14431_v41 = vld [vmem:[#allocation199_spill] sm:$0xff] }
 0x5a9   : > { %vm12012_vm11 = vmand %vm11949_vm10, %vm14408_vm4  ;;  %v12061_v60 = vmul.f32 %v5423_v61, %v14428_v44  ;;  %v4834_v7 = vadd.f32 %v4833_v54, %v4832_v14  ;;  %vm14432_vm4 = vcmp.ge.f32.partialorder %v10553_v47, 1.0  ;;  %v14435_v54 = vunpack.c.h.bf16 %v13979_v3 }
 0x5aa   : > { %vm14413_vm13 = vmmov %vm14378_vm8  ;;  %vm14415_vm8 = vcmp.ge.f32.partialorder %v10548_v1, 1.0  ;;  %v5425_v38 = vsel %vm12012_vm11, 1.0, %v13987_v34  ;;  %v14445_v20 = vunpack.c.l.bf16 %v14411_v45 }
 0x5ab   : > { %v4722_v52 = vsel %vm14413_vm13, %v11977_v12, 0.0  ;;  %vm12029_vm10 = vmand %vm11797_vm15, %vm14415_vm8  ;;  %v4835_v35 = vsel %vm14413_vm13, %v4778_v0, 0.0  ;;  %vm14421_vm15 = vcmp.ge.f32.partialorder %v14333_v57, 1.0  ;;  %v14424_v12 = vld [vmem:[#allocation102_spill] sm:$0xff]  ;;  %14429 = vst [vmem:[#allocation155_spill] sm:$0xff] %v12061_v60  ;;  %v4781_v14 = vmul.f32 %v10981_v32, %v14435_v54  ;;  %v14440_v0 = vld [vmem:[#allocation103_spill] sm:$0xff] }
 0x5ac   : > { %vm12045_vm8 = vmand %vm14421_vm15, %vm14420_vm3  ;;  %v4723_v61 = vadd.f32 %v4722_v52, %v4721_v22  ;;  %vm14441_vm15 = vcmp.le.f32.partialorder %v10548_v1, 16.0  ;;  %v14444_v32 = vld [vmem:[#allocation47_spill] sm:$0xff]  ;;  %v12103_v52 = vmul.f32 %v5424_v42, %v14445_v20  ;;  %v4836_v22 = vadd.f32 %v4835_v35, %v4834_v7  ;;  %v14447_v54 = vld [vmem:[#allocation200_spill] sm:$0xff] }
 0x5ad   : > { %vm12054_vm7 = vmand %vm11987_vm5, %vm14425_vm0  ;;  %vm14448_vm0 = vcmp.ge.f32.partialorder %v10558_v49, 1.0  ;;  %v14451_v35 = vunpack.c.l.bf16 %v14008_v13  ;;  %v14452_v7 = vld [vmem:[#allocation112_spill] sm:$0xff]  ;;  %v14479_v3 = vunpack.c.l.bf16 %v14444_v32 }
 0x5ae   : > { %vm14430_vm3 = vmmov %vm14413_vm13  ;;  %vm14436_vm13 = vcmp.le.f32.partialorder %v14349_v53, 16.0  ;;  %v5426_v8 = vsel %vm12054_vm7, 1.0, %v13987_v34 }
 0x5af   : > { %v4724_v57 = vsel %vm14430_vm3, %v12019_v18, 0.0  ;;  %vm12071_vm5 = vmand %vm11837_vm2, %vm14432_vm4  ;;  %v4837_v44 = vsel %vm14430_vm3, %v4779_v46, 0.0  ;;  %vm14437_vm2 = vcmp.ge.f32.partialorder %v14349_v53, 1.0  ;;  %v4782_v20 = vmul.f32 %v14452_v7, %v14451_v35  ;;  %v14464_v7 = vld [vmem:[#allocation201_spill] sm:$0xff] }
 0x5b0   : > { %vm12087_vm4 = vmand %vm14437_vm2, %vm14436_vm13  ;;  %v4725_v42 = vadd.f32 %v4724_v57, %v4723_v61  ;;  %vm14459_vm2 = vcmp.le.f32.partialorder %v10553_v47, 16.0  ;;  %v14462_v57 = vunpack.c.h.bf16 %v14411_v45  ;;  %v4838_v35 = vadd.f32 %v4837_v44, %v4836_v22 }
 0x5b1   : > { %vm12096_vm11 = vmand %vm12029_vm10, %vm14441_vm15  ;;  %vm14465_vm15 = vcmp.ge.f32.partialorder %v14373_v37, 1.0  ;;  %v14469_v44 = vunpack.c.h.bf16 %v14008_v13 }
 0x5b2   : > { %vm14446_vm13 = vmmov %vm14430_vm3  ;;  %v12145_v61 = vmul.f32 %v5425_v38, %v14462_v57  ;;  %v5427_v6 = vsel %vm12096_vm11, 1.0, %v13987_v34 }
 0x5b3   : > { %v4726_v53 = vsel %vm14446_vm13, %v12061_v60, 0.0  ;;  %vm12113_vm10 = vmand %vm11883_vm6, %vm14448_vm0  ;;  %vm14455_vm6 = vcmp.ge.f32.partialorder %v14362_v19, 1.0  ;;  %v14458_v60 = vld [vmem:[#allocation104_spill] sm:$0xff]  ;;  %v4783_v22 = vmul.f32 %v11057_v21, %v14469_v44  ;;  %v14478_v21 = vld [vmem:[#allocation50_spill] sm:$0xff]  ;;  %v14483_v44 = vunpack.c.l.bf16 %v14036_v63 }
 0x5b4   : > { %vm14453_vm13 = vmmov %vm14430_vm3  ;;  %vm14454_vm3 = vcmp.le.f32.partialorder %v14362_v19, 16.0  ;;  %v4727_v38 = vadd.f32 %v4726_v53, %v4725_v42  ;;  %v12187_v53 = vmul.f32 %v5426_v8, %v14479_v3  ;;  %v14484_v3 = vld [vmem:[#allocation150_spill] sm:$0xff]  ;;  %v14509_v13 = vunpack.c.l.bf16 %v14478_v21 }
 0x5b5   : > { %v4839_v46 = vsel %vm14453_vm13, %v4780_v25, 0.0  ;;  %vm12129_vm0 = vmand %vm14455_vm6, %vm14454_vm3  ;;  %v14474_v25 = vld [vmem:[#allocation105_spill] sm:$0xff]  ;;  %vm14475_vm6 = vcmp.le.f32.partialorder %v10558_v49, 16.0 }
 0x5b6   : > { %vm12138_vm7 = vmand %vm12071_vm5, %vm14459_vm2  ;;  %vm14466_vm5 = vnez %v14372_v55  ;;  %vm4272_vm9 = vcmp.ge.f32.partialorder %v14474_v25, 1.0  ;;  %v4840_v42 = vadd.f32 %v4839_v46, %v4838_v35  ;;  %v14490_v35 = vld [vmem:[#allocation106_spill] sm:$0xff] }
 0x5b7   : > { %vm14463_vm3 = vmmov %vm14453_vm13  ;;  %vm14470_vm13 = vcmp.le.f32.partialorder %v14381_v15, 16.0  ;;  %v5428_v1 = vsel %vm12138_vm7, 1.0, %v13987_v34 }
 0x5b8   : > { %v4728_v19 = vsel %vm14463_vm3, %v12103_v52, 0.0  ;;  %vm12155_vm2 = vmand %vm14466_vm5, %vm14465_vm15  ;;  %v4841_v57 = vsel %vm14463_vm3, %v4781_v14, 0.0  ;;  %vm14471_vm15 = vcmp.ge.f32.partialorder %v14381_v15, 1.0  ;;  %v4784_v14 = vmul.f32 %v14484_v3, %v14483_v44 }
 0x5b9   : > { %vm12171_vm5 = vmand %vm14471_vm15, %vm14470_vm13  ;;  %v4729_v8 = vadd.f32 %v4728_v19, %v4727_v38  ;;  %vm14486_vm15 = vcmp.le.f32.partialorder %v14397_v17, 16.0  ;;  %v14494_v19 = vunpack.c.h.bf16 %v14444_v32  ;;  %v4842_v44 = vadd.f32 %v4841_v57, %v4840_v42  ;;  %v14504_v42 = vld [vmem:[#allocation107_spill] sm:$0xff] }
 0x5ba   : > { %vm12180_vm11 = vmand %vm12113_vm10, %vm14475_vm6  ;;  %vm14491_vm10 = vcmp.le.f32.partialorder %v14373_v37, 16.0  ;;  %v14498_v3 = vunpack.c.h.bf16 %v14036_v63 }
 0x5bb   : > { %vm14480_vm13 = vmmov %vm14463_vm3  ;;  %v12227_v38 = vmul.f32 %v5427_v6, %v14494_v19  ;;  %v5429_v47 = vsel %vm12180_vm11, 1.0, %v13987_v34 }
 0x5bc   : > { %v4730_v15 = vsel %vm14480_vm13, %v12145_v61, 0.0  ;;  %vm12195_vm3 = vmand %vm11961_vm14, %vm4267_vm12  ;;  %vm14487_vm14 = vcmp.ge.f32.partialorder %v14397_v17, 1.0  ;;  %v4785_v19 = vmul.f32 %v11133_v40, %v14498_v3  ;;  %v14508_v40 = vld [vmem:[#allocation91_spill] sm:$0xff]  ;;  %v14513_v3 = vunpack.c.l.bf16 %v14064_v31 }
 0x5bd   : > { %vm14485_vm6 = vmmov %vm14480_vm13  ;;  %v4731_v6 = vadd.f32 %v4730_v15, %v4729_v8  ;;  %vm14505_vm13 = vcmp.le.f32.partialorder %v14391_v33, 16.0  ;;  %v12267_v15 = vmul.f32 %v5428_v1, %v14509_v13  ;;  %v14514_v13 = vld [vmem:[#allocation113_spill] sm:$0xff]  ;;  %v14538_v63 = vunpack.c.l.bf16 %v14508_v40 }
 0x5be   : > { %v4843_v46 = vsel %vm14485_vm6, %v4782_v20, 0.0  ;;  %vm12211_vm12 = vmand %vm14487_vm14, %vm14486_vm15  ;;  %v13108_v20 = vunpack.c.h.bf16 %v14478_v21  ;;  %v4732_v17 = vsel %vm14485_vm6, %v12187_v53, 0.0  ;;  %vm14495_vm15 = vcmp.ge.f32.partialorder %v14407_v36, 1.0 }
 0x5bf   : > { %vm12220_vm7 = vmand %vm12155_vm2, %vm14491_vm10  ;;  %v4844_v8 = vadd.f32 %v4843_v46, %v4842_v44  ;;  %v4733_v1 = vadd.f32 %v4732_v17, %v4731_v6  ;;  %v14520_v44 = vld [vmem:[#allocation108_spill] sm:$0xff]  ;;  %vm14521_vm2 = vcmp.le.f32.partialorder %v14407_v36, 16.0 }
 0x5c0   : > { %vm12235_vm14 = vmand %vm12003_vm1, %vm14495_vm15  ;;  %vm14501_vm1 = vcmp.ge.f32.partialorder %v14414_v39, 1.0  ;;  %v5430_v49 = vsel %vm12220_vm7, 1.0, %v13987_v34  ;;  %v12307_v17 = vmul.f32 %v5429_v47, %v13108_v20 }
 0x5c1   : > { %vm14499_vm10 = vmmov %vm14485_vm6  ;;  %vm14500_vm6 = vcmp.le.f32.partialorder %v14414_v39, 16.0 }
 0x5c2   : > { %v4845_v57 = vsel %vm14499_vm10, %v4783_v22, 0.0  ;;  %vm12251_vm15 = vmand %vm14501_vm1, %vm14500_vm6  ;;  %v4734_v39 = vsel %vm14499_vm10, %v12227_v38, 0.0  ;;  %vm14510_vm6 = vcmp.ge.f32.partialorder %v14424_v12, 1.0  ;;  %v4786_v22 = vmul.f32 %v14514_v13, %v14513_v3 }
 0x5c3   : > { %vm12260_vm11 = vmand %vm12195_vm3, %vm14505_vm13  ;;  %v4846_v6 = vadd.f32 %v4845_v57, %v4844_v8  ;;  %v4735_v47 = vadd.f32 %v4734_v39, %v4733_v1  ;;  %v14527_v3 = vunpack.c.h.bf16 %v14064_v31  ;;  %v14533_v8 = vld [vmem:[#allocation148_spill] sm:$0xff]  ;;  %vm14534_vm3 = vcmp.le.f32.partialorder %v14424_v12, 16.0 }
 0x5c4   : > { %vm12275_vm1 = vmand %vm12045_vm8, %vm14510_vm6  ;;  %vm14517_vm8 = vcmp.ge.f32.partialorder %v14431_v41, 1.0  ;;  %v5431_v37 = vsel %vm12260_vm11, 1.0, %v13987_v34  ;;  %v12347_v39 = vmul.f32 %v5430_v49, %v14538_v63  ;;  %v14543_v63 = vld [vmem:[#allocation114_spill] sm:$0xff]  ;;  %v14565_v12 = vunpack.c.l.bf16 %v14120_v43 }
 0x5c5   : > { %vm14515_vm13 = vmmov %vm14499_vm10  ;;  %vm14516_vm10 = vcmp.le.f32.partialorder %v14431_v41, 16.0  ;;  %v4787_v13 = vmul.f32 %v11209_v56, %v14527_v3  ;;  %v14537_v56 = vld [vmem:[#allocation27_spill] sm:$0xff]  ;;  %v14542_v3 = vunpack.c.l.bf16 %v14092_v59 }
 0x5c6   : > { %v4847_v46 = vsel %vm14515_vm13, %v4784_v14, 0.0  ;;  %vm12291_vm6 = vmand %vm14517_vm8, %vm14516_vm10  ;;  %v13109_v14 = vunpack.c.h.bf16 %v14508_v40  ;;  %v4736_v41 = vsel %vm14515_vm13, %v12267_v15, 0.0  ;;  %vm14524_vm10 = vcmp.ge.f32.partialorder %v14440_v0, 1.0 }
 0x5c7   : > { %vm12300_vm7 = vmand %vm12235_vm14, %vm14521_vm2  ;;  %v4848_v1 = vadd.f32 %v4847_v46, %v4846_v6  ;;  %v4737_v49 = vadd.f32 %v4736_v41, %v4735_v47  ;;  %v4788_v20 = vmul.f32 %v14543_v63, %v14542_v3  ;;  %v14549_v6 = vld [vmem:[#allocation109_spill] sm:$0xff]  ;;  %vm14550_vm14 = vcmp.le.f32.partialorder %v14440_v0, 16.0 }
 0x5c8   : > { %vm12315_vm8 = vmand %vm12087_vm4, %vm14524_vm10  ;;  %vm14530_vm4 = vcmp.ge.f32.partialorder %v14447_v54, 1.0  ;;  %v5432_v33 = vsel %vm12300_vm7, 1.0, %v13987_v34  ;;  %v12387_v41 = vmul.f32 %v5431_v37, %v13109_v14  ;;  %v14555_v3 = vunpack.c.h.bf16 %v14092_v59 }
 0x5c9   : > { %vm14528_vm2 = vmmov %vm14515_vm13  ;;  %vm14529_vm13 = vcmp.le.f32.partialorder %v14447_v54, 16.0 }
 0x5ca   : > { %v4849_v57 = vsel %vm14528_vm2, %v4785_v19, 0.0  ;;  %vm12331_vm10 = vmand %vm14530_vm4, %vm14529_vm13  ;;  %v4592_v19 = vunpack.c.l.bf16 %v14537_v56  ;;  %v4738_v54 = vsel %vm14528_vm2, %v12307_v17, 0.0  ;;  %vm14539_vm13 = vcmp.ge.f32.partialorder %v14458_v60, 1.0 }
 0x5cb   : > { %vm12340_vm11 = vmand %vm12275_vm1, %vm14534_vm3  ;;  %vm4277_vm1 = vcmp.ge.f32.partialorder %v14549_v6, 1.0  ;;  %v4850_v47 = vadd.f32 %v4849_v57, %v4848_v1  ;;  %v4739_v37 = vadd.f32 %v4738_v54, %v4737_v49  ;;  %v4789_v63 = vmul.f32 %v11285_v4, %v14555_v3  ;;  %v14560_v1 = vld [vmem:[#allocation52_spill] sm:$0xff] }
 0x5cc   : > { %vm12355_vm4 = vmand %vm12129_vm0, %vm14539_vm13  ;;  %vm14546_vm0 = vcmp.ge.f32.partialorder %v14464_v7, 1.0  ;;  %v5433_v36 = vsel %vm12340_vm11, 1.0, %v13987_v34  ;;  %v4594_v14 = vunpack.c.l.bf16 %v14560_v1  ;;  %v12418_v31 = vmul.f32 %v5432_v33, %v4592_v19  ;;  %v14566_v33 = vld [vmem:[#allocation151_spill] sm:$0xff] }
 0x5cd   : > { %vm14544_vm3 = vmmov %vm14528_vm2  ;;  %vm14545_vm2 = vcmp.le.f32.partialorder %v14464_v7, 16.0  ;;  %vm14562_vm11 = vcmp.ge.f32.partialorder %v14490_v35, 1.0  ;;  %v4790_v49 = vmul.f32 %v14566_v33, %v14565_v12 }
 0x5ce   : > { %v4851_v46 = vsel %vm14544_vm3, %v4786_v22, 0.0  ;;  %vm12371_vm13 = vmand %vm14546_vm0, %vm14545_vm2  ;;  %v4593_v22 = vunpack.c.h.bf16 %v14537_v56  ;;  %v4740_v7 = vsel %vm14544_vm3, %v12347_v39, 0.0  ;;  %vm14557_vm0 = vcmp.le.f32.partialorder %v14458_v60, 16.0 }
 0x5cf   : > { %vm12380_vm7 = vmand %vm12315_vm8, %vm14550_vm14  ;;  %vm4384_vm8 = vcmp.le.f32.partialorder %v14533_v8, 16.0  ;;  %v4852_v4 = vadd.f32 %v4851_v46, %v4850_v47  ;;  %v4741_v54 = vadd.f32 %v4740_v7, %v4739_v37  ;;  %v4595_v47 = vunpack.c.h.bf16 %v14560_v1 }
 0x5d0   : > { %vm12395_vm2 = vmand %vm12171_vm5, %vm4272_vm9  ;;  %v12449_v24 = vmul.f32 %v5433_v36, %v4593_v22  ;;  %v14575_v36 = vunpack.c.h.bf16 %v14120_v43  ;;  %v14585_v60 = vunpack.c.l.bf16 %v14148_v16  ;;  %v14675_v1 = vunpack.c.l.bf16 %v14598_v27 }
 0x5d1   : > { %vm14556_vm14 = vmmov %vm14544_vm3 }
 0x5d2   : > { %v4853_v57 = vsel %vm14556_vm14, %v4787_v13, 0.0  ;;  %vm12411_vm9 = vmand %vm12355_vm4, %vm14557_vm0  ;;  %vm4385_vm4 = vcmp.le.f32.partialorder %v14549_v6, 16.0  ;;  %v5434_v13 = vsel %vm12380_vm7, 1.0, %v13987_v34  ;;  %vm14568_vm0 = vcmp.le.f32.partialorder %v14474_v25, 16.0  ;;  %v14595_v25 = vld [vmem:[#allocation115_spill] sm:$0xff] }
 0x5d3   : > { %vm14561_vm5 = vmmov %vm14544_vm3  ;;  %v4854_v37 = vadd.f32 %v4853_v57, %v4852_v4  ;;  %v4791_v3 = vmul.f32 %v11361_v58, %v14575_v36  ;;  %v14580_v57 = vld [vmem:[#allocation57_spill] sm:$0xff]  ;;  %v12479_v55 = vmul.f32 %v5434_v13, %v4594_v14  ;;  %v4792_v13 = vmul.f32 %v11399_v26, %v14585_v60 }
 0x5d4   : > { %v4742_v59 = vsel %vm14561_vm5, %v12387_v41, 0.0  ;;  %vm12426_vm3 = vmand %vm12211_vm12, %vm14562_vm11  ;;  %v4596_v4 = vunpack.c.l.bf16 %v14580_v57  ;;  %v13111_v33 = vunpack.c.h.bf16 %v14580_v57  ;;  %v13110_v36 = vunpack.c.l.bf16 %v14598_v27 }
 0x5d5   : > { %vm14567_vm14 = vmmov %vm14561_vm5  ;;  %v4743_v0 = vadd.f32 %v4742_v59, %v4741_v54  ;;  %v13112_v60 = vunpack.c.h.bf16 %v14598_v27 }
 0x5d6   : > { %v4855_v46 = vsel %vm14567_vm14, %v4788_v20, 0.0  ;;  %vm12442_vm12 = vmand %vm12395_vm2, %vm14568_vm0  ;;  %v5435_v20 = vsel %vm12411_vm9, 1.0, %v13987_v34  ;;  %vm14577_vm14 = vcmp.le.f32.partialorder %v14490_v35, 16.0  ;;  %vm14582_vm9 = vcmp.ge.f32.partialorder %v14520_v44, 1.0  ;;  %v14602_v35 = vld [vmem:[#allocation116_spill] sm:$0xff] }
 0x5d7   : > { %vm14571_vm7 = vmmov %vm14561_vm5  ;;  %vm14572_vm5 = vcmp.ge.f32.partialorder %v14504_v42, 1.0  ;;  %v4856_v58 = vadd.f32 %v4855_v46, %v4854_v37  ;;  %v12509_v46 = vmul.f32 %v5435_v20, %v4595_v47  ;;  %v14594_v37 = vunpack.c.h.bf16 %v14148_v16 }
 0x5d8   : > { %v4744_v7 = vsel %vm14571_vm7, %v12418_v31, 0.0  ;;  %vm12457_vm11 = vmand %vm12251_vm15, %vm14572_vm5  ;;  %vm14587_vm5 = vcmp.le.f32.partialorder %v14504_v42, 16.0 }
 0x5d9   : > { %vm14576_vm2 = vmmov %vm14571_vm7  ;;  %v4745_v59 = vadd.f32 %v4744_v7, %v4743_v0  ;;  %v4793_v20 = vmul.f32 %v14595_v25, %v14594_v37  ;;  %v14608_v37 = vld [vmem:[#allocation94_spill] sm:$0xff] }
 0x5da   : > { %v4857_v12 = vsel %vm14576_vm2, %v4789_v63, 0.0  ;;  %vm12472_vm0 = vmand %vm12426_vm3, %vm14577_vm14  ;;  %v5436_v63 = vsel %vm12442_vm12, 1.0, %v13987_v34  ;;  %vm14591_vm12 = vcmp.ge.f32.partialorder %v14533_v8, 1.0  ;;  %v4600_v25 = vunpack.c.l.bf16 %v14608_v37 }
 0x5db   : > { %vm14581_vm15 = vmmov %vm14576_vm2  ;;  %v4858_v26 = vadd.f32 %v4857_v12, %v4856_v58  ;;  %v12535_v12 = vmul.f32 %v5436_v63, %v4596_v4 }
 0x5dc   : > { %v4746_v43 = vsel %vm14581_vm15, %v12449_v24, 0.0  ;;  %vm12487_vm7 = vmand %vm12291_vm6, %vm14582_vm9  ;;  %vm14597_vm15 = vcmp.le.f32.partialorder %v14520_v44, 16.0 }
 0x5dd   : > { %vm14586_vm3 = vmmov %vm14576_vm2  ;;  %v4747_v7 = vadd.f32 %v4746_v43, %v4745_v59  ;;  %v4822_v56 = vmul.f32 %v12535_v12, %v4596_v4 }
 0x5de   : > { %v4859_v54 = vsel %vm14586_vm3, %v4790_v49, 0.0  ;;  %vm12502_vm2 = vmand %vm12457_vm11, %vm14587_vm5  ;;  %v5437_v49 = vsel %vm12472_vm0, 1.0, %v13987_v34 }
 0x5df   : > { %vm14590_vm6 = vmmov %vm14586_vm3  ;;  %v4860_v43 = vadd.f32 %v4859_v54, %v4858_v26  ;;  %v5438_v16 = vsel %vm12502_vm2, 1.0, %v13987_v34  ;;  %v12557_v10 = vmul.f32 %v5437_v49, %v13111_v33 }
 0x5e0   : > { %v4748_v48 = vsel %vm14590_vm6, %v12479_v55, 0.0  ;;  %vm12517_vm14 = vmand %vm12331_vm10, %vm14591_vm12  ;;  %v12571_v49 = vmul.f32 %v5438_v16, %v13110_v36 }
 0x5e1   : > { %vm14596_vm11 = vmmov %vm14586_vm3  ;;  %v4749_v44 = vadd.f32 %v4748_v48, %v4747_v7  ;;  %v14606_v7 = vld [vmem:[#allocation152_spill] sm:$0xff] }
 0x5e2   : > { %v4861_v0 = vsel %vm14596_vm11, %v4791_v3, 0.0  ;;  %vm4437_vm9 = vmand %vm12487_vm7, %vm14597_vm15  ;;  %v14600_v3 = vld [vmem:[#allocation82_spill] sm:$0xff] }
 0x5e3   : > { %vm14599_vm10 = vmmov %vm14586_vm3  ;;  %v14601_v58 = vunpack.c.l.bf16 %v14600_v3  ;;  %v4862_v9 = vadd.f32 %v4861_v0, %v4860_v43  ;;  %v5439_v48 = vsel %vm4437_vm9, 1.0, %v13987_v34 }
 0x5e4   : > { %v4750_v62 = vsel %vm14599_vm10, %v12509_v46, 0.0  ;;  %vm4331_vm0 = vmand %vm12371_vm13, %vm4277_vm1 }
 0x5e5   : > { %v4794_v59 = vmul.f32 %v14602_v35, %v14601_v58  ;;  %vm14603_vm7 = vmmov %vm14586_vm3  ;;  %v4751_v26 = vadd.f32 %v4750_v62, %v4749_v44  ;;  %v14612_v35 = vld [vmem:[#allocation117_spill] sm:$0xff] }
 0x5e6   : > { %v4863_v63 = vsel %vm14603_vm7, %v4792_v13, 0.0  ;;  %vm4438_vm3 = vmand %vm12517_vm14, %vm4384_vm8  ;;  %v14605_v13 = vunpack.c.h.bf16 %v14600_v3  ;;  %v14610_v3 = vld [vmem:[#allocation20_spill] sm:$0xff] }
 0x5e7   : > { %vm14604_vm1 = vmmov %vm14590_vm6  ;;  %v4864_v43 = vadd.f32 %v4863_v63, %v4862_v9  ;;  %v5440_v62 = vsel %vm4438_vm3, 1.0, %v13987_v34  ;;  %v14611_v58 = vunpack.c.l.bf16 %v14610_v3 }
 0x5e8   : > { %v4752_v54 = vsel %vm14604_vm1, %v12535_v12, 0.0  ;;  %v4795_v8 = vmul.f32 %v14606_v7, %v14605_v13  ;;  %vm14607_vm13 = vmmov %vm14604_vm1  ;;  %v4601_v13 = vunpack.c.h.bf16 %v14608_v37  ;;  %v12583_v7 = vmul.f32 %v5439_v48, %v13112_v60 }
 0x5e9   : > { %v4865_v42 = vsel %vm14607_vm13, %v4793_v20, 0.0  ;;  %vm4439_vm8 = vmand %vm4331_vm0, %vm4385_vm4  ;;  %v4753_v44 = vadd.f32 %v4752_v54, %v4751_v26  ;;  %v4796_v20 = vmul.f32 %v14612_v35, %v14611_v58  ;;  %v14615_v54 = vunpack.c.h.bf16 %v14610_v3  ;;  %v14616_v26 = vld [vmem:[#allocation118_spill] sm:$0xff] }
 0x5ea   : > { %vm14609_vm5 = vmmov %vm14604_vm1  ;;  %v4866_v36 = vadd.f32 %v4865_v42, %v4864_v43  ;;  %v5441_v63 = vsel %vm4439_vm8, 1.0, %v13987_v34  ;;  %v14619_v42 = vunpack.c.l.bf16 %v14232_v28  ;;  %v14622_v3 = vunpack.c.h.bf16 %v14232_v28 }
 0x5eb   : > { %v4754_v0 = vsel %vm14609_vm5, %v12557_v10, 0.0  ;;  %vm14613_vm2 = vmmov %vm14604_vm1  ;;  %v4797_v33 = vmul.f32 %v14616_v26, %v14615_v54  ;;  %v12604_v43 = vmul.f32 %v5441_v63, %v4601_v13  ;;  %v14626_v63 = vld [vmem:[#allocation153_spill] sm:$0xff] }
 0x5ec   : > { %v4867_v6 = vsel %vm14613_vm2, %v4794_v59, 0.0  ;;  %vm14614_vm4 = vmmov %vm14604_vm1  ;;  %v4755_v9 = vadd.f32 %v4754_v0, %v4753_v44  ;;  %v12594_v59 = vmul.f32 %v5440_v62, %v4600_v25  ;;  %v4798_v34 = vmul.f32 %v11626_v29, %v14619_v42 }
 0x5ed   : > { %v4756_v16 = vsel %vm14614_vm4, %v12571_v49, 0.0  ;;  %vm14617_vm6 = vmmov %vm14604_vm1  ;;  %v4868_v35 = vadd.f32 %v4867_v6, %v4866_v36  ;;  %v4799_v36 = vmul.f32 %v11656_v30, %v14622_v3  ;;  %vm4771_vm2 = vcmask 24576  }
 0x5ee   : > { %v4869_v58 = vsel %vm14617_vm6, %v4795_v8, 0.0  ;;  %vm14618_vm12 = vmmov %vm14604_vm1  ;;  %v4757_v60 = vadd.f32 %v4756_v16, %v4755_v9  ;;  %v14625_v9 = vunpack.c.l.bf16 %v14263_v2 }
 0x5ef   : > { %v4758_v48 = vsel %vm14618_vm12, %v12583_v7, 0.0  ;;  %vm14620_vm14 = vmmov %vm14604_vm1  ;;  %v4870_v62 = vadd.f32 %v4869_v58, %v4868_v35  ;;  %v14630_v35 = vld [vmem:[#allocation23_spill] sm:$0xff] }
 0x5f0   : > { %v4871_v0 = vsel %vm14620_vm14, %v4796_v20, 0.0  ;;  %vm14621_vm11 = vmmov %vm14604_vm1  ;;  %v4759_v44 = vadd.f32 %v4758_v48, %v4757_v60  ;;  %v4800_v54 = vmul.f32 %v14626_v63, %v14625_v9  ;;  %v14628_v60 = vunpack.c.h.bf16 %v14263_v2 }
 0x5f1   : > { %v4760_v8 = vsel %vm14621_vm11, %v12594_v59, 0.0  ;;  %vm14623_vm15 = vmmov %vm14604_vm1  ;;  %v4872_v16 = vadd.f32 %v4871_v0, %v4870_v62  ;;  %v14631_v3 = vunpack.c.l.bf16 %v14630_v35  ;;  %v14632_v0 = vld [vmem:[#allocation119_spill] sm:$0xff] }
 0x5f2   : > { %v4873_v6 = vsel %vm14623_vm15, %v4797_v33, 0.0  ;;  %vm14624_vm9 = vmmov %vm14604_vm1  ;;  %v4761_v20 = vadd.f32 %v4760_v8, %v4759_v44  ;;  %v4801_v28 = vmul.f32 %v11734_v50, %v14628_v60 }
 0x5f3   : > { %v4762_v29 = vsel %vm14624_vm9, %v12604_v43, 0.0  ;;  %vm14627_vm10 = vmmov %vm14604_vm1  ;;  %v4874_v42 = vadd.f32 %v4873_v6, %v4872_v16  ;;  %v4802_v8 = vmul.f32 %v14632_v0, %v14631_v3  ;;  %v14635_v6 = vld [vmem:[#allocation120_spill] sm:$0xff] }
 0x5f4   : > { %v4875_v26 = vsel %vm14627_vm10, %v4798_v34, 0.0  ;;  %v4763_v58 = vadd.f32 %v4762_v29, %v4761_v20  ;;  %vm14629_vm0 = vmmov %vm14604_vm1  ;;  %v14634_v34 = vunpack.c.h.bf16 %v14630_v35  ;;  %v14638_v20 = vld [vmem:[#allocation154_spill] sm:$0xff] }
 0x5f5   : > { %v4877_v30 = vsel %vm14629_vm0, %v4799_v36, 0.0  ;;  %v4876_v33 = vadd.f32 %v4875_v26, %v4874_v42  ;;  %vm14633_vm7 = vmmov %vm14629_vm0  ;;  %v14637_v36 = vunpack.c.l.bf16 %v14315_v23 }
 0x5f6   : > { %v4764_v48 = vrot.slane %v4763_v58, 4  ;;  %v4879_v62 = vsel %vm14633_vm7, %v4800_v54, 0.0  ;;  %v4803_v29 = vmul.f32 %v14635_v6, %v14634_v34  ;;  %vm14636_vm3 = vmmov %vm14629_vm0  ;;  %v14640_v54 = vunpack.c.h.bf16 %v14315_v23  ;;  %v14646_v34 = vld [vmem:[#allocation122_spill] sm:$0xff] }
 0x5f7   : > { %v4878_v44 = vadd.f32 %v4877_v30, %v4876_v33  ;;  %v4881_v2 = vsel %vm14636_vm3, %v4801_v28, 0.0  ;;  %v4804_v63 = vmul.f32 %v14638_v20, %v14637_v36  ;;  %vm14639_vm1 = vmmov %vm14629_vm0  ;;  %v14641_v30 = vld [vmem:[#allocation121_spill] sm:$0xff]  ;;  %v14643_v28 = vunpack.c.l.bf16 %v14344_v51 }
 0x5f8   : > { %v4765_v9 = vadd.f32 %v4764_v48, %v4763_v58  ;;  %v4883_v26 = vsel %vm14639_vm1, %v4802_v8, 0.0  ;;  %v4805_v58 = vmul.f32 %v14641_v30, %v14640_v54  ;;  %vm14642_vm13 = vmmov %vm14629_vm0  ;;  %v14650_v20 = vunpack.c.h.bf16 %v14366_v5 }
 0x5f9   : > { %v4880_v50 = vadd.f32 %v4879_v62, %v4878_v44  ;;  %v4885_v33 = vsel %vm14642_vm13, %v4803_v29, 0.0  ;;  %v4806_v3 = vmul.f32 %v11936_v11, %v14643_v28  ;;  %vm14644_vm8 = vmmov %vm14629_vm0  ;;  %v4656_v62 = vld [vmem:[%s7265_s26] sm:$0x1] }
 0x5fa   : > { %v4766_v16 = vrot.slane %v4765_v9, 2  ;;  %v4887_v0 = vsel %vm14644_vm8, %v4804_v63, 0.0  ;;  %vm14647_vm5 = vmmov %vm14629_vm0  ;;  %v14651_v63 = vld [vmem:[#allocation155_spill] sm:$0xff] }
 0x5fb   : > { %v4882_v42 = vadd.f32 %v4881_v2, %v4880_v50  ;;  %v4889_v6 = vsel %vm14647_vm5, %v4805_v58, 0.0  ;;  %v14648_v50 = vunpack.c.l.bf16 %v14366_v5  ;;  %vm14649_vm4 = vmmov %vm14629_vm0  ;;  %v14657_v5 = vunpack.c.l.bf16 %v14444_v32 }
 0x5fc   : > { %v4767_v60 = vadd.f32 %v4766_v16, %v4765_v9  ;;  %v14645_v9 = vunpack.c.h.bf16 %v14344_v51  ;;  %v4891_v11 = vsel %vm14649_vm4, %v4806_v3, 0.0  ;;  %v4809_v51 = vmul.f32 %v14651_v63, %v14650_v20  ;;  %vm14652_vm6 = vmmov %vm14629_vm0 }
 0x5fd   : > { %v4884_v48 = vadd.f32 %v4883_v26, %v4882_v42  ;;  %v4808_v16 = vmul.f32 %v12019_v18, %v14648_v50  ;;  %vm14654_vm12 = vmmov %vm14629_vm0  ;;  %v14655_v18 = vunpack.c.h.bf16 %v14411_v45  ;;  %v4812_v28 = vmul.f32 %v12187_v53, %v14657_v5 }
 0x5fe   : > { %v4768_v35 = vrot.slane %v4767_v60, 1  ;;  %v4807_v23 = vmul.f32 %v14646_v34, %v14645_v9  ;;  %vm14656_vm14 = vmmov %vm14629_vm0 }
 0x5ff   : > { %v4886_v44 = vadd.f32 %v4885_v33, %v4884_v48  ;;  %v4895_v30 = vsel %vm14654_vm12, %v4808_v16, 0.0  ;;  %v4811_v33 = vmul.f32 %v12145_v61, %v14655_v18  ;;  %v4897_v48 = vsel %vm14656_vm14, %v4809_v51, 0.0  ;;  %vm14658_vm11 = vmmov %vm14629_vm0 }
 0x600   : > { %v4769_v8 = vadd.f32 %v4768_v35, %v4767_v60  ;;  %v4893_v26 = vsel %vm14652_vm6, %v4807_v23, 0.0  ;;  %v14653_v60 = vunpack.c.l.bf16 %v14411_v45  ;;  %vm14660_vm15 = vmmov %vm14629_vm0  ;;  %v14661_v45 = vunpack.c.l.bf16 %v14478_v21 }
 0x601   : > { %v4888_v29 = vadd.f32 %v4887_v0, %v4886_v44  ;;  %v4901_v44 = vsel %vm14660_vm15, %v4811_v33, 0.0  ;;  %vm14662_vm9 = vmmov %vm14629_vm0  ;;  %v14663_v23 = vunpack.c.h.bf16 %v14478_v21  ;;  %v14666_v16 = vunpack.c.h.bf16 %v14508_v40 }
 0x602   : > { %v4770_v2 = vadd.f32 %v4769_v8, %v4656_v62  ;;  %v4810_v54 = vmul.f32 %v12103_v52, %v14653_v60  ;;  %v14659_v62 = vunpack.c.h.bf16 %v14444_v32  ;;  %v4814_v61 = vmul.f32 %v12267_v15, %v14661_v45  ;;  %vm14664_vm10 = vmmov %vm14629_vm0 }
 0x603   : > { %v4890_v36 = vadd.f32 %v4889_v6, %v4888_v29  ;;  %v4903_v9 = vsel %vm14662_vm9, %v4812_v28, 0.0  ;;  %v4815_v53 = vmul.f32 %v12307_v17, %v14663_v23  ;;  %v14665_v32 = vunpack.c.l.bf16 %v14508_v40  ;;  %vm14667_vm7 = vmmov %vm14629_vm0 }
 0x604   : > { %4772 = vst.msk [vmem:[%s7265_s26] sm:$0x1] %vm4771_vm2, %v4770_v2  ;;  %v4899_v3 = vsel %vm14658_vm11, %v4810_v54, 0.0  ;;  %v4813_v52 = vmul.f32 %v12227_v38, %v14659_v62  ;;  %v4907_v2 = vsel %vm14629_vm0, %v4814_v61, 0.0  ;;  %v4817_v15 = vmul.f32 %v12387_v41, %v14666_v16  ;;  %vm14668_vm3 = vmmov %vm14629_vm0 }
 0x605   : > { %v4892_v42 = vadd.f32 %v4891_v11, %v4890_v36  ;;  %v4816_v38 = vmul.f32 %v12347_v39, %v14665_v32  ;;  %v4909_v11 = vsel %vm14667_vm7, %v4815_v53, 0.0  ;;  %v4818_v21 = vmul.f32 %v12418_v31, %v4592_v19  ;;  %vm14669_vm1 = vmmov %vm14629_vm0 }
 0x606   : > { %v4905_v6 = vsel %vm14664_vm10, %v4813_v52, 0.0  ;;  %v4819_v39 = vmul.f32 %v12449_v24, %v4593_v22  ;;  %v4913_v63 = vsel %vm14669_vm1, %v4817_v15, 0.0  ;;  %v4820_v40 = vmul.f32 %v12479_v55, %v4594_v14  ;;  %vm14670_vm13 = vmmov %vm14629_vm0 }
 0x607   : > { %v4894_v58 = vadd.f32 %v4893_v26, %v4892_v42  ;;  %v4911_v17 = vsel %vm14668_vm3, %v4816_v38, 0.0  ;;  %v4915_v41 = vsel %vm14670_vm13, %v4818_v21, 0.0  ;;  %v4821_v19 = vmul.f32 %v12509_v46, %v4595_v47  ;;  %vm14671_vm8 = vmmov %vm14629_vm0 }
 0x608   : > { %v4917_v31 = vsel %vm14671_vm8, %v4819_v39, 0.0  ;;  %vm14672_vm5 = vmmov %vm14629_vm0  ;;  %v14673_v60 = vunpack.c.h.bf16 %v14580_v57  ;;  %v4824_v47 = vmul.f32 %v12571_v49, %v14675_v1  ;;  %v4826_v57 = vmul.f32 %v12594_v59, %v4600_v25 }
 0x609   : > { %v4896_v35 = vadd.f32 %v4895_v30, %v4894_v58  ;;  %v4919_v22 = vsel %vm14672_vm5, %v4820_v40, 0.0  ;;  %vm14674_vm4 = vmmov %vm14629_vm0  ;;  %v14677_v58 = vunpack.c.h.bf16 %v14598_v27  ;;  %v4827_v49 = vmul.f32 %v12604_v43, %v4601_v13 }
 0x60a   : > { %v4823_v14 = vmul.f32 %v12557_v10, %v14673_v60  ;;  %v4921_v55 = vsel %vm14674_vm4, %v4821_v19, 0.0  ;;  %vm14676_vm6 = vmmov %vm14629_vm0 }
 0x60b   : > { %v4898_v0 = vadd.f32 %v4897_v48, %v4896_v35  ;;  %v4923_v46 = vsel %vm14676_vm6, %v4822_v56, 0.0  ;;  %v4825_v4 = vmul.f32 %v12583_v7, %v14677_v58  ;;  %vm14678_vm12 = vmmov %vm14629_vm0 }
 0x60c   : > { %v4925_v12 = vsel %vm14678_vm12, %v4823_v14, 0.0  ;;  %vm14679_vm14 = vmmov %vm14629_vm0 }
 0x60d   : > { %v4900_v8 = vadd.f32 %v4899_v3, %v4898_v0  ;;  %v4927_v10 = vsel %vm14679_vm14, %v4824_v47, 0.0  ;;  %vm14680_vm11 = vmmov %vm14629_vm0 }
 0x60e   : > { %v4929_v27 = vsel %vm14680_vm11, %v4825_v4, 0.0  ;;  %vm14681_vm15 = vmmov %vm14629_vm0 }
 0x60f   : > { %v4902_v34 = vadd.f32 %v4901_v44, %v4900_v8  ;;  %v4931_v7 = vsel %vm14681_vm15, %v4826_v57, 0.0  ;;  %vm14682_vm9 = vmmov %vm14629_vm0  ;;  %v4773_v44 = vld [vmem:[%s7270_s29] sm:$0x1] }
 0x610   : > { %v4933_v5 = vsel %vm14682_vm9, %v4827_v49, 0.0 }
 0x611   : > { %v4904_v29 = vadd.f32 %v4903_v9, %v4902_v34 }
 0x613   : > { %v4906_v50 = vadd.f32 %v4905_v6, %v4904_v29 }
 0x615   : > { %v4908_v36 = vadd.f32 %v4907_v2, %v4906_v50 }
 0x617   : > { %v4910_v20 = vadd.f32 %v4909_v11, %v4908_v36 }
 0x619   : > { %v4912_v51 = vadd.f32 %v4911_v17, %v4910_v20 }
 0x61b   : > { %v4914_v26 = vadd.f32 %v4913_v63, %v4912_v51 }
 0x61d   : > { %v4916_v42 = vadd.f32 %v4915_v41, %v4914_v26 }
 0x61f   : > { %v4918_v24 = vadd.f32 %v4917_v31, %v4916_v42 }
 0x621   : > { %v4920_v54 = vadd.f32 %v4919_v22, %v4918_v24 }
 0x623   : > { %v4922_v30 = vadd.f32 %v4921_v55, %v4920_v54 }
 0x625   : > { %v4924_v18 = vadd.f32 %v4923_v46, %v4922_v30 }
 0x627   : > { %v4926_v33 = vadd.f32 %v4925_v12, %v4924_v18 }
 0x629   : > { %v4928_v48 = vadd.f32 %v4927_v10, %v4926_v33 }
 0x62b   : > { %v4930_v35 = vadd.f32 %v4929_v27, %v4928_v48 }
 0x62d   : > { %v4932_v28 = vadd.f32 %v4931_v7, %v4930_v35 }
 0x62f   : > { %v4934_v3 = vadd.f32 %v4933_v5, %v4932_v28 }
 0x631   : > { %v4935_v25 = vrot.slane %v4934_v3, 4 }
 0x633   : > { %v4936_v59 = vadd.f32 %v4935_v25, %v4934_v3 }
 0x635   : > { %v4937_v0 = vrot.slane %v4936_v59, 2 }
 0x637   : > { %v4938_v62 = vadd.f32 %v4937_v0, %v4936_v59 }
 0x639   : > { %v4939_v52 = vrot.slane %v4938_v62, 1 }
 0x63b   : > { %v4940_v37 = vadd.f32 %v4939_v52, %v4938_v62 }
 0x63d   : > { %v4941_v8 = vadd.f32 %v4940_v37, %v4773_v44 }
 0x63f   : > { %4942 = vst.msk [vmem:[%s7270_s29] sm:$0x1] %vm4771_vm2, %v4941_v8 }
 0x640 PF: > { %s15_s17 = sadd.s32 1, %s7197_s17   ;;  %s14683_s15 = smov %s7193_s16 }
 0x641   : > { %p12_p7 = scmp.ge.s32.totalorder %s15_s17, 4   ;;  %s14684_s16 = smov %s14686_s18 }
 0x643   :  { %14 = sbr.rel (!%p12_p7) target bundleno = 2 (0x2), region = 98 }

</bundles_post_ra>
